<compile_context>
chip_gen: v7x
topology: tpu7x:2x2x1
jax: 0.10.0
libtpu: 0.0.40
codegen_flags: <defaults>
</compile_context>

<pallas_src>
import math
import jax
import jax.numpy as jnp
from jax.experimental import pallas as pl
from jax.experimental.pallas import tpu as pltpu

LANE = 128


def _round_up(x, m):
    return (x + m - 1) // m * m


# ------------------------------ Pallas kernel ------------------------------- #

def _lstm_cell(gates, c_prev, Hp):
    """PyTorch gate order [i, f, g, o]; gates: (Bb, 4Hp) f32."""
    i_g = jax.nn.sigmoid(gates[:, 0 * Hp:1 * Hp])
    f_g = jax.nn.sigmoid(gates[:, 1 * Hp:2 * Hp])
    g_g = jnp.tanh(gates[:, 2 * Hp:3 * Hp])
    o_g = jax.nn.sigmoid(gates[:, 3 * Hp:4 * Hp])
    c_new = f_g * c_prev + i_g * g_g
    h_new = o_g * jnp.tanh(c_new)
    return h_new, c_new


def _lstm_fc_kernel(len_ref, x_ref, wih0_ref, b0_ref, whh0_ref,
                    wcat1_ref, b1_ref, wcat2_ref, b2_ref, fcw_ref, fcb_ref,
                    out_ref,
                    gx_ref, h2s_ref,
                    h0_ref, c0_ref, h1_ref, c1_ref, h2_ref, c2_ref):
    """Fused input-projection + 3-layer LSTM recurrence + FC head.

    Grid = (batch_blocks, Tp // Tc).  Per grid step: one (Bb, Tc) chunk.
    State refs h*/c* (Bb, Hp) f32 persist across the time ("arbitrary") axis.
    """
    bblk = pl.program_id(0)
    tblk = pl.program_id(1)
    Bb, Tc, _ = x_ref.shape
    Hp = h0_ref.shape[-1]

    # Zero the recurrent state at the start of each batch block's time sweep.
    @pl.when(tblk == 0)
    def _():
        for r in (h0_ref, c0_ref, h1_ref, c1_ref, h2_ref, c2_ref):
            r[...] = jnp.zeros(r.shape, r.dtype)

    # Chunk-level (time-parallel) layer-0 input projection, off the serial
    # path:  gx[b, t] = x[b, t] @ W_ih0^T + (b_ih0 + b_hh0).
    for bi in range(Bb):
        gx_ref[bi] = (jnp.dot(x_ref[bi].astype(jnp.bfloat16), wih0_ref[...],
                              preferred_element_type=jnp.float32)
                      + b0_ref[...])

    # Sequence lengths for this batch block (packed-sequence masking).
    if Bb == len_ref.shape[0]:
        lengths = len_ref[...]                       # (Bb, 1) int32
    else:
        lengths = len_ref[pl.ds(bblk * Bb, Bb), :]
    t_base = tblk * Tc

    # Layer-time skewed (wavefront) recurrence.  At local step tt:
    #   layer0 -> t_base+tt, layer1 -> t_base+tt-1, layer2 -> t_base+tt-2.
    # The three dots only use states read at the top of the step, so they are
    # independent.  Static Python loop => fill/drain gating is free; weights
    # are re-read from their refs next to each dot (no long live ranges).
    for tt in range(Tc + 2):
        h0p = h0_ref[...]
        h1p = h1_ref[...]
        h2p = h2_ref[...]

        if tt < Tc:                                  # layer 0 @ t_base + tt
            c0p = c0_ref[...]
            g0 = gx_ref[:, tt, :] + jnp.dot(
                h0p.astype(jnp.bfloat16), whh0_ref[...],
                preferred_element_type=jnp.float32)
            h0n, c0n = _lstm_cell(g0, c0p, Hp)
            v0 = (t_base + tt) < lengths
            h0_ref[...] = jnp.where(v0, h0n, h0p)
            c0_ref[...] = jnp.where(v0, c0n, c0p)

        if 1 <= tt <= Tc:                            # layer 1 @ t_base + tt - 1
            c1p = c1_ref[...]
            g1 = (jnp.dot(jnp.concatenate([h0p, h1p], axis=-1).astype(jnp.bfloat16),
                          wcat1_ref[...], preferred_element_type=jnp.float32)
                  + b1_ref[...])
            h1n, c1n = _lstm_cell(g1, c1p, Hp)
            v1 = (t_base + tt - 1) < lengths
            h1_ref[...] = jnp.where(v1, h1n, h1p)
            c1_ref[...] = jnp.where(v1, c1n, c1p)

        if 2 <= tt <= Tc + 1:                        # layer 2 @ t_base + tt - 2
            c2p = c2_ref[...]
            g2 = (jnp.dot(jnp.concatenate([h1p, h2p], axis=-1).astype(jnp.bfloat16),
                          wcat2_ref[...], preferred_element_type=jnp.float32)
                  + b2_ref[...])
            h2n, c2n = _lstm_cell(g2, c2p, Hp)
            v2 = (t_base + tt - 2) < lengths
            h2_ref[...] = jnp.where(v2, h2n, h2p)
            c2_ref[...] = jnp.where(v2, c2n, c2p)
            # pad_packed_sequence semantics: zeros past each sequence length.
            h2s_ref[:, tt - 2, :] = jnp.where(v2, h2n, 0.0)

    # FC head fused as a per-chunk epilogue (MXU-batched over Tc rows/batch,
    # hidden behind the next chunk's DMA).  fc(0) = bias on padded timesteps,
    # exactly like the PyTorch reference.
    for bi in range(Bb):
        out_ref[bi] = (jnp.dot(h2s_ref[bi].astype(jnp.bfloat16), fcw_ref[...],
                               preferred_element_type=jnp.float32)
                       + fcb_ref[...])


# -------------------------------- Wrapper ----------------------------------- #

def fused_lstm_fc(params, x, lengths_b1, Tc, batch_blocks=1):
    """x: (B, Tp, D) f32 batch-major, Tp % Tc == 0.  Returns (B, Tp, Op) f32."""
    B, Tp, D = x.shape
    Hp, Op = params["Hp"], params["Op"]
    G = 4 * Hp
    assert B % batch_blocks == 0
    Bb = B // batch_blocks

    return pl.pallas_call(
        _lstm_fc_kernel,
        out_shape=jax.ShapeDtypeStruct((B, Tp, Op), jnp.float32),
        grid_spec=pltpu.PrefetchScalarGridSpec(
            num_scalar_prefetch=0,
            grid=(batch_blocks, Tp // Tc),
            in_specs=[
                pl.BlockSpec((B, 1), lambda b, t: (0, 0)),           # lengths
                pl.BlockSpec((Bb, Tc, D), lambda b, t: (b, t, 0)),   # x (batch-major)
                pl.BlockSpec((D, G), lambda b, t: (0, 0)),           # W_ih0^T
                pl.BlockSpec((1, G), lambda b, t: (0, 0)),           # b0
                pl.BlockSpec((Hp, G), lambda b, t: (0, 0)),          # W_hh0^T
                pl.BlockSpec((2 * Hp, G), lambda b, t: (0, 0)),      # [W_ih1^T ; W_hh1^T]
                pl.BlockSpec((1, G), lambda b, t: (0, 0)),           # b1
                pl.BlockSpec((2 * Hp, G), lambda b, t: (0, 0)),      # [W_ih2^T ; W_hh2^T]
                pl.BlockSpec((1, G), lambda b, t: (0, 0)),           # b2
                pl.BlockSpec((Hp, Op), lambda b, t: (0, 0)),         # fc_w^T
                pl.BlockSpec((1, Op), lambda b, t: (0, 0)),          # fc_b
            ],
            out_specs=pl.BlockSpec((Bb, Tc, Op), lambda b, t: (b, t, 0)),
            scratch_shapes=[
                pltpu.VMEM((Bb, Tc, G), jnp.float32),    # layer-0 input gates
                pltpu.VMEM((Bb, Tc, Hp), jnp.float32),   # chunk h2 slab for FC
                pltpu.VMEM((Bb, Hp), jnp.float32),       # h0
                pltpu.VMEM((Bb, Hp), jnp.float32),       # c0
                pltpu.VMEM((Bb, Hp), jnp.float32),       # h1
                pltpu.VMEM((Bb, Hp), jnp.float32),       # c1
                pltpu.VMEM((Bb, Hp), jnp.float32),       # h2
                pltpu.VMEM((Bb, Hp), jnp.float32),       # c2
            ],
        ),
        compiler_params=pltpu.CompilerParams(
            dimension_semantics=("parallel", "arbitrary"),
            vmem_limit_bytes=32 * 1024 * 1024,
        ),
    )(lengths_b1, x, params["w_ih0_t"], params["b0"], params["w_hh0_t"],
      params["wcat1"], params["b1"], params["wcat2"], params["b2"],
      params["fc_w"], params["fc_b"])


# --------------------------- Parameter creation ----------------------------- #

def _pack_gate_weight(w, Hp, Kp=None):
    """PyTorch (4H, K) gate-stacked weight -> zero-padded, transposed (Kp, 4Hp)."""
    fourH, K = w.shape
    H = fourH // 4
    Kp = K if Kp is None else Kp
    w = w.reshape(4, H, K)
    w = jnp.pad(w, ((0, 0), (0, Hp - H), (0, Kp - K)))
    return w.reshape(4 * Hp, Kp).T


def _pack_gate_bias(b, Hp):
    H = b.shape[0] // 4
    b = jnp.pad(b.reshape(4, H), ((0, 0), (0, Hp - H)))
    return b.reshape(1, 4 * Hp).astype(jnp.float32)


def init_params(key, input_dim, hidden_dim, output_dim, num_layers=3):
    """PyTorch-style init U(-1/sqrt(H), 1/sqrt(H)); weights packed for the
    kernel: per-gate zero-padded to Hp=round_up(H,128), transposed, bf16."""
    assert num_layers == 3
    H, D, O = hidden_dim, input_dim, output_dim
    Hp = _round_up(H, LANE)
    Op = _round_up(O, LANE)
    k = 1.0 / math.sqrt(H)

    raw = []
    for layer in range(num_layers):
        d_in = D if layer == 0 else H
        key, k1, k2, k3, k4 = jax.random.split(key, 5)
        w_ih = jax.random.uniform(k1, (4 * H, d_in), jnp.float32, -k, k)
        w_hh = jax.random.uniform(k2, (4 * H, H), jnp.float32, -k, k)
        b_ih = jax.random.uniform(k3, (4 * H,), jnp.float32, -k, k)
        b_hh = jax.random.uniform(k4, (4 * H,), jnp.float32, -k, k)
        raw.append((w_ih, w_hh, b_ih + b_hh))
    key, k5, k6 = jax.random.split(key, 3)
    fc_w = jax.random.uniform(k5, (O, H), jnp.float32, -k, k)
    fc_b = jax.random.uniform(k6, (O,), jnp.float32, -k, k)

    params = {"H": H, "Hp": Hp, "O": O, "Op": Op, "D": D}
    # Layer 0: input projection fused in the kernel prologue -> keep separate.
    w_ih0, w_hh0, b0 = raw[0]
    params["w_ih0_t"] = _pack_gate_weight(w_ih0, Hp).astype(jnp.bfloat16)         # (D, 4Hp)
    params["w_hh0_t"] = _pack_gate_weight(w_hh0, Hp, Kp=Hp).astype(jnp.bfloat16)  # (Hp, 4Hp)
    params["b0"] = _pack_gate_bias(b0, Hp)                                        # (1, 4Hp)
    # Layers 1/2: fuse [W_ih^T ; W_hh^T] so [h_below | h_prev] needs one matmul.
    for l in (1, 2):
        w_ih, w_hh, b = raw[l]
        wcat = jnp.concatenate([_pack_gate_weight(w_ih, Hp, Kp=Hp),
                                _pack_gate_weight(w_hh, Hp, Kp=Hp)], axis=0)
        params[f"wcat{l}"] = wcat.astype(jnp.bfloat16)                            # (2Hp, 4Hp)
        params[f"b{l}"] = _pack_gate_bias(b, Hp)
    params["fc_w"] = jnp.pad(fc_w.T, ((0, Hp - H), (0, Op - O))).astype(jnp.bfloat16)
    params["fc_b"] = jnp.pad(fc_b, (0, Op - O)).reshape(1, Op).astype(jnp.float32)
    return params


# ------------------------------ Forward pass -------------------------------- #

def three_layer_lstm_forward(params, inputs, input_lengths, *,
                             time_chunk=32, batch_blocks=1):
    """inputs: [B, T, input_dim] (batch_first, like PyTorch).
    Returns (outputs [B, max(input_lengths), output_dim], input_lengths).
    batch_blocks=2 splits the batch across TensorCores (useful on v7x)."""
    lengths = input_lengths.astype(jnp.int32)
    # pad_packed_sequence output length is data-dependent (as in PyTorch);
    # concretized here, so this wrapper is not wrapped in jax.jit.
    # Assumes all lengths >= 1 (pack_padded_sequence requires this too).
    max_len = int(jnp.max(lengths))
    B, T, D = inputs.shape
    O = params["O"]

    if max_len <= time_chunk:
        Tc = max_len                       # single chunk
    else:
        Tc = _round_up(time_chunk, 8)      # multi-chunk: sublane-aligned blocks
    Tp = _round_up(max_len, Tc)            # skip all work past max(length)

    x = inputs.astype(jnp.float32)
    x = x[:, :Tp] if Tp <= T else jnp.pad(x, ((0, 0), (0, Tp - T), (0, 0)))

    out = fused_lstm_fc(params, x, lengths.reshape(B, 1), Tc, batch_blocks)
    # TODO(synk): inter-layer dropout (p=0.1) skipped (eval/identity semantics).
    return out[:, :max_len, :O], input_lengths


# ---------------------------------- Main ------------------------------------ #

if __name__ == "__main__":
    B, T = 2, 8
    input_dim, hidden_dim, output_dim = 16, 32, 24

    key = jax.random.PRNGKey(0)
    key, pkey, xkey = jax.random.split(key, 3)

    params = init_params(pkey, input_dim, hidden_dim, output_dim)
    inputs = jax.random.normal(xkey, (B, T, input_dim), dtype=jnp.float32)
    input_lengths = jnp.array([8, 5], dtype=jnp.int32)

    outputs, lengths_out = three_layer_lstm_forward(params, inputs, input_lengths)
    outputs = jax.block_until_ready(outputs)

    assert outputs.shape == (B, 8, output_dim), outputs.shape
    print("KERNEL_OK")
</pallas_src>

<mosaic_0001>
module attributes {stable_mosaic.version = 11 : i64} {
  func.func @_lstm_fc_kernel(%arg0: i32, %arg1: i32, %arg2: memref<2x1xi32, #tpu.memory_space<vmem>>, %arg3: memref<2x8x16xf32, #tpu.memory_space<vmem>>, %arg4: memref<16x512xbf16, #tpu.memory_space<vmem>>, %arg5: memref<1x512xf32, #tpu.memory_space<vmem>>, %arg6: memref<128x512xbf16, #tpu.memory_space<vmem>>, %arg7: memref<256x512xbf16, #tpu.memory_space<vmem>>, %arg8: memref<1x512xf32, #tpu.memory_space<vmem>>, %arg9: memref<256x512xbf16, #tpu.memory_space<vmem>>, %arg10: memref<1x512xf32, #tpu.memory_space<vmem>>, %arg11: memref<128x128xbf16, #tpu.memory_space<vmem>>, %arg12: memref<1x128xf32, #tpu.memory_space<vmem>>, %arg13: memref<2x8x128xf32, #tpu.memory_space<vmem>>, %arg14: memref<2x8x512xf32, #tpu.memory_space<vmem>>, %arg15: memref<2x8x128xf32, #tpu.memory_space<vmem>>, %arg16: memref<2x128xf32, #tpu.memory_space<vmem>>, %arg17: memref<2x128xf32, #tpu.memory_space<vmem>>, %arg18: memref<2x128xf32, #tpu.memory_space<vmem>>, %arg19: memref<2x128xf32, #tpu.memory_space<vmem>>, %arg20: memref<2x128xf32, #tpu.memory_space<vmem>>, %arg21: memref<2x128xf32, #tpu.memory_space<vmem>>) attributes {dimension_semantics = [#tpu.dimension_semantics<parallel>, #tpu.dimension_semantics<arbitrary>], iteration_bounds = array<i64: 1, 1>, scalar_prefetch = 0 : i64, scratch_operands = 8 : i64, tpu.core_type = #tpu.core_type<tc>, window_params = [{pipeline_mode = #tpu.pipeline_mode<synchronous>, transform_indices = @transform_0, window_bounds = array<i64: 2, 1>}, {transform_indices = @transform_1, window_bounds = array<i64: 2, 8, 16>}, {pipeline_mode = #tpu.pipeline_mode<synchronous>, transform_indices = @transform_2, window_bounds = array<i64: 16, 512>}, {pipeline_mode = #tpu.pipeline_mode<synchronous>, transform_indices = @transform_3, window_bounds = array<i64: 1, 512>}, {pipeline_mode = #tpu.pipeline_mode<synchronous>, transform_indices = @transform_4, window_bounds = array<i64: 128, 512>}, {pipeline_mode = #tpu.pipeline_mode<synchronous>, transform_indices = @transform_5, window_bounds = array<i64: 256, 512>}, {pipeline_mode = #tpu.pipeline_mode<synchronous>, transform_indices = @transform_6, window_bounds = array<i64: 1, 512>}, {pipeline_mode = #tpu.pipeline_mode<synchronous>, transform_indices = @transform_7, window_bounds = array<i64: 256, 512>}, {pipeline_mode = #tpu.pipeline_mode<synchronous>, transform_indices = @transform_8, window_bounds = array<i64: 1, 512>}, {pipeline_mode = #tpu.pipeline_mode<synchronous>, transform_indices = @transform_9, window_bounds = array<i64: 128, 128>}, {pipeline_mode = #tpu.pipeline_mode<synchronous>, transform_indices = @transform_10, window_bounds = array<i64: 1, 128>}, {transform_indices = @transform_11, window_bounds = array<i64: 2, 8, 128>}]} {
    %c0_i32 = arith.constant 0 : i32
    %0 = arith.cmpi eq, %arg1, %c0_i32 : i32
    %1 = arith.extui %0 : i1 to i32
    %c0_i32_0 = arith.constant 0 : i32
    %2 = arith.cmpi ne, %1, %c0_i32_0 : i32
    scf.if %2 {
      %cst_498 = arith.constant 0.000000e+00 : f32
      %1195 = vector.broadcast %cst_498 : f32 to vector<2x128xf32>
      %c0_499 = arith.constant 0 : index
      %c0_500 = arith.constant 0 : index
      %1196 = vector.load %arg16[%c0_499, %c0_500] : memref<2x128xf32, #tpu.memory_space<vmem>>, vector<2x128xf32>
      tpu.vector_store %arg16[%c0_499, %c0_500], %1195 {strides = array<i32>} : memref<2x128xf32, #tpu.memory_space<vmem>>, vector<2x128xf32>,
      %cst_501 = arith.constant 0.000000e+00 : f32
      %1197 = vector.broadcast %cst_501 : f32 to vector<2x128xf32>
      %c0_502 = arith.constant 0 : index
      %c0_503 = arith.constant 0 : index
      %1198 = vector.load %arg17[%c0_502, %c0_503] : memref<2x128xf32, #tpu.memory_space<vmem>>, vector<2x128xf32>
      tpu.vector_store %arg17[%c0_502, %c0_503], %1197 {strides = array<i32>} : memref<2x128xf32, #tpu.memory_space<vmem>>, vector<2x128xf32>,
      %cst_504 = arith.constant 0.000000e+00 : f32
      %1199 = vector.broadcast %cst_504 : f32 to vector<2x128xf32>
      %c0_505 = arith.constant 0 : index
      %c0_506 = arith.constant 0 : index
      %1200 = vector.load %arg18[%c0_505, %c0_506] : memref<2x128xf32, #tpu.memory_space<vmem>>, vector<2x128xf32>
      tpu.vector_store %arg18[%c0_505, %c0_506], %1199 {strides = array<i32>} : memref<2x128xf32, #tpu.memory_space<vmem>>, vector<2x128xf32>,
      %cst_507 = arith.constant 0.000000e+00 : f32
      %1201 = vector.broadcast %cst_507 : f32 to vector<2x128xf32>
      %c0_508 = arith.constant 0 : index
      %c0_509 = arith.constant 0 : index
      %1202 = vector.load %arg19[%c0_508, %c0_509] : memref<2x128xf32, #tpu.memory_space<vmem>>, vector<2x128xf32>
      tpu.vector_store %arg19[%c0_508, %c0_509], %1201 {strides = array<i32>} : memref<2x128xf32, #tpu.memory_space<vmem>>, vector<2x128xf32>,
      %cst_510 = arith.constant 0.000000e+00 : f32
      %1203 = vector.broadcast %cst_510 : f32 to vector<2x128xf32>
      %c0_511 = arith.constant 0 : index
      %c0_512 = arith.constant 0 : index
      %1204 = vector.load %arg20[%c0_511, %c0_512] : memref<2x128xf32, #tpu.memory_space<vmem>>, vector<2x128xf32>
      tpu.vector_store %arg20[%c0_511, %c0_512], %1203 {strides = array<i32>} : memref<2x128xf32, #tpu.memory_space<vmem>>, vector<2x128xf32>,
      %cst_513 = arith.constant 0.000000e+00 : f32
      %1205 = vector.broadcast %cst_513 : f32 to vector<2x128xf32>
      %c0_514 = arith.constant 0 : index
      %c0_515 = arith.constant 0 : index
      %1206 = vector.load %arg21[%c0_514, %c0_515] : memref<2x128xf32, #tpu.memory_space<vmem>>, vector<2x128xf32>
      tpu.vector_store %arg21[%c0_514, %c0_515], %1205 {strides = array<i32>} : memref<2x128xf32, #tpu.memory_space<vmem>>, vector<2x128xf32>,
    } else {
    }
    %c0 = arith.constant 0 : index
    %c0_1 = arith.constant 0 : index
    %c0_2 = arith.constant 0 : index
    %3 = vector.load %arg3[%c0, %c0_1, %c0_2] : memref<2x8x16xf32, #tpu.memory_space<vmem>>, vector<1x8x16xf32>
    %4 = vector.shape_cast %3 : vector<1x8x16xf32> to vector<8x16xf32>
    %5 = arith.truncf %4 : vector<8x16xf32> to vector<8x16xbf16>
    %c0_3 = arith.constant 0 : index
    %c0_4 = arith.constant 0 : index
    %6 = vector.load %arg4[%c0_3, %c0_4] : memref<16x512xbf16, #tpu.memory_space<vmem>>, vector<16x512xbf16>
    %cst = arith.constant dense<0.000000e+00> : vector<8x512xf32>
    %7 = tpu.matmul %5, %6, %cst {dimension_numbers = #tpu.dot_dimension_numbers<[1], [0], [0], [1], [0, 0, 1, 1], [], []>} : vector<8x16xbf16>, vector<16x512xbf16>, vector<8x512xf32> -> vector<8x512xf32>
    %c0_5 = arith.constant 0 : index
    %c0_6 = arith.constant 0 : index
    %8 = vector.load %arg5[%c0_5, %c0_6] : memref<1x512xf32, #tpu.memory_space<vmem>>, vector<1x512xf32>
    %9 = vector.broadcast %8 : vector<1x512xf32> to vector<8x512xf32>
    %10 = arith.addf %7, %9 : vector<8x512xf32>
    %c0_7 = arith.constant 0 : index
    %c0_8 = arith.constant 0 : index
    %c0_9 = arith.constant 0 : index
    %11 = vector.load %arg14[%c0_7, %c0_8, %c0_9] : memref<2x8x512xf32, #tpu.memory_space<vmem>>, vector<1x8x512xf32>
    %12 = vector.shape_cast %11 : vector<1x8x512xf32> to vector<8x512xf32>
    %13 = vector.shape_cast %10 : vector<8x512xf32> to vector<1x8x512xf32>
    tpu.vector_store %arg14[%c0_7, %c0_8, %c0_9], %13 {strides = array<i32>} : memref<2x8x512xf32, #tpu.memory_space<vmem>>, vector<1x8x512xf32>,
    %c1 = arith.constant 1 : index
    %c0_10 = arith.constant 0 : index
    %c0_11 = arith.constant 0 : index
    %14 = vector.load %arg3[%c1, %c0_10, %c0_11] : memref<2x8x16xf32, #tpu.memory_space<vmem>>, vector<1x8x16xf32>
    %15 = vector.shape_cast %14 : vector<1x8x16xf32> to vector<8x16xf32>
    %16 = arith.truncf %15 : vector<8x16xf32> to vector<8x16xbf16>
    %c0_12 = arith.constant 0 : index
    %c0_13 = arith.constant 0 : index
    %17 = vector.load %arg4[%c0_12, %c0_13] : memref<16x512xbf16, #tpu.memory_space<vmem>>, vector<16x512xbf16>
    %cst_14 = arith.constant dense<0.000000e+00> : vector<8x512xf32>
    %18 = tpu.matmul %16, %17, %cst_14 {dimension_numbers = #tpu.dot_dimension_numbers<[1], [0], [0], [1], [0, 0, 1, 1], [], []>} : vector<8x16xbf16>, vector<16x512xbf16>, vector<8x512xf32> -> vector<8x512xf32>
    %c0_15 = arith.constant 0 : index
    %c0_16 = arith.constant 0 : index
    %19 = vector.load %arg5[%c0_15, %c0_16] : memref<1x512xf32, #tpu.memory_space<vmem>>, vector<1x512xf32>
    %20 = vector.broadcast %19 : vector<1x512xf32> to vector<8x512xf32>
    %21 = arith.addf %18, %20 : vector<8x512xf32>
    %c1_17 = arith.constant 1 : index
    %c0_18 = arith.constant 0 : index
    %c0_19 = arith.constant 0 : index
    %22 = vector.load %arg14[%c1_17, %c0_18, %c0_19] : memref<2x8x512xf32, #tpu.memory_space<vmem>>, vector<1x8x512xf32>
    %23 = vector.shape_cast %22 : vector<1x8x512xf32> to vector<8x512xf32>
    %24 = vector.shape_cast %21 : vector<8x512xf32> to vector<1x8x512xf32>
    tpu.vector_store %arg14[%c1_17, %c0_18, %c0_19], %24 {strides = array<i32>} : memref<2x8x512xf32, #tpu.memory_space<vmem>>, vector<1x8x512xf32>,
    %c0_20 = arith.constant 0 : index
    %c0_21 = arith.constant 0 : index
    %25 = vector.load %arg2[%c0_20, %c0_21] : memref<2x1xi32, #tpu.memory_space<vmem>>, vector<2x1xi32>
    %c8_i32 = arith.constant 8 : i32
    %26 = arith.muli %arg1, %c8_i32 : i32
    %c0_22 = arith.constant 0 : index
    %c0_23 = arith.constant 0 : index
    %27 = vector.load %arg16[%c0_22, %c0_23] : memref<2x128xf32, #tpu.memory_space<vmem>>, vector<2x128xf32>
    %c0_24 = arith.constant 0 : index
    %c0_25 = arith.constant 0 : index
    %28 = vector.load %arg17[%c0_24, %c0_25] : memref<2x128xf32, #tpu.memory_space<vmem>>, vector<2x128xf32>
    %c0_26 = arith.constant 0 : index
    %c0_27 = arith.constant 0 : index
    %c0_28 = arith.constant 0 : index
    %29 = vector.load %arg14[%c0_26, %c0_27, %c0_28] : memref<2x8x512xf32, #tpu.memory_space<vmem>>, vector<2x1x512xf32>
    %30 = vector.shape_cast %29 : vector<2x1x512xf32> to vector<2x512xf32>
    %31 = arith.truncf %27 : vector<2x128xf32> to vector<2x128xbf16>
    %c0_29 = arith.constant 0 : index
    %c0_30 = arith.constant 0 : index
    %32 = vector.load %arg6[%c0_29, %c0_30] : memref<128x512xbf16, #tpu.memory_space<vmem>>, vector<128x512xbf16>
    %cst_31 = arith.constant dense<0.000000e+00> : vector<2x512xf32>
    %33 = tpu.matmul %31, %32, %cst_31 {dimension_numbers = #tpu.dot_dimension_numbers<[1], [0], [0], [1], [0, 0, 1, 1], [], []>} : vector<2x128xbf16>, vector<128x512xbf16>, vector<2x512xf32> -> vector<2x512xf32>
    %34 = arith.addf %30, %33 : vector<2x512xf32>
    %35 = vector.extract_strided_slice %34 {offsets = [0, 0], sizes = [2, 128], strides = [1, 1]} : vector<2x512xf32> to vector<2x128xf32>
    %36 = arith.negf %35 : vector<2x128xf32>
    %37 = math.exp %36 : vector<2x128xf32>
    %cst_32 = arith.constant 1.000000e+00 : f32
    %38 = vector.broadcast %cst_32 : f32 to vector<2x128xf32>
    %39 = arith.addf %38, %37 : vector<2x128xf32>
    %40 = arith.divf %38, %39 : vector<2x128xf32>
    %41 = vector.extract_strided_slice %34 {offsets = [0, 128], sizes = [2, 128], strides = [1, 1]} : vector<2x512xf32> to vector<2x128xf32>
    %42 = arith.negf %41 : vector<2x128xf32>
    %43 = math.exp %42 : vector<2x128xf32>
    %cst_33 = arith.constant 1.000000e+00 : f32
    %44 = vector.broadcast %cst_33 : f32 to vector<2x128xf32>
    %45 = arith.addf %44, %43 : vector<2x128xf32>
    %46 = arith.divf %44, %45 : vector<2x128xf32>
    %47 = vector.extract_strided_slice %34 {offsets = [0, 256], sizes = [2, 128], strides = [1, 1]} : vector<2x512xf32> to vector<2x128xf32>
    %48 = math.tanh %47 : vector<2x128xf32>
    %49 = vector.extract_strided_slice %34 {offsets = [0, 384], sizes = [2, 128], strides = [1, 1]} : vector<2x512xf32> to vector<2x128xf32>
    %50 = arith.negf %49 : vector<2x128xf32>
    %51 = math.exp %50 : vector<2x128xf32>
    %cst_34 = arith.constant 1.000000e+00 : f32
    %52 = vector.broadcast %cst_34 : f32 to vector<2x128xf32>
    %53 = arith.addf %52, %51 : vector<2x128xf32>
    %54 = arith.divf %52, %53 : vector<2x128xf32>
    %55 = arith.mulf %46, %28 : vector<2x128xf32>
    %56 = arith.mulf %40, %48 : vector<2x128xf32>
    %57 = arith.addf %55, %56 : vector<2x128xf32>
    %58 = math.tanh %57 : vector<2x128xf32>
    %59 = arith.mulf %54, %58 : vector<2x128xf32>
    %c0_i32_35 = arith.constant 0 : i32
    %60 = arith.addi %26, %c0_i32_35 : i32
    %61 = vector.broadcast %60 : i32 to vector<2x1xi32>
    %62 = arith.cmpi slt, %61, %25 : vector<2x1xi32>
    %63 = vector.shape_cast %62 : vector<2x1xi1> to vector<2x1xi1>
    %64 = vector.broadcast %63 : vector<2x1xi1> to vector<2x128xi1>
    %65 = arith.select %64, %59, %27 : vector<2x128xi1>, vector<2x128xf32>
    %c0_36 = arith.constant 0 : index
    %c0_37 = arith.constant 0 : index
    %66 = vector.load %arg16[%c0_36, %c0_37] : memref<2x128xf32, #tpu.memory_space<vmem>>, vector<2x128xf32>
    tpu.vector_store %arg16[%c0_36, %c0_37], %65 {strides = array<i32>} : memref<2x128xf32, #tpu.memory_space<vmem>>, vector<2x128xf32>,
    %67 = vector.shape_cast %62 : vector<2x1xi1> to vector<2x1xi1>
    %68 = vector.broadcast %67 : vector<2x1xi1> to vector<2x128xi1>
    %69 = arith.select %68, %57, %28 : vector<2x128xi1>, vector<2x128xf32>
    %c0_38 = arith.constant 0 : index
    %c0_39 = arith.constant 0 : index
    %70 = vector.load %arg17[%c0_38, %c0_39] : memref<2x128xf32, #tpu.memory_space<vmem>>, vector<2x128xf32>
    tpu.vector_store %arg17[%c0_38, %c0_39], %69 {strides = array<i32>} : memref<2x128xf32, #tpu.memory_space<vmem>>, vector<2x128xf32>,
    %c0_40 = arith.constant 0 : index
    %c0_41 = arith.constant 0 : index
    %71 = vector.load %arg16[%c0_40, %c0_41] : memref<2x128xf32, #tpu.memory_space<vmem>>, vector<2x128xf32>
    %c0_42 = arith.constant 0 : index
    %c0_43 = arith.constant 0 : index
    %72 = vector.load %arg18[%c0_42, %c0_43] : memref<2x128xf32, #tpu.memory_space<vmem>>, vector<2x128xf32>
    %c0_44 = arith.constant 0 : index
    %c0_45 = arith.constant 0 : index
    %73 = vector.load %arg17[%c0_44, %c0_45] : memref<2x128xf32, #tpu.memory_space<vmem>>, vector<2x128xf32>
    %c0_46 = arith.constant 0 : index
    %c1_47 = arith.constant 1 : index
    %c0_48 = arith.constant 0 : index
    %74 = vector.load %arg14[%c0_46, %c1_47, %c0_48] : memref<2x8x512xf32, #tpu.memory_space<vmem>>, vector<2x1x512xf32>
    %75 = vector.shape_cast %74 : vector<2x1x512xf32> to vector<2x512xf32>
    %76 = arith.truncf %71 : vector<2x128xf32> to vector<2x128xbf16>
    %c0_49 = arith.constant 0 : index
    %c0_50 = arith.constant 0 : index
    %77 = vector.load %arg6[%c0_49, %c0_50] : memref<128x512xbf16, #tpu.memory_space<vmem>>, vector<128x512xbf16>
    %cst_51 = arith.constant dense<0.000000e+00> : vector<2x512xf32>
    %78 = tpu.matmul %76, %77, %cst_51 {dimension_numbers = #tpu.dot_dimension_numbers<[1], [0], [0], [1], [0, 0, 1, 1], [], []>} : vector<2x128xbf16>, vector<128x512xbf16>, vector<2x512xf32> -> vector<2x512xf32>
    %79 = arith.addf %75, %78 : vector<2x512xf32>
    %80 = vector.extract_strided_slice %79 {offsets = [0, 0], sizes = [2, 128], strides = [1, 1]} : vector<2x512xf32> to vector<2x128xf32>
    %81 = arith.negf %80 : vector<2x128xf32>
    %82 = math.exp %81 : vector<2x128xf32>
    %cst_52 = arith.constant 1.000000e+00 : f32
    %83 = vector.broadcast %cst_52 : f32 to vector<2x128xf32>
    %84 = arith.addf %83, %82 : vector<2x128xf32>
    %85 = arith.divf %83, %84 : vector<2x128xf32>
    %86 = vector.extract_strided_slice %79 {offsets = [0, 128], sizes = [2, 128], strides = [1, 1]} : vector<2x512xf32> to vector<2x128xf32>
    %87 = arith.negf %86 : vector<2x128xf32>
    %88 = math.exp %87 : vector<2x128xf32>
    %cst_53 = arith.constant 1.000000e+00 : f32
    %89 = vector.broadcast %cst_53 : f32 to vector<2x128xf32>
    %90 = arith.addf %89, %88 : vector<2x128xf32>
    %91 = arith.divf %89, %90 : vector<2x128xf32>
    %92 = vector.extract_strided_slice %79 {offsets = [0, 256], sizes = [2, 128], strides = [1, 1]} : vector<2x512xf32> to vector<2x128xf32>
    %93 = math.tanh %92 : vector<2x128xf32>
    %94 = vector.extract_strided_slice %79 {offsets = [0, 384], sizes = [2, 128], strides = [1, 1]} : vector<2x512xf32> to vector<2x128xf32>
    %95 = arith.negf %94 : vector<2x128xf32>
    %96 = math.exp %95 : vector<2x128xf32>
    %cst_54 = arith.constant 1.000000e+00 : f32
    %97 = vector.broadcast %cst_54 : f32 to vector<2x128xf32>
    %98 = arith.addf %97, %96 : vector<2x128xf32>
    %99 = arith.divf %97, %98 : vector<2x128xf32>
    %100 = arith.mulf %91, %73 : vector<2x128xf32>
    %101 = arith.mulf %85, %93 : vector<2x128xf32>
    %102 = arith.addf %100, %101 : vector<2x128xf32>
    %103 = math.tanh %102 : vector<2x128xf32>
    %104 = arith.mulf %99, %103 : vector<2x128xf32>
    %c1_i32 = arith.constant 1 : i32
    %105 = arith.addi %26, %c1_i32 : i32
    %106 = vector.broadcast %105 : i32 to vector<2x1xi32>
    %107 = arith.cmpi slt, %106, %25 : vector<2x1xi32>
    %108 = vector.shape_cast %107 : vector<2x1xi1> to vector<2x1xi1>
    %109 = vector.broadcast %108 : vector<2x1xi1> to vector<2x128xi1>
    %110 = arith.select %109, %104, %71 : vector<2x128xi1>, vector<2x128xf32>
    %c0_55 = arith.constant 0 : index
    %c0_56 = arith.constant 0 : index
    %111 = vector.load %arg16[%c0_55, %c0_56] : memref<2x128xf32, #tpu.memory_space<vmem>>, vector<2x128xf32>
    tpu.vector_store %arg16[%c0_55, %c0_56], %110 {strides = array<i32>} : memref<2x128xf32, #tpu.memory_space<vmem>>, vector<2x128xf32>,
    %112 = vector.shape_cast %107 : vector<2x1xi1> to vector<2x1xi1>
    %113 = vector.broadcast %112 : vector<2x1xi1> to vector<2x128xi1>
    %114 = arith.select %113, %102, %73 : vector<2x128xi1>, vector<2x128xf32>
    %c0_57 = arith.constant 0 : index
    %c0_58 = arith.constant 0 : index
    %115 = vector.load %arg17[%c0_57, %c0_58] : memref<2x128xf32, #tpu.memory_space<vmem>>, vector<2x128xf32>
    tpu.vector_store %arg17[%c0_57, %c0_58], %114 {strides = array<i32>} : memref<2x128xf32, #tpu.memory_space<vmem>>, vector<2x128xf32>,
    %c0_59 = arith.constant 0 : index
    %c0_60 = arith.constant 0 : index
    %116 = vector.load %arg19[%c0_59, %c0_60] : memref<2x128xf32, #tpu.memory_space<vmem>>, vector<2x128xf32>
    %117 = tpu.concatenate %71, %72 in 1 : vector<2x128xf32>, vector<2x128xf32> -> vector<2x256xf32>
    %118 = arith.truncf %117 : vector<2x256xf32> to vector<2x256xbf16>
    %c0_61 = arith.constant 0 : index
    %c0_62 = arith.constant 0 : index
    %119 = vector.load %arg7[%c0_61, %c0_62] : memref<256x512xbf16, #tpu.memory_space<vmem>>, vector<256x512xbf16>
    %cst_63 = arith.constant dense<0.000000e+00> : vector<2x512xf32>
    %120 = tpu.matmul %118, %119, %cst_63 {dimension_numbers = #tpu.dot_dimension_numbers<[1], [0], [0], [1], [0, 0, 1, 1], [], []>} : vector<2x256xbf16>, vector<256x512xbf16>, vector<2x512xf32> -> vector<2x512xf32>
    %c0_64 = arith.constant 0 : index
    %c0_65 = arith.constant 0 : index
    %121 = vector.load %arg8[%c0_64, %c0_65] : memref<1x512xf32, #tpu.memory_space<vmem>>, vector<1x512xf32>
    %122 = vector.broadcast %121 : vector<1x512xf32> to vector<2x512xf32>
    %123 = arith.addf %120, %122 : vector<2x512xf32>
    %124 = vector.extract_strided_slice %123 {offsets = [0, 0], sizes = [2, 128], strides = [1, 1]} : vector<2x512xf32> to vector<2x128xf32>
    %125 = arith.negf %124 : vector<2x128xf32>
    %126 = math.exp %125 : vector<2x128xf32>
    %cst_66 = arith.constant 1.000000e+00 : f32
    %127 = vector.broadcast %cst_66 : f32 to vector<2x128xf32>
    %128 = arith.addf %127, %126 : vector<2x128xf32>
    %129 = arith.divf %127, %128 : vector<2x128xf32>
    %130 = vector.extract_strided_slice %123 {offsets = [0, 128], sizes = [2, 128], strides = [1, 1]} : vector<2x512xf32> to vector<2x128xf32>
    %131 = arith.negf %130 : vector<2x128xf32>
    %132 = math.exp %131 : vector<2x128xf32>
    %cst_67 = arith.constant 1.000000e+00 : f32
    %133 = vector.broadcast %cst_67 : f32 to vector<2x128xf32>
    %134 = arith.addf %133, %132 : vector<2x128xf32>
    %135 = arith.divf %133, %134 : vector<2x128xf32>
    %136 = vector.extract_strided_slice %123 {offsets = [0, 256], sizes = [2, 128], strides = [1, 1]} : vector<2x512xf32> to vector<2x128xf32>
    %137 = math.tanh %136 : vector<2x128xf32>
    %138 = vector.extract_strided_slice %123 {offsets = [0, 384], sizes = [2, 128], strides = [1, 1]} : vector<2x512xf32> to vector<2x128xf32>
    %139 = arith.negf %138 : vector<2x128xf32>
    %140 = math.exp %139 : vector<2x128xf32>
    %cst_68 = arith.constant 1.000000e+00 : f32
    %141 = vector.broadcast %cst_68 : f32 to vector<2x128xf32>
    %142 = arith.addf %141, %140 : vector<2x128xf32>
    %143 = arith.divf %141, %142 : vector<2x128xf32>
    %144 = arith.mulf %135, %116 : vector<2x128xf32>
    %145 = arith.mulf %129, %137 : vector<2x128xf32>
    %146 = arith.addf %144, %145 : vector<2x128xf32>
    %147 = math.tanh %146 : vector<2x128xf32>
    %148 = arith.mulf %143, %147 : vector<2x128xf32>
    %c1_i32_69 = arith.constant 1 : i32
    %149 = arith.addi %26, %c1_i32_69 : i32
    %c1_i32_70 = arith.constant 1 : i32
    %150 = arith.subi %149, %c1_i32_70 : i32
    %151 = vector.broadcast %150 : i32 to vector<2x1xi32>
    %152 = arith.cmpi slt, %151, %25 : vector<2x1xi32>
    %153 = vector.shape_cast %152 : vector<2x1xi1> to vector<2x1xi1>
    %154 = vector.broadcast %153 : vector<2x1xi1> to vector<2x128xi1>
    %155 = arith.select %154, %148, %72 : vector<2x128xi1>, vector<2x128xf32>
    %c0_71 = arith.constant 0 : index
    %c0_72 = arith.constant 0 : index
    %156 = vector.load %arg18[%c0_71, %c0_72] : memref<2x128xf32, #tpu.memory_space<vmem>>, vector<2x128xf32>
    tpu.vector_store %arg18[%c0_71, %c0_72], %155 {strides = array<i32>} : memref<2x128xf32, #tpu.memory_space<vmem>>, vector<2x128xf32>,
    %157 = vector.shape_cast %152 : vector<2x1xi1> to vector<2x1xi1>
    %158 = vector.broadcast %157 : vector<2x1xi1> to vector<2x128xi1>
    %159 = arith.select %158, %146, %116 : vector<2x128xi1>, vector<2x128xf32>
    %c0_73 = arith.constant 0 : index
    %c0_74 = arith.constant 0 : index
    %160 = vector.load %arg19[%c0_73, %c0_74] : memref<2x128xf32, #tpu.memory_space<vmem>>, vector<2x128xf32>
    tpu.vector_store %arg19[%c0_73, %c0_74], %159 {strides = array<i32>} : memref<2x128xf32, #tpu.memory_space<vmem>>, vector<2x128xf32>,
    %c0_75 = arith.constant 0 : index
    %c0_76 = arith.constant 0 : index
    %161 = vector.load %arg16[%c0_75, %c0_76] : memref<2x128xf32, #tpu.memory_space<vmem>>, vector<2x128xf32>
    %c0_77 = arith.constant 0 : index
    %c0_78 = arith.constant 0 : index
    %162 = vector.load %arg18[%c0_77, %c0_78] : memref<2x128xf32, #tpu.memory_space<vmem>>, vector<2x128xf32>
    %c0_79 = arith.constant 0 : index
    %c0_80 = arith.constant 0 : index
    %163 = vector.load %arg20[%c0_79, %c0_80] : memref<2x128xf32, #tpu.memory_space<vmem>>, vector<2x128xf32>
    %c0_81 = arith.constant 0 : index
    %c0_82 = arith.constant 0 : index
    %164 = vector.load %arg17[%c0_81, %c0_82] : memref<2x128xf32, #tpu.memory_space<vmem>>, vector<2x128xf32>
    %c0_83 = arith.constant 0 : index
    %c2 = arith.constant 2 : index
    %c0_84 = arith.constant 0 : index
    %165 = vector.load %arg14[%c0_83, %c2, %c0_84] : memref<2x8x512xf32, #tpu.memory_space<vmem>>, vector<2x1x512xf32>
    %166 = vector.shape_cast %165 : vector<2x1x512xf32> to vector<2x512xf32>
    %167 = arith.truncf %161 : vector<2x128xf32> to vector<2x128xbf16>
    %c0_85 = arith.constant 0 : index
    %c0_86 = arith.constant 0 : index
    %168 = vector.load %arg6[%c0_85, %c0_86] : memref<128x512xbf16, #tpu.memory_space<vmem>>, vector<128x512xbf16>
    %cst_87 = arith.constant dense<0.000000e+00> : vector<2x512xf32>
    %169 = tpu.matmul %167, %168, %cst_87 {dimension_numbers = #tpu.dot_dimension_numbers<[1], [0], [0], [1], [0, 0, 1, 1], [], []>} : vector<2x128xbf16>, vector<128x512xbf16>, vector<2x512xf32> -> vector<2x512xf32>
    %170 = arith.addf %166, %169 : vector<2x512xf32>
    %171 = vector.extract_strided_slice %170 {offsets = [0, 0], sizes = [2, 128], strides = [1, 1]} : vector<2x512xf32> to vector<2x128xf32>
    %172 = arith.negf %171 : vector<2x128xf32>
    %173 = math.exp %172 : vector<2x128xf32>
    %cst_88 = arith.constant 1.000000e+00 : f32
    %174 = vector.broadcast %cst_88 : f32 to vector<2x128xf32>
    %175 = arith.addf %174, %173 : vector<2x128xf32>
    %176 = arith.divf %174, %175 : vector<2x128xf32>
    %177 = vector.extract_strided_slice %170 {offsets = [0, 128], sizes = [2, 128], strides = [1, 1]} : vector<2x512xf32> to vector<2x128xf32>
    %178 = arith.negf %177 : vector<2x128xf32>
    %179 = math.exp %178 : vector<2x128xf32>
    %cst_89 = arith.constant 1.000000e+00 : f32
    %180 = vector.broadcast %cst_89 : f32 to vector<2x128xf32>
    %181 = arith.addf %180, %179 : vector<2x128xf32>
    %182 = arith.divf %180, %181 : vector<2x128xf32>
    %183 = vector.extract_strided_slice %170 {offsets = [0, 256], sizes = [2, 128], strides = [1, 1]} : vector<2x512xf32> to vector<2x128xf32>
    %184 = math.tanh %183 : vector<2x128xf32>
    %185 = vector.extract_strided_slice %170 {offsets = [0, 384], sizes = [2, 128], strides = [1, 1]} : vector<2x512xf32> to vector<2x128xf32>
    %186 = arith.negf %185 : vector<2x128xf32>
    %187 = math.exp %186 : vector<2x128xf32>
    %cst_90 = arith.constant 1.000000e+00 : f32
    %188 = vector.broadcast %cst_90 : f32 to vector<2x128xf32>
    %189 = arith.addf %188, %187 : vector<2x128xf32>
    %190 = arith.divf %188, %189 : vector<2x128xf32>
    %191 = arith.mulf %182, %164 : vector<2x128xf32>
    %192 = arith.mulf %176, %184 : vector<2x128xf32>
    %193 = arith.addf %191, %192 : vector<2x128xf32>
    %194 = math.tanh %193 : vector<2x128xf32>
    %195 = arith.mulf %190, %194 : vector<2x128xf32>
    %c2_i32 = arith.constant 2 : i32
    %196 = arith.addi %26, %c2_i32 : i32
    %197 = vector.broadcast %196 : i32 to vector<2x1xi32>
    %198 = arith.cmpi slt, %197, %25 : vector<2x1xi32>
    %199 = vector.shape_cast %198 : vector<2x1xi1> to vector<2x1xi1>
    %200 = vector.broadcast %199 : vector<2x1xi1> to vector<2x128xi1>
    %201 = arith.select %200, %195, %161 : vector<2x128xi1>, vector<2x128xf32>
    %c0_91 = arith.constant 0 : index
    %c0_92 = arith.constant 0 : index
    %202 = vector.load %arg16[%c0_91, %c0_92] : memref<2x128xf32, #tpu.memory_space<vmem>>, vector<2x128xf32>
    tpu.vector_store %arg16[%c0_91, %c0_92], %201 {strides = array<i32>} : memref<2x128xf32, #tpu.memory_space<vmem>>, vector<2x128xf32>,
    %203 = vector.shape_cast %198 : vector<2x1xi1> to vector<2x1xi1>
    %204 = vector.broadcast %203 : vector<2x1xi1> to vector<2x128xi1>
    %205 = arith.select %204, %193, %164 : vector<2x128xi1>, vector<2x128xf32>
    %c0_93 = arith.constant 0 : index
    %c0_94 = arith.constant 0 : index
    %206 = vector.load %arg17[%c0_93, %c0_94] : memref<2x128xf32, #tpu.memory_space<vmem>>, vector<2x128xf32>
    tpu.vector_store %arg17[%c0_93, %c0_94], %205 {strides = array<i32>} : memref<2x128xf32, #tpu.memory_space<vmem>>, vector<2x128xf32>,
    %c0_95 = arith.constant 0 : index
    %c0_96 = arith.constant 0 : index
    %207 = vector.load %arg19[%c0_95, %c0_96] : memref<2x128xf32, #tpu.memory_space<vmem>>, vector<2x128xf32>
    %208 = tpu.concatenate %161, %162 in 1 : vector<2x128xf32>, vector<2x128xf32> -> vector<2x256xf32>
    %209 = arith.truncf %208 : vector<2x256xf32> to vector<2x256xbf16>
    %c0_97 = arith.constant 0 : index
    %c0_98 = arith.constant 0 : index
    %210 = vector.load %arg7[%c0_97, %c0_98] : memref<256x512xbf16, #tpu.memory_space<vmem>>, vector<256x512xbf16>
    %cst_99 = arith.constant dense<0.000000e+00> : vector<2x512xf32>
    %211 = tpu.matmul %209, %210, %cst_99 {dimension_numbers = #tpu.dot_dimension_numbers<[1], [0], [0], [1], [0, 0, 1, 1], [], []>} : vector<2x256xbf16>, vector<256x512xbf16>, vector<2x512xf32> -> vector<2x512xf32>
    %c0_100 = arith.constant 0 : index
    %c0_101 = arith.constant 0 : index
    %212 = vector.load %arg8[%c0_100, %c0_101] : memref<1x512xf32, #tpu.memory_space<vmem>>, vector<1x512xf32>
    %213 = vector.broadcast %212 : vector<1x512xf32> to vector<2x512xf32>
    %214 = arith.addf %211, %213 : vector<2x512xf32>
    %215 = vector.extract_strided_slice %214 {offsets = [0, 0], sizes = [2, 128], strides = [1, 1]} : vector<2x512xf32> to vector<2x128xf32>
    %216 = arith.negf %215 : vector<2x128xf32>
    %217 = math.exp %216 : vector<2x128xf32>
    %cst_102 = arith.constant 1.000000e+00 : f32
    %218 = vector.broadcast %cst_102 : f32 to vector<2x128xf32>
    %219 = arith.addf %218, %217 : vector<2x128xf32>
    %220 = arith.divf %218, %219 : vector<2x128xf32>
    %221 = vector.extract_strided_slice %214 {offsets = [0, 128], sizes = [2, 128], strides = [1, 1]} : vector<2x512xf32> to vector<2x128xf32>
    %222 = arith.negf %221 : vector<2x128xf32>
    %223 = math.exp %222 : vector<2x128xf32>
    %cst_103 = arith.constant 1.000000e+00 : f32
    %224 = vector.broadcast %cst_103 : f32 to vector<2x128xf32>
    %225 = arith.addf %224, %223 : vector<2x128xf32>
    %226 = arith.divf %224, %225 : vector<2x128xf32>
    %227 = vector.extract_strided_slice %214 {offsets = [0, 256], sizes = [2, 128], strides = [1, 1]} : vector<2x512xf32> to vector<2x128xf32>
    %228 = math.tanh %227 : vector<2x128xf32>
    %229 = vector.extract_strided_slice %214 {offsets = [0, 384], sizes = [2, 128], strides = [1, 1]} : vector<2x512xf32> to vector<2x128xf32>
    %230 = arith.negf %229 : vector<2x128xf32>
    %231 = math.exp %230 : vector<2x128xf32>
    %cst_104 = arith.constant 1.000000e+00 : f32
    %232 = vector.broadcast %cst_104 : f32 to vector<2x128xf32>
    %233 = arith.addf %232, %231 : vector<2x128xf32>
    %234 = arith.divf %232, %233 : vector<2x128xf32>
    %235 = arith.mulf %226, %207 : vector<2x128xf32>
    %236 = arith.mulf %220, %228 : vector<2x128xf32>
    %237 = arith.addf %235, %236 : vector<2x128xf32>
    %238 = math.tanh %237 : vector<2x128xf32>
    %239 = arith.mulf %234, %238 : vector<2x128xf32>
    %c2_i32_105 = arith.constant 2 : i32
    %240 = arith.addi %26, %c2_i32_105 : i32
    %c1_i32_106 = arith.constant 1 : i32
    %241 = arith.subi %240, %c1_i32_106 : i32
    %242 = vector.broadcast %241 : i32 to vector<2x1xi32>
    %243 = arith.cmpi slt, %242, %25 : vector<2x1xi32>
    %244 = vector.shape_cast %243 : vector<2x1xi1> to vector<2x1xi1>
    %245 = vector.broadcast %244 : vector<2x1xi1> to vector<2x128xi1>
    %246 = arith.select %245, %239, %162 : vector<2x128xi1>, vector<2x128xf32>
    %c0_107 = arith.constant 0 : index
    %c0_108 = arith.constant 0 : index
    %247 = vector.load %arg18[%c0_107, %c0_108] : memref<2x128xf32, #tpu.memory_space<vmem>>, vector<2x128xf32>
    tpu.vector_store %arg18[%c0_107, %c0_108], %246 {strides = array<i32>} : memref<2x128xf32, #tpu.memory_space<vmem>>, vector<2x128xf32>,
    %248 = vector.shape_cast %243 : vector<2x1xi1> to vector<2x1xi1>
    %249 = vector.broadcast %248 : vector<2x1xi1> to vector<2x128xi1>
    %250 = arith.select %249, %237, %207 : vector<2x128xi1>, vector<2x128xf32>
    %c0_109 = arith.constant 0 : index
    %c0_110 = arith.constant 0 : index
    %251 = vector.load %arg19[%c0_109, %c0_110] : memref<2x128xf32, #tpu.memory_space<vmem>>, vector<2x128xf32>
    tpu.vector_store %arg19[%c0_109, %c0_110], %250 {strides = array<i32>} : memref<2x128xf32, #tpu.memory_space<vmem>>, vector<2x128xf32>,
    %c0_111 = arith.constant 0 : index
    %c0_112 = arith.constant 0 : index
    %252 = vector.load %arg21[%c0_111, %c0_112] : memref<2x128xf32, #tpu.memory_space<vmem>>, vector<2x128xf32>
    %253 = tpu.concatenate %162, %163 in 1 : vector<2x128xf32>, vector<2x128xf32> -> vector<2x256xf32>
    %254 = arith.truncf %253 : vector<2x256xf32> to vector<2x256xbf16>
    %c0_113 = arith.constant 0 : index
    %c0_114 = arith.constant 0 : index
    %255 = vector.load %arg9[%c0_113, %c0_114] : memref<256x512xbf16, #tpu.memory_space<vmem>>, vector<256x512xbf16>
    %cst_115 = arith.constant dense<0.000000e+00> : vector<2x512xf32>
    %256 = tpu.matmul %254, %255, %cst_115 {dimension_numbers = #tpu.dot_dimension_numbers<[1], [0], [0], [1], [0, 0, 1, 1], [], []>} : vector<2x256xbf16>, vector<256x512xbf16>, vector<2x512xf32> -> vector<2x512xf32>
    %c0_116 = arith.constant 0 : index
    %c0_117 = arith.constant 0 : index
    %257 = vector.load %arg10[%c0_116, %c0_117] : memref<1x512xf32, #tpu.memory_space<vmem>>, vector<1x512xf32>
    %258 = vector.broadcast %257 : vector<1x512xf32> to vector<2x512xf32>
    %259 = arith.addf %256, %258 : vector<2x512xf32>
    %260 = vector.extract_strided_slice %259 {offsets = [0, 0], sizes = [2, 128], strides = [1, 1]} : vector<2x512xf32> to vector<2x128xf32>
    %261 = arith.negf %260 : vector<2x128xf32>
    %262 = math.exp %261 : vector<2x128xf32>
    %cst_118 = arith.constant 1.000000e+00 : f32
    %263 = vector.broadcast %cst_118 : f32 to vector<2x128xf32>
    %264 = arith.addf %263, %262 : vector<2x128xf32>
    %265 = arith.divf %263, %264 : vector<2x128xf32>
    %266 = vector.extract_strided_slice %259 {offsets = [0, 128], sizes = [2, 128], strides = [1, 1]} : vector<2x512xf32> to vector<2x128xf32>
    %267 = arith.negf %266 : vector<2x128xf32>
    %268 = math.exp %267 : vector<2x128xf32>
    %cst_119 = arith.constant 1.000000e+00 : f32
    %269 = vector.broadcast %cst_119 : f32 to vector<2x128xf32>
    %270 = arith.addf %269, %268 : vector<2x128xf32>
    %271 = arith.divf %269, %270 : vector<2x128xf32>
    %272 = vector.extract_strided_slice %259 {offsets = [0, 256], sizes = [2, 128], strides = [1, 1]} : vector<2x512xf32> to vector<2x128xf32>
    %273 = math.tanh %272 : vector<2x128xf32>
    %274 = vector.extract_strided_slice %259 {offsets = [0, 384], sizes = [2, 128], strides = [1, 1]} : vector<2x512xf32> to vector<2x128xf32>
    %275 = arith.negf %274 : vector<2x128xf32>
    %276 = math.exp %275 : vector<2x128xf32>
    %cst_120 = arith.constant 1.000000e+00 : f32
    %277 = vector.broadcast %cst_120 : f32 to vector<2x128xf32>
    %278 = arith.addf %277, %276 : vector<2x128xf32>
    %279 = arith.divf %277, %278 : vector<2x128xf32>
    %280 = arith.mulf %271, %252 : vector<2x128xf32>
    %281 = arith.mulf %265, %273 : vector<2x128xf32>
    %282 = arith.addf %280, %281 : vector<2x128xf32>
    %283 = math.tanh %282 : vector<2x128xf32>
    %284 = arith.mulf %279, %283 : vector<2x128xf32>
    %c2_i32_121 = arith.constant 2 : i32
    %285 = arith.addi %26, %c2_i32_121 : i32
    %c2_i32_122 = arith.constant 2 : i32
    %286 = arith.subi %285, %c2_i32_122 : i32
    %287 = vector.broadcast %286 : i32 to vector<2x1xi32>
    %288 = arith.cmpi slt, %287, %25 : vector<2x1xi32>
    %289 = vector.shape_cast %288 : vector<2x1xi1> to vector<2x1xi1>
    %290 = vector.broadcast %289 : vector<2x1xi1> to vector<2x128xi1>
    %291 = arith.select %290, %284, %163 : vector<2x128xi1>, vector<2x128xf32>
    %c0_123 = arith.constant 0 : index
    %c0_124 = arith.constant 0 : index
    %292 = vector.load %arg20[%c0_123, %c0_124] : memref<2x128xf32, #tpu.memory_space<vmem>>, vector<2x128xf32>
    tpu.vector_store %arg20[%c0_123, %c0_124], %291 {strides = array<i32>} : memref<2x128xf32, #tpu.memory_space<vmem>>, vector<2x128xf32>,
    %293 = vector.shape_cast %288 : vector<2x1xi1> to vector<2x1xi1>
    %294 = vector.broadcast %293 : vector<2x1xi1> to vector<2x128xi1>
    %295 = arith.select %294, %282, %252 : vector<2x128xi1>, vector<2x128xf32>
    %c0_125 = arith.constant 0 : index
    %c0_126 = arith.constant 0 : index
    %296 = vector.load %arg21[%c0_125, %c0_126] : memref<2x128xf32, #tpu.memory_space<vmem>>, vector<2x128xf32>
    tpu.vector_store %arg21[%c0_125, %c0_126], %295 {strides = array<i32>} : memref<2x128xf32, #tpu.memory_space<vmem>>, vector<2x128xf32>,
    %cst_127 = arith.constant 0.000000e+00 : f32
    %297 = vector.shape_cast %288 : vector<2x1xi1> to vector<2x1xi1>
    %298 = vector.broadcast %297 : vector<2x1xi1> to vector<2x128xi1>
    %299 = vector.broadcast %cst_127 : f32 to vector<2x128xf32>
    %300 = arith.select %298, %284, %299 : vector<2x128xi1>, vector<2x128xf32>
    %c0_128 = arith.constant 0 : index
    %c0_129 = arith.constant 0 : index
    %c0_130 = arith.constant 0 : index
    %301 = vector.load %arg15[%c0_128, %c0_129, %c0_130] : memref<2x8x128xf32, #tpu.memory_space<vmem>>, vector<2x1x128xf32>
    %302 = vector.shape_cast %301 : vector<2x1x128xf32> to vector<2x128xf32>
    %303 = vector.shape_cast %300 : vector<2x128xf32> to vector<2x1x128xf32>
    tpu.vector_store %arg15[%c0_128, %c0_129, %c0_130], %303 {strides = array<i32>} : memref<2x8x128xf32, #tpu.memory_space<vmem>>, vector<2x1x128xf32>,
    %c0_131 = arith.constant 0 : index
    %c0_132 = arith.constant 0 : index
    %304 = vector.load %arg16[%c0_131, %c0_132] : memref<2x128xf32, #tpu.memory_space<vmem>>, vector<2x128xf32>
    %c0_133 = arith.constant 0 : index
    %c0_134 = arith.constant 0 : index
    %305 = vector.load %arg18[%c0_133, %c0_134] : memref<2x128xf32, #tpu.memory_space<vmem>>, vector<2x128xf32>
    %c0_135 = arith.constant 0 : index
    %c0_136 = arith.constant 0 : index
    %306 = vector.load %arg20[%c0_135, %c0_136] : memref<2x128xf32, #tpu.memory_space<vmem>>, vector<2x128xf32>
    %c0_137 = arith.constant 0 : index
    %c0_138 = arith.constant 0 : index
    %307 = vector.load %arg17[%c0_137, %c0_138] : memref<2x128xf32, #tpu.memory_space<vmem>>, vector<2x128xf32>
    %c0_139 = arith.constant 0 : index
    %c3 = arith.constant 3 : index
    %c0_140 = arith.constant 0 : index
    %308 = vector.load %arg14[%c0_139, %c3, %c0_140] : memref<2x8x512xf32, #tpu.memory_space<vmem>>, vector<2x1x512xf32>
    %309 = vector.shape_cast %308 : vector<2x1x512xf32> to vector<2x512xf32>
    %310 = arith.truncf %304 : vector<2x128xf32> to vector<2x128xbf16>
    %c0_141 = arith.constant 0 : index
    %c0_142 = arith.constant 0 : index
    %311 = vector.load %arg6[%c0_141, %c0_142] : memref<128x512xbf16, #tpu.memory_space<vmem>>, vector<128x512xbf16>
    %cst_143 = arith.constant dense<0.000000e+00> : vector<2x512xf32>
    %312 = tpu.matmul %310, %311, %cst_143 {dimension_numbers = #tpu.dot_dimension_numbers<[1], [0], [0], [1], [0, 0, 1, 1], [], []>} : vector<2x128xbf16>, vector<128x512xbf16>, vector<2x512xf32> -> vector<2x512xf32>
    %313 = arith.addf %309, %312 : vector<2x512xf32>
    %314 = vector.extract_strided_slice %313 {offsets = [0, 0], sizes = [2, 128], strides = [1, 1]} : vector<2x512xf32> to vector<2x128xf32>
    %315 = arith.negf %314 : vector<2x128xf32>
    %316 = math.exp %315 : vector<2x128xf32>
    %cst_144 = arith.constant 1.000000e+00 : f32
    %317 = vector.broadcast %cst_144 : f32 to vector<2x128xf32>
    %318 = arith.addf %317, %316 : vector<2x128xf32>
    %319 = arith.divf %317, %318 : vector<2x128xf32>
    %320 = vector.extract_strided_slice %313 {offsets = [0, 128], sizes = [2, 128], strides = [1, 1]} : vector<2x512xf32> to vector<2x128xf32>
    %321 = arith.negf %320 : vector<2x128xf32>
    %322 = math.exp %321 : vector<2x128xf32>
    %cst_145 = arith.constant 1.000000e+00 : f32
    %323 = vector.broadcast %cst_145 : f32 to vector<2x128xf32>
    %324 = arith.addf %323, %322 : vector<2x128xf32>
    %325 = arith.divf %323, %324 : vector<2x128xf32>
    %326 = vector.extract_strided_slice %313 {offsets = [0, 256], sizes = [2, 128], strides = [1, 1]} : vector<2x512xf32> to vector<2x128xf32>
    %327 = math.tanh %326 : vector<2x128xf32>
    %328 = vector.extract_strided_slice %313 {offsets = [0, 384], sizes = [2, 128], strides = [1, 1]} : vector<2x512xf32> to vector<2x128xf32>
    %329 = arith.negf %328 : vector<2x128xf32>
    %330 = math.exp %329 : vector<2x128xf32>
    %cst_146 = arith.constant 1.000000e+00 : f32
    %331 = vector.broadcast %cst_146 : f32 to vector<2x128xf32>
    %332 = arith.addf %331, %330 : vector<2x128xf32>
    %333 = arith.divf %331, %332 : vector<2x128xf32>
    %334 = arith.mulf %325, %307 : vector<2x128xf32>
    %335 = arith.mulf %319, %327 : vector<2x128xf32>
    %336 = arith.addf %334, %335 : vector<2x128xf32>
    %337 = math.tanh %336 : vector<2x128xf32>
    %338 = arith.mulf %333, %337 : vector<2x128xf32>
    %c3_i32 = arith.constant 3 : i32
    %339 = arith.addi %26, %c3_i32 : i32
    %340 = vector.broadcast %339 : i32 to vector<2x1xi32>
    %341 = arith.cmpi slt, %340, %25 : vector<2x1xi32>
    %342 = vector.shape_cast %341 : vector<2x1xi1> to vector<2x1xi1>
    %343 = vector.broadcast %342 : vector<2x1xi1> to vector<2x128xi1>
    %344 = arith.select %343, %338, %304 : vector<2x128xi1>, vector<2x128xf32>
    %c0_147 = arith.constant 0 : index
    %c0_148 = arith.constant 0 : index
    %345 = vector.load %arg16[%c0_147, %c0_148] : memref<2x128xf32, #tpu.memory_space<vmem>>, vector<2x128xf32>
    tpu.vector_store %arg16[%c0_147, %c0_148], %344 {strides = array<i32>} : memref<2x128xf32, #tpu.memory_space<vmem>>, vector<2x128xf32>,
    %346 = vector.shape_cast %341 : vector<2x1xi1> to vector<2x1xi1>
    %347 = vector.broadcast %346 : vector<2x1xi1> to vector<2x128xi1>
    %348 = arith.select %347, %336, %307 : vector<2x128xi1>, vector<2x128xf32>
    %c0_149 = arith.constant 0 : index
    %c0_150 = arith.constant 0 : index
    %349 = vector.load %arg17[%c0_149, %c0_150] : memref<2x128xf32, #tpu.memory_space<vmem>>, vector<2x128xf32>
    tpu.vector_store %arg17[%c0_149, %c0_150], %348 {strides = array<i32>} : memref<2x128xf32, #tpu.memory_space<vmem>>, vector<2x128xf32>,
    %c0_151 = arith.constant 0 : index
    %c0_152 = arith.constant 0 : index
    %350 = vector.load %arg19[%c0_151, %c0_152] : memref<2x128xf32, #tpu.memory_space<vmem>>, vector<2x128xf32>
    %351 = tpu.concatenate %304, %305 in 1 : vector<2x128xf32>, vector<2x128xf32> -> vector<2x256xf32>
    %352 = arith.truncf %351 : vector<2x256xf32> to vector<2x256xbf16>
    %c0_153 = arith.constant 0 : index
    %c0_154 = arith.constant 0 : index
    %353 = vector.load %arg7[%c0_153, %c0_154] : memref<256x512xbf16, #tpu.memory_space<vmem>>, vector<256x512xbf16>
    %cst_155 = arith.constant dense<0.000000e+00> : vector<2x512xf32>
    %354 = tpu.matmul %352, %353, %cst_155 {dimension_numbers = #tpu.dot_dimension_numbers<[1], [0], [0], [1], [0, 0, 1, 1], [], []>} : vector<2x256xbf16>, vector<256x512xbf16>, vector<2x512xf32> -> vector<2x512xf32>
    %c0_156 = arith.constant 0 : index
    %c0_157 = arith.constant 0 : index
    %355 = vector.load %arg8[%c0_156, %c0_157] : memref<1x512xf32, #tpu.memory_space<vmem>>, vector<1x512xf32>
    %356 = vector.broadcast %355 : vector<1x512xf32> to vector<2x512xf32>
    %357 = arith.addf %354, %356 : vector<2x512xf32>
    %358 = vector.extract_strided_slice %357 {offsets = [0, 0], sizes = [2, 128], strides = [1, 1]} : vector<2x512xf32> to vector<2x128xf32>
    %359 = arith.negf %358 : vector<2x128xf32>
    %360 = math.exp %359 : vector<2x128xf32>
    %cst_158 = arith.constant 1.000000e+00 : f32
    %361 = vector.broadcast %cst_158 : f32 to vector<2x128xf32>
    %362 = arith.addf %361, %360 : vector<2x128xf32>
    %363 = arith.divf %361, %362 : vector<2x128xf32>
    %364 = vector.extract_strided_slice %357 {offsets = [0, 128], sizes = [2, 128], strides = [1, 1]} : vector<2x512xf32> to vector<2x128xf32>
    %365 = arith.negf %364 : vector<2x128xf32>
    %366 = math.exp %365 : vector<2x128xf32>
    %cst_159 = arith.constant 1.000000e+00 : f32
    %367 = vector.broadcast %cst_159 : f32 to vector<2x128xf32>
    %368 = arith.addf %367, %366 : vector<2x128xf32>
    %369 = arith.divf %367, %368 : vector<2x128xf32>
    %370 = vector.extract_strided_slice %357 {offsets = [0, 256], sizes = [2, 128], strides = [1, 1]} : vector<2x512xf32> to vector<2x128xf32>
    %371 = math.tanh %370 : vector<2x128xf32>
    %372 = vector.extract_strided_slice %357 {offsets = [0, 384], sizes = [2, 128], strides = [1, 1]} : vector<2x512xf32> to vector<2x128xf32>
    %373 = arith.negf %372 : vector<2x128xf32>
    %374 = math.exp %373 : vector<2x128xf32>
    %cst_160 = arith.constant 1.000000e+00 : f32
    %375 = vector.broadcast %cst_160 : f32 to vector<2x128xf32>
    %376 = arith.addf %375, %374 : vector<2x128xf32>
    %377 = arith.divf %375, %376 : vector<2x128xf32>
    %378 = arith.mulf %369, %350 : vector<2x128xf32>
    %379 = arith.mulf %363, %371 : vector<2x128xf32>
    %380 = arith.addf %378, %379 : vector<2x128xf32>
    %381 = math.tanh %380 : vector<2x128xf32>
    %382 = arith.mulf %377, %381 : vector<2x128xf32>
    %c3_i32_161 = arith.constant 3 : i32
    %383 = arith.addi %26, %c3_i32_161 : i32
    %c1_i32_162 = arith.constant 1 : i32
    %384 = arith.subi %383, %c1_i32_162 : i32
    %385 = vector.broadcast %384 : i32 to vector<2x1xi32>
    %386 = arith.cmpi slt, %385, %25 : vector<2x1xi32>
    %387 = vector.shape_cast %386 : vector<2x1xi1> to vector<2x1xi1>
    %388 = vector.broadcast %387 : vector<2x1xi1> to vector<2x128xi1>
    %389 = arith.select %388, %382, %305 : vector<2x128xi1>, vector<2x128xf32>
    %c0_163 = arith.constant 0 : index
    %c0_164 = arith.constant 0 : index
    %390 = vector.load %arg18[%c0_163, %c0_164] : memref<2x128xf32, #tpu.memory_space<vmem>>, vector<2x128xf32>
    tpu.vector_store %arg18[%c0_163, %c0_164], %389 {strides = array<i32>} : memref<2x128xf32, #tpu.memory_space<vmem>>, vector<2x128xf32>,
    %391 = vector.shape_cast %386 : vector<2x1xi1> to vector<2x1xi1>
    %392 = vector.broadcast %391 : vector<2x1xi1> to vector<2x128xi1>
    %393 = arith.select %392, %380, %350 : vector<2x128xi1>, vector<2x128xf32>
    %c0_165 = arith.constant 0 : index
    %c0_166 = arith.constant 0 : index
    %394 = vector.load %arg19[%c0_165, %c0_166] : memref<2x128xf32, #tpu.memory_space<vmem>>, vector<2x128xf32>
    tpu.vector_store %arg19[%c0_165, %c0_166], %393 {strides = array<i32>} : memref<2x128xf32, #tpu.memory_space<vmem>>, vector<2x128xf32>,
    %c0_167 = arith.constant 0 : index
    %c0_168 = arith.constant 0 : index
    %395 = vector.load %arg21[%c0_167, %c0_168] : memref<2x128xf32, #tpu.memory_space<vmem>>, vector<2x128xf32>
    %396 = tpu.concatenate %305, %306 in 1 : vector<2x128xf32>, vector<2x128xf32> -> vector<2x256xf32>
    %397 = arith.truncf %396 : vector<2x256xf32> to vector<2x256xbf16>
    %c0_169 = arith.constant 0 : index
    %c0_170 = arith.constant 0 : index
    %398 = vector.load %arg9[%c0_169, %c0_170] : memref<256x512xbf16, #tpu.memory_space<vmem>>, vector<256x512xbf16>
    %cst_171 = arith.constant dense<0.000000e+00> : vector<2x512xf32>
    %399 = tpu.matmul %397, %398, %cst_171 {dimension_numbers = #tpu.dot_dimension_numbers<[1], [0], [0], [1], [0, 0, 1, 1], [], []>} : vector<2x256xbf16>, vector<256x512xbf16>, vector<2x512xf32> -> vector<2x512xf32>
    %c0_172 = arith.constant 0 : index
    %c0_173 = arith.constant 0 : index
    %400 = vector.load %arg10[%c0_172, %c0_173] : memref<1x512xf32, #tpu.memory_space<vmem>>, vector<1x512xf32>
    %401 = vector.broadcast %400 : vector<1x512xf32> to vector<2x512xf32>
    %402 = arith.addf %399, %401 : vector<2x512xf32>
    %403 = vector.extract_strided_slice %402 {offsets = [0, 0], sizes = [2, 128], strides = [1, 1]} : vector<2x512xf32> to vector<2x128xf32>
    %404 = arith.negf %403 : vector<2x128xf32>
    %405 = math.exp %404 : vector<2x128xf32>
    %cst_174 = arith.constant 1.000000e+00 : f32
    %406 = vector.broadcast %cst_174 : f32 to vector<2x128xf32>
    %407 = arith.addf %406, %405 : vector<2x128xf32>
    %408 = arith.divf %406, %407 : vector<2x128xf32>
    %409 = vector.extract_strided_slice %402 {offsets = [0, 128], sizes = [2, 128], strides = [1, 1]} : vector<2x512xf32> to vector<2x128xf32>
    %410 = arith.negf %409 : vector<2x128xf32>
    %411 = math.exp %410 : vector<2x128xf32>
    %cst_175 = arith.constant 1.000000e+00 : f32
    %412 = vector.broadcast %cst_175 : f32 to vector<2x128xf32>
    %413 = arith.addf %412, %411 : vector<2x128xf32>
    %414 = arith.divf %412, %413 : vector<2x128xf32>
    %415 = vector.extract_strided_slice %402 {offsets = [0, 256], sizes = [2, 128], strides = [1, 1]} : vector<2x512xf32> to vector<2x128xf32>
    %416 = math.tanh %415 : vector<2x128xf32>
    %417 = vector.extract_strided_slice %402 {offsets = [0, 384], sizes = [2, 128], strides = [1, 1]} : vector<2x512xf32> to vector<2x128xf32>
    %418 = arith.negf %417 : vector<2x128xf32>
    %419 = math.exp %418 : vector<2x128xf32>
    %cst_176 = arith.constant 1.000000e+00 : f32
    %420 = vector.broadcast %cst_176 : f32 to vector<2x128xf32>
    %421 = arith.addf %420, %419 : vector<2x128xf32>
    %422 = arith.divf %420, %421 : vector<2x128xf32>
    %423 = arith.mulf %414, %395 : vector<2x128xf32>
    %424 = arith.mulf %408, %416 : vector<2x128xf32>
    %425 = arith.addf %423, %424 : vector<2x128xf32>
    %426 = math.tanh %425 : vector<2x128xf32>
    %427 = arith.mulf %422, %426 : vector<2x128xf32>
    %c3_i32_177 = arith.constant 3 : i32
    %428 = arith.addi %26, %c3_i32_177 : i32
    %c2_i32_178 = arith.constant 2 : i32
    %429 = arith.subi %428, %c2_i32_178 : i32
    %430 = vector.broadcast %429 : i32 to vector<2x1xi32>
    %431 = arith.cmpi slt, %430, %25 : vector<2x1xi32>
    %432 = vector.shape_cast %431 : vector<2x1xi1> to vector<2x1xi1>
    %433 = vector.broadcast %432 : vector<2x1xi1> to vector<2x128xi1>
    %434 = arith.select %433, %427, %306 : vector<2x128xi1>, vector<2x128xf32>
    %c0_179 = arith.constant 0 : index
    %c0_180 = arith.constant 0 : index
    %435 = vector.load %arg20[%c0_179, %c0_180] : memref<2x128xf32, #tpu.memory_space<vmem>>, vector<2x128xf32>
    tpu.vector_store %arg20[%c0_179, %c0_180], %434 {strides = array<i32>} : memref<2x128xf32, #tpu.memory_space<vmem>>, vector<2x128xf32>,
    %436 = vector.shape_cast %431 : vector<2x1xi1> to vector<2x1xi1>
    %437 = vector.broadcast %436 : vector<2x1xi1> to vector<2x128xi1>
    %438 = arith.select %437, %425, %395 : vector<2x128xi1>, vector<2x128xf32>
    %c0_181 = arith.constant 0 : index
    %c0_182 = arith.constant 0 : index
    %439 = vector.load %arg21[%c0_181, %c0_182] : memref<2x128xf32, #tpu.memory_space<vmem>>, vector<2x128xf32>
    tpu.vector_store %arg21[%c0_181, %c0_182], %438 {strides = array<i32>} : memref<2x128xf32, #tpu.memory_space<vmem>>, vector<2x128xf32>,
    %cst_183 = arith.constant 0.000000e+00 : f32
    %440 = vector.shape_cast %431 : vector<2x1xi1> to vector<2x1xi1>
    %441 = vector.broadcast %440 : vector<2x1xi1> to vector<2x128xi1>
    %442 = vector.broadcast %cst_183 : f32 to vector<2x128xf32>
    %443 = arith.select %441, %427, %442 : vector<2x128xi1>, vector<2x128xf32>
    %c0_184 = arith.constant 0 : index
    %c1_185 = arith.constant 1 : index
    %c0_186 = arith.constant 0 : index
    %444 = vector.load %arg15[%c0_184, %c1_185, %c0_186] : memref<2x8x128xf32, #tpu.memory_space<vmem>>, vector<2x1x128xf32>
    %445 = vector.shape_cast %444 : vector<2x1x128xf32> to vector<2x128xf32>
    %446 = vector.shape_cast %443 : vector<2x128xf32> to vector<2x1x128xf32>
    tpu.vector_store %arg15[%c0_184, %c1_185, %c0_186], %446 {strides = array<i32>} : memref<2x8x128xf32, #tpu.memory_space<vmem>>, vector<2x1x128xf32>,
    %c0_187 = arith.constant 0 : index
    %c0_188 = arith.constant 0 : index
    %447 = vector.load %arg16[%c0_187, %c0_188] : memref<2x128xf32, #tpu.memory_space<vmem>>, vector<2x128xf32>
    %c0_189 = arith.constant 0 : index
    %c0_190 = arith.constant 0 : index
    %448 = vector.load %arg18[%c0_189, %c0_190] : memref<2x128xf32, #tpu.memory_space<vmem>>, vector<2x128xf32>
    %c0_191 = arith.constant 0 : index
    %c0_192 = arith.constant 0 : index
    %449 = vector.load %arg20[%c0_191, %c0_192] : memref<2x128xf32, #tpu.memory_space<vmem>>, vector<2x128xf32>
    %c0_193 = arith.constant 0 : index
    %c0_194 = arith.constant 0 : index
    %450 = vector.load %arg17[%c0_193, %c0_194] : memref<2x128xf32, #tpu.memory_space<vmem>>, vector<2x128xf32>
    %c0_195 = arith.constant 0 : index
    %c4 = arith.constant 4 : index
    %c0_196 = arith.constant 0 : index
    %451 = vector.load %arg14[%c0_195, %c4, %c0_196] : memref<2x8x512xf32, #tpu.memory_space<vmem>>, vector<2x1x512xf32>
    %452 = vector.shape_cast %451 : vector<2x1x512xf32> to vector<2x512xf32>
    %453 = arith.truncf %447 : vector<2x128xf32> to vector<2x128xbf16>
    %c0_197 = arith.constant 0 : index
    %c0_198 = arith.constant 0 : index
    %454 = vector.load %arg6[%c0_197, %c0_198] : memref<128x512xbf16, #tpu.memory_space<vmem>>, vector<128x512xbf16>
    %cst_199 = arith.constant dense<0.000000e+00> : vector<2x512xf32>
    %455 = tpu.matmul %453, %454, %cst_199 {dimension_numbers = #tpu.dot_dimension_numbers<[1], [0], [0], [1], [0, 0, 1, 1], [], []>} : vector<2x128xbf16>, vector<128x512xbf16>, vector<2x512xf32> -> vector<2x512xf32>
    %456 = arith.addf %452, %455 : vector<2x512xf32>
    %457 = vector.extract_strided_slice %456 {offsets = [0, 0], sizes = [2, 128], strides = [1, 1]} : vector<2x512xf32> to vector<2x128xf32>
    %458 = arith.negf %457 : vector<2x128xf32>
    %459 = math.exp %458 : vector<2x128xf32>
    %cst_200 = arith.constant 1.000000e+00 : f32
    %460 = vector.broadcast %cst_200 : f32 to vector<2x128xf32>
    %461 = arith.addf %460, %459 : vector<2x128xf32>
    %462 = arith.divf %460, %461 : vector<2x128xf32>
    %463 = vector.extract_strided_slice %456 {offsets = [0, 128], sizes = [2, 128], strides = [1, 1]} : vector<2x512xf32> to vector<2x128xf32>
    %464 = arith.negf %463 : vector<2x128xf32>
    %465 = math.exp %464 : vector<2x128xf32>
    %cst_201 = arith.constant 1.000000e+00 : f32
    %466 = vector.broadcast %cst_201 : f32 to vector<2x128xf32>
    %467 = arith.addf %466, %465 : vector<2x128xf32>
    %468 = arith.divf %466, %467 : vector<2x128xf32>
    %469 = vector.extract_strided_slice %456 {offsets = [0, 256], sizes = [2, 128], strides = [1, 1]} : vector<2x512xf32> to vector<2x128xf32>
    %470 = math.tanh %469 : vector<2x128xf32>
    %471 = vector.extract_strided_slice %456 {offsets = [0, 384], sizes = [2, 128], strides = [1, 1]} : vector<2x512xf32> to vector<2x128xf32>
    %472 = arith.negf %471 : vector<2x128xf32>
    %473 = math.exp %472 : vector<2x128xf32>
    %cst_202 = arith.constant 1.000000e+00 : f32
    %474 = vector.broadcast %cst_202 : f32 to vector<2x128xf32>
    %475 = arith.addf %474, %473 : vector<2x128xf32>
    %476 = arith.divf %474, %475 : vector<2x128xf32>
    %477 = arith.mulf %468, %450 : vector<2x128xf32>
    %478 = arith.mulf %462, %470 : vector<2x128xf32>
    %479 = arith.addf %477, %478 : vector<2x128xf32>
    %480 = math.tanh %479 : vector<2x128xf32>
    %481 = arith.mulf %476, %480 : vector<2x128xf32>
    %c4_i32 = arith.constant 4 : i32
    %482 = arith.addi %26, %c4_i32 : i32
    %483 = vector.broadcast %482 : i32 to vector<2x1xi32>
    %484 = arith.cmpi slt, %483, %25 : vector<2x1xi32>
    %485 = vector.shape_cast %484 : vector<2x1xi1> to vector<2x1xi1>
    %486 = vector.broadcast %485 : vector<2x1xi1> to vector<2x128xi1>
    %487 = arith.select %486, %481, %447 : vector<2x128xi1>, vector<2x128xf32>
    %c0_203 = arith.constant 0 : index
    %c0_204 = arith.constant 0 : index
    %488 = vector.load %arg16[%c0_203, %c0_204] : memref<2x128xf32, #tpu.memory_space<vmem>>, vector<2x128xf32>
    tpu.vector_store %arg16[%c0_203, %c0_204], %487 {strides = array<i32>} : memref<2x128xf32, #tpu.memory_space<vmem>>, vector<2x128xf32>,
    %489 = vector.shape_cast %484 : vector<2x1xi1> to vector<2x1xi1>
    %490 = vector.broadcast %489 : vector<2x1xi1> to vector<2x128xi1>
    %491 = arith.select %490, %479, %450 : vector<2x128xi1>, vector<2x128xf32>
    %c0_205 = arith.constant 0 : index
    %c0_206 = arith.constant 0 : index
    %492 = vector.load %arg17[%c0_205, %c0_206] : memref<2x128xf32, #tpu.memory_space<vmem>>, vector<2x128xf32>
    tpu.vector_store %arg17[%c0_205, %c0_206], %491 {strides = array<i32>} : memref<2x128xf32, #tpu.memory_space<vmem>>, vector<2x128xf32>,
    %c0_207 = arith.constant 0 : index
    %c0_208 = arith.constant 0 : index
    %493 = vector.load %arg19[%c0_207, %c0_208] : memref<2x128xf32, #tpu.memory_space<vmem>>, vector<2x128xf32>
    %494 = tpu.concatenate %447, %448 in 1 : vector<2x128xf32>, vector<2x128xf32> -> vector<2x256xf32>
    %495 = arith.truncf %494 : vector<2x256xf32> to vector<2x256xbf16>
    %c0_209 = arith.constant 0 : index
    %c0_210 = arith.constant 0 : index
    %496 = vector.load %arg7[%c0_209, %c0_210] : memref<256x512xbf16, #tpu.memory_space<vmem>>, vector<256x512xbf16>
    %cst_211 = arith.constant dense<0.000000e+00> : vector<2x512xf32>
    %497 = tpu.matmul %495, %496, %cst_211 {dimension_numbers = #tpu.dot_dimension_numbers<[1], [0], [0], [1], [0, 0, 1, 1], [], []>} : vector<2x256xbf16>, vector<256x512xbf16>, vector<2x512xf32> -> vector<2x512xf32>
    %c0_212 = arith.constant 0 : index
    %c0_213 = arith.constant 0 : index
    %498 = vector.load %arg8[%c0_212, %c0_213] : memref<1x512xf32, #tpu.memory_space<vmem>>, vector<1x512xf32>
    %499 = vector.broadcast %498 : vector<1x512xf32> to vector<2x512xf32>
    %500 = arith.addf %497, %499 : vector<2x512xf32>
    %501 = vector.extract_strided_slice %500 {offsets = [0, 0], sizes = [2, 128], strides = [1, 1]} : vector<2x512xf32> to vector<2x128xf32>
    %502 = arith.negf %501 : vector<2x128xf32>
    %503 = math.exp %502 : vector<2x128xf32>
    %cst_214 = arith.constant 1.000000e+00 : f32
    %504 = vector.broadcast %cst_214 : f32 to vector<2x128xf32>
    %505 = arith.addf %504, %503 : vector<2x128xf32>
    %506 = arith.divf %504, %505 : vector<2x128xf32>
    %507 = vector.extract_strided_slice %500 {offsets = [0, 128], sizes = [2, 128], strides = [1, 1]} : vector<2x512xf32> to vector<2x128xf32>
    %508 = arith.negf %507 : vector<2x128xf32>
    %509 = math.exp %508 : vector<2x128xf32>
    %cst_215 = arith.constant 1.000000e+00 : f32
    %510 = vector.broadcast %cst_215 : f32 to vector<2x128xf32>
    %511 = arith.addf %510, %509 : vector<2x128xf32>
    %512 = arith.divf %510, %511 : vector<2x128xf32>
    %513 = vector.extract_strided_slice %500 {offsets = [0, 256], sizes = [2, 128], strides = [1, 1]} : vector<2x512xf32> to vector<2x128xf32>
    %514 = math.tanh %513 : vector<2x128xf32>
    %515 = vector.extract_strided_slice %500 {offsets = [0, 384], sizes = [2, 128], strides = [1, 1]} : vector<2x512xf32> to vector<2x128xf32>
    %516 = arith.negf %515 : vector<2x128xf32>
    %517 = math.exp %516 : vector<2x128xf32>
    %cst_216 = arith.constant 1.000000e+00 : f32
    %518 = vector.broadcast %cst_216 : f32 to vector<2x128xf32>
    %519 = arith.addf %518, %517 : vector<2x128xf32>
    %520 = arith.divf %518, %519 : vector<2x128xf32>
    %521 = arith.mulf %512, %493 : vector<2x128xf32>
    %522 = arith.mulf %506, %514 : vector<2x128xf32>
    %523 = arith.addf %521, %522 : vector<2x128xf32>
    %524 = math.tanh %523 : vector<2x128xf32>
    %525 = arith.mulf %520, %524 : vector<2x128xf32>
    %c4_i32_217 = arith.constant 4 : i32
    %526 = arith.addi %26, %c4_i32_217 : i32
    %c1_i32_218 = arith.constant 1 : i32
    %527 = arith.subi %526, %c1_i32_218 : i32
    %528 = vector.broadcast %527 : i32 to vector<2x1xi32>
    %529 = arith.cmpi slt, %528, %25 : vector<2x1xi32>
    %530 = vector.shape_cast %529 : vector<2x1xi1> to vector<2x1xi1>
    %531 = vector.broadcast %530 : vector<2x1xi1> to vector<2x128xi1>
    %532 = arith.select %531, %525, %448 : vector<2x128xi1>, vector<2x128xf32>
    %c0_219 = arith.constant 0 : index
    %c0_220 = arith.constant 0 : index
    %533 = vector.load %arg18[%c0_219, %c0_220] : memref<2x128xf32, #tpu.memory_space<vmem>>, vector<2x128xf32>
    tpu.vector_store %arg18[%c0_219, %c0_220], %532 {strides = array<i32>} : memref<2x128xf32, #tpu.memory_space<vmem>>, vector<2x128xf32>,
    %534 = vector.shape_cast %529 : vector<2x1xi1> to vector<2x1xi1>
    %535 = vector.broadcast %534 : vector<2x1xi1> to vector<2x128xi1>
    %536 = arith.select %535, %523, %493 : vector<2x128xi1>, vector<2x128xf32>
    %c0_221 = arith.constant 0 : index
    %c0_222 = arith.constant 0 : index
    %537 = vector.load %arg19[%c0_221, %c0_222] : memref<2x128xf32, #tpu.memory_space<vmem>>, vector<2x128xf32>
    tpu.vector_store %arg19[%c0_221, %c0_222], %536 {strides = array<i32>} : memref<2x128xf32, #tpu.memory_space<vmem>>, vector<2x128xf32>,
    %c0_223 = arith.constant 0 : index
    %c0_224 = arith.constant 0 : index
    %538 = vector.load %arg21[%c0_223, %c0_224] : memref<2x128xf32, #tpu.memory_space<vmem>>, vector<2x128xf32>
    %539 = tpu.concatenate %448, %449 in 1 : vector<2x128xf32>, vector<2x128xf32> -> vector<2x256xf32>
    %540 = arith.truncf %539 : vector<2x256xf32> to vector<2x256xbf16>
    %c0_225 = arith.constant 0 : index
    %c0_226 = arith.constant 0 : index
    %541 = vector.load %arg9[%c0_225, %c0_226] : memref<256x512xbf16, #tpu.memory_space<vmem>>, vector<256x512xbf16>
    %cst_227 = arith.constant dense<0.000000e+00> : vector<2x512xf32>
    %542 = tpu.matmul %540, %541, %cst_227 {dimension_numbers = #tpu.dot_dimension_numbers<[1], [0], [0], [1], [0, 0, 1, 1], [], []>} : vector<2x256xbf16>, vector<256x512xbf16>, vector<2x512xf32> -> vector<2x512xf32>
    %c0_228 = arith.constant 0 : index
    %c0_229 = arith.constant 0 : index
    %543 = vector.load %arg10[%c0_228, %c0_229] : memref<1x512xf32, #tpu.memory_space<vmem>>, vector<1x512xf32>
    %544 = vector.broadcast %543 : vector<1x512xf32> to vector<2x512xf32>
    %545 = arith.addf %542, %544 : vector<2x512xf32>
    %546 = vector.extract_strided_slice %545 {offsets = [0, 0], sizes = [2, 128], strides = [1, 1]} : vector<2x512xf32> to vector<2x128xf32>
    %547 = arith.negf %546 : vector<2x128xf32>
    %548 = math.exp %547 : vector<2x128xf32>
    %cst_230 = arith.constant 1.000000e+00 : f32
    %549 = vector.broadcast %cst_230 : f32 to vector<2x128xf32>
    %550 = arith.addf %549, %548 : vector<2x128xf32>
    %551 = arith.divf %549, %550 : vector<2x128xf32>
    %552 = vector.extract_strided_slice %545 {offsets = [0, 128], sizes = [2, 128], strides = [1, 1]} : vector<2x512xf32> to vector<2x128xf32>
    %553 = arith.negf %552 : vector<2x128xf32>
    %554 = math.exp %553 : vector<2x128xf32>
    %cst_231 = arith.constant 1.000000e+00 : f32
    %555 = vector.broadcast %cst_231 : f32 to vector<2x128xf32>
    %556 = arith.addf %555, %554 : vector<2x128xf32>
    %557 = arith.divf %555, %556 : vector<2x128xf32>
    %558 = vector.extract_strided_slice %545 {offsets = [0, 256], sizes = [2, 128], strides = [1, 1]} : vector<2x512xf32> to vector<2x128xf32>
    %559 = math.tanh %558 : vector<2x128xf32>
    %560 = vector.extract_strided_slice %545 {offsets = [0, 384], sizes = [2, 128], strides = [1, 1]} : vector<2x512xf32> to vector<2x128xf32>
    %561 = arith.negf %560 : vector<2x128xf32>
    %562 = math.exp %561 : vector<2x128xf32>
    %cst_232 = arith.constant 1.000000e+00 : f32
    %563 = vector.broadcast %cst_232 : f32 to vector<2x128xf32>
    %564 = arith.addf %563, %562 : vector<2x128xf32>
    %565 = arith.divf %563, %564 : vector<2x128xf32>
    %566 = arith.mulf %557, %538 : vector<2x128xf32>
    %567 = arith.mulf %551, %559 : vector<2x128xf32>
    %568 = arith.addf %566, %567 : vector<2x128xf32>
    %569 = math.tanh %568 : vector<2x128xf32>
    %570 = arith.mulf %565, %569 : vector<2x128xf32>
    %c4_i32_233 = arith.constant 4 : i32
    %571 = arith.addi %26, %c4_i32_233 : i32
    %c2_i32_234 = arith.constant 2 : i32
    %572 = arith.subi %571, %c2_i32_234 : i32
    %573 = vector.broadcast %572 : i32 to vector<2x1xi32>
    %574 = arith.cmpi slt, %573, %25 : vector<2x1xi32>
    %575 = vector.shape_cast %574 : vector<2x1xi1> to vector<2x1xi1>
    %576 = vector.broadcast %575 : vector<2x1xi1> to vector<2x128xi1>
    %577 = arith.select %576, %570, %449 : vector<2x128xi1>, vector<2x128xf32>
    %c0_235 = arith.constant 0 : index
    %c0_236 = arith.constant 0 : index
    %578 = vector.load %arg20[%c0_235, %c0_236] : memref<2x128xf32, #tpu.memory_space<vmem>>, vector<2x128xf32>
    tpu.vector_store %arg20[%c0_235, %c0_236], %577 {strides = array<i32>} : memref<2x128xf32, #tpu.memory_space<vmem>>, vector<2x128xf32>,
    %579 = vector.shape_cast %574 : vector<2x1xi1> to vector<2x1xi1>
    %580 = vector.broadcast %579 : vector<2x1xi1> to vector<2x128xi1>
    %581 = arith.select %580, %568, %538 : vector<2x128xi1>, vector<2x128xf32>
    %c0_237 = arith.constant 0 : index
    %c0_238 = arith.constant 0 : index
    %582 = vector.load %arg21[%c0_237, %c0_238] : memref<2x128xf32, #tpu.memory_space<vmem>>, vector<2x128xf32>
    tpu.vector_store %arg21[%c0_237, %c0_238], %581 {strides = array<i32>} : memref<2x128xf32, #tpu.memory_space<vmem>>, vector<2x128xf32>,
    %cst_239 = arith.constant 0.000000e+00 : f32
    %583 = vector.shape_cast %574 : vector<2x1xi1> to vector<2x1xi1>
    %584 = vector.broadcast %583 : vector<2x1xi1> to vector<2x128xi1>
    %585 = vector.broadcast %cst_239 : f32 to vector<2x128xf32>
    %586 = arith.select %584, %570, %585 : vector<2x128xi1>, vector<2x128xf32>
    %c0_240 = arith.constant 0 : index
    %c2_241 = arith.constant 2 : index
    %c0_242 = arith.constant 0 : index
    %587 = vector.load %arg15[%c0_240, %c2_241, %c0_242] : memref<2x8x128xf32, #tpu.memory_space<vmem>>, vector<2x1x128xf32>
    %588 = vector.shape_cast %587 : vector<2x1x128xf32> to vector<2x128xf32>
    %589 = vector.shape_cast %586 : vector<2x128xf32> to vector<2x1x128xf32>
    tpu.vector_store %arg15[%c0_240, %c2_241, %c0_242], %589 {strides = array<i32>} : memref<2x8x128xf32, #tpu.memory_space<vmem>>, vector<2x1x128xf32>,
    %c0_243 = arith.constant 0 : index
    %c0_244 = arith.constant 0 : index
    %590 = vector.load %arg16[%c0_243, %c0_244] : memref<2x128xf32, #tpu.memory_space<vmem>>, vector<2x128xf32>
    %c0_245 = arith.constant 0 : index
    %c0_246 = arith.constant 0 : index
    %591 = vector.load %arg18[%c0_245, %c0_246] : memref<2x128xf32, #tpu.memory_space<vmem>>, vector<2x128xf32>
    %c0_247 = arith.constant 0 : index
    %c0_248 = arith.constant 0 : index
    %592 = vector.load %arg20[%c0_247, %c0_248] : memref<2x128xf32, #tpu.memory_space<vmem>>, vector<2x128xf32>
    %c0_249 = arith.constant 0 : index
    %c0_250 = arith.constant 0 : index
    %593 = vector.load %arg17[%c0_249, %c0_250] : memref<2x128xf32, #tpu.memory_space<vmem>>, vector<2x128xf32>
    %c0_251 = arith.constant 0 : index
    %c5 = arith.constant 5 : index
    %c0_252 = arith.constant 0 : index
    %594 = vector.load %arg14[%c0_251, %c5, %c0_252] : memref<2x8x512xf32, #tpu.memory_space<vmem>>, vector<2x1x512xf32>
    %595 = vector.shape_cast %594 : vector<2x1x512xf32> to vector<2x512xf32>
    %596 = arith.truncf %590 : vector<2x128xf32> to vector<2x128xbf16>
    %c0_253 = arith.constant 0 : index
    %c0_254 = arith.constant 0 : index
    %597 = vector.load %arg6[%c0_253, %c0_254] : memref<128x512xbf16, #tpu.memory_space<vmem>>, vector<128x512xbf16>
    %cst_255 = arith.constant dense<0.000000e+00> : vector<2x512xf32>
    %598 = tpu.matmul %596, %597, %cst_255 {dimension_numbers = #tpu.dot_dimension_numbers<[1], [0], [0], [1], [0, 0, 1, 1], [], []>} : vector<2x128xbf16>, vector<128x512xbf16>, vector<2x512xf32> -> vector<2x512xf32>
    %599 = arith.addf %595, %598 : vector<2x512xf32>
    %600 = vector.extract_strided_slice %599 {offsets = [0, 0], sizes = [2, 128], strides = [1, 1]} : vector<2x512xf32> to vector<2x128xf32>
    %601 = arith.negf %600 : vector<2x128xf32>
    %602 = math.exp %601 : vector<2x128xf32>
    %cst_256 = arith.constant 1.000000e+00 : f32
    %603 = vector.broadcast %cst_256 : f32 to vector<2x128xf32>
    %604 = arith.addf %603, %602 : vector<2x128xf32>
    %605 = arith.divf %603, %604 : vector<2x128xf32>
    %606 = vector.extract_strided_slice %599 {offsets = [0, 128], sizes = [2, 128], strides = [1, 1]} : vector<2x512xf32> to vector<2x128xf32>
    %607 = arith.negf %606 : vector<2x128xf32>
    %608 = math.exp %607 : vector<2x128xf32>
    %cst_257 = arith.constant 1.000000e+00 : f32
    %609 = vector.broadcast %cst_257 : f32 to vector<2x128xf32>
    %610 = arith.addf %609, %608 : vector<2x128xf32>
    %611 = arith.divf %609, %610 : vector<2x128xf32>
    %612 = vector.extract_strided_slice %599 {offsets = [0, 256], sizes = [2, 128], strides = [1, 1]} : vector<2x512xf32> to vector<2x128xf32>
    %613 = math.tanh %612 : vector<2x128xf32>
    %614 = vector.extract_strided_slice %599 {offsets = [0, 384], sizes = [2, 128], strides = [1, 1]} : vector<2x512xf32> to vector<2x128xf32>
    %615 = arith.negf %614 : vector<2x128xf32>
    %616 = math.exp %615 : vector<2x128xf32>
    %cst_258 = arith.constant 1.000000e+00 : f32
    %617 = vector.broadcast %cst_258 : f32 to vector<2x128xf32>
    %618 = arith.addf %617, %616 : vector<2x128xf32>
    %619 = arith.divf %617, %618 : vector<2x128xf32>
    %620 = arith.mulf %611, %593 : vector<2x128xf32>
    %621 = arith.mulf %605, %613 : vector<2x128xf32>
    %622 = arith.addf %620, %621 : vector<2x128xf32>
    %623 = math.tanh %622 : vector<2x128xf32>
    %624 = arith.mulf %619, %623 : vector<2x128xf32>
    %c5_i32 = arith.constant 5 : i32
    %625 = arith.addi %26, %c5_i32 : i32
    %626 = vector.broadcast %625 : i32 to vector<2x1xi32>
    %627 = arith.cmpi slt, %626, %25 : vector<2x1xi32>
    %628 = vector.shape_cast %627 : vector<2x1xi1> to vector<2x1xi1>
    %629 = vector.broadcast %628 : vector<2x1xi1> to vector<2x128xi1>
    %630 = arith.select %629, %624, %590 : vector<2x128xi1>, vector<2x128xf32>
    %c0_259 = arith.constant 0 : index
    %c0_260 = arith.constant 0 : index
    %631 = vector.load %arg16[%c0_259, %c0_260] : memref<2x128xf32, #tpu.memory_space<vmem>>, vector<2x128xf32>
    tpu.vector_store %arg16[%c0_259, %c0_260], %630 {strides = array<i32>} : memref<2x128xf32, #tpu.memory_space<vmem>>, vector<2x128xf32>,
    %632 = vector.shape_cast %627 : vector<2x1xi1> to vector<2x1xi1>
    %633 = vector.broadcast %632 : vector<2x1xi1> to vector<2x128xi1>
    %634 = arith.select %633, %622, %593 : vector<2x128xi1>, vector<2x128xf32>
    %c0_261 = arith.constant 0 : index
    %c0_262 = arith.constant 0 : index
    %635 = vector.load %arg17[%c0_261, %c0_262] : memref<2x128xf32, #tpu.memory_space<vmem>>, vector<2x128xf32>
    tpu.vector_store %arg17[%c0_261, %c0_262], %634 {strides = array<i32>} : memref<2x128xf32, #tpu.memory_space<vmem>>, vector<2x128xf32>,
    %c0_263 = arith.constant 0 : index
    %c0_264 = arith.constant 0 : index
    %636 = vector.load %arg19[%c0_263, %c0_264] : memref<2x128xf32, #tpu.memory_space<vmem>>, vector<2x128xf32>
    %637 = tpu.concatenate %590, %591 in 1 : vector<2x128xf32>, vector<2x128xf32> -> vector<2x256xf32>
    %638 = arith.truncf %637 : vector<2x256xf32> to vector<2x256xbf16>
    %c0_265 = arith.constant 0 : index
    %c0_266 = arith.constant 0 : index
    %639 = vector.load %arg7[%c0_265, %c0_266] : memref<256x512xbf16, #tpu.memory_space<vmem>>, vector<256x512xbf16>
    %cst_267 = arith.constant dense<0.000000e+00> : vector<2x512xf32>
    %640 = tpu.matmul %638, %639, %cst_267 {dimension_numbers = #tpu.dot_dimension_numbers<[1], [0], [0], [1], [0, 0, 1, 1], [], []>} : vector<2x256xbf16>, vector<256x512xbf16>, vector<2x512xf32> -> vector<2x512xf32>
    %c0_268 = arith.constant 0 : index
    %c0_269 = arith.constant 0 : index
    %641 = vector.load %arg8[%c0_268, %c0_269] : memref<1x512xf32, #tpu.memory_space<vmem>>, vector<1x512xf32>
    %642 = vector.broadcast %641 : vector<1x512xf32> to vector<2x512xf32>
    %643 = arith.addf %640, %642 : vector<2x512xf32>
    %644 = vector.extract_strided_slice %643 {offsets = [0, 0], sizes = [2, 128], strides = [1, 1]} : vector<2x512xf32> to vector<2x128xf32>
    %645 = arith.negf %644 : vector<2x128xf32>
    %646 = math.exp %645 : vector<2x128xf32>
    %cst_270 = arith.constant 1.000000e+00 : f32
    %647 = vector.broadcast %cst_270 : f32 to vector<2x128xf32>
    %648 = arith.addf %647, %646 : vector<2x128xf32>
    %649 = arith.divf %647, %648 : vector<2x128xf32>
    %650 = vector.extract_strided_slice %643 {offsets = [0, 128], sizes = [2, 128], strides = [1, 1]} : vector<2x512xf32> to vector<2x128xf32>
    %651 = arith.negf %650 : vector<2x128xf32>
    %652 = math.exp %651 : vector<2x128xf32>
    %cst_271 = arith.constant 1.000000e+00 : f32
    %653 = vector.broadcast %cst_271 : f32 to vector<2x128xf32>
    %654 = arith.addf %653, %652 : vector<2x128xf32>
    %655 = arith.divf %653, %654 : vector<2x128xf32>
    %656 = vector.extract_strided_slice %643 {offsets = [0, 256], sizes = [2, 128], strides = [1, 1]} : vector<2x512xf32> to vector<2x128xf32>
    %657 = math.tanh %656 : vector<2x128xf32>
    %658 = vector.extract_strided_slice %643 {offsets = [0, 384], sizes = [2, 128], strides = [1, 1]} : vector<2x512xf32> to vector<2x128xf32>
    %659 = arith.negf %658 : vector<2x128xf32>
    %660 = math.exp %659 : vector<2x128xf32>
    %cst_272 = arith.constant 1.000000e+00 : f32
    %661 = vector.broadcast %cst_272 : f32 to vector<2x128xf32>
    %662 = arith.addf %661, %660 : vector<2x128xf32>
    %663 = arith.divf %661, %662 : vector<2x128xf32>
    %664 = arith.mulf %655, %636 : vector<2x128xf32>
    %665 = arith.mulf %649, %657 : vector<2x128xf32>
    %666 = arith.addf %664, %665 : vector<2x128xf32>
    %667 = math.tanh %666 : vector<2x128xf32>
    %668 = arith.mulf %663, %667 : vector<2x128xf32>
    %c5_i32_273 = arith.constant 5 : i32
    %669 = arith.addi %26, %c5_i32_273 : i32
    %c1_i32_274 = arith.constant 1 : i32
    %670 = arith.subi %669, %c1_i32_274 : i32
    %671 = vector.broadcast %670 : i32 to vector<2x1xi32>
    %672 = arith.cmpi slt, %671, %25 : vector<2x1xi32>
    %673 = vector.shape_cast %672 : vector<2x1xi1> to vector<2x1xi1>
    %674 = vector.broadcast %673 : vector<2x1xi1> to vector<2x128xi1>
    %675 = arith.select %674, %668, %591 : vector<2x128xi1>, vector<2x128xf32>
    %c0_275 = arith.constant 0 : index
    %c0_276 = arith.constant 0 : index
    %676 = vector.load %arg18[%c0_275, %c0_276] : memref<2x128xf32, #tpu.memory_space<vmem>>, vector<2x128xf32>
    tpu.vector_store %arg18[%c0_275, %c0_276], %675 {strides = array<i32>} : memref<2x128xf32, #tpu.memory_space<vmem>>, vector<2x128xf32>,
    %677 = vector.shape_cast %672 : vector<2x1xi1> to vector<2x1xi1>
    %678 = vector.broadcast %677 : vector<2x1xi1> to vector<2x128xi1>
    %679 = arith.select %678, %666, %636 : vector<2x128xi1>, vector<2x128xf32>
    %c0_277 = arith.constant 0 : index
    %c0_278 = arith.constant 0 : index
    %680 = vector.load %arg19[%c0_277, %c0_278] : memref<2x128xf32, #tpu.memory_space<vmem>>, vector<2x128xf32>
    tpu.vector_store %arg19[%c0_277, %c0_278], %679 {strides = array<i32>} : memref<2x128xf32, #tpu.memory_space<vmem>>, vector<2x128xf32>,
    %c0_279 = arith.constant 0 : index
    %c0_280 = arith.constant 0 : index
    %681 = vector.load %arg21[%c0_279, %c0_280] : memref<2x128xf32, #tpu.memory_space<vmem>>, vector<2x128xf32>
    %682 = tpu.concatenate %591, %592 in 1 : vector<2x128xf32>, vector<2x128xf32> -> vector<2x256xf32>
    %683 = arith.truncf %682 : vector<2x256xf32> to vector<2x256xbf16>
    %c0_281 = arith.constant 0 : index
    %c0_282 = arith.constant 0 : index
    %684 = vector.load %arg9[%c0_281, %c0_282] : memref<256x512xbf16, #tpu.memory_space<vmem>>, vector<256x512xbf16>
    %cst_283 = arith.constant dense<0.000000e+00> : vector<2x512xf32>
    %685 = tpu.matmul %683, %684, %cst_283 {dimension_numbers = #tpu.dot_dimension_numbers<[1], [0], [0], [1], [0, 0, 1, 1], [], []>} : vector<2x256xbf16>, vector<256x512xbf16>, vector<2x512xf32> -> vector<2x512xf32>
    %c0_284 = arith.constant 0 : index
    %c0_285 = arith.constant 0 : index
    %686 = vector.load %arg10[%c0_284, %c0_285] : memref<1x512xf32, #tpu.memory_space<vmem>>, vector<1x512xf32>
    %687 = vector.broadcast %686 : vector<1x512xf32> to vector<2x512xf32>
    %688 = arith.addf %685, %687 : vector<2x512xf32>
    %689 = vector.extract_strided_slice %688 {offsets = [0, 0], sizes = [2, 128], strides = [1, 1]} : vector<2x512xf32> to vector<2x128xf32>
    %690 = arith.negf %689 : vector<2x128xf32>
    %691 = math.exp %690 : vector<2x128xf32>
    %cst_286 = arith.constant 1.000000e+00 : f32
    %692 = vector.broadcast %cst_286 : f32 to vector<2x128xf32>
    %693 = arith.addf %692, %691 : vector<2x128xf32>
    %694 = arith.divf %692, %693 : vector<2x128xf32>
    %695 = vector.extract_strided_slice %688 {offsets = [0, 128], sizes = [2, 128], strides = [1, 1]} : vector<2x512xf32> to vector<2x128xf32>
    %696 = arith.negf %695 : vector<2x128xf32>
    %697 = math.exp %696 : vector<2x128xf32>
    %cst_287 = arith.constant 1.000000e+00 : f32
    %698 = vector.broadcast %cst_287 : f32 to vector<2x128xf32>
    %699 = arith.addf %698, %697 : vector<2x128xf32>
    %700 = arith.divf %698, %699 : vector<2x128xf32>
    %701 = vector.extract_strided_slice %688 {offsets = [0, 256], sizes = [2, 128], strides = [1, 1]} : vector<2x512xf32> to vector<2x128xf32>
    %702 = math.tanh %701 : vector<2x128xf32>
    %703 = vector.extract_strided_slice %688 {offsets = [0, 384], sizes = [2, 128], strides = [1, 1]} : vector<2x512xf32> to vector<2x128xf32>
    %704 = arith.negf %703 : vector<2x128xf32>
    %705 = math.exp %704 : vector<2x128xf32>
    %cst_288 = arith.constant 1.000000e+00 : f32
    %706 = vector.broadcast %cst_288 : f32 to vector<2x128xf32>
    %707 = arith.addf %706, %705 : vector<2x128xf32>
    %708 = arith.divf %706, %707 : vector<2x128xf32>
    %709 = arith.mulf %700, %681 : vector<2x128xf32>
    %710 = arith.mulf %694, %702 : vector<2x128xf32>
    %711 = arith.addf %709, %710 : vector<2x128xf32>
    %712 = math.tanh %711 : vector<2x128xf32>
    %713 = arith.mulf %708, %712 : vector<2x128xf32>
    %c5_i32_289 = arith.constant 5 : i32
    %714 = arith.addi %26, %c5_i32_289 : i32
    %c2_i32_290 = arith.constant 2 : i32
    %715 = arith.subi %714, %c2_i32_290 : i32
    %716 = vector.broadcast %715 : i32 to vector<2x1xi32>
    %717 = arith.cmpi slt, %716, %25 : vector<2x1xi32>
    %718 = vector.shape_cast %717 : vector<2x1xi1> to vector<2x1xi1>
    %719 = vector.broadcast %718 : vector<2x1xi1> to vector<2x128xi1>
    %720 = arith.select %719, %713, %592 : vector<2x128xi1>, vector<2x128xf32>
    %c0_291 = arith.constant 0 : index
    %c0_292 = arith.constant 0 : index
    %721 = vector.load %arg20[%c0_291, %c0_292] : memref<2x128xf32, #tpu.memory_space<vmem>>, vector<2x128xf32>
    tpu.vector_store %arg20[%c0_291, %c0_292], %720 {strides = array<i32>} : memref<2x128xf32, #tpu.memory_space<vmem>>, vector<2x128xf32>,
    %722 = vector.shape_cast %717 : vector<2x1xi1> to vector<2x1xi1>
    %723 = vector.broadcast %722 : vector<2x1xi1> to vector<2x128xi1>
    %724 = arith.select %723, %711, %681 : vector<2x128xi1>, vector<2x128xf32>
    %c0_293 = arith.constant 0 : index
    %c0_294 = arith.constant 0 : index
    %725 = vector.load %arg21[%c0_293, %c0_294] : memref<2x128xf32, #tpu.memory_space<vmem>>, vector<2x128xf32>
    tpu.vector_store %arg21[%c0_293, %c0_294], %724 {strides = array<i32>} : memref<2x128xf32, #tpu.memory_space<vmem>>, vector<2x128xf32>,
    %cst_295 = arith.constant 0.000000e+00 : f32
    %726 = vector.shape_cast %717 : vector<2x1xi1> to vector<2x1xi1>
    %727 = vector.broadcast %726 : vector<2x1xi1> to vector<2x128xi1>
    %728 = vector.broadcast %cst_295 : f32 to vector<2x128xf32>
    %729 = arith.select %727, %713, %728 : vector<2x128xi1>, vector<2x128xf32>
    %c0_296 = arith.constant 0 : index
    %c3_297 = arith.constant 3 : index
    %c0_298 = arith.constant 0 : index
    %730 = vector.load %arg15[%c0_296, %c3_297, %c0_298] : memref<2x8x128xf32, #tpu.memory_space<vmem>>, vector<2x1x128xf32>
    %731 = vector.shape_cast %730 : vector<2x1x128xf32> to vector<2x128xf32>
    %732 = vector.shape_cast %729 : vector<2x128xf32> to vector<2x1x128xf32>
    tpu.vector_store %arg15[%c0_296, %c3_297, %c0_298], %732 {strides = array<i32>} : memref<2x8x128xf32, #tpu.memory_space<vmem>>, vector<2x1x128xf32>,
    %c0_299 = arith.constant 0 : index
    %c0_300 = arith.constant 0 : index
    %733 = vector.load %arg16[%c0_299, %c0_300] : memref<2x128xf32, #tpu.memory_space<vmem>>, vector<2x128xf32>
    %c0_301 = arith.constant 0 : index
    %c0_302 = arith.constant 0 : index
    %734 = vector.load %arg18[%c0_301, %c0_302] : memref<2x128xf32, #tpu.memory_space<vmem>>, vector<2x128xf32>
    %c0_303 = arith.constant 0 : index
    %c0_304 = arith.constant 0 : index
    %735 = vector.load %arg20[%c0_303, %c0_304] : memref<2x128xf32, #tpu.memory_space<vmem>>, vector<2x128xf32>
    %c0_305 = arith.constant 0 : index
    %c0_306 = arith.constant 0 : index
    %736 = vector.load %arg17[%c0_305, %c0_306] : memref<2x128xf32, #tpu.memory_space<vmem>>, vector<2x128xf32>
    %c0_307 = arith.constant 0 : index
    %c6 = arith.constant 6 : index
    %c0_308 = arith.constant 0 : index
    %737 = vector.load %arg14[%c0_307, %c6, %c0_308] : memref<2x8x512xf32, #tpu.memory_space<vmem>>, vector<2x1x512xf32>
    %738 = vector.shape_cast %737 : vector<2x1x512xf32> to vector<2x512xf32>
    %739 = arith.truncf %733 : vector<2x128xf32> to vector<2x128xbf16>
    %c0_309 = arith.constant 0 : index
    %c0_310 = arith.constant 0 : index
    %740 = vector.load %arg6[%c0_309, %c0_310] : memref<128x512xbf16, #tpu.memory_space<vmem>>, vector<128x512xbf16>
    %cst_311 = arith.constant dense<0.000000e+00> : vector<2x512xf32>
    %741 = tpu.matmul %739, %740, %cst_311 {dimension_numbers = #tpu.dot_dimension_numbers<[1], [0], [0], [1], [0, 0, 1, 1], [], []>} : vector<2x128xbf16>, vector<128x512xbf16>, vector<2x512xf32> -> vector<2x512xf32>
    %742 = arith.addf %738, %741 : vector<2x512xf32>
    %743 = vector.extract_strided_slice %742 {offsets = [0, 0], sizes = [2, 128], strides = [1, 1]} : vector<2x512xf32> to vector<2x128xf32>
    %744 = arith.negf %743 : vector<2x128xf32>
    %745 = math.exp %744 : vector<2x128xf32>
    %cst_312 = arith.constant 1.000000e+00 : f32
    %746 = vector.broadcast %cst_312 : f32 to vector<2x128xf32>
    %747 = arith.addf %746, %745 : vector<2x128xf32>
    %748 = arith.divf %746, %747 : vector<2x128xf32>
    %749 = vector.extract_strided_slice %742 {offsets = [0, 128], sizes = [2, 128], strides = [1, 1]} : vector<2x512xf32> to vector<2x128xf32>
    %750 = arith.negf %749 : vector<2x128xf32>
    %751 = math.exp %750 : vector<2x128xf32>
    %cst_313 = arith.constant 1.000000e+00 : f32
    %752 = vector.broadcast %cst_313 : f32 to vector<2x128xf32>
    %753 = arith.addf %752, %751 : vector<2x128xf32>
    %754 = arith.divf %752, %753 : vector<2x128xf32>
    %755 = vector.extract_strided_slice %742 {offsets = [0, 256], sizes = [2, 128], strides = [1, 1]} : vector<2x512xf32> to vector<2x128xf32>
    %756 = math.tanh %755 : vector<2x128xf32>
    %757 = vector.extract_strided_slice %742 {offsets = [0, 384], sizes = [2, 128], strides = [1, 1]} : vector<2x512xf32> to vector<2x128xf32>
    %758 = arith.negf %757 : vector<2x128xf32>
    %759 = math.exp %758 : vector<2x128xf32>
    %cst_314 = arith.constant 1.000000e+00 : f32
    %760 = vector.broadcast %cst_314 : f32 to vector<2x128xf32>
    %761 = arith.addf %760, %759 : vector<2x128xf32>
    %762 = arith.divf %760, %761 : vector<2x128xf32>
    %763 = arith.mulf %754, %736 : vector<2x128xf32>
    %764 = arith.mulf %748, %756 : vector<2x128xf32>
    %765 = arith.addf %763, %764 : vector<2x128xf32>
    %766 = math.tanh %765 : vector<2x128xf32>
    %767 = arith.mulf %762, %766 : vector<2x128xf32>
    %c6_i32 = arith.constant 6 : i32
    %768 = arith.addi %26, %c6_i32 : i32
    %769 = vector.broadcast %768 : i32 to vector<2x1xi32>
    %770 = arith.cmpi slt, %769, %25 : vector<2x1xi32>
    %771 = vector.shape_cast %770 : vector<2x1xi1> to vector<2x1xi1>
    %772 = vector.broadcast %771 : vector<2x1xi1> to vector<2x128xi1>
    %773 = arith.select %772, %767, %733 : vector<2x128xi1>, vector<2x128xf32>
    %c0_315 = arith.constant 0 : index
    %c0_316 = arith.constant 0 : index
    %774 = vector.load %arg16[%c0_315, %c0_316] : memref<2x128xf32, #tpu.memory_space<vmem>>, vector<2x128xf32>
    tpu.vector_store %arg16[%c0_315, %c0_316], %773 {strides = array<i32>} : memref<2x128xf32, #tpu.memory_space<vmem>>, vector<2x128xf32>,
    %775 = vector.shape_cast %770 : vector<2x1xi1> to vector<2x1xi1>
    %776 = vector.broadcast %775 : vector<2x1xi1> to vector<2x128xi1>
    %777 = arith.select %776, %765, %736 : vector<2x128xi1>, vector<2x128xf32>
    %c0_317 = arith.constant 0 : index
    %c0_318 = arith.constant 0 : index
    %778 = vector.load %arg17[%c0_317, %c0_318] : memref<2x128xf32, #tpu.memory_space<vmem>>, vector<2x128xf32>
    tpu.vector_store %arg17[%c0_317, %c0_318], %777 {strides = array<i32>} : memref<2x128xf32, #tpu.memory_space<vmem>>, vector<2x128xf32>,
    %c0_319 = arith.constant 0 : index
    %c0_320 = arith.constant 0 : index
    %779 = vector.load %arg19[%c0_319, %c0_320] : memref<2x128xf32, #tpu.memory_space<vmem>>, vector<2x128xf32>
    %780 = tpu.concatenate %733, %734 in 1 : vector<2x128xf32>, vector<2x128xf32> -> vector<2x256xf32>
    %781 = arith.truncf %780 : vector<2x256xf32> to vector<2x256xbf16>
    %c0_321 = arith.constant 0 : index
    %c0_322 = arith.constant 0 : index
    %782 = vector.load %arg7[%c0_321, %c0_322] : memref<256x512xbf16, #tpu.memory_space<vmem>>, vector<256x512xbf16>
    %cst_323 = arith.constant dense<0.000000e+00> : vector<2x512xf32>
    %783 = tpu.matmul %781, %782, %cst_323 {dimension_numbers = #tpu.dot_dimension_numbers<[1], [0], [0], [1], [0, 0, 1, 1], [], []>} : vector<2x256xbf16>, vector<256x512xbf16>, vector<2x512xf32> -> vector<2x512xf32>
    %c0_324 = arith.constant 0 : index
    %c0_325 = arith.constant 0 : index
    %784 = vector.load %arg8[%c0_324, %c0_325] : memref<1x512xf32, #tpu.memory_space<vmem>>, vector<1x512xf32>
    %785 = vector.broadcast %784 : vector<1x512xf32> to vector<2x512xf32>
    %786 = arith.addf %783, %785 : vector<2x512xf32>
    %787 = vector.extract_strided_slice %786 {offsets = [0, 0], sizes = [2, 128], strides = [1, 1]} : vector<2x512xf32> to vector<2x128xf32>
    %788 = arith.negf %787 : vector<2x128xf32>
    %789 = math.exp %788 : vector<2x128xf32>
    %cst_326 = arith.constant 1.000000e+00 : f32
    %790 = vector.broadcast %cst_326 : f32 to vector<2x128xf32>
    %791 = arith.addf %790, %789 : vector<2x128xf32>
    %792 = arith.divf %790, %791 : vector<2x128xf32>
    %793 = vector.extract_strided_slice %786 {offsets = [0, 128], sizes = [2, 128], strides = [1, 1]} : vector<2x512xf32> to vector<2x128xf32>
    %794 = arith.negf %793 : vector<2x128xf32>
    %795 = math.exp %794 : vector<2x128xf32>
    %cst_327 = arith.constant 1.000000e+00 : f32
    %796 = vector.broadcast %cst_327 : f32 to vector<2x128xf32>
    %797 = arith.addf %796, %795 : vector<2x128xf32>
    %798 = arith.divf %796, %797 : vector<2x128xf32>
    %799 = vector.extract_strided_slice %786 {offsets = [0, 256], sizes = [2, 128], strides = [1, 1]} : vector<2x512xf32> to vector<2x128xf32>
    %800 = math.tanh %799 : vector<2x128xf32>
    %801 = vector.extract_strided_slice %786 {offsets = [0, 384], sizes = [2, 128], strides = [1, 1]} : vector<2x512xf32> to vector<2x128xf32>
    %802 = arith.negf %801 : vector<2x128xf32>
    %803 = math.exp %802 : vector<2x128xf32>
    %cst_328 = arith.constant 1.000000e+00 : f32
    %804 = vector.broadcast %cst_328 : f32 to vector<2x128xf32>
    %805 = arith.addf %804, %803 : vector<2x128xf32>
    %806 = arith.divf %804, %805 : vector<2x128xf32>
    %807 = arith.mulf %798, %779 : vector<2x128xf32>
    %808 = arith.mulf %792, %800 : vector<2x128xf32>
    %809 = arith.addf %807, %808 : vector<2x128xf32>
    %810 = math.tanh %809 : vector<2x128xf32>
    %811 = arith.mulf %806, %810 : vector<2x128xf32>
    %c6_i32_329 = arith.constant 6 : i32
    %812 = arith.addi %26, %c6_i32_329 : i32
    %c1_i32_330 = arith.constant 1 : i32
    %813 = arith.subi %812, %c1_i32_330 : i32
    %814 = vector.broadcast %813 : i32 to vector<2x1xi32>
    %815 = arith.cmpi slt, %814, %25 : vector<2x1xi32>
    %816 = vector.shape_cast %815 : vector<2x1xi1> to vector<2x1xi1>
    %817 = vector.broadcast %816 : vector<2x1xi1> to vector<2x128xi1>
    %818 = arith.select %817, %811, %734 : vector<2x128xi1>, vector<2x128xf32>
    %c0_331 = arith.constant 0 : index
    %c0_332 = arith.constant 0 : index
    %819 = vector.load %arg18[%c0_331, %c0_332] : memref<2x128xf32, #tpu.memory_space<vmem>>, vector<2x128xf32>
    tpu.vector_store %arg18[%c0_331, %c0_332], %818 {strides = array<i32>} : memref<2x128xf32, #tpu.memory_space<vmem>>, vector<2x128xf32>,
    %820 = vector.shape_cast %815 : vector<2x1xi1> to vector<2x1xi1>
    %821 = vector.broadcast %820 : vector<2x1xi1> to vector<2x128xi1>
    %822 = arith.select %821, %809, %779 : vector<2x128xi1>, vector<2x128xf32>
    %c0_333 = arith.constant 0 : index
    %c0_334 = arith.constant 0 : index
    %823 = vector.load %arg19[%c0_333, %c0_334] : memref<2x128xf32, #tpu.memory_space<vmem>>, vector<2x128xf32>
    tpu.vector_store %arg19[%c0_333, %c0_334], %822 {strides = array<i32>} : memref<2x128xf32, #tpu.memory_space<vmem>>, vector<2x128xf32>,
    %c0_335 = arith.constant 0 : index
    %c0_336 = arith.constant 0 : index
    %824 = vector.load %arg21[%c0_335, %c0_336] : memref<2x128xf32, #tpu.memory_space<vmem>>, vector<2x128xf32>
    %825 = tpu.concatenate %734, %735 in 1 : vector<2x128xf32>, vector<2x128xf32> -> vector<2x256xf32>
    %826 = arith.truncf %825 : vector<2x256xf32> to vector<2x256xbf16>
    %c0_337 = arith.constant 0 : index
    %c0_338 = arith.constant 0 : index
    %827 = vector.load %arg9[%c0_337, %c0_338] : memref<256x512xbf16, #tpu.memory_space<vmem>>, vector<256x512xbf16>
    %cst_339 = arith.constant dense<0.000000e+00> : vector<2x512xf32>
    %828 = tpu.matmul %826, %827, %cst_339 {dimension_numbers = #tpu.dot_dimension_numbers<[1], [0], [0], [1], [0, 0, 1, 1], [], []>} : vector<2x256xbf16>, vector<256x512xbf16>, vector<2x512xf32> -> vector<2x512xf32>
    %c0_340 = arith.constant 0 : index
    %c0_341 = arith.constant 0 : index
    %829 = vector.load %arg10[%c0_340, %c0_341] : memref<1x512xf32, #tpu.memory_space<vmem>>, vector<1x512xf32>
    %830 = vector.broadcast %829 : vector<1x512xf32> to vector<2x512xf32>
    %831 = arith.addf %828, %830 : vector<2x512xf32>
    %832 = vector.extract_strided_slice %831 {offsets = [0, 0], sizes = [2, 128], strides = [1, 1]} : vector<2x512xf32> to vector<2x128xf32>
    %833 = arith.negf %832 : vector<2x128xf32>
    %834 = math.exp %833 : vector<2x128xf32>
    %cst_342 = arith.constant 1.000000e+00 : f32
    %835 = vector.broadcast %cst_342 : f32 to vector<2x128xf32>
    %836 = arith.addf %835, %834 : vector<2x128xf32>
    %837 = arith.divf %835, %836 : vector<2x128xf32>
    %838 = vector.extract_strided_slice %831 {offsets = [0, 128], sizes = [2, 128], strides = [1, 1]} : vector<2x512xf32> to vector<2x128xf32>
    %839 = arith.negf %838 : vector<2x128xf32>
    %840 = math.exp %839 : vector<2x128xf32>
    %cst_343 = arith.constant 1.000000e+00 : f32
    %841 = vector.broadcast %cst_343 : f32 to vector<2x128xf32>
    %842 = arith.addf %841, %840 : vector<2x128xf32>
    %843 = arith.divf %841, %842 : vector<2x128xf32>
    %844 = vector.extract_strided_slice %831 {offsets = [0, 256], sizes = [2, 128], strides = [1, 1]} : vector<2x512xf32> to vector<2x128xf32>
    %845 = math.tanh %844 : vector<2x128xf32>
    %846 = vector.extract_strided_slice %831 {offsets = [0, 384], sizes = [2, 128], strides = [1, 1]} : vector<2x512xf32> to vector<2x128xf32>
    %847 = arith.negf %846 : vector<2x128xf32>
    %848 = math.exp %847 : vector<2x128xf32>
    %cst_344 = arith.constant 1.000000e+00 : f32
    %849 = vector.broadcast %cst_344 : f32 to vector<2x128xf32>
    %850 = arith.addf %849, %848 : vector<2x128xf32>
    %851 = arith.divf %849, %850 : vector<2x128xf32>
    %852 = arith.mulf %843, %824 : vector<2x128xf32>
    %853 = arith.mulf %837, %845 : vector<2x128xf32>
    %854 = arith.addf %852, %853 : vector<2x128xf32>
    %855 = math.tanh %854 : vector<2x128xf32>
    %856 = arith.mulf %851, %855 : vector<2x128xf32>
    %c6_i32_345 = arith.constant 6 : i32
    %857 = arith.addi %26, %c6_i32_345 : i32
    %c2_i32_346 = arith.constant 2 : i32
    %858 = arith.subi %857, %c2_i32_346 : i32
    %859 = vector.broadcast %858 : i32 to vector<2x1xi32>
    %860 = arith.cmpi slt, %859, %25 : vector<2x1xi32>
    %861 = vector.shape_cast %860 : vector<2x1xi1> to vector<2x1xi1>
    %862 = vector.broadcast %861 : vector<2x1xi1> to vector<2x128xi1>
    %863 = arith.select %862, %856, %735 : vector<2x128xi1>, vector<2x128xf32>
    %c0_347 = arith.constant 0 : index
    %c0_348 = arith.constant 0 : index
    %864 = vector.load %arg20[%c0_347, %c0_348] : memref<2x128xf32, #tpu.memory_space<vmem>>, vector<2x128xf32>
    tpu.vector_store %arg20[%c0_347, %c0_348], %863 {strides = array<i32>} : memref<2x128xf32, #tpu.memory_space<vmem>>, vector<2x128xf32>,
    %865 = vector.shape_cast %860 : vector<2x1xi1> to vector<2x1xi1>
    %866 = vector.broadcast %865 : vector<2x1xi1> to vector<2x128xi1>
    %867 = arith.select %866, %854, %824 : vector<2x128xi1>, vector<2x128xf32>
    %c0_349 = arith.constant 0 : index
    %c0_350 = arith.constant 0 : index
    %868 = vector.load %arg21[%c0_349, %c0_350] : memref<2x128xf32, #tpu.memory_space<vmem>>, vector<2x128xf32>
    tpu.vector_store %arg21[%c0_349, %c0_350], %867 {strides = array<i32>} : memref<2x128xf32, #tpu.memory_space<vmem>>, vector<2x128xf32>,
    %cst_351 = arith.constant 0.000000e+00 : f32
    %869 = vector.shape_cast %860 : vector<2x1xi1> to vector<2x1xi1>
    %870 = vector.broadcast %869 : vector<2x1xi1> to vector<2x128xi1>
    %871 = vector.broadcast %cst_351 : f32 to vector<2x128xf32>
    %872 = arith.select %870, %856, %871 : vector<2x128xi1>, vector<2x128xf32>
    %c0_352 = arith.constant 0 : index
    %c4_353 = arith.constant 4 : index
    %c0_354 = arith.constant 0 : index
    %873 = vector.load %arg15[%c0_352, %c4_353, %c0_354] : memref<2x8x128xf32, #tpu.memory_space<vmem>>, vector<2x1x128xf32>
    %874 = vector.shape_cast %873 : vector<2x1x128xf32> to vector<2x128xf32>
    %875 = vector.shape_cast %872 : vector<2x128xf32> to vector<2x1x128xf32>
    tpu.vector_store %arg15[%c0_352, %c4_353, %c0_354], %875 {strides = array<i32>} : memref<2x8x128xf32, #tpu.memory_space<vmem>>, vector<2x1x128xf32>,
    %c0_355 = arith.constant 0 : index
    %c0_356 = arith.constant 0 : index
    %876 = vector.load %arg16[%c0_355, %c0_356] : memref<2x128xf32, #tpu.memory_space<vmem>>, vector<2x128xf32>
    %c0_357 = arith.constant 0 : index
    %c0_358 = arith.constant 0 : index
    %877 = vector.load %arg18[%c0_357, %c0_358] : memref<2x128xf32, #tpu.memory_space<vmem>>, vector<2x128xf32>
    %c0_359 = arith.constant 0 : index
    %c0_360 = arith.constant 0 : index
    %878 = vector.load %arg20[%c0_359, %c0_360] : memref<2x128xf32, #tpu.memory_space<vmem>>, vector<2x128xf32>
    %c0_361 = arith.constant 0 : index
    %c0_362 = arith.constant 0 : index
    %879 = vector.load %arg17[%c0_361, %c0_362] : memref<2x128xf32, #tpu.memory_space<vmem>>, vector<2x128xf32>
    %c0_363 = arith.constant 0 : index
    %c7 = arith.constant 7 : index
    %c0_364 = arith.constant 0 : index
    %880 = vector.load %arg14[%c0_363, %c7, %c0_364] : memref<2x8x512xf32, #tpu.memory_space<vmem>>, vector<2x1x512xf32>
    %881 = vector.shape_cast %880 : vector<2x1x512xf32> to vector<2x512xf32>
    %882 = arith.truncf %876 : vector<2x128xf32> to vector<2x128xbf16>
    %c0_365 = arith.constant 0 : index
    %c0_366 = arith.constant 0 : index
    %883 = vector.load %arg6[%c0_365, %c0_366] : memref<128x512xbf16, #tpu.memory_space<vmem>>, vector<128x512xbf16>
    %cst_367 = arith.constant dense<0.000000e+00> : vector<2x512xf32>
    %884 = tpu.matmul %882, %883, %cst_367 {dimension_numbers = #tpu.dot_dimension_numbers<[1], [0], [0], [1], [0, 0, 1, 1], [], []>} : vector<2x128xbf16>, vector<128x512xbf16>, vector<2x512xf32> -> vector<2x512xf32>
    %885 = arith.addf %881, %884 : vector<2x512xf32>
    %886 = vector.extract_strided_slice %885 {offsets = [0, 0], sizes = [2, 128], strides = [1, 1]} : vector<2x512xf32> to vector<2x128xf32>
    %887 = arith.negf %886 : vector<2x128xf32>
    %888 = math.exp %887 : vector<2x128xf32>
    %cst_368 = arith.constant 1.000000e+00 : f32
    %889 = vector.broadcast %cst_368 : f32 to vector<2x128xf32>
    %890 = arith.addf %889, %888 : vector<2x128xf32>
    %891 = arith.divf %889, %890 : vector<2x128xf32>
    %892 = vector.extract_strided_slice %885 {offsets = [0, 128], sizes = [2, 128], strides = [1, 1]} : vector<2x512xf32> to vector<2x128xf32>
    %893 = arith.negf %892 : vector<2x128xf32>
    %894 = math.exp %893 : vector<2x128xf32>
    %cst_369 = arith.constant 1.000000e+00 : f32
    %895 = vector.broadcast %cst_369 : f32 to vector<2x128xf32>
    %896 = arith.addf %895, %894 : vector<2x128xf32>
    %897 = arith.divf %895, %896 : vector<2x128xf32>
    %898 = vector.extract_strided_slice %885 {offsets = [0, 256], sizes = [2, 128], strides = [1, 1]} : vector<2x512xf32> to vector<2x128xf32>
    %899 = math.tanh %898 : vector<2x128xf32>
    %900 = vector.extract_strided_slice %885 {offsets = [0, 384], sizes = [2, 128], strides = [1, 1]} : vector<2x512xf32> to vector<2x128xf32>
    %901 = arith.negf %900 : vector<2x128xf32>
    %902 = math.exp %901 : vector<2x128xf32>
    %cst_370 = arith.constant 1.000000e+00 : f32
    %903 = vector.broadcast %cst_370 : f32 to vector<2x128xf32>
    %904 = arith.addf %903, %902 : vector<2x128xf32>
    %905 = arith.divf %903, %904 : vector<2x128xf32>
    %906 = arith.mulf %897, %879 : vector<2x128xf32>
    %907 = arith.mulf %891, %899 : vector<2x128xf32>
    %908 = arith.addf %906, %907 : vector<2x128xf32>
    %909 = math.tanh %908 : vector<2x128xf32>
    %910 = arith.mulf %905, %909 : vector<2x128xf32>
    %c7_i32 = arith.constant 7 : i32
    %911 = arith.addi %26, %c7_i32 : i32
    %912 = vector.broadcast %911 : i32 to vector<2x1xi32>
    %913 = arith.cmpi slt, %912, %25 : vector<2x1xi32>
    %914 = vector.shape_cast %913 : vector<2x1xi1> to vector<2x1xi1>
    %915 = vector.broadcast %914 : vector<2x1xi1> to vector<2x128xi1>
    %916 = arith.select %915, %910, %876 : vector<2x128xi1>, vector<2x128xf32>
    %c0_371 = arith.constant 0 : index
    %c0_372 = arith.constant 0 : index
    %917 = vector.load %arg16[%c0_371, %c0_372] : memref<2x128xf32, #tpu.memory_space<vmem>>, vector<2x128xf32>
    tpu.vector_store %arg16[%c0_371, %c0_372], %916 {strides = array<i32>} : memref<2x128xf32, #tpu.memory_space<vmem>>, vector<2x128xf32>,
    %918 = vector.shape_cast %913 : vector<2x1xi1> to vector<2x1xi1>
    %919 = vector.broadcast %918 : vector<2x1xi1> to vector<2x128xi1>
    %920 = arith.select %919, %908, %879 : vector<2x128xi1>, vector<2x128xf32>
    %c0_373 = arith.constant 0 : index
    %c0_374 = arith.constant 0 : index
    %921 = vector.load %arg17[%c0_373, %c0_374] : memref<2x128xf32, #tpu.memory_space<vmem>>, vector<2x128xf32>
    tpu.vector_store %arg17[%c0_373, %c0_374], %920 {strides = array<i32>} : memref<2x128xf32, #tpu.memory_space<vmem>>, vector<2x128xf32>,
    %c0_375 = arith.constant 0 : index
    %c0_376 = arith.constant 0 : index
    %922 = vector.load %arg19[%c0_375, %c0_376] : memref<2x128xf32, #tpu.memory_space<vmem>>, vector<2x128xf32>
    %923 = tpu.concatenate %876, %877 in 1 : vector<2x128xf32>, vector<2x128xf32> -> vector<2x256xf32>
    %924 = arith.truncf %923 : vector<2x256xf32> to vector<2x256xbf16>
    %c0_377 = arith.constant 0 : index
    %c0_378 = arith.constant 0 : index
    %925 = vector.load %arg7[%c0_377, %c0_378] : memref<256x512xbf16, #tpu.memory_space<vmem>>, vector<256x512xbf16>
    %cst_379 = arith.constant dense<0.000000e+00> : vector<2x512xf32>
    %926 = tpu.matmul %924, %925, %cst_379 {dimension_numbers = #tpu.dot_dimension_numbers<[1], [0], [0], [1], [0, 0, 1, 1], [], []>} : vector<2x256xbf16>, vector<256x512xbf16>, vector<2x512xf32> -> vector<2x512xf32>
    %c0_380 = arith.constant 0 : index
    %c0_381 = arith.constant 0 : index
    %927 = vector.load %arg8[%c0_380, %c0_381] : memref<1x512xf32, #tpu.memory_space<vmem>>, vector<1x512xf32>
    %928 = vector.broadcast %927 : vector<1x512xf32> to vector<2x512xf32>
    %929 = arith.addf %926, %928 : vector<2x512xf32>
    %930 = vector.extract_strided_slice %929 {offsets = [0, 0], sizes = [2, 128], strides = [1, 1]} : vector<2x512xf32> to vector<2x128xf32>
    %931 = arith.negf %930 : vector<2x128xf32>
    %932 = math.exp %931 : vector<2x128xf32>
    %cst_382 = arith.constant 1.000000e+00 : f32
    %933 = vector.broadcast %cst_382 : f32 to vector<2x128xf32>
    %934 = arith.addf %933, %932 : vector<2x128xf32>
    %935 = arith.divf %933, %934 : vector<2x128xf32>
    %936 = vector.extract_strided_slice %929 {offsets = [0, 128], sizes = [2, 128], strides = [1, 1]} : vector<2x512xf32> to vector<2x128xf32>
    %937 = arith.negf %936 : vector<2x128xf32>
    %938 = math.exp %937 : vector<2x128xf32>
    %cst_383 = arith.constant 1.000000e+00 : f32
    %939 = vector.broadcast %cst_383 : f32 to vector<2x128xf32>
    %940 = arith.addf %939, %938 : vector<2x128xf32>
    %941 = arith.divf %939, %940 : vector<2x128xf32>
    %942 = vector.extract_strided_slice %929 {offsets = [0, 256], sizes = [2, 128], strides = [1, 1]} : vector<2x512xf32> to vector<2x128xf32>
    %943 = math.tanh %942 : vector<2x128xf32>
    %944 = vector.extract_strided_slice %929 {offsets = [0, 384], sizes = [2, 128], strides = [1, 1]} : vector<2x512xf32> to vector<2x128xf32>
    %945 = arith.negf %944 : vector<2x128xf32>
    %946 = math.exp %945 : vector<2x128xf32>
    %cst_384 = arith.constant 1.000000e+00 : f32
    %947 = vector.broadcast %cst_384 : f32 to vector<2x128xf32>
    %948 = arith.addf %947, %946 : vector<2x128xf32>
    %949 = arith.divf %947, %948 : vector<2x128xf32>
    %950 = arith.mulf %941, %922 : vector<2x128xf32>
    %951 = arith.mulf %935, %943 : vector<2x128xf32>
    %952 = arith.addf %950, %951 : vector<2x128xf32>
    %953 = math.tanh %952 : vector<2x128xf32>
    %954 = arith.mulf %949, %953 : vector<2x128xf32>
    %c7_i32_385 = arith.constant 7 : i32
    %955 = arith.addi %26, %c7_i32_385 : i32
    %c1_i32_386 = arith.constant 1 : i32
    %956 = arith.subi %955, %c1_i32_386 : i32
    %957 = vector.broadcast %956 : i32 to vector<2x1xi32>
    %958 = arith.cmpi slt, %957, %25 : vector<2x1xi32>
    %959 = vector.shape_cast %958 : vector<2x1xi1> to vector<2x1xi1>
    %960 = vector.broadcast %959 : vector<2x1xi1> to vector<2x128xi1>
    %961 = arith.select %960, %954, %877 : vector<2x128xi1>, vector<2x128xf32>
    %c0_387 = arith.constant 0 : index
    %c0_388 = arith.constant 0 : index
    %962 = vector.load %arg18[%c0_387, %c0_388] : memref<2x128xf32, #tpu.memory_space<vmem>>, vector<2x128xf32>
    tpu.vector_store %arg18[%c0_387, %c0_388], %961 {strides = array<i32>} : memref<2x128xf32, #tpu.memory_space<vmem>>, vector<2x128xf32>,
    %963 = vector.shape_cast %958 : vector<2x1xi1> to vector<2x1xi1>
    %964 = vector.broadcast %963 : vector<2x1xi1> to vector<2x128xi1>
    %965 = arith.select %964, %952, %922 : vector<2x128xi1>, vector<2x128xf32>
    %c0_389 = arith.constant 0 : index
    %c0_390 = arith.constant 0 : index
    %966 = vector.load %arg19[%c0_389, %c0_390] : memref<2x128xf32, #tpu.memory_space<vmem>>, vector<2x128xf32>
    tpu.vector_store %arg19[%c0_389, %c0_390], %965 {strides = array<i32>} : memref<2x128xf32, #tpu.memory_space<vmem>>, vector<2x128xf32>,
    %c0_391 = arith.constant 0 : index
    %c0_392 = arith.constant 0 : index
    %967 = vector.load %arg21[%c0_391, %c0_392] : memref<2x128xf32, #tpu.memory_space<vmem>>, vector<2x128xf32>
    %968 = tpu.concatenate %877, %878 in 1 : vector<2x128xf32>, vector<2x128xf32> -> vector<2x256xf32>
    %969 = arith.truncf %968 : vector<2x256xf32> to vector<2x256xbf16>
    %c0_393 = arith.constant 0 : index
    %c0_394 = arith.constant 0 : index
    %970 = vector.load %arg9[%c0_393, %c0_394] : memref<256x512xbf16, #tpu.memory_space<vmem>>, vector<256x512xbf16>
    %cst_395 = arith.constant dense<0.000000e+00> : vector<2x512xf32>
    %971 = tpu.matmul %969, %970, %cst_395 {dimension_numbers = #tpu.dot_dimension_numbers<[1], [0], [0], [1], [0, 0, 1, 1], [], []>} : vector<2x256xbf16>, vector<256x512xbf16>, vector<2x512xf32> -> vector<2x512xf32>
    %c0_396 = arith.constant 0 : index
    %c0_397 = arith.constant 0 : index
    %972 = vector.load %arg10[%c0_396, %c0_397] : memref<1x512xf32, #tpu.memory_space<vmem>>, vector<1x512xf32>
    %973 = vector.broadcast %972 : vector<1x512xf32> to vector<2x512xf32>
    %974 = arith.addf %971, %973 : vector<2x512xf32>
    %975 = vector.extract_strided_slice %974 {offsets = [0, 0], sizes = [2, 128], strides = [1, 1]} : vector<2x512xf32> to vector<2x128xf32>
    %976 = arith.negf %975 : vector<2x128xf32>
    %977 = math.exp %976 : vector<2x128xf32>
    %cst_398 = arith.constant 1.000000e+00 : f32
    %978 = vector.broadcast %cst_398 : f32 to vector<2x128xf32>
    %979 = arith.addf %978, %977 : vector<2x128xf32>
    %980 = arith.divf %978, %979 : vector<2x128xf32>
    %981 = vector.extract_strided_slice %974 {offsets = [0, 128], sizes = [2, 128], strides = [1, 1]} : vector<2x512xf32> to vector<2x128xf32>
    %982 = arith.negf %981 : vector<2x128xf32>
    %983 = math.exp %982 : vector<2x128xf32>
    %cst_399 = arith.constant 1.000000e+00 : f32
    %984 = vector.broadcast %cst_399 : f32 to vector<2x128xf32>
    %985 = arith.addf %984, %983 : vector<2x128xf32>
    %986 = arith.divf %984, %985 : vector<2x128xf32>
    %987 = vector.extract_strided_slice %974 {offsets = [0, 256], sizes = [2, 128], strides = [1, 1]} : vector<2x512xf32> to vector<2x128xf32>
    %988 = math.tanh %987 : vector<2x128xf32>
    %989 = vector.extract_strided_slice %974 {offsets = [0, 384], sizes = [2, 128], strides = [1, 1]} : vector<2x512xf32> to vector<2x128xf32>
    %990 = arith.negf %989 : vector<2x128xf32>
    %991 = math.exp %990 : vector<2x128xf32>
    %cst_400 = arith.constant 1.000000e+00 : f32
    %992 = vector.broadcast %cst_400 : f32 to vector<2x128xf32>
    %993 = arith.addf %992, %991 : vector<2x128xf32>
    %994 = arith.divf %992, %993 : vector<2x128xf32>
    %995 = arith.mulf %986, %967 : vector<2x128xf32>
    %996 = arith.mulf %980, %988 : vector<2x128xf32>
    %997 = arith.addf %995, %996 : vector<2x128xf32>
    %998 = math.tanh %997 : vector<2x128xf32>
    %999 = arith.mulf %994, %998 : vector<2x128xf32>
    %c7_i32_401 = arith.constant 7 : i32
    %1000 = arith.addi %26, %c7_i32_401 : i32
    %c2_i32_402 = arith.constant 2 : i32
    %1001 = arith.subi %1000, %c2_i32_402 : i32
    %1002 = vector.broadcast %1001 : i32 to vector<2x1xi32>
    %1003 = arith.cmpi slt, %1002, %25 : vector<2x1xi32>
    %1004 = vector.shape_cast %1003 : vector<2x1xi1> to vector<2x1xi1>
    %1005 = vector.broadcast %1004 : vector<2x1xi1> to vector<2x128xi1>
    %1006 = arith.select %1005, %999, %878 : vector<2x128xi1>, vector<2x128xf32>
    %c0_403 = arith.constant 0 : index
    %c0_404 = arith.constant 0 : index
    %1007 = vector.load %arg20[%c0_403, %c0_404] : memref<2x128xf32, #tpu.memory_space<vmem>>, vector<2x128xf32>
    tpu.vector_store %arg20[%c0_403, %c0_404], %1006 {strides = array<i32>} : memref<2x128xf32, #tpu.memory_space<vmem>>, vector<2x128xf32>,
    %1008 = vector.shape_cast %1003 : vector<2x1xi1> to vector<2x1xi1>
    %1009 = vector.broadcast %1008 : vector<2x1xi1> to vector<2x128xi1>
    %1010 = arith.select %1009, %997, %967 : vector<2x128xi1>, vector<2x128xf32>
    %c0_405 = arith.constant 0 : index
    %c0_406 = arith.constant 0 : index
    %1011 = vector.load %arg21[%c0_405, %c0_406] : memref<2x128xf32, #tpu.memory_space<vmem>>, vector<2x128xf32>
    tpu.vector_store %arg21[%c0_405, %c0_406], %1010 {strides = array<i32>} : memref<2x128xf32, #tpu.memory_space<vmem>>, vector<2x128xf32>,
    %cst_407 = arith.constant 0.000000e+00 : f32
    %1012 = vector.shape_cast %1003 : vector<2x1xi1> to vector<2x1xi1>
    %1013 = vector.broadcast %1012 : vector<2x1xi1> to vector<2x128xi1>
    %1014 = vector.broadcast %cst_407 : f32 to vector<2x128xf32>
    %1015 = arith.select %1013, %999, %1014 : vector<2x128xi1>, vector<2x128xf32>
    %c0_408 = arith.constant 0 : index
    %c5_409 = arith.constant 5 : index
    %c0_410 = arith.constant 0 : index
    %1016 = vector.load %arg15[%c0_408, %c5_409, %c0_410] : memref<2x8x128xf32, #tpu.memory_space<vmem>>, vector<2x1x128xf32>
    %1017 = vector.shape_cast %1016 : vector<2x1x128xf32> to vector<2x128xf32>
    %1018 = vector.shape_cast %1015 : vector<2x128xf32> to vector<2x1x128xf32>
    tpu.vector_store %arg15[%c0_408, %c5_409, %c0_410], %1018 {strides = array<i32>} : memref<2x8x128xf32, #tpu.memory_space<vmem>>, vector<2x1x128xf32>,
    %c0_411 = arith.constant 0 : index
    %c0_412 = arith.constant 0 : index
    %1019 = vector.load %arg16[%c0_411, %c0_412] : memref<2x128xf32, #tpu.memory_space<vmem>>, vector<2x128xf32>
    %c0_413 = arith.constant 0 : index
    %c0_414 = arith.constant 0 : index
    %1020 = vector.load %arg18[%c0_413, %c0_414] : memref<2x128xf32, #tpu.memory_space<vmem>>, vector<2x128xf32>
    %c0_415 = arith.constant 0 : index
    %c0_416 = arith.constant 0 : index
    %1021 = vector.load %arg20[%c0_415, %c0_416] : memref<2x128xf32, #tpu.memory_space<vmem>>, vector<2x128xf32>
    %c0_417 = arith.constant 0 : index
    %c0_418 = arith.constant 0 : index
    %1022 = vector.load %arg19[%c0_417, %c0_418] : memref<2x128xf32, #tpu.memory_space<vmem>>, vector<2x128xf32>
    %1023 = tpu.concatenate %1019, %1020 in 1 : vector<2x128xf32>, vector<2x128xf32> -> vector<2x256xf32>
    %1024 = arith.truncf %1023 : vector<2x256xf32> to vector<2x256xbf16>
    %c0_419 = arith.constant 0 : index
    %c0_420 = arith.constant 0 : index
    %1025 = vector.load %arg7[%c0_419, %c0_420] : memref<256x512xbf16, #tpu.memory_space<vmem>>, vector<256x512xbf16>
    %cst_421 = arith.constant dense<0.000000e+00> : vector<2x512xf32>
    %1026 = tpu.matmul %1024, %1025, %cst_421 {dimension_numbers = #tpu.dot_dimension_numbers<[1], [0], [0], [1], [0, 0, 1, 1], [], []>} : vector<2x256xbf16>, vector<256x512xbf16>, vector<2x512xf32> -> vector<2x512xf32>
    %c0_422 = arith.constant 0 : index
    %c0_423 = arith.constant 0 : index
    %1027 = vector.load %arg8[%c0_422, %c0_423] : memref<1x512xf32, #tpu.memory_space<vmem>>, vector<1x512xf32>
    %1028 = vector.broadcast %1027 : vector<1x512xf32> to vector<2x512xf32>
    %1029 = arith.addf %1026, %1028 : vector<2x512xf32>
    %1030 = vector.extract_strided_slice %1029 {offsets = [0, 0], sizes = [2, 128], strides = [1, 1]} : vector<2x512xf32> to vector<2x128xf32>
    %1031 = arith.negf %1030 : vector<2x128xf32>
    %1032 = math.exp %1031 : vector<2x128xf32>
    %cst_424 = arith.constant 1.000000e+00 : f32
    %1033 = vector.broadcast %cst_424 : f32 to vector<2x128xf32>
    %1034 = arith.addf %1033, %1032 : vector<2x128xf32>
    %1035 = arith.divf %1033, %1034 : vector<2x128xf32>
    %1036 = vector.extract_strided_slice %1029 {offsets = [0, 128], sizes = [2, 128], strides = [1, 1]} : vector<2x512xf32> to vector<2x128xf32>
    %1037 = arith.negf %1036 : vector<2x128xf32>
    %1038 = math.exp %1037 : vector<2x128xf32>
    %cst_425 = arith.constant 1.000000e+00 : f32
    %1039 = vector.broadcast %cst_425 : f32 to vector<2x128xf32>
    %1040 = arith.addf %1039, %1038 : vector<2x128xf32>
    %1041 = arith.divf %1039, %1040 : vector<2x128xf32>
    %1042 = vector.extract_strided_slice %1029 {offsets = [0, 256], sizes = [2, 128], strides = [1, 1]} : vector<2x512xf32> to vector<2x128xf32>
    %1043 = math.tanh %1042 : vector<2x128xf32>
    %1044 = vector.extract_strided_slice %1029 {offsets = [0, 384], sizes = [2, 128], strides = [1, 1]} : vector<2x512xf32> to vector<2x128xf32>
    %1045 = arith.negf %1044 : vector<2x128xf32>
    %1046 = math.exp %1045 : vector<2x128xf32>
    %cst_426 = arith.constant 1.000000e+00 : f32
    %1047 = vector.broadcast %cst_426 : f32 to vector<2x128xf32>
    %1048 = arith.addf %1047, %1046 : vector<2x128xf32>
    %1049 = arith.divf %1047, %1048 : vector<2x128xf32>
    %1050 = arith.mulf %1041, %1022 : vector<2x128xf32>
    %1051 = arith.mulf %1035, %1043 : vector<2x128xf32>
    %1052 = arith.addf %1050, %1051 : vector<2x128xf32>
    %1053 = math.tanh %1052 : vector<2x128xf32>
    %1054 = arith.mulf %1049, %1053 : vector<2x128xf32>
    %c8_i32_427 = arith.constant 8 : i32
    %1055 = arith.addi %26, %c8_i32_427 : i32
    %c1_i32_428 = arith.constant 1 : i32
    %1056 = arith.subi %1055, %c1_i32_428 : i32
    %1057 = vector.broadcast %1056 : i32 to vector<2x1xi32>
    %1058 = arith.cmpi slt, %1057, %25 : vector<2x1xi32>
    %1059 = vector.shape_cast %1058 : vector<2x1xi1> to vector<2x1xi1>
    %1060 = vector.broadcast %1059 : vector<2x1xi1> to vector<2x128xi1>
    %1061 = arith.select %1060, %1054, %1020 : vector<2x128xi1>, vector<2x128xf32>
    %c0_429 = arith.constant 0 : index
    %c0_430 = arith.constant 0 : index
    %1062 = vector.load %arg18[%c0_429, %c0_430] : memref<2x128xf32, #tpu.memory_space<vmem>>, vector<2x128xf32>
    tpu.vector_store %arg18[%c0_429, %c0_430], %1061 {strides = array<i32>} : memref<2x128xf32, #tpu.memory_space<vmem>>, vector<2x128xf32>,
    %1063 = vector.shape_cast %1058 : vector<2x1xi1> to vector<2x1xi1>
    %1064 = vector.broadcast %1063 : vector<2x1xi1> to vector<2x128xi1>
    %1065 = arith.select %1064, %1052, %1022 : vector<2x128xi1>, vector<2x128xf32>
    %c0_431 = arith.constant 0 : index
    %c0_432 = arith.constant 0 : index
    %1066 = vector.load %arg19[%c0_431, %c0_432] : memref<2x128xf32, #tpu.memory_space<vmem>>, vector<2x128xf32>
    tpu.vector_store %arg19[%c0_431, %c0_432], %1065 {strides = array<i32>} : memref<2x128xf32, #tpu.memory_space<vmem>>, vector<2x128xf32>,
    %c0_433 = arith.constant 0 : index
    %c0_434 = arith.constant 0 : index
    %1067 = vector.load %arg21[%c0_433, %c0_434] : memref<2x128xf32, #tpu.memory_space<vmem>>, vector<2x128xf32>
    %1068 = tpu.concatenate %1020, %1021 in 1 : vector<2x128xf32>, vector<2x128xf32> -> vector<2x256xf32>
    %1069 = arith.truncf %1068 : vector<2x256xf32> to vector<2x256xbf16>
    %c0_435 = arith.constant 0 : index
    %c0_436 = arith.constant 0 : index
    %1070 = vector.load %arg9[%c0_435, %c0_436] : memref<256x512xbf16, #tpu.memory_space<vmem>>, vector<256x512xbf16>
    %cst_437 = arith.constant dense<0.000000e+00> : vector<2x512xf32>
    %1071 = tpu.matmul %1069, %1070, %cst_437 {dimension_numbers = #tpu.dot_dimension_numbers<[1], [0], [0], [1], [0, 0, 1, 1], [], []>} : vector<2x256xbf16>, vector<256x512xbf16>, vector<2x512xf32> -> vector<2x512xf32>
    %c0_438 = arith.constant 0 : index
    %c0_439 = arith.constant 0 : index
    %1072 = vector.load %arg10[%c0_438, %c0_439] : memref<1x512xf32, #tpu.memory_space<vmem>>, vector<1x512xf32>
    %1073 = vector.broadcast %1072 : vector<1x512xf32> to vector<2x512xf32>
    %1074 = arith.addf %1071, %1073 : vector<2x512xf32>
    %1075 = vector.extract_strided_slice %1074 {offsets = [0, 0], sizes = [2, 128], strides = [1, 1]} : vector<2x512xf32> to vector<2x128xf32>
    %1076 = arith.negf %1075 : vector<2x128xf32>
    %1077 = math.exp %1076 : vector<2x128xf32>
    %cst_440 = arith.constant 1.000000e+00 : f32
    %1078 = vector.broadcast %cst_440 : f32 to vector<2x128xf32>
    %1079 = arith.addf %1078, %1077 : vector<2x128xf32>
    %1080 = arith.divf %1078, %1079 : vector<2x128xf32>
    %1081 = vector.extract_strided_slice %1074 {offsets = [0, 128], sizes = [2, 128], strides = [1, 1]} : vector<2x512xf32> to vector<2x128xf32>
    %1082 = arith.negf %1081 : vector<2x128xf32>
    %1083 = math.exp %1082 : vector<2x128xf32>
    %cst_441 = arith.constant 1.000000e+00 : f32
    %1084 = vector.broadcast %cst_441 : f32 to vector<2x128xf32>
    %1085 = arith.addf %1084, %1083 : vector<2x128xf32>
    %1086 = arith.divf %1084, %1085 : vector<2x128xf32>
    %1087 = vector.extract_strided_slice %1074 {offsets = [0, 256], sizes = [2, 128], strides = [1, 1]} : vector<2x512xf32> to vector<2x128xf32>
    %1088 = math.tanh %1087 : vector<2x128xf32>
    %1089 = vector.extract_strided_slice %1074 {offsets = [0, 384], sizes = [2, 128], strides = [1, 1]} : vector<2x512xf32> to vector<2x128xf32>
    %1090 = arith.negf %1089 : vector<2x128xf32>
    %1091 = math.exp %1090 : vector<2x128xf32>
    %cst_442 = arith.constant 1.000000e+00 : f32
    %1092 = vector.broadcast %cst_442 : f32 to vector<2x128xf32>
    %1093 = arith.addf %1092, %1091 : vector<2x128xf32>
    %1094 = arith.divf %1092, %1093 : vector<2x128xf32>
    %1095 = arith.mulf %1086, %1067 : vector<2x128xf32>
    %1096 = arith.mulf %1080, %1088 : vector<2x128xf32>
    %1097 = arith.addf %1095, %1096 : vector<2x128xf32>
    %1098 = math.tanh %1097 : vector<2x128xf32>
    %1099 = arith.mulf %1094, %1098 : vector<2x128xf32>
    %c8_i32_443 = arith.constant 8 : i32
    %1100 = arith.addi %26, %c8_i32_443 : i32
    %c2_i32_444 = arith.constant 2 : i32
    %1101 = arith.subi %1100, %c2_i32_444 : i32
    %1102 = vector.broadcast %1101 : i32 to vector<2x1xi32>
    %1103 = arith.cmpi slt, %1102, %25 : vector<2x1xi32>
    %1104 = vector.shape_cast %1103 : vector<2x1xi1> to vector<2x1xi1>
    %1105 = vector.broadcast %1104 : vector<2x1xi1> to vector<2x128xi1>
    %1106 = arith.select %1105, %1099, %1021 : vector<2x128xi1>, vector<2x128xf32>
    %c0_445 = arith.constant 0 : index
    %c0_446 = arith.constant 0 : index
    %1107 = vector.load %arg20[%c0_445, %c0_446] : memref<2x128xf32, #tpu.memory_space<vmem>>, vector<2x128xf32>
    tpu.vector_store %arg20[%c0_445, %c0_446], %1106 {strides = array<i32>} : memref<2x128xf32, #tpu.memory_space<vmem>>, vector<2x128xf32>,
    %1108 = vector.shape_cast %1103 : vector<2x1xi1> to vector<2x1xi1>
    %1109 = vector.broadcast %1108 : vector<2x1xi1> to vector<2x128xi1>
    %1110 = arith.select %1109, %1097, %1067 : vector<2x128xi1>, vector<2x128xf32>
    %c0_447 = arith.constant 0 : index
    %c0_448 = arith.constant 0 : index
    %1111 = vector.load %arg21[%c0_447, %c0_448] : memref<2x128xf32, #tpu.memory_space<vmem>>, vector<2x128xf32>
    tpu.vector_store %arg21[%c0_447, %c0_448], %1110 {strides = array<i32>} : memref<2x128xf32, #tpu.memory_space<vmem>>, vector<2x128xf32>,
    %cst_449 = arith.constant 0.000000e+00 : f32
    %1112 = vector.shape_cast %1103 : vector<2x1xi1> to vector<2x1xi1>
    %1113 = vector.broadcast %1112 : vector<2x1xi1> to vector<2x128xi1>
    %1114 = vector.broadcast %cst_449 : f32 to vector<2x128xf32>
    %1115 = arith.select %1113, %1099, %1114 : vector<2x128xi1>, vector<2x128xf32>
    %c0_450 = arith.constant 0 : index
    %c6_451 = arith.constant 6 : index
    %c0_452 = arith.constant 0 : index
    %1116 = vector.load %arg15[%c0_450, %c6_451, %c0_452] : memref<2x8x128xf32, #tpu.memory_space<vmem>>, vector<2x1x128xf32>
    %1117 = vector.shape_cast %1116 : vector<2x1x128xf32> to vector<2x128xf32>
    %1118 = vector.shape_cast %1115 : vector<2x128xf32> to vector<2x1x128xf32>
    tpu.vector_store %arg15[%c0_450, %c6_451, %c0_452], %1118 {strides = array<i32>} : memref<2x8x128xf32, #tpu.memory_space<vmem>>, vector<2x1x128xf32>,
    %c0_453 = arith.constant 0 : index
    %c0_454 = arith.constant 0 : index
    %1119 = vector.load %arg18[%c0_453, %c0_454] : memref<2x128xf32, #tpu.memory_space<vmem>>, vector<2x128xf32>
    %c0_455 = arith.constant 0 : index
    %c0_456 = arith.constant 0 : index
    %1120 = vector.load %arg20[%c0_455, %c0_456] : memref<2x128xf32, #tpu.memory_space<vmem>>, vector<2x128xf32>
    %c0_457 = arith.constant 0 : index
    %c0_458 = arith.constant 0 : index
    %1121 = vector.load %arg21[%c0_457, %c0_458] : memref<2x128xf32, #tpu.memory_space<vmem>>, vector<2x128xf32>
    %1122 = tpu.concatenate %1119, %1120 in 1 : vector<2x128xf32>, vector<2x128xf32> -> vector<2x256xf32>
    %1123 = arith.truncf %1122 : vector<2x256xf32> to vector<2x256xbf16>
    %c0_459 = arith.constant 0 : index
    %c0_460 = arith.constant 0 : index
    %1124 = vector.load %arg9[%c0_459, %c0_460] : memref<256x512xbf16, #tpu.memory_space<vmem>>, vector<256x512xbf16>
    %cst_461 = arith.constant dense<0.000000e+00> : vector<2x512xf32>
    %1125 = tpu.matmul %1123, %1124, %cst_461 {dimension_numbers = #tpu.dot_dimension_numbers<[1], [0], [0], [1], [0, 0, 1, 1], [], []>} : vector<2x256xbf16>, vector<256x512xbf16>, vector<2x512xf32> -> vector<2x512xf32>
    %c0_462 = arith.constant 0 : index
    %c0_463 = arith.constant 0 : index
    %1126 = vector.load %arg10[%c0_462, %c0_463] : memref<1x512xf32, #tpu.memory_space<vmem>>, vector<1x512xf32>
    %1127 = vector.broadcast %1126 : vector<1x512xf32> to vector<2x512xf32>
    %1128 = arith.addf %1125, %1127 : vector<2x512xf32>
    %1129 = vector.extract_strided_slice %1128 {offsets = [0, 0], sizes = [2, 128], strides = [1, 1]} : vector<2x512xf32> to vector<2x128xf32>
    %1130 = arith.negf %1129 : vector<2x128xf32>
    %1131 = math.exp %1130 : vector<2x128xf32>
    %cst_464 = arith.constant 1.000000e+00 : f32
    %1132 = vector.broadcast %cst_464 : f32 to vector<2x128xf32>
    %1133 = arith.addf %1132, %1131 : vector<2x128xf32>
    %1134 = arith.divf %1132, %1133 : vector<2x128xf32>
    %1135 = vector.extract_strided_slice %1128 {offsets = [0, 128], sizes = [2, 128], strides = [1, 1]} : vector<2x512xf32> to vector<2x128xf32>
    %1136 = arith.negf %1135 : vector<2x128xf32>
    %1137 = math.exp %1136 : vector<2x128xf32>
    %cst_465 = arith.constant 1.000000e+00 : f32
    %1138 = vector.broadcast %cst_465 : f32 to vector<2x128xf32>
    %1139 = arith.addf %1138, %1137 : vector<2x128xf32>
    %1140 = arith.divf %1138, %1139 : vector<2x128xf32>
    %1141 = vector.extract_strided_slice %1128 {offsets = [0, 256], sizes = [2, 128], strides = [1, 1]} : vector<2x512xf32> to vector<2x128xf32>
    %1142 = math.tanh %1141 : vector<2x128xf32>
    %1143 = vector.extract_strided_slice %1128 {offsets = [0, 384], sizes = [2, 128], strides = [1, 1]} : vector<2x512xf32> to vector<2x128xf32>
    %1144 = arith.negf %1143 : vector<2x128xf32>
    %1145 = math.exp %1144 : vector<2x128xf32>
    %cst_466 = arith.constant 1.000000e+00 : f32
    %1146 = vector.broadcast %cst_466 : f32 to vector<2x128xf32>
    %1147 = arith.addf %1146, %1145 : vector<2x128xf32>
    %1148 = arith.divf %1146, %1147 : vector<2x128xf32>
    %1149 = arith.mulf %1140, %1121 : vector<2x128xf32>
    %1150 = arith.mulf %1134, %1142 : vector<2x128xf32>
    %1151 = arith.addf %1149, %1150 : vector<2x128xf32>
    %1152 = math.tanh %1151 : vector<2x128xf32>
    %1153 = arith.mulf %1148, %1152 : vector<2x128xf32>
    %c9_i32 = arith.constant 9 : i32
    %1154 = arith.addi %26, %c9_i32 : i32
    %c2_i32_467 = arith.constant 2 : i32
    %1155 = arith.subi %1154, %c2_i32_467 : i32
    %1156 = vector.broadcast %1155 : i32 to vector<2x1xi32>
    %1157 = arith.cmpi slt, %1156, %25 : vector<2x1xi32>
    %1158 = vector.shape_cast %1157 : vector<2x1xi1> to vector<2x1xi1>
    %1159 = vector.broadcast %1158 : vector<2x1xi1> to vector<2x128xi1>
    %1160 = arith.select %1159, %1153, %1120 : vector<2x128xi1>, vector<2x128xf32>
    %c0_468 = arith.constant 0 : index
    %c0_469 = arith.constant 0 : index
    %1161 = vector.load %arg20[%c0_468, %c0_469] : memref<2x128xf32, #tpu.memory_space<vmem>>, vector<2x128xf32>
    tpu.vector_store %arg20[%c0_468, %c0_469], %1160 {strides = array<i32>} : memref<2x128xf32, #tpu.memory_space<vmem>>, vector<2x128xf32>,
    %1162 = vector.shape_cast %1157 : vector<2x1xi1> to vector<2x1xi1>
    %1163 = vector.broadcast %1162 : vector<2x1xi1> to vector<2x128xi1>
    %1164 = arith.select %1163, %1151, %1121 : vector<2x128xi1>, vector<2x128xf32>
    %c0_470 = arith.constant 0 : index
    %c0_471 = arith.constant 0 : index
    %1165 = vector.load %arg21[%c0_470, %c0_471] : memref<2x128xf32, #tpu.memory_space<vmem>>, vector<2x128xf32>
    tpu.vector_store %arg21[%c0_470, %c0_471], %1164 {strides = array<i32>} : memref<2x128xf32, #tpu.memory_space<vmem>>, vector<2x128xf32>,
    %cst_472 = arith.constant 0.000000e+00 : f32
    %1166 = vector.shape_cast %1157 : vector<2x1xi1> to vector<2x1xi1>
    %1167 = vector.broadcast %1166 : vector<2x1xi1> to vector<2x128xi1>
    %1168 = vector.broadcast %cst_472 : f32 to vector<2x128xf32>
    %1169 = arith.select %1167, %1153, %1168 : vector<2x128xi1>, vector<2x128xf32>
    %c0_473 = arith.constant 0 : index
    %c7_474 = arith.constant 7 : index
    %c0_475 = arith.constant 0 : index
    %1170 = vector.load %arg15[%c0_473, %c7_474, %c0_475] : memref<2x8x128xf32, #tpu.memory_space<vmem>>, vector<2x1x128xf32>
    %1171 = vector.shape_cast %1170 : vector<2x1x128xf32> to vector<2x128xf32>
    %1172 = vector.shape_cast %1169 : vector<2x128xf32> to vector<2x1x128xf32>
    tpu.vector_store %arg15[%c0_473, %c7_474, %c0_475], %1172 {strides = array<i32>} : memref<2x8x128xf32, #tpu.memory_space<vmem>>, vector<2x1x128xf32>,
    %c0_476 = arith.constant 0 : index
    %c0_477 = arith.constant 0 : index
    %c0_478 = arith.constant 0 : index
    %1173 = vector.load %arg15[%c0_476, %c0_477, %c0_478] : memref<2x8x128xf32, #tpu.memory_space<vmem>>, vector<1x8x128xf32>
    %1174 = vector.shape_cast %1173 : vector<1x8x128xf32> to vector<8x128xf32>
    %1175 = arith.truncf %1174 : vector<8x128xf32> to vector<8x128xbf16>
    %c0_479 = arith.constant 0 : index
    %c0_480 = arith.constant 0 : index
    %1176 = vector.load %arg11[%c0_479, %c0_480] : memref<128x128xbf16, #tpu.memory_space<vmem>>, vector<128x128xbf16>
    %cst_481 = arith.constant dense<0.000000e+00> : vector<8x128xf32>
    %1177 = tpu.matmul %1175, %1176, %cst_481 {dimension_numbers = #tpu.dot_dimension_numbers<[1], [0], [0], [1], [0, 0, 1, 1], [], []>} : vector<8x128xbf16>, vector<128x128xbf16>, vector<8x128xf32> -> vector<8x128xf32>
    %c0_482 = arith.constant 0 : index
    %c0_483 = arith.constant 0 : index
    %1178 = vector.load %arg12[%c0_482, %c0_483] : memref<1x128xf32, #tpu.memory_space<vmem>>, vector<1x128xf32>
    %1179 = vector.broadcast %1178 : vector<1x128xf32> to vector<8x128xf32>
    %1180 = arith.addf %1177, %1179 : vector<8x128xf32>
    %c0_484 = arith.constant 0 : index
    %c0_485 = arith.constant 0 : index
    %c0_486 = arith.constant 0 : index
    %1181 = vector.load %arg13[%c0_484, %c0_485, %c0_486] : memref<2x8x128xf32, #tpu.memory_space<vmem>>, vector<1x8x128xf32>
    %1182 = vector.shape_cast %1181 : vector<1x8x128xf32> to vector<8x128xf32>
    %1183 = vector.shape_cast %1180 : vector<8x128xf32> to vector<1x8x128xf32>
    tpu.vector_store %arg13[%c0_484, %c0_485, %c0_486], %1183 {strides = array<i32>} : memref<2x8x128xf32, #tpu.memory_space<vmem>>, vector<1x8x128xf32>,
    %c1_487 = arith.constant 1 : index
    %c0_488 = arith.constant 0 : index
    %c0_489 = arith.constant 0 : index
    %1184 = vector.load %arg15[%c1_487, %c0_488, %c0_489] : memref<2x8x128xf32, #tpu.memory_space<vmem>>, vector<1x8x128xf32>
    %1185 = vector.shape_cast %1184 : vector<1x8x128xf32> to vector<8x128xf32>
    %1186 = arith.truncf %1185 : vector<8x128xf32> to vector<8x128xbf16>
    %c0_490 = arith.constant 0 : index
    %c0_491 = arith.constant 0 : index
    %1187 = vector.load %arg11[%c0_490, %c0_491] : memref<128x128xbf16, #tpu.memory_space<vmem>>, vector<128x128xbf16>
    %cst_492 = arith.constant dense<0.000000e+00> : vector<8x128xf32>
    %1188 = tpu.matmul %1186, %1187, %cst_492 {dimension_numbers = #tpu.dot_dimension_numbers<[1], [0], [0], [1], [0, 0, 1, 1], [], []>} : vector<8x128xbf16>, vector<128x128xbf16>, vector<8x128xf32> -> vector<8x128xf32>
    %c0_493 = arith.constant 0 : index
    %c0_494 = arith.constant 0 : index
    %1189 = vector.load %arg12[%c0_493, %c0_494] : memref<1x128xf32, #tpu.memory_space<vmem>>, vector<1x128xf32>
    %1190 = vector.broadcast %1189 : vector<1x128xf32> to vector<8x128xf32>
    %1191 = arith.addf %1188, %1190 : vector<8x128xf32>
    %c1_495 = arith.constant 1 : index
    %c0_496 = arith.constant 0 : index
    %c0_497 = arith.constant 0 : index
    %1192 = vector.load %arg13[%c1_495, %c0_496, %c0_497] : memref<2x8x128xf32, #tpu.memory_space<vmem>>, vector<1x8x128xf32>
    %1193 = vector.shape_cast %1192 : vector<1x8x128xf32> to vector<8x128xf32>
    %1194 = vector.shape_cast %1191 : vector<8x128xf32> to vector<1x8x128xf32>
    tpu.vector_store %arg13[%c1_495, %c0_496, %c0_497], %1194 {strides = array<i32>} : memref<2x8x128xf32, #tpu.memory_space<vmem>>, vector<1x8x128xf32>,
    return
  }
  func.func @transform_0(%arg0: i32, %arg1: i32) -> (i32, i32) {
    %c0_i32 = arith.constant 0 : i32
    %c0_i32_0 = arith.constant 0 : i32
    %c0_i32_1 = arith.constant 0 : i32
    return %c0_i32, %c0_i32_0 : i32, i32
  }
  func.func @transform_1(%arg0: i32, %arg1: i32) -> (i32, i32, i32) {
    %c0_i32 = arith.constant 0 : i32
    %c0_i32_0 = arith.constant 0 : i32
    return %arg0, %arg1, %c0_i32 : i32, i32, i32
  }
  func.func @transform_2(%arg0: i32, %arg1: i32) -> (i32, i32) {
    %c0_i32 = arith.constant 0 : i32
    %c0_i32_0 = arith.constant 0 : i32
    %c0_i32_1 = arith.constant 0 : i32
    return %c0_i32, %c0_i32_0 : i32, i32
  }
  func.func @transform_3(%arg0: i32, %arg1: i32) -> (i32, i32) {
    %c0_i32 = arith.constant 0 : i32
    %c0_i32_0 = arith.constant 0 : i32
    %c0_i32_1 = arith.constant 0 : i32
    return %c0_i32, %c0_i32_0 : i32, i32
  }
  func.func @transform_4(%arg0: i32, %arg1: i32) -> (i32, i32) {
    %c0_i32 = arith.constant 0 : i32
    %c0_i32_0 = arith.constant 0 : i32
    %c0_i32_1 = arith.constant 0 : i32
    return %c0_i32, %c0_i32_0 : i32, i32
  }
  func.func @transform_5(%arg0: i32, %arg1: i32) -> (i32, i32) {
    %c0_i32 = arith.constant 0 : i32
    %c0_i32_0 = arith.constant 0 : i32
    %c0_i32_1 = arith.constant 0 : i32
    return %c0_i32, %c0_i32_0 : i32, i32
  }
  func.func @transform_6(%arg0: i32, %arg1: i32) -> (i32, i32) {
    %c0_i32 = arith.constant 0 : i32
    %c0_i32_0 = arith.constant 0 : i32
    %c0_i32_1 = arith.constant 0 : i32
    return %c0_i32, %c0_i32_0 : i32, i32
  }
  func.func @transform_7(%arg0: i32, %arg1: i32) -> (i32, i32) {
    %c0_i32 = arith.constant 0 : i32
    %c0_i32_0 = arith.constant 0 : i32
    %c0_i32_1 = arith.constant 0 : i32
    return %c0_i32, %c0_i32_0 : i32, i32
  }
  func.func @transform_8(%arg0: i32, %arg1: i32) -> (i32, i32) {
    %c0_i32 = arith.constant 0 : i32
    %c0_i32_0 = arith.constant 0 : i32
    %c0_i32_1 = arith.constant 0 : i32
    return %c0_i32, %c0_i32_0 : i32, i32
  }
  func.func @transform_9(%arg0: i32, %arg1: i32) -> (i32, i32) {
    %c0_i32 = arith.constant 0 : i32
    %c0_i32_0 = arith.constant 0 : i32
    %c0_i32_1 = arith.constant 0 : i32
    return %c0_i32, %c0_i32_0 : i32, i32
  }
  func.func @transform_10(%arg0: i32, %arg1: i32) -> (i32, i32) {
    %c0_i32 = arith.constant 0 : i32
    %c0_i32_0 = arith.constant 0 : i32
    %c0_i32_1 = arith.constant 0 : i32
    return %c0_i32, %c0_i32_0 : i32, i32
  }
  func.func @transform_11(%arg0: i32, %arg1: i32) -> (i32, i32, i32) {
    %c0_i32 = arith.constant 0 : i32
    %c0_i32_0 = arith.constant 0 : i32
    return %arg0, %arg1, %c0_i32 : i32, i32, i32
  }
}

</mosaic_0001>

<bundles_post_ra>
// kernel: tpu_custom_call.1
= control target key start
LH: loop header
LB: loop body
LE: loop exit
PB: predicated region body
PF: predicated region fallthrough
CT: control target
= control target key end

     0   :  { %16 = vsyncpa [#allocation11], 0  ;;  %s17985_s0 = inlined_call_operand.vmem [shape: s32[2,1], index: 0, kind: input, shape index: {}]   ;;  %s17986_s1 = inlined_call_operand.hbm [shape: f32[2,8,16], index: 1, kind: input, shape index: {}]   ;;  %s17987_s2 = inlined_call_operand.hbm [shape: bf16[16,512], index: 2, kind: input, shape index: {}]   ;;  %s17988_s3 = inlined_call_operand.vmem [shape: f32[1,512], index: 3, kind: input, shape index: {}]   ;;  %s17989_s4 = inlined_call_operand.hbm [shape: bf16[128,512], index: 4, kind: input, shape index: {}]   ;;  %s17990_s5 = inlined_call_operand.hbm [shape: bf16[256,512], index: 5, kind: input, shape index: {}]   ;;  %s17991_s6 = inlined_call_operand.vmem [shape: f32[1,512], index: 6, kind: input, shape index: {}]   ;;  %s17992_s7 = inlined_call_operand.hbm [shape: bf16[256,512], index: 7, kind: input, shape index: {}]   ;;  %s17993_s8 = inlined_call_operand.vmem [shape: f32[1,512], index: 8, kind: input, shape index: {}]   ;;  %s17994_s9 = inlined_call_operand.hbm [shape: bf16[128,128], index: 9, kind: input, shape index: {}]   ;;  %s17995_s10 = inlined_call_operand.vmem [shape: f32[1,128], index: 10, kind: input, shape index: {}]   ;;  %s17996_s11 = inlined_call_operand.hbm [shape: f32[2,8,128], index: 11, kind: output, shape index: {}]  }
   0x1   :  { %17 = vsyncpa [#allocation14], 0 }
   0x2   :  { %18 = vsyncpa [#allocation17], 0 }
   0x3   :  { %19 = vsyncpa [#allocation20], 0 }
   0x4   :  { %20 = vsyncpa [#allocation12], 0  ;;  %s16768_s17 = smov [#allocation13]   ;;  %s16604_s21 = scalar_lea.hbm %s17987_s2, 512 }
   0x5   :  { %s40_s18 = sshll.u32 %s16768_s17, 4  ;;  %p16605_p0 = scmp.ne.s32.totalorder %s17987_s2, %s16604_s21  ;;  %s41_s18 = int_to_ptr.vmem [resolvable:$true] %s40_s18 }
   0x6   :  { %p16608_p1 = scmp.lt.u32.totalorder %s16604_s21, %s17987_s2 }
   0x8   :  { %p16610_p2 = pnand %p16608_p1, %p16605_p0 }
   0xa   :  { %16613 = shalt.err (!%p16610_p2)
}
   0xb   :  { %s16614_s26 = scalar_lea.vmem %s41_s18, 512  ;;  %p16619_p4 = scmp.lt.s32.totalorder %s41_s18, %s41_s18 }
   0xc   :  { %p16615_p3 = scmp.ne.s32.totalorder %s41_s18, %s16614_s26  ;;  %p16620_p5 = scmp.lt.s32.totalorder %s16614_s26, %s16614_s26 }
   0xe   :  { %p16621_p6 = por %p16620_p5, %p16619_p4 }
  0x10   :  { %p16622_p7 = pnand %p16621_p6, %p16615_p3 }
  0x12   :  { %16625 = shalt.err (!%p16622_p7)
}
  0x13   :  { %s16769_s27 = smov 256   ;;  %s16770_s28 = smov 16  }
  0x14   :  { %46 = dma.hbm_to_vmem [thread:$0]  %s17987_s2, 512, %s41_s18, [#allocation14], %s16769_s27, %s16769_s27, %s16770_s28  }
  0x15   :  { %s16771_s12 = smov [#allocation16]   ;;  %s16772_s14 = smov [#allocation10]  }
  0x16   :  { %s66_s13 = sshll.u32 %s16771_s12, 4  ;;  %s28_s15 = sshll.u32 %s16772_s14, 4  ;;  %s67_s13 = int_to_ptr.vmem [resolvable:$true] %s66_s13  ;;  %s29_s15 = int_to_ptr.vmem [resolvable:$true] %s28_s15 }
  0x17   :  { %s16626_s19 = scalar_lea.hbm %s17990_s5, 8192 }
  0x18   :  { %p16627_p8 = scmp.ne.s32.totalorder %s17990_s5, %s16626_s19  ;;  %p16630_p9 = scmp.lt.u32.totalorder %s16626_s19, %s17990_s5 }
  0x1a   :  { %p16632_p10 = pnand %p16630_p9, %p16627_p8 }
  0x1c   :  { %16635 = shalt.err (!%p16632_p10)
}
  0x1d   :  { %s16636_s2 = scalar_lea.vmem %s67_s13, 8192  ;;  %p16641_p12 = scmp.lt.s32.totalorder %s67_s13, %s67_s13 }
  0x1e   :  { %p16637_p11 = scmp.ne.s32.totalorder %s67_s13, %s16636_s2  ;;  %p16642_p13 = scmp.lt.s32.totalorder %s16636_s2, %s16636_s2 }
  0x20   :  { %p16643_p0 = por %p16642_p13, %p16641_p12 }
  0x22   :  { %p16644_p1 = pnand %p16643_p0, %p16637_p11 }
  0x24   :  { %16647 = shalt.err (!%p16644_p1)
}
  0x25   :  { %72 = dma.hbm_to_vmem [thread:$0]  %s17990_s5, 8192, %s67_s13, [#allocation17], %s16769_s27, %s16769_s27, %s16770_s28  }
  0x26   :  { %s16648_s29 = scalar_lea.hbm %s17986_s1, 256 }
  0x27   :  { %p16649_p2 = scmp.ne.s32.totalorder %s17986_s1, %s16648_s29  ;;  %p16652_p3 = scmp.lt.u32.totalorder %s16648_s29, %s17986_s1 }
  0x29   :  { %p16654_p4 = pnand %p16652_p3, %p16649_p2 }
  0x2b   :  { %16657 = shalt.err (!%p16654_p4)
}
  0x2c   :  { %s16658_s17 = scalar_lea.vmem %s29_s15, 256  ;;  %p16663_p6 = scmp.lt.s32.totalorder %s29_s15, %s29_s15 }
  0x2d   :  { %p16659_p5 = scmp.ne.s32.totalorder %s29_s15, %s16658_s17  ;;  %p16664_p7 = scmp.lt.s32.totalorder %s16658_s17, %s16658_s17 }
  0x2f   :  { %p16665_p8 = por %p16664_p7, %p16663_p6 }
  0x31   :  { %p16666_p9 = pnand %p16665_p8, %p16659_p5 }
  0x33   :  { %16669 = shalt.err (!%p16666_p9)
}
  0x34   :  { %s16773_s5 = smov 128   ;;  %s16774_s13 = smov 8  }
  0x35   :  { %34 = dma.hbm_to_vmem [thread:$0]  %s17986_s1, 256, %s29_s15, [#allocation11], %s16773_s5, %s16773_s5, %s16774_s13  }
  0x36   :  { %s16775_s21 = smov [#allocation15]   ;;  %s16776_s23 = smov [#allocation18]  }
  0x37   :  { %s54_s22 = sshll.u32 %s16775_s21, 4  ;;  %s80_s2 = sshll.u32 %s16776_s23, 4  ;;  %s55_s22 = int_to_ptr.vmem [resolvable:$true] %s54_s22  ;;  %s81_s2 = int_to_ptr.vmem [resolvable:$true] %s80_s2 }
  0x38   :  { %s16670_s25 = scalar_lea.hbm %s17989_s4, 4096 }
  0x39   :  { %p16671_p10 = scmp.ne.s32.totalorder %s17989_s4, %s16670_s25  ;;  %p16674_p11 = scmp.lt.u32.totalorder %s16670_s25, %s17989_s4 }
  0x3b   :  { %p16676_p12 = pnand %p16674_p11, %p16671_p10 }
  0x3d   :  { %16679 = shalt.err (!%p16676_p12)
}
  0x3e   :  { %s16680_s1 = scalar_lea.vmem %s55_s22, 4096  ;;  %p16685_p0 = scmp.lt.s32.totalorder %s55_s22, %s55_s22 }
  0x3f   :  { %p16681_p13 = scmp.ne.s32.totalorder %s55_s22, %s16680_s1  ;;  %p16686_p1 = scmp.lt.s32.totalorder %s16680_s1, %s16680_s1 }
  0x41   :  { %p16687_p2 = por %p16686_p1, %p16685_p0 }
  0x43   :  { %p16688_p3 = pnand %p16687_p2, %p16681_p13 }
  0x45   :  { %16691 = shalt.err (!%p16688_p3)
}
  0x46   :  { %60 = dma.hbm_to_vmem [thread:$0]  %s17989_s4, 4096, %s55_s22, [#allocation14], %s16769_s27, %s16769_s27, %s16770_s28  }
  0x47   :  { %s16692_s19 = scalar_lea.hbm %s17992_s7, 8192 }
  0x48   :  { %p16693_p4 = scmp.ne.s32.totalorder %s17992_s7, %s16692_s19  ;;  %p16696_p5 = scmp.lt.u32.totalorder %s16692_s19, %s17992_s7 }
  0x4a   :  { %p16698_p6 = pnand %p16696_p5, %p16693_p4 }
  0x4c   :  { %16701 = shalt.err (!%p16698_p6)
}
  0x4d   :  { %s16702_s24 = scalar_lea.vmem %s81_s2, 8192  ;;  %p16707_p8 = scmp.lt.s32.totalorder %s81_s2, %s81_s2 }
  0x4e   :  { %p16703_p7 = scmp.ne.s32.totalorder %s81_s2, %s16702_s24  ;;  %p16708_p9 = scmp.lt.s32.totalorder %s16702_s24, %s16702_s24 }
  0x50   :  { %p16709_p10 = por %p16708_p9, %p16707_p8 }
  0x52   :  { %p16710_p11 = pnand %p16709_p10, %p16703_p7 }
  0x54   :  { %16713 = shalt.err (!%p16710_p11)
}
  0x55   :  { %86 = dma.hbm_to_vmem [thread:$0]  %s17992_s7, 8192, %s81_s2, [#allocation17], %s16769_s27, %s16769_s27, %s16770_s28  }
  0x56   :  { %s16777_s25 = smov [#allocation19]   ;;  %s16714_s12 = scalar_lea.hbm %s17994_s9, 1024 }
  0x57   :  { %s94_s26 = sshll.u32 %s16777_s25, 4  ;;  %p16715_p12 = scmp.ne.s32.totalorder %s17994_s9, %s16714_s12  ;;  %s95_s26 = int_to_ptr.vmem [resolvable:$true] %s94_s26 }
  0x58   :  { %p16718_p13 = scmp.lt.u32.totalorder %s16714_s12, %s17994_s9 }
  0x5a   :  { %p16720_p0 = pnand %p16718_p13, %p16715_p12 }
  0x5c   :  { %16723 = shalt.err (!%p16720_p0)
}
  0x5d   :  { %s16724_s17 = scalar_lea.vmem %s95_s26, 1024  ;;  %p16729_p2 = scmp.lt.s32.totalorder %s95_s26, %s95_s26 }
  0x5e   :  { %p16725_p1 = scmp.ne.s32.totalorder %s95_s26, %s16724_s17  ;;  %p16730_p3 = scmp.lt.s32.totalorder %s16724_s17, %s16724_s17 }
  0x60   :  { %p16731_p4 = por %p16730_p3, %p16729_p2 }
  0x62   :  { %p16732_p5 = pnand %p16731_p4, %p16725_p1 }
  0x64   :  { %16735 = shalt.err (!%p16732_p5)
}
  0x65   :  { %s16778_s7 = smov 64   ;;  %s16779_s27 = smov 4  }
  0x66   :  { %100 = dma.hbm_to_vmem [thread:$0]  %s17994_s9, 1024, %s95_s26, [#allocation20], %s16778_s7, %s16778_s7, %s16779_s27  }
  0x67   :  { %16758 = dma.done.wait [#allocation11], 256  }
  0x68   :  { %16759 = vsyncadd [#allocation11], 4294967040 }
  0x69   :  { %16760 = dma.done.wait [#allocation14], 4608  }
  0x6a   :  { %16761 = vsyncadd [#allocation14], 4294962688 }
  0x6b   :  { %16762 = dma.done.wait [#allocation17], 16384  }
  0x6c   :  { %16763 = vsyncadd [#allocation17], 4294950912 }
  0x6d   :  { %16764 = dma.done.wait [#allocation20], 1024  }
  0x6e   :  { %16765 = vsyncadd [#allocation20], 4294966272  ;;  %v16780_v0 = vmov 0   ;;  %v17997_v1 = vmov 0.0   ;;  %v14346_v2 = vld [vmem:[#allocation13 + $0x4] ss:$16 sps:$4 sm:$0xff]   ;;  %v140_v51 = vlaneseq }
  0x6f   :  { %216 = vmatprep.mubr.bf16.mxu0 %v16780_v0  ;;  %257 = vmatprep.mubr.bf16.mxu1 %v16780_v0  ;;  %126 = vst [vmem:[#allocation4] sm:$0x3] %v17997_v1  ;;  %127 = vst [vmem:[#allocation5] sm:$0x3] %v17997_v1  ;;  %v14348_v3 = vld [vmem:[#allocation13 + $0xc] ss:$16 sps:$4 sm:$0xff]  }
  0x70   :  { %128 = vst [vmem:[#allocation6] sm:$0x3] %v17997_v1  ;;  %129 = vst [vmem:[#allocation7] sm:$0x3] %v17997_v1  ;;  %14344 = vset.pattern.permute.xlu0 %v16780_v0  ;;  %14345 = vset.pattern.permute.xlu1 %v16780_v0  ;;  %v14350_v4 = vld [vmem:[#allocation13] ss:$16 sps:$4 sm:$0xff]  }
  0x71   :  { %130 = vst [vmem:[#allocation8] sm:$0x3] %v17997_v1  ;;  %131 = vst [vmem:[#allocation9] sm:$0x3] %v17997_v1  ;;  %184 = vmatprep.subr.bf16.mxu0 %v14346_v2  ;;  %v14351_v5 = vld [vmem:[#allocation13 + $0x8] ss:$16 sps:$4 sm:$0xff]   ;;  %225 = vmatprep.subr.bf16.mxu1 %v14348_v3 }
  0x72   :  { %v132_v6 = vld [vmem:[#allocation10] sm:$0xff]  ;;  %185 = vmatpush1.bf16.msra.mxu0 %v14350_v4  ;;  %226 = vmatpush1.bf16.msra.mxu1 %v14351_v5  ;;  %vm180_vm0 = vcmask 130048   ;;  %v16944_v9 = vld [vmem:[#allocation15 + $0xc] ss:$16 sps:$4 sm:$0xff]   ;;  %v16954_v13 = vld [vmem:[#allocation15 + $0x8] ss:$16 sps:$4 sm:$0xff]  }
  0x73   :  { %v133_v7 = vpack.c.bf16 %v132_v6, %v132_v6  ;;  %322 = vmatprep.subr.bf16.mxu0 %v14346_v2  ;;  %363 = vmatprep.subr.bf16.mxu1 %v14348_v3  ;;  %v16942_v8 = vld [vmem:[#allocation15 + $0x4] ss:$16 sps:$4 sm:$0xff]   ;;  %v271_v10 = vld [vmem:[#allocation10 + $0x8] sm:$0xff]  ;;  %v16952_v12 = vld [vmem:[#allocation15] ss:$16 sps:$4 sm:$0xff]   ;;  %v141_v52 = vshrl.u32 %v140_v51, 7 }
  0x74   :  { %v272_v11 = vpack.c.bf16 %v271_v10, %v271_v10  ;;  %v16956_v14 = vld [vmem:[#allocation15 + $0x24] ss:$16 sps:$4 sm:$0xff]   ;;  %v16958_v15 = vld [vmem:[#allocation15 + $0x2c] ss:$16 sps:$4 sm:$0xff]   ;;  %v16964_v16 = vld [vmem:[#allocation15 + $0x20] ss:$16 sps:$4 sm:$0xff]  }
  0x75   :  { %12843 = vmatmul.mubr.msk.bf16.vlgmr.msra.gmra.mrb[0].mxu0 %vm180_vm0, %v133_v7  ;;  %12844 = vmatmul.mubr.msk.bf16.vlgmr.msra.gmra.mrb[0].mxu1 %vm180_vm0, %v133_v7  ;;  %v16966_v17 = vld [vmem:[#allocation15 + $0x28] ss:$16 sps:$4 sm:$0xff]   ;;  %v16970_v18 = vld [vmem:[#allocation15 + $0x44] ss:$16 sps:$4 sm:$0xff]   ;;  %v16972_v19 = vld [vmem:[#allocation15 + $0x4c] ss:$16 sps:$4 sm:$0xff]  }
  0x76   :  { %323 = vmatpush1.bf16.msra.mxu0 %v14350_v4  ;;  %364 = vmatpush1.bf16.msra.mxu1 %v14351_v5  ;;  %v16978_v20 = vld [vmem:[#allocation15 + $0x40] ss:$16 sps:$4 sm:$0xff]   ;;  %v16980_v21 = vld [vmem:[#allocation15 + $0x48] ss:$16 sps:$4 sm:$0xff]   ;;  %v16984_v22 = vld [vmem:[#allocation15 + $0x64] ss:$16 sps:$4 sm:$0xff]  }
  0x77   :  { %354 = vmatprep.mubr.bf16.mxu0 %v16780_v0  ;;  %395 = vmatprep.mubr.bf16.mxu1 %v16780_v0  ;;  %v16986_v23 = vld [vmem:[#allocation15 + $0x6c] ss:$16 sps:$4 sm:$0xff]   ;;  %v16990_v24 = vld [vmem:[#allocation15 + $0x60] ss:$16 sps:$4 sm:$0xff]   ;;  %v16992_v25 = vld [vmem:[#allocation15 + $0x68] ss:$16 sps:$4 sm:$0xff]  }
  0x78   :  { %609 = vmatprep.subr.bf16.mxu0 %v16942_v8  ;;  %650 = vmatprep.subr.bf16.mxu1 %v16944_v9  ;;  %v16994_v26 = vld [vmem:[#allocation15 + $0x84] ss:$16 sps:$4 sm:$0xff]   ;;  %v16998_v27 = vld [vmem:[#allocation15 + $0x8c] ss:$16 sps:$4 sm:$0xff]   ;;  %v17003_v29 = vld [vmem:[#allocation15 + $0x80] ss:$16 sps:$4 sm:$0xff]  }
  0x79   :  { %v409_v28 = vld [vmem:[%s17985_s0] sm:$0x3]  ;;  %v17005_v30 = vld [vmem:[#allocation15 + $0x88] ss:$16 sps:$4 sm:$0xff]   ;;  %v17007_v31 = vld [vmem:[#allocation15 + $0xa4] ss:$16 sps:$4 sm:$0xff]  }
  0x7a   :  { %vm12889_vm1 = vcmp.gt.s32.totalorder %v409_v28, 0  ;;  %v17009_v32 = vld [vmem:[#allocation15 + $0xac] ss:$16 sps:$4 sm:$0xff]   ;;  %vm12928_vm2 = vcmp.gt.s32.totalorder %v409_v28, 1  ;;  %v14382_v34 = vld [vmem:[#allocation15 + $0xa0] ss:$16 sps:$4 sm:$0xff]  }
  0x7b   :  { %v820_v33 = vsel %vm12889_vm1, 1, %v16780_v0  ;;  %v14385_v35 = vld [vmem:[#allocation15 + $0xa8] ss:$16 sps:$4 sm:$0xff]   ;;  %v14390_v36 = vld [vmem:[#allocation15 + $0xc4] ss:$16 sps:$4 sm:$0xff]   ;;  %v1277_v38 = vsel %vm12928_vm2, 1, %v16780_v0 }
  0x7c   :  { %822 = vperm.xlu0 %14344, %v820_v33   ;;  %v14393_v37 = vld [vmem:[#allocation15 + $0xcc] ss:$16 sps:$4 sm:$0xff]   ;;  %vm13384_vm3 = vcmp.gt.s32.totalorder %v409_v28, 4  ;;  %v14388_v39 = vld [vmem:[#allocation15 + $0xc0] ss:$16 sps:$4 sm:$0xff]   ;;  %vm13734_vm4 = vcmp.gt.s32.totalorder %v409_v28, 6 }
  0x7d   :  { %12849 = vmatmul.mubr.msk.bf16.vlgmr.msra.gmra.mrb[4].mxu0 %vm180_vm0, %v272_v11  ;;  %12850 = vmatmul.mubr.msk.bf16.vlgmr.msra.gmra.mrb[4].mxu1 %vm180_vm0, %v272_v11  ;;  %v14391_v40 = vld [vmem:[#allocation15 + $0xc8] ss:$16 sps:$4 sm:$0xff]   ;;  %v14396_v41 = vld [vmem:[#allocation15 + $0xe4] ss:$16 sps:$4 sm:$0xff]   ;;  %v14399_v42 = vld [vmem:[#allocation15 + $0xec] ss:$16 sps:$4 sm:$0xff]  }
  0x7e   :  { %610 = vmatpush1.bf16.msra.mxu0 %v16952_v12  ;;  %651 = vmatpush1.bf16.msra.mxu1 %v16954_v13  ;;  %v5297_v43 = vsel %vm13384_vm3, 1, %v16780_v0  ;;  %v14394_v44 = vld [vmem:[#allocation15 + $0xe0] ss:$16 sps:$4 sm:$0xff]   ;;  %v14397_v45 = vld [vmem:[#allocation15 + $0xe8] ss:$16 sps:$4 sm:$0xff]   ;;  %v8341_v47 = vsel %vm13734_vm4, 1, %v16780_v0 }
  0x7f   :  { %611 = vmatprep.subr.bf16.mxu0 %v16956_v14  ;;  %652 = vmatprep.subr.bf16.mxu1 %v16958_v15  ;;  %v411_v46 = vld [vmem:[#allocation4] sm:$0x3]  ;;  %v14405_v50 = vld [vmem:[#allocation16 + $0xc] ss:$16 sps:$4 sm:$0xff]   ;;  %v17050_v54 = vsub.s32 0, %v141_v52  ;;  %v17052_v55 = vsub.s32 2, %v141_v52 }
  0x80   :  { %641 = vmatprep.mubr.bf16.mxu0 %v16780_v0  ;;  %682 = vmatprep.mubr.bf16.mxu1 %v16780_v0  ;;  %v416_v48 = vpack.c.bf16 %v411_v46, %v411_v46  ;;  %v14402_v49 = vld [vmem:[#allocation16 + $0x4] ss:$16 sps:$4 sm:$0xff]   ;;  %v138_v53 = vld [vmem:[%s17988_s3] sm:$0xf]  ;;  %v17054_v56 = vsub.s32 1, %v141_v52  ;;  %v17056_v57 = vsub.s32 3, %v141_v52 }
  0x81   :  { %1279 = vperm.xlu0 %14344, %v1277_v38   ;;  %18017 = vst [vmem:[#allocation27_spill] sm:$0xff] %v17050_v54  ;;  %18018 = vst [vmem:[#allocation28_spill] sm:$0xff] %v17052_v55  ;;  %v143_v58 = vrot.slane %v138_v53, %v17050_v54  ;;  %v151_v59 = vrot.slane %v138_v53, %v17052_v55  ;;  %v277_v6 = vld [vmem:[%s17988_s3] sm:$0xf]  ;;  %v17759_v1 = vld [vmem:[#allocation18 + $0x148] ss:$16 sps:$4 sm:$0xff]  }
  0x82   :  { %612 = vmatpush1.bf16.msra.mxu0 %v16964_v16  ;;  %653 = vmatpush1.bf16.msra.mxu1 %v16966_v17  ;;  %18019 = vst [vmem:[#allocation29_spill] sm:$0xff] %v17054_v56  ;;  %18020 = vst [vmem:[#allocation30_spill] sm:$0xff] %v17056_v57  ;;  %v147_v60 = vrot.slane %v138_v53, %v17054_v56  ;;  %v155_v61 = vrot.slane %v138_v53, %v17056_v57  ;;  %vm16783_vm1 = vmmov 0   ;;  %s16784_s12 = smov [#allocation21]  }
  0x83   :  { %613 = vmatprep.subr.bf16.mxu0 %v16970_v18  ;;  %654 = vmatprep.subr.bf16.mxu1 %v16972_v19  ;;  %s12824_s1 = sshll.u32 %s16784_s12, 4  ;;  %s12825_s1 = int_to_ptr.vmem [resolvable:$true] %s12824_s1 }
  0x84   :  { %s16736_s15 = scalar_lea.vmem %s12825_s1, 256  ;;  %p16741_p7 = scmp.lt.s32.totalorder %s12825_s1, %s12825_s1 }
  0x85   :  { %5299 = vperm.xlu0 %14344, %v5297_v43   ;;  %p16737_p6 = scmp.ne.s32.totalorder %s12825_s1, %s16736_s15  ;;  %p16742_p8 = scmp.lt.s32.totalorder %s16736_s15, %s16736_s15 }
  0x86   :  { %614 = vmatpush1.bf16.msra.mxu0 %v16978_v20  ;;  %655 = vmatpush1.bf16.msra.mxu1 %v16980_v21 }
  0x87   :  { %615 = vmatprep.subr.bf16.mxu0 %v16984_v22  ;;  %656 = vmatprep.subr.bf16.mxu1 %v16986_v23  ;;  %p16743_p9 = por %p16742_p8, %p16741_p7 }
  0x89   :  { %8343 = vperm.xlu0 %14344, %v8341_v47   ;;  %p16744_p10 = pnand %p16743_p9, %p16737_p6 }
  0x8a   :  { %616 = vmatpush1.bf16.msra.mxu0 %v16990_v24  ;;  %657 = vmatpush1.bf16.msra.mxu1 %v16992_v25 }
  0x8b   :  { %617 = vmatprep.subr.bf16.mxu0 %v16994_v26  ;;  %658 = vmatprep.subr.bf16.mxu1 %v16998_v27 }
  0x8e   :  { %618 = vmatpush1.bf16.msra.mxu0 %v17003_v29  ;;  %659 = vmatpush1.bf16.msra.mxu1 %v17005_v30 }
  0x8f   :  { %619 = vmatprep.subr.bf16.mxu0 %v17007_v31  ;;  %660 = vmatprep.subr.bf16.mxu1 %v17009_v32 }
  0x92   :  { %620 = vmatpush1.bf16.msra.mxu0 %v14382_v34  ;;  %661 = vmatpush1.bf16.msra.mxu1 %v14385_v35 }
  0x93   :  { %621 = vmatprep.subr.bf16.mxu0 %v14390_v36  ;;  %662 = vmatprep.subr.bf16.mxu1 %v14393_v37 }
  0x96   :  { %622 = vmatpush1.bf16.msra.mxu0 %v14388_v39  ;;  %663 = vmatpush1.bf16.msra.mxu1 %v14391_v40 }
  0x97   :  { %623 = vmatprep.subr.bf16.mxu0 %v14396_v41  ;;  %664 = vmatprep.subr.bf16.mxu1 %v14399_v42 }
  0x9a   :  { %624 = vmatpush1.bf16.msra.mxu0 %v14394_v44  ;;  %665 = vmatpush1.bf16.msra.mxu1 %v14397_v45 }
  0x9b   :  { %1065 = vmatprep.subr.bf16.mxu0 %v16942_v8  ;;  %1106 = vmatprep.subr.bf16.mxu1 %v16944_v9 }
  0x9d   :  { %642 = vmatmul.mubr.bf16.vlgmr.msra.gmra.mrb[8].mxu0 %v416_v48  ;;  %683 = vmatmul.mubr.bf16.vlgmr.msra.gmra.mrb[8].mxu1 %v416_v48 }
  0x9e   :  { %1066 = vmatpush1.bf16.msra.mxu0 %v16952_v12  ;;  %1107 = vmatpush1.bf16.msra.mxu1 %v16954_v13  ;;  %v282_v13 = vrot.slane %v277_v6, %v17050_v54 }
  0x9f   :  { %1067 = vmatprep.subr.bf16.mxu0 %v16956_v14  ;;  %1108 = vmatprep.subr.bf16.mxu1 %v16958_v15  ;;  %v290_v14 = vrot.slane %v277_v6, %v17052_v55  ;;  %v286_v15 = vrot.slane %v277_v6, %v17054_v56 }
  0xa0   :  { %1097 = vmatprep.mubr.bf16.mxu0 %v16780_v0  ;;  %1138 = vmatprep.mubr.bf16.mxu1 %v16780_v0 }
  0xa2   :  { %1068 = vmatpush1.bf16.msra.mxu0 %v16964_v16  ;;  %1109 = vmatpush1.bf16.msra.mxu1 %v16966_v17  ;;  %v294_v16 = vrot.slane %v277_v6, %v17056_v57 }
  0xa3   :  { %1069 = vmatprep.subr.bf16.mxu0 %v16970_v18  ;;  %1110 = vmatprep.subr.bf16.mxu1 %v16972_v19 }
  0xa6   :  { %1070 = vmatpush1.bf16.msra.mxu0 %v16978_v20  ;;  %1111 = vmatpush1.bf16.msra.mxu1 %v16980_v21 }
  0xa7   :  { %1071 = vmatprep.subr.bf16.mxu0 %v16984_v22  ;;  %1112 = vmatprep.subr.bf16.mxu1 %v16986_v23 }
  0xaa   :  { %1072 = vmatpush1.bf16.msra.mxu0 %v16990_v24  ;;  %1113 = vmatpush1.bf16.msra.mxu1 %v16992_v25 }
  0xab   :  { %1073 = vmatprep.subr.bf16.mxu0 %v16994_v26  ;;  %1114 = vmatprep.subr.bf16.mxu1 %v16998_v27 }
  0xae   :  { %1074 = vmatpush1.bf16.msra.mxu0 %v17003_v29  ;;  %1115 = vmatpush1.bf16.msra.mxu1 %v17005_v30  ;;  %v16782_v29 = vmov 1966171168  }
  0xaf   :  { %1075 = vmatprep.subr.bf16.mxu0 %v17007_v31  ;;  %1116 = vmatprep.subr.bf16.mxu1 %v17009_v32  ;;  %v698_v30 = vunpack.c.l.s4 %v16782_v29 }
  0xb1   :  { %v699_v31 = vunpack.c.0.s8 %v698_v30 }
  0xb2   :  { %1076 = vmatpush1.bf16.msra.mxu0 %v14382_v34  ;;  %1117 = vmatpush1.bf16.msra.mxu1 %v14385_v35 }
  0xb3   :  { %1077 = vmatprep.subr.bf16.mxu0 %v14390_v36  ;;  %1118 = vmatprep.subr.bf16.mxu1 %v14393_v37  ;;  %v17069_v34 = vsub.s32 %v699_v31, %v141_v52 }
  0xb6   :  { %1078 = vmatpush1.bf16.msra.mxu0 %v14388_v39  ;;  %1119 = vmatpush1.bf16.msra.mxu1 %v14391_v40 }
  0xb7   :  { %1079 = vmatprep.subr.bf16.mxu0 %v14396_v41  ;;  %1120 = vmatprep.subr.bf16.mxu1 %v14399_v42 }
  0xba   :  { %1080 = vmatpush1.bf16.msra.mxu0 %v14394_v44  ;;  %1121 = vmatpush1.bf16.msra.mxu1 %v14397_v45 }
  0xbb   :  { %1730 = vmatprep.subr.bf16.mxu0 %v14402_v49  ;;  %1771 = vmatprep.subr.bf16.mxu1 %v14405_v50 }
 0x148   :  { %v218_v62 = vpop.f32.mrb[0].mxu0  ;;  %v259_v63 = vpop.f32.mrb[0].mxu1 }
 0x149   :  { %v219_v2 = vadd.f32 %v218_v62, %v143_v58  ;;  %v260_v3 = vadd.f32 %v259_v63, %v151_v59  ;;  %v220_v4 = vpop.f32.mrb[1].mxu0  ;;  %v261_v5 = vpop.f32.mrb[1].mxu1 }
 0x14a   :  { %v221_v7 = vadd.f32 %v220_v4, %v147_v60  ;;  %v262_v8 = vadd.f32 %v261_v5, %v155_v61  ;;  %v222_v9 = vpop.f32.mrb[2].mxu0  ;;  %v263_v10 = vpop.f32.mrb[2].mxu1 }
 0x14b   :  { %266 = vst [vmem:[#allocation2] sm:$0xff] %v219_v2  ;;  %268 = vst [vmem:[#allocation2 + $0x10] sm:$0xff] %v260_v3  ;;  %v223_v11 = vpop.f32.mrb[3].mxu0  ;;  %v264_v12 = vpop.f32.mrb[3].mxu1 }
 0x14c   :  { %267 = vst [vmem:[#allocation2 + $0x8] sm:$0xff] %v221_v7  ;;  %269 = vst [vmem:[#allocation2 + $0x18] sm:$0xff] %v262_v8  ;;  %v412_v8 = vld [vmem:[#allocation5] sm:$0x3] }
 0x150   :  { %v356_v17 = vpop.f32.mrb[4].mxu0  ;;  %v397_v18 = vpop.f32.mrb[4].mxu1 }
 0x151   :  { %v357_v19 = vadd.f32 %v356_v17, %v282_v13  ;;  %v398_v20 = vadd.f32 %v397_v18, %v290_v14  ;;  %v358_v21 = vpop.f32.mrb[5].mxu0  ;;  %v399_v22 = vpop.f32.mrb[5].mxu1 }
 0x152   :  { %v359_v23 = vadd.f32 %v358_v21, %v286_v15  ;;  %v400_v24 = vadd.f32 %v399_v22, %v294_v16  ;;  %v360_v25 = vpop.f32.mrb[6].mxu0  ;;  %v401_v26 = vpop.f32.mrb[6].mxu1  ;;  %v790_v16 = vrot.slane %v412_v8, %v17069_v34 }
 0x153   :  { %405 = vst [vmem:[#allocation2 + $0x20] sm:$0xff] %v357_v19  ;;  %407 = vst [vmem:[#allocation2 + $0x30] sm:$0xff] %v398_v20  ;;  %v361_v27 = vpop.f32.mrb[7].mxu0  ;;  %v402_v28 = vpop.f32.mrb[7].mxu1 }
 0x154   :  { %406 = vst [vmem:[#allocation2 + $0x28] sm:$0xff] %v359_v23  ;;  %408 = vst [vmem:[#allocation2 + $0x38] sm:$0xff] %v400_v24  ;;  %v413_v47 = vld [vmem:[#allocation2] ss:$8 sm:$0xf]  ;;  %v791_v18 = vcombine.high %v790_v16, %v790_v16  ;;  %v798_v22 = vrot.slane %v790_v16, %v17069_v34 }
 0x155   :  { %v14427_v16 = vld [vmem:[#allocation16 + $0x88] ss:$16 sps:$4 sm:$0xff]  }
 0x156   :  { %v805_v24 = vrot.slane %v791_v18, %v17069_v34  ;;  %v14435_v18 = vld [vmem:[#allocation16 + $0xac] ss:$16 sps:$4 sm:$0xff]  }
 0x15b   :  { %v415_v48 = vld [vmem:[#allocation2 + $0x20] ss:$8 sm:$0xf] }
 0x170   :  { %v643_v32 = vpop.f32.mrb[8].mxu0  ;;  %v684_v33 = vpop.f32.mrb[8].mxu1 }
 0x171   :  { %v645_v35 = vpop.f32.mrb[9].mxu0  ;;  %v686_v36 = vpop.f32.mrb[9].mxu1 }
 0x172   :  { %v695_v37 = vcombine.low %v643_v32, %v645_v35  ;;  %v696_v38 = vcombine.low %v684_v33, %v686_v36  ;;  %v647_v39 = vpop.f32.mrb[10].mxu0  ;;  %v688_v40 = vpop.f32.mrb[10].mxu1 }
 0x173   :  { %v648_v41 = vpop.f32.mrb[11].mxu0  ;;  %v689_v42 = vpop.f32.mrb[11].mxu1 }
 0x174   :  { %v703_v43 = vrot.slane %v695_v37, %v17069_v34  ;;  %v710_v44 = vrot.slane %v696_v38, %v17069_v34  ;;  %v17078_v37 = vpop.permute.xlu0 %822 }
 0x175   :  { %vm824_vm5 = vcmp.eq.s32.totalorder %v17078_v37, 1  ;;  %v14858_v37 = vld [vmem:[#allocation18 + $0x184] ss:$16 sps:$4 sm:$0xff]  }
 0x176   :  { %v711_v45 = vcombine.low %v703_v43, %v710_v44  ;;  %v712_v46 = vcombine.high %v703_v43, %v710_v44 }
 0x178   :  { %v719_v49 = vrot.slane %v711_v45, %v17069_v34  ;;  %v726_v50 = vrot.slane %v712_v46, %v17069_v34 }
 0x17a   :  { %v729_v51 = vadd.f32 %v719_v49, %v413_v47  ;;  %v730_v52 = vadd.f32 %v726_v50, %v415_v48 }
 0x17c   :  { %v12883_v53 = vmul.f32 -1.442695, %v729_v51  ;;  %v12884_v58 = vmul.f32 -1.442695, %v730_v52  ;;  %v745_v59 = vrot.slane %v729_v51, 1  ;;  %v746_v60 = vrot.slane %v730_v52, 1 }
 0x17d   :  { %v767_v63 = vrot.slane %v729_v51, 3  ;;  %v768_v2 = vrot.slane %v730_v52, 3  ;;  %v761_v3 = vrot.slane %v729_v51, 2  ;;  %v762_v4 = vrot.slane %v730_v52, 2  ;;  %v16548_v51 = vld [vmem:[#allocation4] sm:$0x3] }
 0x17e   :  { %16036 = vpow2.f32 %v12883_v53  ;;  %v12885_v61 = vmul.f32 -1.442695, %v745_v59  ;;  %v12886_v62 = vmul.f32 -1.442695, %v746_v60  ;;  %v866_v53 = vld [vmem:[#allocation6] sm:$0x3] }
 0x17f   :  { %16038 = vpow2.f32 %v12884_v58  ;;  %v12887_v5 = vmul.f32 -1.442695, %v767_v63  ;;  %v12888_v6 = vmul.f32 -1.442695, %v768_v2  ;;  %v14400_v58 = vld [vmem:[#allocation16] ss:$16 sps:$4 sm:$0xff]  }
 0x180   :  { %16040 = vpow2.f32 %v12885_v61  ;;  %v14403_v59 = vld [vmem:[#allocation16 + $0x8] ss:$16 sps:$4 sm:$0xff]   ;;  %v14408_v60 = vld [vmem:[#allocation16 + $0x24] ss:$16 sps:$4 sm:$0xff]   ;;  %v14411_v61 = vld [vmem:[#allocation16 + $0x2c] ss:$16 sps:$4 sm:$0xff]  }
 0x181   :  { %16042 = vpow2.f32 %v12886_v62  ;;  %v14406_v2 = vld [vmem:[#allocation16 + $0x20] ss:$16 sps:$4 sm:$0xff]  }
 0x182   :  { %16044 = vtanh.f32 %v761_v3  ;;  %v14409_v3 = vld [vmem:[#allocation16 + $0x28] ss:$16 sps:$4 sm:$0xff]  }
 0x183   :  { %16046 = vtanh.f32 %v762_v4  ;;  %v1323_v4 = vpack.c.bf16 %v866_v53, %v866_v53  ;;  %v17125_v53 = vld [vmem:[#allocation16 + $0x1a0] ss:$16 sps:$4 sm:$0xff]  }
 0x184   :  { %16048 = vpow2.f32 %v12887_v5  ;;  %v14414_v5 = vld [vmem:[#allocation16 + $0x44] ss:$16 sps:$4 sm:$0xff]  }
 0x185   :  { %16050 = vpow2.f32 %v12888_v6  ;;  %v14417_v6 = vld [vmem:[#allocation16 + $0x4c] ss:$16 sps:$4 sm:$0xff]  }
 0x188   :  { %v16037_v7 = vpop.eup %16036 }
 0x189   :  { %v16039_v9 = vpop.eup %16038  ;;  %v737_v10 = vadd.f32 1.0, %v16037_v7  ;;  %v14412_v7 = vld [vmem:[#allocation16 + $0x40] ss:$16 sps:$4 sm:$0xff]  }
 0x18a   :  { %v16041_v11 = vpop.eup %16040  ;;  %v738_v12 = vadd.f32 1.0, %v16039_v9  ;;  %v14420_v9 = vld [vmem:[#allocation16 + $0x64] ss:$16 sps:$4 sm:$0xff]  }
 0x18b   :  { %v16043_v13 = vpop.eup %16042  ;;  %16052 = vrcp.f32 %v737_v10  ;;  %v755_v14 = vadd.f32 1.0, %v16041_v11  ;;  %v14423_v10 = vld [vmem:[#allocation16 + $0x6c] ss:$16 sps:$4 sm:$0xff]   ;;  %v14418_v11 = vld [vmem:[#allocation16 + $0x60] ss:$16 sps:$4 sm:$0xff]  }
 0x18c   :  { %16054 = vrcp.f32 %v738_v12  ;;  %v756_v15 = vadd.f32 1.0, %v16043_v13  ;;  %v16045_v17 = vpop.eup %16044  ;;  %v14421_v12 = vld [vmem:[#allocation16 + $0x68] ss:$16 sps:$4 sm:$0xff]   ;;  %v14426_v13 = vld [vmem:[#allocation16 + $0x84] ss:$16 sps:$4 sm:$0xff]  }
 0x18d   :  { %16056 = vrcp.f32 %v755_v14  ;;  %v16047_v19 = vpop.eup %16046  ;;  %v14429_v14 = vld [vmem:[#allocation16 + $0x8c] ss:$16 sps:$4 sm:$0xff]  }
 0x18e   :  { %16058 = vrcp.f32 %v756_v15  ;;  %v16049_v20 = vpop.eup %16048  ;;  %v14424_v15 = vld [vmem:[#allocation16 + $0x80] ss:$16 sps:$4 sm:$0xff]  }
 0x18f   :  { %v16051_v21 = vpop.eup %16050  ;;  %v777_v26 = vadd.f32 1.0, %v16049_v20  ;;  %v14433_v20 = vld [vmem:[#allocation16 + $0xa8] ss:$16 sps:$4 sm:$0xff]  }
 0x190   :  { %v778_v28 = vadd.f32 1.0, %v16051_v21  ;;  %v14438_v21 = vld [vmem:[#allocation16 + $0xc4] ss:$16 sps:$4 sm:$0xff]  }
 0x191   :  { %16060 = vrcp.f32 %v777_v26  ;;  %v14447_v26 = vld [vmem:[#allocation16 + $0xec] ss:$16 sps:$4 sm:$0xff]  }
 0x192   :  { %16062 = vrcp.f32 %v778_v28  ;;  %v14445_v28 = vld [vmem:[#allocation16 + $0xe8] ss:$16 sps:$4 sm:$0xff]  }
 0x195   :  { %v16053_v23 = vpop.eup %16052 }
 0x196   :  { %v16055_v25 = vpop.eup %16054  ;;  %v810_v31 = vmul.f32 %v16053_v23, %v16045_v17  ;;  %v14432_v17 = vld [vmem:[#allocation16 + $0xa4] ss:$16 sps:$4 sm:$0xff]   ;;  %v14436_v23 = vld [vmem:[#allocation16 + $0xc0] ss:$16 sps:$4 sm:$0xff]  }
 0x197   :  { %v16057_v27 = vpop.eup %16056  ;;  %v811_v33 = vmul.f32 %v16055_v25, %v16047_v19  ;;  %v14430_v19 = vld [vmem:[#allocation16 + $0xa0] ss:$16 sps:$4 sm:$0xff]   ;;  %v14444_v25 = vld [vmem:[#allocation16 + $0xe4] ss:$16 sps:$4 sm:$0xff]  }
 0x198   :  { %v16059_v29 = vpop.eup %16058  ;;  %v808_v30 = vmul.f32 %v16057_v27, %v798_v22  ;;  %v14441_v22 = vld [vmem:[#allocation16 + $0xcc] ss:$16 sps:$4 sm:$0xff]   ;;  %v14442_v27 = vld [vmem:[#allocation16 + $0xe0] ss:$16 sps:$4 sm:$0xff]  }
 0x199   :  { %v809_v32 = vmul.f32 %v16059_v29, %v805_v24  ;;  %v14439_v24 = vld [vmem:[#allocation16 + $0xc8] ss:$16 sps:$4 sm:$0xff]   ;;  %v14450_v29 = vld [vmem:[#allocation16 + $0x104] ss:$16 sps:$4 sm:$0xff]  }
 0x19a   :  { %v812_v35 = vadd.f32 %v810_v31, %v808_v30  ;;  %v14453_v30 = vld [vmem:[#allocation16 + $0x10c] ss:$16 sps:$4 sm:$0xff]   ;;  %v14448_v31 = vld [vmem:[#allocation16 + $0x100] ss:$16 sps:$4 sm:$0xff]  }
 0x19b   :  { %v813_v36 = vadd.f32 %v811_v33, %v809_v32  ;;  %v16061_v42 = vpop.eup %16060  ;;  %v14451_v32 = vld [vmem:[#allocation16 + $0x108] ss:$16 sps:$4 sm:$0xff]   ;;  %v14456_v33 = vld [vmem:[#allocation16 + $0x124] ss:$16 sps:$4 sm:$0xff]  }
 0x19c   :  { %16064 = vtanh.f32 %v812_v35  ;;  %v16063_v43 = vpop.eup %16062 }
 0x19d   :  { %16066 = vtanh.f32 %v813_v36  ;;  %v847_v38 = vcombine.low %v812_v35, %v813_v36  ;;  %v14459_v35 = vld [vmem:[#allocation16 + $0x12c] ss:$16 sps:$4 sm:$0xff]   ;;  %v14454_v36 = vld [vmem:[#allocation16 + $0x120] ss:$16 sps:$4 sm:$0xff]  }
 0x19f   :  { %v854_v39 = vrot.slane %v847_v38, %v17069_v34  ;;  %v14457_v38 = vld [vmem:[#allocation16 + $0x128] ss:$16 sps:$4 sm:$0xff]  }
 0x1a1   :  { %v861_v40 = vrot.slane %v854_v39, %v17069_v34  ;;  %v14462_v39 = vld [vmem:[#allocation16 + $0x144] ss:$16 sps:$4 sm:$0xff]  }
 0x1a3   :  { %v863_v41 = vsel %vm824_vm5, %v861_v40, %v412_v8  ;;  %v14415_v8 = vld [vmem:[#allocation16 + $0x48] ss:$16 sps:$4 sm:$0xff]   ;;  %v14465_v40 = vld [vmem:[#allocation16 + $0x14c] ss:$16 sps:$4 sm:$0xff]  }
 0x1a4   :  { %864 = vst [vmem:[#allocation5] sm:$0x3] %v863_v41  ;;  %v17093_v41 = vld [vmem:[#allocation16 + $0x140] ss:$16 sps:$4 sm:$0xff]  }
 0x1a6   :  { %v16065_v44 = vpop.eup %16064 }
 0x1a7   :  { %v16067_v45 = vpop.eup %16066  ;;  %v816_v46 = vmul.f32 %v16065_v44, %v16061_v42  ;;  %v17095_v42 = vld [vmem:[#allocation16 + $0x148] ss:$16 sps:$4 sm:$0xff]   ;;  %v17099_v44 = vld [vmem:[#allocation16 + $0x16c] ss:$16 sps:$4 sm:$0xff]  }
 0x1a8   :  { %v817_v47 = vmul.f32 %v16067_v45, %v16063_v43  ;;  %v17097_v43 = vld [vmem:[#allocation16 + $0x164] ss:$16 sps:$4 sm:$0xff]   ;;  %v17101_v45 = vld [vmem:[#allocation16 + $0x160] ss:$16 sps:$4 sm:$0xff]  }
 0x1aa   :  { %v827_v48 = vcombine.low %v816_v46, %v817_v47  ;;  %v17103_v46 = vld [vmem:[#allocation16 + $0x168] ss:$16 sps:$4 sm:$0xff]   ;;  %v17105_v47 = vld [vmem:[#allocation16 + $0x184] ss:$16 sps:$4 sm:$0xff]  }
 0x1ac   :  { %v834_v49 = vrot.slane %v827_v48, %v17069_v34  ;;  %v17107_v48 = vld [vmem:[#allocation16 + $0x18c] ss:$16 sps:$4 sm:$0xff]  }
 0x1ae   :  { %v841_v50 = vrot.slane %v834_v49, %v17069_v34  ;;  %v17113_v49 = vld [vmem:[#allocation16 + $0x180] ss:$16 sps:$4 sm:$0xff]  }
 0x1b0   :  { %v843_v52 = vsel %vm824_vm5, %v841_v50, %v16548_v51  ;;  %v17115_v50 = vld [vmem:[#allocation16 + $0x188] ss:$16 sps:$4 sm:$0xff]   ;;  %v17117_v51 = vld [vmem:[#allocation16 + $0x1a4] ss:$16 sps:$4 sm:$0xff]  }
 0x1b1   :  { %844 = vst [vmem:[#allocation4] sm:$0x3] %v843_v52  ;;  %v17119_v52 = vld [vmem:[#allocation16 + $0x1ac] ss:$16 sps:$4 sm:$0xff]  }
 0x1b8   :  { %v865_v62 = vld [vmem:[#allocation4] sm:$0x3] }
 0x1b9   :  { %v17089_v63 = vpack.c.bf16 %v865_v62, %v865_v62  ;;  %v17139_v62 = vld [vmem:[#allocation16 + $0x1c8] ss:$16 sps:$4 sm:$0xff]  }
 0x1bb   :  { %1098 = vmatmul.mubr.bf16.vlgmr.msra.gmra.mrb[12].mxu0 %v17089_v63  ;;  %1139 = vmatmul.mubr.bf16.vlgmr.msra.gmra.mrb[12].mxu1 %v17089_v63 }
 0x1bc   :  { %1731 = vmatpush1.bf16.msra.mxu0 %v14400_v58  ;;  %1772 = vmatpush1.bf16.msra.mxu1 %v14403_v59  ;;  %v17127_v58 = vld [vmem:[#allocation16 + $0x1a8] ss:$16 sps:$4 sm:$0xff]   ;;  %v17129_v59 = vld [vmem:[#allocation16 + $0x1c4] ss:$16 sps:$4 sm:$0xff]  }
 0x1bd   :  { %1732 = vmatprep.subr.bf16.mxu0 %v14408_v60  ;;  %1773 = vmatprep.subr.bf16.mxu1 %v14411_v61  ;;  %v17131_v60 = vld [vmem:[#allocation16 + $0x1cc] ss:$16 sps:$4 sm:$0xff]   ;;  %v17137_v61 = vld [vmem:[#allocation16 + $0x1c0] ss:$16 sps:$4 sm:$0xff]  }
 0x1be   :  { %1762 = vmatprep.mubr.bf16.mxu0 %v1323_v4  ;;  %1803 = vmatprep.mubr.bf16.mxu1 %v1323_v4  ;;  %v17149_v4 = vld [vmem:[#allocation16 + $0x1e0] ss:$16 sps:$4 sm:$0xff]  }
 0x1c0   :  { %1733 = vmatpush1.bf16.msra.mxu0 %v14406_v2  ;;  %1774 = vmatpush1.bf16.msra.mxu1 %v14409_v3  ;;  %v17141_v2 = vld [vmem:[#allocation16 + $0x1e4] ss:$16 sps:$4 sm:$0xff]   ;;  %v17143_v3 = vld [vmem:[#allocation16 + $0x1ec] ss:$16 sps:$4 sm:$0xff]  }
 0x1c1   :  { %1734 = vmatprep.subr.bf16.mxu0 %v14414_v5  ;;  %1775 = vmatprep.subr.bf16.mxu1 %v14417_v6  ;;  %v17151_v5 = vld [vmem:[#allocation16 + $0x1e8] ss:$16 sps:$4 sm:$0xff]   ;;  %v14498_v6 = vld [vmem:[#allocation15 + $0x4] ss:$16 sps:$4 sm:$0xff]  }
 0x1c4   :  { %1735 = vmatpush1.bf16.msra.mxu0 %v14412_v7  ;;  %1776 = vmatpush1.bf16.msra.mxu1 %v14415_v8  ;;  %v14501_v7 = vld [vmem:[#allocation15 + $0xc] ss:$16 sps:$4 sm:$0xff]   ;;  %v14496_v8 = vld [vmem:[#allocation15] ss:$16 sps:$4 sm:$0xff]  }
 0x1c5   :  { %1736 = vmatprep.subr.bf16.mxu0 %v14420_v9  ;;  %1777 = vmatprep.subr.bf16.mxu1 %v14423_v10  ;;  %v14499_v9 = vld [vmem:[#allocation15 + $0x8] ss:$16 sps:$4 sm:$0xff]   ;;  %v14504_v10 = vld [vmem:[#allocation15 + $0x24] ss:$16 sps:$4 sm:$0xff]  }
 0x1c8   :  { %1737 = vmatpush1.bf16.msra.mxu0 %v14418_v11  ;;  %1778 = vmatpush1.bf16.msra.mxu1 %v14421_v12  ;;  %v14507_v11 = vld [vmem:[#allocation15 + $0x2c] ss:$16 sps:$4 sm:$0xff]   ;;  %v14502_v12 = vld [vmem:[#allocation15 + $0x20] ss:$16 sps:$4 sm:$0xff]  }
 0x1c9   :  { %1738 = vmatprep.subr.bf16.mxu0 %v14426_v13  ;;  %1779 = vmatprep.subr.bf16.mxu1 %v14429_v14  ;;  %v14505_v13 = vld [vmem:[#allocation15 + $0x28] ss:$16 sps:$4 sm:$0xff]   ;;  %v14513_v14 = vld [vmem:[#allocation15 + $0x4c] ss:$16 sps:$4 sm:$0xff]  }
 0x1cc   :  { %1739 = vmatpush1.bf16.msra.mxu0 %v14424_v15  ;;  %1780 = vmatpush1.bf16.msra.mxu1 %v14427_v16  ;;  %v14508_v15 = vld [vmem:[#allocation15 + $0x40] ss:$16 sps:$4 sm:$0xff]   ;;  %v14511_v16 = vld [vmem:[#allocation15 + $0x48] ss:$16 sps:$4 sm:$0xff]  }
 0x1cd   :  { %1740 = vmatprep.subr.bf16.mxu0 %v14432_v17  ;;  %1781 = vmatprep.subr.bf16.mxu1 %v14435_v18  ;;  %v14516_v17 = vld [vmem:[#allocation15 + $0x64] ss:$16 sps:$4 sm:$0xff]   ;;  %v14519_v18 = vld [vmem:[#allocation15 + $0x6c] ss:$16 sps:$4 sm:$0xff]  }
 0x1d0   :  { %1741 = vmatpush1.bf16.msra.mxu0 %v14430_v19  ;;  %1782 = vmatpush1.bf16.msra.mxu1 %v14433_v20  ;;  %v14514_v19 = vld [vmem:[#allocation15 + $0x60] ss:$16 sps:$4 sm:$0xff]   ;;  %v14517_v20 = vld [vmem:[#allocation15 + $0x68] ss:$16 sps:$4 sm:$0xff]  }
 0x1d1   :  { %1742 = vmatprep.subr.bf16.mxu0 %v14438_v21  ;;  %1783 = vmatprep.subr.bf16.mxu1 %v14441_v22  ;;  %v14522_v21 = vld [vmem:[#allocation15 + $0x84] ss:$16 sps:$4 sm:$0xff]   ;;  %v14525_v22 = vld [vmem:[#allocation15 + $0x8c] ss:$16 sps:$4 sm:$0xff]  }
 0x1d4   :  { %1743 = vmatpush1.bf16.msra.mxu0 %v14436_v23  ;;  %1784 = vmatpush1.bf16.msra.mxu1 %v14439_v24  ;;  %v14520_v23 = vld [vmem:[#allocation15 + $0x80] ss:$16 sps:$4 sm:$0xff]   ;;  %v14523_v24 = vld [vmem:[#allocation15 + $0x88] ss:$16 sps:$4 sm:$0xff]  }
 0x1d5   :  { %1744 = vmatprep.subr.bf16.mxu0 %v14444_v25  ;;  %1785 = vmatprep.subr.bf16.mxu1 %v14447_v26  ;;  %v14528_v25 = vld [vmem:[#allocation15 + $0xa4] ss:$16 sps:$4 sm:$0xff]   ;;  %v14531_v26 = vld [vmem:[#allocation15 + $0xac] ss:$16 sps:$4 sm:$0xff]  }
 0x1d8   :  { %1745 = vmatpush1.bf16.msra.mxu0 %v14442_v27  ;;  %1786 = vmatpush1.bf16.msra.mxu1 %v14445_v28  ;;  %v14526_v27 = vld [vmem:[#allocation15 + $0xa0] ss:$16 sps:$4 sm:$0xff]   ;;  %v14529_v28 = vld [vmem:[#allocation15 + $0xa8] ss:$16 sps:$4 sm:$0xff]  }
 0x1d9   :  { %1746 = vmatprep.subr.bf16.mxu0 %v14450_v29  ;;  %1787 = vmatprep.subr.bf16.mxu1 %v14453_v30  ;;  %v14534_v29 = vld [vmem:[#allocation15 + $0xc4] ss:$16 sps:$4 sm:$0xff]   ;;  %v14537_v30 = vld [vmem:[#allocation15 + $0xcc] ss:$16 sps:$4 sm:$0xff]  }
 0x1dc   :  { %1747 = vmatpush1.bf16.msra.mxu0 %v14448_v31  ;;  %1788 = vmatpush1.bf16.msra.mxu1 %v14451_v32  ;;  %v14532_v31 = vld [vmem:[#allocation15 + $0xc0] ss:$16 sps:$4 sm:$0xff]   ;;  %v14535_v32 = vld [vmem:[#allocation15 + $0xc8] ss:$16 sps:$4 sm:$0xff]  }
 0x1dd   :  { %1748 = vmatprep.subr.bf16.mxu0 %v14456_v33  ;;  %1789 = vmatprep.subr.bf16.mxu1 %v14459_v35  ;;  %v14540_v33 = vld [vmem:[#allocation15 + $0xe4] ss:$16 sps:$4 sm:$0xff]   ;;  %v14543_v35 = vld [vmem:[#allocation15 + $0xec] ss:$16 sps:$4 sm:$0xff]  }
 0x1e0   :  { %1749 = vmatpush1.bf16.msra.mxu0 %v14454_v36  ;;  %1790 = vmatpush1.bf16.msra.mxu1 %v14457_v38  ;;  %v14538_v36 = vld [vmem:[#allocation15 + $0xe0] ss:$16 sps:$4 sm:$0xff]   ;;  %v14541_v38 = vld [vmem:[#allocation15 + $0xe8] ss:$16 sps:$4 sm:$0xff]  }
 0x1e1   :  { %1750 = vmatprep.subr.bf16.mxu0 %v14462_v39  ;;  %1791 = vmatprep.subr.bf16.mxu1 %v14465_v40  ;;  %v16549_v39 = vld [vmem:[#allocation16 + $0x4] ss:$16 sps:$4 sm:$0xff]   ;;  %v16550_v40 = vld [vmem:[#allocation16 + $0xc] ss:$16 sps:$4 sm:$0xff]  }
 0x1e4   :  { %1751 = vmatpush1.bf16.msra.mxu0 %v17093_v41  ;;  %1792 = vmatpush1.bf16.msra.mxu1 %v17095_v42 }
 0x1e5   :  { %1752 = vmatprep.subr.bf16.mxu0 %v17097_v43  ;;  %1793 = vmatprep.subr.bf16.mxu1 %v17099_v44 }
 0x1e8   :  { %1753 = vmatpush1.bf16.msra.mxu0 %v17101_v45  ;;  %1794 = vmatpush1.bf16.msra.mxu1 %v17103_v46 }
 0x1e9   :  { %1754 = vmatprep.subr.bf16.mxu0 %v17105_v47  ;;  %1795 = vmatprep.subr.bf16.mxu1 %v17107_v48 }
 0x1ec   :  { %1755 = vmatpush1.bf16.msra.mxu0 %v17113_v49  ;;  %1796 = vmatpush1.bf16.msra.mxu1 %v17115_v50 }
 0x1ed   :  { %1756 = vmatprep.subr.bf16.mxu0 %v17117_v51  ;;  %1797 = vmatprep.subr.bf16.mxu1 %v17119_v52 }
 0x1f0   :  { %1757 = vmatpush1.bf16.msra.mxu0 %v17125_v53  ;;  %1798 = vmatpush1.bf16.msra.mxu1 %v17127_v58 }
 0x1f1   :  { %1758 = vmatprep.subr.bf16.mxu0 %v17129_v59  ;;  %1799 = vmatprep.subr.bf16.mxu1 %v17131_v60 }
 0x1f4   :  { %1759 = vmatpush1.bf16.msra.mxu0 %v17137_v61  ;;  %1800 = vmatpush1.bf16.msra.mxu1 %v17139_v62 }
 0x1f5   :  { %1760 = vmatprep.subr.bf16.mxu0 %v17141_v2  ;;  %1801 = vmatprep.subr.bf16.mxu1 %v17143_v3 }
 0x1f8   :  { %1761 = vmatpush1.bf16.msra.mxu0 %v17149_v4  ;;  %1802 = vmatpush1.bf16.msra.mxu1 %v17151_v5 }
 0x1f9   :  { %2041 = vmatprep.subr.bf16.mxu0 %v14498_v6  ;;  %2082 = vmatprep.subr.bf16.mxu1 %v14501_v7 }
 0x1fb   :  { %1763 = vmatmul.mubr.bf16.vlgmr.msra.gmra.mrb[16].mxu0 %v17089_v63  ;;  %1804 = vmatmul.mubr.bf16.vlgmr.msra.gmra.mrb[16].mxu1 %v17089_v63  ;;  %v14510_v63 = vld [vmem:[#allocation15 + $0x44] ss:$16 sps:$4 sm:$0xff]  }
 0x1fc   :  { %2073 = vmatprep.mubr.bf16.mxu0 %v16780_v0  ;;  %2114 = vmatprep.mubr.bf16.mxu1 %v16780_v0 }
 0x1fd   :  { %2042 = vmatpush1.bf16.msra.mxu0 %v14496_v8  ;;  %2083 = vmatpush1.bf16.msra.mxu1 %v14499_v9 }
 0x1fe   :  { %2043 = vmatprep.subr.bf16.mxu0 %v14504_v10  ;;  %2084 = vmatprep.subr.bf16.mxu1 %v14507_v11 }
 0x201   :  { %2044 = vmatpush1.bf16.msra.mxu0 %v14502_v12  ;;  %2085 = vmatpush1.bf16.msra.mxu1 %v14505_v13 }
 0x202   :  { %2045 = vmatprep.subr.bf16.mxu0 %v14510_v63  ;;  %2086 = vmatprep.subr.bf16.mxu1 %v14513_v14 }
 0x205   :  { %2046 = vmatpush1.bf16.msra.mxu0 %v14508_v15  ;;  %2087 = vmatpush1.bf16.msra.mxu1 %v14511_v16 }
 0x206   :  { %2047 = vmatprep.subr.bf16.mxu0 %v14516_v17  ;;  %2088 = vmatprep.subr.bf16.mxu1 %v14519_v18 }
 0x209   :  { %2048 = vmatpush1.bf16.msra.mxu0 %v14514_v19  ;;  %2089 = vmatpush1.bf16.msra.mxu1 %v14517_v20 }
 0x20a   :  { %2049 = vmatprep.subr.bf16.mxu0 %v14522_v21  ;;  %2090 = vmatprep.subr.bf16.mxu1 %v14525_v22  ;;  %v869_v21 = vld [vmem:[#allocation2 + $0x1] ss:$8 sm:$0xf] }
 0x20b   :  { %v871_v22 = vld [vmem:[#allocation2 + $0x21] ss:$8 sm:$0xf] }
 0x20d   :  { %2050 = vmatpush1.bf16.msra.mxu0 %v14520_v23  ;;  %2091 = vmatpush1.bf16.msra.mxu1 %v14523_v24 }
 0x20e   :  { %2051 = vmatprep.subr.bf16.mxu0 %v14528_v25  ;;  %2092 = vmatprep.subr.bf16.mxu1 %v14531_v26 }
 0x211   :  { %2052 = vmatpush1.bf16.msra.mxu0 %v14526_v27  ;;  %2093 = vmatpush1.bf16.msra.mxu1 %v14529_v28 }
 0x212   :  { %2053 = vmatprep.subr.bf16.mxu0 %v14534_v29  ;;  %2094 = vmatprep.subr.bf16.mxu1 %v14537_v30 }
 0x215   :  { %2054 = vmatpush1.bf16.msra.mxu0 %v14532_v31  ;;  %2095 = vmatpush1.bf16.msra.mxu1 %v14535_v32 }
 0x216   :  { %2055 = vmatprep.subr.bf16.mxu0 %v14540_v33  ;;  %2096 = vmatprep.subr.bf16.mxu1 %v14543_v35 }
 0x219   :  { %2056 = vmatpush1.bf16.msra.mxu0 %v14538_v36  ;;  %2097 = vmatpush1.bf16.msra.mxu1 %v14541_v38 }
 0x21a   :  { %2706 = vmatprep.subr.bf16.mxu0 %v16549_v39  ;;  %2747 = vmatprep.subr.bf16.mxu1 %v16550_v40 }
 0x28e   :  { %v1099_v6 = vpop.f32.mrb[12].mxu0  ;;  %v1140_v7 = vpop.f32.mrb[12].mxu1 }
 0x28f   :  { %v1101_v8 = vpop.f32.mrb[13].mxu0  ;;  %v1142_v9 = vpop.f32.mrb[13].mxu1 }
 0x290   :  { %v1151_v10 = vcombine.low %v1099_v6, %v1101_v8  ;;  %v1152_v11 = vcombine.low %v1140_v7, %v1142_v9  ;;  %v1103_v12 = vpop.f32.mrb[14].mxu0  ;;  %v1144_v13 = vpop.f32.mrb[14].mxu1 }
 0x291   :  { %v1104_v63 = vpop.f32.mrb[15].mxu0  ;;  %v1145_v14 = vpop.f32.mrb[15].mxu1 }
 0x292   :  { %v1159_v15 = vrot.slane %v1151_v10, %v17069_v34  ;;  %v1166_v16 = vrot.slane %v1152_v11, %v17069_v34  ;;  %v867_v11 = vld [vmem:[#allocation5] sm:$0x3] }
 0x293   :  { %v1246_v13 = vrot.slane %v867_v11, %v17069_v34 }
 0x294   :  { %v1167_v17 = vcombine.low %v1159_v15, %v1166_v16  ;;  %v1168_v18 = vcombine.high %v1159_v15, %v1166_v16 }
 0x295   :  { %v1247_v16 = vcombine.high %v1246_v13, %v1246_v13 }
 0x296   :  { %v1175_v19 = vrot.slane %v1167_v17, %v17069_v34  ;;  %v1182_v20 = vrot.slane %v1168_v18, %v17069_v34 }
 0x298   :  { %v1185_v23 = vadd.f32 %v1175_v19, %v869_v21  ;;  %v1186_v24 = vadd.f32 %v1182_v20, %v871_v22  ;;  %v1254_v21 = vrot.slane %v1246_v13, %v17069_v34 }
 0x29a   :  { %v12922_v25 = vmul.f32 -1.442695, %v1185_v23  ;;  %v12923_v26 = vmul.f32 -1.442695, %v1186_v24  ;;  %v1201_v27 = vrot.slane %v1185_v23, 1  ;;  %v1202_v28 = vrot.slane %v1186_v24, 1 }
 0x29b   :  { %v1223_v31 = vrot.slane %v1185_v23, 3  ;;  %v1224_v32 = vrot.slane %v1186_v24, 3  ;;  %v1217_v33 = vrot.slane %v1185_v23, 2  ;;  %v1218_v35 = vrot.slane %v1186_v24, 2 }
 0x29c   :  { %16068 = vpow2.f32 %v12922_v25  ;;  %v12924_v29 = vmul.f32 -1.442695, %v1201_v27  ;;  %v12925_v30 = vmul.f32 -1.442695, %v1202_v28  ;;  %v1261_v24 = vrot.slane %v1247_v16, %v17069_v34 }
 0x29d   :  { %16070 = vpow2.f32 %v12923_v26  ;;  %v12926_v36 = vmul.f32 -1.442695, %v1223_v31  ;;  %v12927_v38 = vmul.f32 -1.442695, %v1224_v32 }
 0x29e   :  { %16072 = vpow2.f32 %v12924_v29 }
 0x29f   :  { %16074 = vpow2.f32 %v12925_v30 }
 0x2a0   :  { %16076 = vtanh.f32 %v1217_v33 }
 0x2a1   :  { %16078 = vtanh.f32 %v1218_v35  ;;  %v17171_v35 = vpop.permute.xlu0 %1279 }
 0x2a2   :  { %16080 = vpow2.f32 %v12926_v36  ;;  %vm1281_vm6 = vcmp.eq.s32.totalorder %v17171_v35, 1  ;;  %v15098_v35 = vld [vmem:[#allocation18 + $0x184] ss:$16 sps:$4 sm:$0xff]  }
 0x2a3   :  { %16082 = vpow2.f32 %v12927_v38 }
 0x2a6   :  { %v16069_v39 = vpop.eup %16068 }
 0x2a7   :  { %v16071_v40 = vpop.eup %16070  ;;  %v1193_v6 = vadd.f32 1.0, %v16069_v39 }
 0x2a8   :  { %v16073_v7 = vpop.eup %16072  ;;  %v1194_v8 = vadd.f32 1.0, %v16071_v40 }
 0x2a9   :  { %v16075_v9 = vpop.eup %16074  ;;  %16084 = vrcp.f32 %v1193_v6  ;;  %v1211_v10 = vadd.f32 1.0, %v16073_v7 }
 0x2aa   :  { %16086 = vrcp.f32 %v1194_v8  ;;  %v1212_v12 = vadd.f32 1.0, %v16075_v9  ;;  %v16077_v63 = vpop.eup %16076 }
 0x2ab   :  { %16088 = vrcp.f32 %v1211_v10  ;;  %v16079_v14 = vpop.eup %16078 }
 0x2ac   :  { %16090 = vrcp.f32 %v1212_v12  ;;  %v16081_v15 = vpop.eup %16080  ;;  %v1388_v12 = vld [vmem:[%s17991_s6] sm:$0xf] }
 0x2ad   :  { %v16083_v17 = vpop.eup %16082  ;;  %v1233_v20 = vadd.f32 1.0, %v16081_v15  ;;  %v16551_v15 = vld [vmem:[#allocation4] sm:$0x3] }
 0x2ae   :  { %v1234_v23 = vadd.f32 1.0, %v16083_v17 }
 0x2af   :  { %16092 = vrcp.f32 %v1233_v20 }
 0x2b0   :  { %16094 = vrcp.f32 %v1234_v23 }
 0x2b3   :  { %v16085_v18 = vpop.eup %16084 }
 0x2b4   :  { %v16087_v19 = vpop.eup %16086  ;;  %v1266_v27 = vmul.f32 %v16085_v18, %v16077_v63  ;;  %v1393_v63 = vrot.slane %v1388_v12, %v17050_v54 }
 0x2b5   :  { %v16089_v22 = vpop.eup %16088  ;;  %v1267_v29 = vmul.f32 %v16087_v19, %v16079_v14 }
 0x2b6   :  { %v16091_v25 = vpop.eup %16090  ;;  %v1264_v26 = vmul.f32 %v16089_v22, %v1254_v21 }
 0x2b7   :  { %v1265_v28 = vmul.f32 %v16091_v25, %v1261_v24 }
 0x2b8   :  { %v1268_v30 = vadd.f32 %v1266_v27, %v1264_v26 }
 0x2b9   :  { %v1269_v31 = vadd.f32 %v1267_v29, %v1265_v28  ;;  %v16093_v39 = vpop.eup %16092  ;;  %v1405_v29 = vrot.slane %v1388_v12, %v17056_v57 }
 0x2ba   :  { %16096 = vtanh.f32 %v1268_v30  ;;  %v16095_v40 = vpop.eup %16094 }
 0x2bb   :  { %16098 = vtanh.f32 %v1269_v31  ;;  %v1304_v32 = vcombine.low %v1268_v30, %v1269_v31 }
 0x2bd   :  { %v1311_v33 = vrot.slane %v1304_v32, %v17069_v34  ;;  %v1401_v32 = vrot.slane %v1388_v12, %v17052_v55 }
 0x2bf   :  { %v1318_v36 = vrot.slane %v1311_v33, %v17069_v34 }
 0x2c1   :  { %v1320_v38 = vsel %vm1281_vm6, %v1318_v36, %v867_v11  ;;  %v1397_v11 = vrot.slane %v1388_v12, %v17054_v56  ;;  %v16552_v36 = vld [vmem:[%s17985_s0] sm:$0x3] }
 0x2c2   :  { %1321 = vst [vmem:[#allocation5] sm:$0x3] %v1320_v38  ;;  %vm13034_vm7 = vcmp.gt.s32.totalorder %v16552_v36, 2  ;;  %vm13209_vm8 = vcmp.gt.s32.totalorder %v16552_v36, 3  ;;  %vm13559_vm9 = vcmp.gt.s32.totalorder %v16552_v36, 5  ;;  %vm13909_vm10 = vcmp.gt.s32.totalorder %v16552_v36, 7 }
 0x2c3   :  { %v3775_v12 = vsel %vm13209_vm8, 1, %v16780_v0  ;;  %v16569_v36 = vld [vmem:[#allocation16 + $0x80] ss:$16 sps:$4 sm:$0xff]  }
 0x2c4   :  { %v16097_v6 = vpop.eup %16096 }
 0x2c5   :  { %v16099_v7 = vpop.eup %16098  ;;  %v1272_v8 = vmul.f32 %v16097_v6, %v16093_v39  ;;  %v16553_v39 = vld [vmem:[#allocation16] ss:$16 sps:$4 sm:$0xff]   ;;  %v2253_v6 = vsel %vm13034_vm7, 1, %v16780_v0 }
 0x2c6   :  { %v1273_v9 = vmul.f32 %v16099_v7, %v16095_v40  ;;  %v16554_v40 = vld [vmem:[#allocation16 + $0x8] ss:$16 sps:$4 sm:$0xff]   ;;  %2255 = vperm.xlu1 %14345, %v2253_v6  }
 0x2c8   :  { %v1284_v10 = vcombine.low %v1272_v8, %v1273_v9  ;;  %v16555_v8 = vld [vmem:[#allocation16 + $0x24] ss:$16 sps:$4 sm:$0xff]   ;;  %v16556_v9 = vld [vmem:[#allocation16 + $0x2c] ss:$16 sps:$4 sm:$0xff]  }
 0x2ca   :  { %v1291_v13 = vrot.slane %v1284_v10, %v17069_v34  ;;  %3777 = vperm.xlu1 %14345, %v3775_v12   ;;  %v16573_v12 = vld [vmem:[#allocation16 + $0xa0] ss:$16 sps:$4 sm:$0xff]  }
 0x2cc   :  { %v1298_v14 = vrot.slane %v1291_v13, %v17069_v34 }
 0x2ce   :  { %v1300_v16 = vsel %vm1281_vm6, %v1298_v14, %v16551_v15  ;;  %v1764_v17 = vpop.f32.mrb[16].mxu0  ;;  %v1805_v18 = vpop.f32.mrb[16].mxu1  ;;  %v16557_v14 = vld [vmem:[#allocation16 + $0x20] ss:$16 sps:$4 sm:$0xff]  }
 0x2cf   :  { %1301 = vst [vmem:[#allocation4] sm:$0x3] %v1300_v16  ;;  %v1765_v19 = vadd.f32 %v1764_v17, %v1393_v63  ;;  %v1766_v20 = vpop.f32.mrb[17].mxu0  ;;  %v1807_v21 = vpop.f32.mrb[17].mxu1  ;;  %v1806_v7 = vadd.f32 %v1805_v18, %v1401_v32  ;;  %v16559_v16 = vld [vmem:[#allocation16 + $0x44] ss:$16 sps:$4 sm:$0xff]  }
 0x2d0   :  { %v1767_v22 = vadd.f32 %v1766_v20, %v1397_v11  ;;  %v1768_v23 = vpop.f32.mrb[18].mxu0  ;;  %v1809_v24 = vpop.f32.mrb[18].mxu1  ;;  %v1808_v30 = vadd.f32 %v1807_v21, %v1405_v29  ;;  %v16558_v11 = vld [vmem:[#allocation16 + $0x28] ss:$16 sps:$4 sm:$0xff]   ;;  %v16560_v17 = vld [vmem:[#allocation16 + $0x4c] ss:$16 sps:$4 sm:$0xff]  }
 0x2d1   :  { %v12993_v25 = vmul.f32 -1.442695, %v1765_v19  ;;  %v1769_v26 = vpop.f32.mrb[19].mxu0  ;;  %v1810_v27 = vpop.f32.mrb[19].mxu1  ;;  %v6819_v18 = vsel %vm13559_vm9, 1, %v16780_v0  ;;  %v9863_v23 = vsel %vm13909_vm10, 1, %v16780_v0 }
 0x2d2   :  { %v12994_v28 = vmul.f32 -1.442695, %v1767_v22  ;;  %v12995_v38 = vmul.f32 -1.442695, %v1808_v30  ;;  %v16561_v19 = vld [vmem:[#allocation16 + $0x40] ss:$16 sps:$4 sm:$0xff]   ;;  %6821 = vperm.xlu1 %14345, %v6819_v18  }
 0x2d3   :  { %16100 = vpow2.f32 %v12993_v25  ;;  %v16562_v20 = vld [vmem:[#allocation16 + $0x48] ss:$16 sps:$4 sm:$0xff]   ;;  %v16563_v21 = vld [vmem:[#allocation16 + $0x64] ss:$16 sps:$4 sm:$0xff]   ;;  %v16564_v22 = vld [vmem:[#allocation16 + $0x6c] ss:$16 sps:$4 sm:$0xff]  }
 0x2d4   :  { %16102 = vpow2.f32 %v12994_v28  ;;  %v16565_v24 = vld [vmem:[#allocation16 + $0x60] ss:$16 sps:$4 sm:$0xff]   ;;  %v16566_v25 = vld [vmem:[#allocation16 + $0x68] ss:$16 sps:$4 sm:$0xff]   ;;  %v16567_v26 = vld [vmem:[#allocation16 + $0x84] ss:$16 sps:$4 sm:$0xff]  }
 0x2d5   :  { %16104 = vpow2.f32 %v12995_v38  ;;  %v16568_v27 = vld [vmem:[#allocation16 + $0x8c] ss:$16 sps:$4 sm:$0xff]   ;;  %v1322_v30 = vld [vmem:[#allocation7] sm:$0x3] }
 0x2d6   :  { %v17187_v31 = vld [vmem:[#allocation4] sm:$0x3]  ;;  %16106 = vtanh.f32 %v1806_v7  ;;  %9865 = vperm.xlu1 %14345, %v9863_v23   ;;  %v16570_v38 = vld [vmem:[#allocation16 + $0x88] ss:$16 sps:$4 sm:$0xff]   ;;  %v16580_v18 = vld [vmem:[#allocation16 + $0xec] ss:$16 sps:$4 sm:$0xff]  }
 0x2d7   :  { %v17192_v33 = vpack.c.bf16 %v17187_v31, %v17187_v31  ;;  %v16571_v7 = vld [vmem:[#allocation16 + $0xa4] ss:$16 sps:$4 sm:$0xff]  }
 0x2d9   :  { %2074 = vmatmul.mubr.bf16.vlgmr.msra.gmra.mrb[20].mxu0 %v17192_v33  ;;  %2115 = vmatmul.mubr.bf16.vlgmr.msra.gmra.mrb[20].mxu1 %v17192_v33 }
 0x2da   :  { %2707 = vmatpush1.bf16.msra.mxu0 %v16553_v39  ;;  %2748 = vmatpush1.bf16.msra.mxu1 %v16554_v40 }
 0x2db   :  { %2708 = vmatprep.subr.bf16.mxu0 %v16555_v8  ;;  %2749 = vmatprep.subr.bf16.mxu1 %v16556_v9  ;;  %v16572_v8 = vld [vmem:[#allocation16 + $0xac] ss:$16 sps:$4 sm:$0xff]  }
 0x2dd   :  { %v16101_v10 = vpop.eup %16100 }
 0x2de   :  { %v16103_v13 = vpop.eup %16102  ;;  %v1815_v63 = vadd.f32 1.0, %v16101_v10  ;;  %2709 = vmatpush1.bf16.msra.mxu0 %v16557_v14  ;;  %2750 = vmatpush1.bf16.msra.mxu1 %v16558_v11  ;;  %v16576_v14 = vld [vmem:[#allocation16 + $0xcc] ss:$16 sps:$4 sm:$0xff]  }
 0x2df   :  { %v1821_v15 = vadd.f32 1.0, %v16103_v13  ;;  %2710 = vmatprep.subr.bf16.mxu0 %v16559_v16  ;;  %2751 = vmatprep.subr.bf16.mxu1 %v16560_v17  ;;  %v16105_v28 = vpop.eup %16104  ;;  %v16574_v13 = vld [vmem:[#allocation16 + $0xa8] ss:$16 sps:$4 sm:$0xff]   ;;  %v16579_v17 = vld [vmem:[#allocation16 + $0xe4] ss:$16 sps:$4 sm:$0xff]  }
 0x2e0   :  { %16108 = vrcp.f32 %v1815_v63  ;;  %v16107_v29 = vpop.eup %16106  ;;  %v1828_v6 = vadd.f32 1.0, %v16105_v28  ;;  %v16575_v63 = vld [vmem:[#allocation16 + $0xc4] ss:$16 sps:$4 sm:$0xff]   ;;  %v16578_v16 = vld [vmem:[#allocation16 + $0xc8] ss:$16 sps:$4 sm:$0xff]  }
 0x2e1   :  { %16110 = vrcp.f32 %v1821_v15  ;;  %v16577_v15 = vld [vmem:[#allocation16 + $0xc0] ss:$16 sps:$4 sm:$0xff]   ;;  %v16587_v28 = vld [vmem:[#allocation16 + $0x124] ss:$16 sps:$4 sm:$0xff]  }
 0x2e2   :  { %2711 = vmatpush1.bf16.msra.mxu0 %v16561_v19  ;;  %2752 = vmatpush1.bf16.msra.mxu1 %v16562_v20  ;;  %16112 = vrcp.f32 %v1828_v6  ;;  %v16581_v19 = vld [vmem:[#allocation16 + $0xe0] ss:$16 sps:$4 sm:$0xff]   ;;  %v16582_v20 = vld [vmem:[#allocation16 + $0xe8] ss:$16 sps:$4 sm:$0xff]  }
 0x2e3   :  { %2712 = vmatprep.subr.bf16.mxu0 %v16563_v21  ;;  %2753 = vmatprep.subr.bf16.mxu1 %v16564_v22  ;;  %v16583_v21 = vld [vmem:[#allocation16 + $0x104] ss:$16 sps:$4 sm:$0xff]   ;;  %v16584_v22 = vld [vmem:[#allocation16 + $0x10c] ss:$16 sps:$4 sm:$0xff]  }
 0x2e6   :  { %2713 = vmatpush1.bf16.msra.mxu0 %v16565_v24  ;;  %2754 = vmatpush1.bf16.msra.mxu1 %v16566_v25  ;;  %v16585_v25 = vld [vmem:[#allocation16 + $0x100] ss:$16 sps:$4 sm:$0xff]  }
 0x2e7   :  { %2714 = vmatprep.subr.bf16.mxu0 %v16567_v26  ;;  %2755 = vmatprep.subr.bf16.mxu1 %v16568_v27  ;;  %v16586_v26 = vld [vmem:[#allocation16 + $0x108] ss:$16 sps:$4 sm:$0xff]  }
 0x2ea   :  { %v16109_v32 = vpop.eup %16108  ;;  %2715 = vmatpush1.bf16.msra.mxu0 %v16569_v36  ;;  %2756 = vmatpush1.bf16.msra.mxu1 %v16570_v38  ;;  %v16590_v36 = vld [vmem:[#allocation16 + $0x120] ss:$16 sps:$4 sm:$0xff]   ;;  %v16591_v38 = vld [vmem:[#allocation16 + $0x128] ss:$16 sps:$4 sm:$0xff]  }
 0x2eb   :  { %v16111_v39 = vpop.eup %16110  ;;  %v1832_v40 = vmul.f32 %v16109_v32, %v16107_v29  ;;  %2716 = vmatprep.subr.bf16.mxu0 %v16571_v7  ;;  %2757 = vmatprep.subr.bf16.mxu1 %v16572_v8  ;;  %v16588_v29 = vld [vmem:[#allocation16 + $0x12c] ss:$16 sps:$4 sm:$0xff]  }
 0x2ec   :  { %v1831_v9 = vmul.f32 %v16111_v39, %v1322_v30  ;;  %v16113_v23 = vpop.eup %16112  ;;  %v16592_v39 = vld [vmem:[#allocation16 + $0x144] ss:$16 sps:$4 sm:$0xff]   ;;  %v14579_v8 = vld [vmem:[#allocation18 + $0xac] ss:$16 sps:$4 sm:$0xff]  }
 0x2ee   :  { %v1833_v10 = vadd.f32 %v1832_v40, %v1831_v9  ;;  %2717 = vmatpush1.bf16.msra.mxu0 %v16573_v12  ;;  %2758 = vmatpush1.bf16.msra.mxu1 %v16574_v13  ;;  %v16593_v40 = vld [vmem:[#allocation16 + $0x14c] ss:$16 sps:$4 sm:$0xff]   ;;  %v14574_v9 = vld [vmem:[#allocation18 + $0xa0] ss:$16 sps:$4 sm:$0xff]   ;;  %v14582_v12 = vld [vmem:[#allocation18 + $0xc4] ss:$16 sps:$4 sm:$0xff]  }
 0x2ef   :  { %2718 = vmatprep.subr.bf16.mxu0 %v16575_v63  ;;  %2759 = vmatprep.subr.bf16.mxu1 %v16576_v14  ;;  %v14585_v13 = vld [vmem:[#allocation18 + $0xcc] ss:$16 sps:$4 sm:$0xff]   ;;  %v14580_v63 = vld [vmem:[#allocation18 + $0xc0] ss:$16 sps:$4 sm:$0xff]   ;;  %v14583_v14 = vld [vmem:[#allocation18 + $0xc8] ss:$16 sps:$4 sm:$0xff]  }
 0x2f0   :  { %16114 = vtanh.f32 %v1833_v10  ;;  %v1838_v11 = vsel %vm824_vm5, %v1833_v10, %v1322_v30  ;;  %v16589_v30 = vld [vmem:[#allocation6] sm:$0x3] }
 0x2f1   :  { %1839 = vst [vmem:[#allocation7] sm:$0x3] %v1838_v11  ;;  %v14577_v10 = vld [vmem:[#allocation18 + $0xa8] ss:$16 sps:$4 sm:$0xff]   ;;  %v14588_v11 = vld [vmem:[#allocation18 + $0xe4] ss:$16 sps:$4 sm:$0xff]  }
 0x2f2   :  { %2719 = vmatpush1.bf16.msra.mxu0 %v16577_v15  ;;  %2760 = vmatpush1.bf16.msra.mxu1 %v16578_v16  ;;  %v14591_v15 = vld [vmem:[#allocation18 + $0xec] ss:$16 sps:$4 sm:$0xff]   ;;  %v14586_v16 = vld [vmem:[#allocation18 + $0xe0] ss:$16 sps:$4 sm:$0xff]  }
 0x2f3   :  { %2720 = vmatprep.subr.bf16.mxu0 %v16579_v17  ;;  %2761 = vmatprep.subr.bf16.mxu1 %v16580_v18  ;;  %v14589_v17 = vld [vmem:[#allocation18 + $0xe8] ss:$16 sps:$4 sm:$0xff]   ;;  %v14594_v18 = vld [vmem:[#allocation18 + $0x104] ss:$16 sps:$4 sm:$0xff]  }
 0x2f6   :  { %2721 = vmatpush1.bf16.msra.mxu0 %v16581_v19  ;;  %2762 = vmatpush1.bf16.msra.mxu1 %v16582_v20  ;;  %v14597_v19 = vld [vmem:[#allocation18 + $0x10c] ss:$16 sps:$4 sm:$0xff]   ;;  %v14592_v20 = vld [vmem:[#allocation18 + $0x100] ss:$16 sps:$4 sm:$0xff]  }
 0x2f7   :  { %2722 = vmatprep.subr.bf16.mxu0 %v16583_v21  ;;  %2763 = vmatprep.subr.bf16.mxu1 %v16584_v22  ;;  %v14595_v21 = vld [vmem:[#allocation18 + $0x108] ss:$16 sps:$4 sm:$0xff]   ;;  %v14600_v22 = vld [vmem:[#allocation18 + $0x124] ss:$16 sps:$4 sm:$0xff]  }
 0x2fa   :  { %v16115_v24 = vpop.eup %16114  ;;  %2723 = vmatpush1.bf16.msra.mxu0 %v16585_v25  ;;  %2764 = vmatpush1.bf16.msra.mxu1 %v16586_v26  ;;  %v14601_v25 = vld [vmem:[#allocation18 + $0x128] ss:$16 sps:$4 sm:$0xff]   ;;  %v14606_v26 = vld [vmem:[#allocation18 + $0x144] ss:$16 sps:$4 sm:$0xff]  }
 0x2fb   :  { %v1835_v27 = vmul.f32 %v16115_v24, %v16113_v23  ;;  %2724 = vmatprep.subr.bf16.mxu0 %v16587_v28  ;;  %2765 = vmatprep.subr.bf16.mxu1 %v16588_v29  ;;  %v14603_v23 = vld [vmem:[#allocation18 + $0x12c] ss:$16 sps:$4 sm:$0xff]   ;;  %v14598_v24 = vld [vmem:[#allocation18 + $0x120] ss:$16 sps:$4 sm:$0xff]   ;;  %v14607_v29 = vld [vmem:[#allocation18 + $0x148] ss:$16 sps:$4 sm:$0xff]  }
 0x2fc   :  { %v14604_v28 = vld [vmem:[#allocation18 + $0x140] ss:$16 sps:$4 sm:$0xff]  }
 0x2fd   :  { %v1836_v32 = vsel %vm824_vm5, %v1835_v27, %v16589_v30  ;;  %v14609_v27 = vld [vmem:[#allocation18 + $0x14c] ss:$16 sps:$4 sm:$0xff]   ;;  %v14612_v30 = vld [vmem:[#allocation18 + $0x164] ss:$16 sps:$4 sm:$0xff]  }
 0x2fe   :  { %1837 = vst [vmem:[#allocation6] sm:$0x3] %v1836_v32  ;;  %2725 = vmatpush1.bf16.msra.mxu0 %v16590_v36  ;;  %2766 = vmatpush1.bf16.msra.mxu1 %v16591_v38  ;;  %v14615_v32 = vld [vmem:[#allocation18 + $0x16c] ss:$16 sps:$4 sm:$0xff]   ;;  %v14610_v36 = vld [vmem:[#allocation18 + $0x160] ss:$16 sps:$4 sm:$0xff]  }
 0x2ff   :  { %2726 = vmatprep.subr.bf16.mxu0 %v16592_v39  ;;  %2767 = vmatprep.subr.bf16.mxu1 %v16593_v40  ;;  %v14613_v38 = vld [vmem:[#allocation18 + $0x168] ss:$16 sps:$4 sm:$0xff]   ;;  %v14618_v39 = vld [vmem:[#allocation18 + $0x184] ss:$16 sps:$4 sm:$0xff]   ;;  %v14621_v40 = vld [vmem:[#allocation18 + $0x18c] ss:$16 sps:$4 sm:$0xff]  }
 0x302   :  { %2727 = vmatpush1.bf16.msra.mxu0 %v17093_v41  ;;  %2768 = vmatpush1.bf16.msra.mxu1 %v17095_v42  ;;  %v14546_v41 = vld [vmem:[#allocation18 + $0x4] ss:$16 sps:$4 sm:$0xff]   ;;  %v14549_v42 = vld [vmem:[#allocation18 + $0xc] ss:$16 sps:$4 sm:$0xff]  }
 0x303   :  { %2728 = vmatprep.subr.bf16.mxu0 %v17097_v43  ;;  %2769 = vmatprep.subr.bf16.mxu1 %v17099_v44  ;;  %v1842_v43 = vld [vmem:[#allocation8] sm:$0x3]  ;;  %v14544_v44 = vld [vmem:[#allocation18] ss:$16 sps:$4 sm:$0xff]  }
 0x305   :  { %v17211_v6 = vld [vmem:[#allocation6] sm:$0x3] }
 0x306   :  { %2729 = vmatpush1.bf16.msra.mxu0 %v17101_v45  ;;  %2770 = vmatpush1.bf16.msra.mxu1 %v17103_v46  ;;  %v17217_v7 = vpack.c.bf16 %v17211_v6, %v17211_v6  ;;  %v14547_v45 = vld [vmem:[#allocation18 + $0x8] ss:$16 sps:$4 sm:$0xff]   ;;  %v14552_v46 = vld [vmem:[#allocation18 + $0x24] ss:$16 sps:$4 sm:$0xff]  }
 0x307   :  { %2730 = vmatprep.subr.bf16.mxu0 %v17105_v47  ;;  %2771 = vmatprep.subr.bf16.mxu1 %v17107_v48  ;;  %v14555_v47 = vld [vmem:[#allocation18 + $0x2c] ss:$16 sps:$4 sm:$0xff]   ;;  %v2817_v48 = vpack.c.bf16 %v1842_v43, %v1842_v43  ;;  %v14624_v43 = vld [vmem:[#allocation18 + $0x1a4] ss:$16 sps:$4 sm:$0xff]  }
 0x308   :  { %2738 = vmatprep.mubr.bf16.mxu0 %v17217_v7  ;;  %2779 = vmatprep.mubr.bf16.mxu1 %v17217_v7 }
 0x30a   :  { %2731 = vmatpush1.bf16.msra.mxu0 %v17113_v49  ;;  %2772 = vmatpush1.bf16.msra.mxu1 %v17115_v50  ;;  %v14550_v49 = vld [vmem:[#allocation18 + $0x20] ss:$16 sps:$4 sm:$0xff]   ;;  %v14553_v50 = vld [vmem:[#allocation18 + $0x28] ss:$16 sps:$4 sm:$0xff]  }
 0x30b   :  { %2732 = vmatprep.subr.bf16.mxu0 %v17117_v51  ;;  %2773 = vmatprep.subr.bf16.mxu1 %v17119_v52  ;;  %v14558_v51 = vld [vmem:[#allocation18 + $0x44] ss:$16 sps:$4 sm:$0xff]   ;;  %v14561_v52 = vld [vmem:[#allocation18 + $0x4c] ss:$16 sps:$4 sm:$0xff]  }
 0x30e   :  { %2733 = vmatpush1.bf16.msra.mxu0 %v17125_v53  ;;  %2774 = vmatpush1.bf16.msra.mxu1 %v17127_v58  ;;  %v14556_v53 = vld [vmem:[#allocation18 + $0x40] ss:$16 sps:$4 sm:$0xff]   ;;  %v14559_v58 = vld [vmem:[#allocation18 + $0x48] ss:$16 sps:$4 sm:$0xff]  }
 0x30f   :  { %2734 = vmatprep.subr.bf16.mxu0 %v17129_v59  ;;  %2775 = vmatprep.subr.bf16.mxu1 %v17131_v60  ;;  %v14564_v59 = vld [vmem:[#allocation18 + $0x64] ss:$16 sps:$4 sm:$0xff]   ;;  %v14567_v60 = vld [vmem:[#allocation18 + $0x6c] ss:$16 sps:$4 sm:$0xff]  }
 0x312   :  { %2735 = vmatpush1.bf16.msra.mxu0 %v17137_v61  ;;  %2776 = vmatpush1.bf16.msra.mxu1 %v17139_v62  ;;  %v14562_v61 = vld [vmem:[#allocation18 + $0x60] ss:$16 sps:$4 sm:$0xff]   ;;  %v14565_v62 = vld [vmem:[#allocation18 + $0x68] ss:$16 sps:$4 sm:$0xff]  }
 0x313   :  { %2736 = vmatprep.subr.bf16.mxu0 %v17141_v2  ;;  %2777 = vmatprep.subr.bf16.mxu1 %v17143_v3  ;;  %v14570_v2 = vld [vmem:[#allocation18 + $0x84] ss:$16 sps:$4 sm:$0xff]   ;;  %v14573_v3 = vld [vmem:[#allocation18 + $0x8c] ss:$16 sps:$4 sm:$0xff]  }
 0x316   :  { %2737 = vmatpush1.bf16.msra.mxu0 %v17149_v4  ;;  %2778 = vmatpush1.bf16.msra.mxu1 %v17151_v5  ;;  %v14568_v4 = vld [vmem:[#allocation18 + $0x80] ss:$16 sps:$4 sm:$0xff]   ;;  %v14571_v5 = vld [vmem:[#allocation18 + $0x88] ss:$16 sps:$4 sm:$0xff]  }
 0x317   :  { %3224 = vmatprep.subr.bf16.mxu0 %v14546_v41  ;;  %3265 = vmatprep.subr.bf16.mxu1 %v14549_v42  ;;  %v14616_v41 = vld [vmem:[#allocation18 + $0x180] ss:$16 sps:$4 sm:$0xff]   ;;  %v14619_v42 = vld [vmem:[#allocation18 + $0x188] ss:$16 sps:$4 sm:$0xff]  }
 0x319   :  { %2739 = vmatmul.mubr.bf16.vlgmr.msra.gmra.mrb[24].mxu0 %v17192_v33  ;;  %2780 = vmatmul.mubr.bf16.vlgmr.msra.gmra.mrb[24].mxu1 %v17192_v33  ;;  %v14576_v33 = vld [vmem:[#allocation18 + $0xa4] ss:$16 sps:$4 sm:$0xff]  }
 0x31a   :  { %3225 = vmatpush1.bf16.msra.mxu0 %v14544_v44  ;;  %3266 = vmatpush1.bf16.msra.mxu1 %v14547_v45  ;;  %v14627_v44 = vld [vmem:[#allocation18 + $0x1ac] ss:$16 sps:$4 sm:$0xff]   ;;  %v14622_v45 = vld [vmem:[#allocation18 + $0x1a0] ss:$16 sps:$4 sm:$0xff]  }
 0x31b   :  { %3226 = vmatprep.subr.bf16.mxu0 %v14552_v46  ;;  %3267 = vmatprep.subr.bf16.mxu1 %v14555_v47  ;;  %v14625_v46 = vld [vmem:[#allocation18 + $0x1a8] ss:$16 sps:$4 sm:$0xff]   ;;  %v14630_v47 = vld [vmem:[#allocation18 + $0x1c4] ss:$16 sps:$4 sm:$0xff]  }
 0x31c   :  { %3256 = vmatprep.mubr.bf16.mxu0 %v2817_v48  ;;  %3297 = vmatprep.mubr.bf16.mxu1 %v2817_v48  ;;  %v14633_v48 = vld [vmem:[#allocation18 + $0x1cc] ss:$16 sps:$4 sm:$0xff]  }
 0x31e   :  { %3227 = vmatpush1.bf16.msra.mxu0 %v14550_v49  ;;  %3268 = vmatpush1.bf16.msra.mxu1 %v14553_v50  ;;  %v14628_v49 = vld [vmem:[#allocation18 + $0x1c0] ss:$16 sps:$4 sm:$0xff]   ;;  %v14631_v50 = vld [vmem:[#allocation18 + $0x1c8] ss:$16 sps:$4 sm:$0xff]  }
 0x31f   :  { %3228 = vmatprep.subr.bf16.mxu0 %v14558_v51  ;;  %3269 = vmatprep.subr.bf16.mxu1 %v14561_v52  ;;  %v14636_v51 = vld [vmem:[#allocation18 + $0x1e4] ss:$16 sps:$4 sm:$0xff]   ;;  %v14639_v52 = vld [vmem:[#allocation18 + $0x1ec] ss:$16 sps:$4 sm:$0xff]  }
 0x322   :  { %3229 = vmatpush1.bf16.msra.mxu0 %v14556_v53  ;;  %3270 = vmatpush1.bf16.msra.mxu1 %v14559_v58  ;;  %v14634_v53 = vld [vmem:[#allocation18 + $0x1e0] ss:$16 sps:$4 sm:$0xff]   ;;  %v14637_v58 = vld [vmem:[#allocation18 + $0x1e8] ss:$16 sps:$4 sm:$0xff]  }
 0x323   :  { %3230 = vmatprep.subr.bf16.mxu0 %v14564_v59  ;;  %3271 = vmatprep.subr.bf16.mxu1 %v14567_v60  ;;  %v14642_v59 = vld [vmem:[#allocation15 + $0x4] ss:$16 sps:$4 sm:$0xff]   ;;  %v14645_v60 = vld [vmem:[#allocation15 + $0xc] ss:$16 sps:$4 sm:$0xff]  }
 0x326   :  { %3231 = vmatpush1.bf16.msra.mxu0 %v14562_v61  ;;  %3272 = vmatpush1.bf16.msra.mxu1 %v14565_v62  ;;  %v14640_v61 = vld [vmem:[#allocation15] ss:$16 sps:$4 sm:$0xff]   ;;  %v14643_v62 = vld [vmem:[#allocation15 + $0x8] ss:$16 sps:$4 sm:$0xff]  }
 0x327   :  { %3232 = vmatprep.subr.bf16.mxu0 %v14570_v2  ;;  %3273 = vmatprep.subr.bf16.mxu1 %v14573_v3  ;;  %v14648_v2 = vld [vmem:[#allocation15 + $0x24] ss:$16 sps:$4 sm:$0xff]   ;;  %v14651_v3 = vld [vmem:[#allocation15 + $0x2c] ss:$16 sps:$4 sm:$0xff]  }
 0x32a   :  { %3233 = vmatpush1.bf16.msra.mxu0 %v14568_v4  ;;  %3274 = vmatpush1.bf16.msra.mxu1 %v14571_v5  ;;  %v14646_v4 = vld [vmem:[#allocation15 + $0x20] ss:$16 sps:$4 sm:$0xff]   ;;  %v14649_v5 = vld [vmem:[#allocation15 + $0x28] ss:$16 sps:$4 sm:$0xff]  }
 0x32b   :  { %3234 = vmatprep.subr.bf16.mxu0 %v14576_v33  ;;  %3275 = vmatprep.subr.bf16.mxu1 %v14579_v8  ;;  %v14654_v33 = vld [vmem:[#allocation15 + $0x44] ss:$16 sps:$4 sm:$0xff]   ;;  %v14657_v8 = vld [vmem:[#allocation15 + $0x4c] ss:$16 sps:$4 sm:$0xff]  }
 0x32e   :  { %3235 = vmatpush1.bf16.msra.mxu0 %v14574_v9  ;;  %3276 = vmatpush1.bf16.msra.mxu1 %v14577_v10  ;;  %v14652_v9 = vld [vmem:[#allocation15 + $0x40] ss:$16 sps:$4 sm:$0xff]   ;;  %v14655_v10 = vld [vmem:[#allocation15 + $0x48] ss:$16 sps:$4 sm:$0xff]  }
 0x32f   :  { %3236 = vmatprep.subr.bf16.mxu0 %v14582_v12  ;;  %3277 = vmatprep.subr.bf16.mxu1 %v14585_v13  ;;  %v14663_v12 = vld [vmem:[#allocation15 + $0x6c] ss:$16 sps:$4 sm:$0xff]   ;;  %v14658_v13 = vld [vmem:[#allocation15 + $0x60] ss:$16 sps:$4 sm:$0xff]  }
 0x332   :  { %3237 = vmatpush1.bf16.msra.mxu0 %v14580_v63  ;;  %3278 = vmatpush1.bf16.msra.mxu1 %v14583_v14  ;;  %v14661_v63 = vld [vmem:[#allocation15 + $0x68] ss:$16 sps:$4 sm:$0xff]   ;;  %v14666_v14 = vld [vmem:[#allocation15 + $0x84] ss:$16 sps:$4 sm:$0xff]  }
 0x333   :  { %3238 = vmatprep.subr.bf16.mxu0 %v14588_v11  ;;  %3279 = vmatprep.subr.bf16.mxu1 %v14591_v15  ;;  %v14669_v11 = vld [vmem:[#allocation15 + $0x8c] ss:$16 sps:$4 sm:$0xff]   ;;  %v14664_v15 = vld [vmem:[#allocation15 + $0x80] ss:$16 sps:$4 sm:$0xff]  }
 0x336   :  { %3239 = vmatpush1.bf16.msra.mxu0 %v14586_v16  ;;  %3280 = vmatpush1.bf16.msra.mxu1 %v14589_v17  ;;  %v14667_v16 = vld [vmem:[#allocation15 + $0x88] ss:$16 sps:$4 sm:$0xff]   ;;  %v14672_v17 = vld [vmem:[#allocation15 + $0xa4] ss:$16 sps:$4 sm:$0xff]  }
 0x337   :  { %3240 = vmatprep.subr.bf16.mxu0 %v14594_v18  ;;  %3281 = vmatprep.subr.bf16.mxu1 %v14597_v19  ;;  %v14675_v18 = vld [vmem:[#allocation15 + $0xac] ss:$16 sps:$4 sm:$0xff]   ;;  %v14670_v19 = vld [vmem:[#allocation15 + $0xa0] ss:$16 sps:$4 sm:$0xff]  }
 0x33a   :  { %3241 = vmatpush1.bf16.msra.mxu0 %v14592_v20  ;;  %3282 = vmatpush1.bf16.msra.mxu1 %v14595_v21  ;;  %v14673_v20 = vld [vmem:[#allocation15 + $0xa8] ss:$16 sps:$4 sm:$0xff]   ;;  %v14678_v21 = vld [vmem:[#allocation15 + $0xc4] ss:$16 sps:$4 sm:$0xff]  }
 0x33b   :  { %3242 = vmatprep.subr.bf16.mxu0 %v14600_v22  ;;  %3283 = vmatprep.subr.bf16.mxu1 %v14603_v23  ;;  %v14681_v22 = vld [vmem:[#allocation15 + $0xcc] ss:$16 sps:$4 sm:$0xff]   ;;  %v14676_v23 = vld [vmem:[#allocation15 + $0xc0] ss:$16 sps:$4 sm:$0xff]  }
 0x33e   :  { %3243 = vmatpush1.bf16.msra.mxu0 %v14598_v24  ;;  %3284 = vmatpush1.bf16.msra.mxu1 %v14601_v25  ;;  %v14679_v24 = vld [vmem:[#allocation15 + $0xc8] ss:$16 sps:$4 sm:$0xff]   ;;  %v14684_v25 = vld [vmem:[#allocation15 + $0xe4] ss:$16 sps:$4 sm:$0xff]  }
 0x33f   :  { %3244 = vmatprep.subr.bf16.mxu0 %v14606_v26  ;;  %3285 = vmatprep.subr.bf16.mxu1 %v14609_v27  ;;  %v14687_v26 = vld [vmem:[#allocation15 + $0xec] ss:$16 sps:$4 sm:$0xff]   ;;  %v14682_v27 = vld [vmem:[#allocation15 + $0xe0] ss:$16 sps:$4 sm:$0xff]  }
 0x342   :  { %3245 = vmatpush1.bf16.msra.mxu0 %v14604_v28  ;;  %3286 = vmatpush1.bf16.msra.mxu1 %v14607_v29  ;;  %v14685_v28 = vld [vmem:[#allocation15 + $0xe8] ss:$16 sps:$4 sm:$0xff]   ;;  %v14690_v29 = vld [vmem:[#allocation16 + $0x4] ss:$16 sps:$4 sm:$0xff]  }
 0x343   :  { %3246 = vmatprep.subr.bf16.mxu0 %v14612_v30  ;;  %3287 = vmatprep.subr.bf16.mxu1 %v14615_v32  ;;  %v14693_v30 = vld [vmem:[#allocation16 + $0xc] ss:$16 sps:$4 sm:$0xff]  }
 0x346   :  { %3247 = vmatpush1.bf16.msra.mxu0 %v14610_v36  ;;  %3288 = vmatpush1.bf16.msra.mxu1 %v14613_v38 }
 0x347   :  { %3248 = vmatprep.subr.bf16.mxu0 %v14618_v39  ;;  %3289 = vmatprep.subr.bf16.mxu1 %v14621_v40 }
 0x34a   :  { %3249 = vmatpush1.bf16.msra.mxu0 %v14616_v41  ;;  %3290 = vmatpush1.bf16.msra.mxu1 %v14619_v42 }
 0x34b   :  { %3250 = vmatprep.subr.bf16.mxu0 %v14624_v43  ;;  %3291 = vmatprep.subr.bf16.mxu1 %v14627_v44 }
 0x34e   :  { %3251 = vmatpush1.bf16.msra.mxu0 %v14622_v45  ;;  %3292 = vmatpush1.bf16.msra.mxu1 %v14625_v46 }
 0x34f   :  { %3252 = vmatprep.subr.bf16.mxu0 %v14630_v47  ;;  %3293 = vmatprep.subr.bf16.mxu1 %v14633_v48 }
 0x352   :  { %3253 = vmatpush1.bf16.msra.mxu0 %v14628_v49  ;;  %3294 = vmatpush1.bf16.msra.mxu1 %v14631_v50 }
 0x353   :  { %3254 = vmatprep.subr.bf16.mxu0 %v14636_v51  ;;  %3295 = vmatprep.subr.bf16.mxu1 %v14639_v52  ;;  %v1845_v52 = vld [vmem:[#allocation2 + $0x2] ss:$8 sm:$0xf] }
 0x356   :  { %3255 = vmatpush1.bf16.msra.mxu0 %v14634_v53  ;;  %3296 = vmatpush1.bf16.msra.mxu1 %v14637_v58  ;;  %v1847_v53 = vld [vmem:[#allocation2 + $0x22] ss:$8 sm:$0xf] }
 0x357   :  { %3563 = vmatprep.subr.bf16.mxu0 %v14642_v59  ;;  %3604 = vmatprep.subr.bf16.mxu1 %v14645_v60 }
 0x359   :  { %3257 = vmatmul.mubr.bf16.vlgmr.msra.gmra.mrb[28].mxu0 %v17217_v7  ;;  %3298 = vmatmul.mubr.bf16.vlgmr.msra.gmra.mrb[28].mxu1 %v17217_v7  ;;  %v14660_v7 = vld [vmem:[#allocation15 + $0x64] ss:$16 sps:$4 sm:$0xff]  }
 0x35a   :  { %3564 = vmatpush1.bf16.msra.mxu0 %v14640_v61  ;;  %3605 = vmatpush1.bf16.msra.mxu1 %v14643_v62 }
 0x35b   :  { %3565 = vmatprep.subr.bf16.mxu0 %v14648_v2  ;;  %3606 = vmatprep.subr.bf16.mxu1 %v14651_v3 }
 0x35c   :  { %3595 = vmatprep.mubr.bf16.mxu0 %v16780_v0  ;;  %3636 = vmatprep.mubr.bf16.mxu1 %v16780_v0 }
 0x35e   :  { %3566 = vmatpush1.bf16.msra.mxu0 %v14646_v4  ;;  %3607 = vmatpush1.bf16.msra.mxu1 %v14649_v5 }
 0x35f   :  { %3567 = vmatprep.subr.bf16.mxu0 %v14654_v33  ;;  %3608 = vmatprep.subr.bf16.mxu1 %v14657_v8 }
 0x362   :  { %3568 = vmatpush1.bf16.msra.mxu0 %v14652_v9  ;;  %3609 = vmatpush1.bf16.msra.mxu1 %v14655_v10 }
 0x363   :  { %3569 = vmatprep.subr.bf16.mxu0 %v14660_v7  ;;  %3610 = vmatprep.subr.bf16.mxu1 %v14663_v12 }
 0x366   :  { %3570 = vmatpush1.bf16.msra.mxu0 %v14658_v13  ;;  %3611 = vmatpush1.bf16.msra.mxu1 %v14661_v63 }
 0x367   :  { %3571 = vmatprep.subr.bf16.mxu0 %v14666_v14  ;;  %3612 = vmatprep.subr.bf16.mxu1 %v14669_v11 }
 0x36a   :  { %3572 = vmatpush1.bf16.msra.mxu0 %v14664_v15  ;;  %3613 = vmatpush1.bf16.msra.mxu1 %v14667_v16 }
 0x36b   :  { %3573 = vmatprep.subr.bf16.mxu0 %v14672_v17  ;;  %3614 = vmatprep.subr.bf16.mxu1 %v14675_v18  ;;  %v1843_v18 = vld [vmem:[#allocation5] sm:$0x3] }
 0x36e   :  { %3574 = vmatpush1.bf16.msra.mxu0 %v14670_v19  ;;  %3615 = vmatpush1.bf16.msra.mxu1 %v14673_v20  ;;  %v2222_v19 = vrot.slane %v1843_v18, %v17069_v34 }
 0x36f   :  { %3575 = vmatprep.subr.bf16.mxu0 %v14678_v21  ;;  %3616 = vmatprep.subr.bf16.mxu1 %v14681_v22 }
 0x372   :  { %3576 = vmatpush1.bf16.msra.mxu0 %v14676_v23  ;;  %3617 = vmatpush1.bf16.msra.mxu1 %v14679_v24  ;;  %v2223_v23 = vcombine.high %v2222_v19, %v2222_v19 }
 0x373   :  { %3577 = vmatprep.subr.bf16.mxu0 %v14684_v25  ;;  %3618 = vmatprep.subr.bf16.mxu1 %v14687_v26 }
 0x376   :  { %3578 = vmatpush1.bf16.msra.mxu0 %v14682_v27  ;;  %3619 = vmatpush1.bf16.msra.mxu1 %v14685_v28  ;;  %v2230_v28 = vrot.slane %v2222_v19, %v17069_v34 }
 0x377   :  { %4228 = vmatprep.subr.bf16.mxu0 %v14690_v29  ;;  %4269 = vmatprep.subr.bf16.mxu1 %v14693_v30 }
 0x3ac   :  { %v2075_v32 = vpop.f32.mrb[20].mxu0  ;;  %v2116_v36 = vpop.f32.mrb[20].mxu1 }
 0x3ad   :  { %v2077_v38 = vpop.f32.mrb[21].mxu0  ;;  %v2118_v39 = vpop.f32.mrb[21].mxu1 }
 0x3ae   :  { %v2127_v40 = vcombine.low %v2075_v32, %v2077_v38  ;;  %v2128_v41 = vcombine.low %v2116_v36, %v2118_v39  ;;  %v2079_v42 = vpop.f32.mrb[22].mxu0  ;;  %v2120_v43 = vpop.f32.mrb[22].mxu1  ;;  %v2237_v32 = vrot.slane %v2223_v23, %v17069_v34  ;;  %v14699_v23 = vld [vmem:[#allocation16 + $0x2c] ss:$16 sps:$4 sm:$0xff]  }
 0x3af   :  { %v2080_v44 = vpop.f32.mrb[23].mxu0  ;;  %v2121_v45 = vpop.f32.mrb[23].mxu1 }
 0x3b0   :  { %v2135_v46 = vrot.slane %v2127_v40, %v17069_v34  ;;  %v2142_v47 = vrot.slane %v2128_v41, %v17069_v34  ;;  %v17250_v44 = vpop.permute.xlu1 %2255 }
 0x3b1   :  { %vm2257_vm11 = vcmp.eq.s32.totalorder %v17250_v44, 1  ;;  %v15338_v44 = vld [vmem:[#allocation18 + $0x184] ss:$16 sps:$4 sm:$0xff]  }
 0x3b2   :  { %v2143_v48 = vcombine.low %v2135_v46, %v2142_v47  ;;  %v2144_v49 = vcombine.high %v2135_v46, %v2142_v47 }
 0x3b4   :  { %v2151_v50 = vrot.slane %v2143_v48, %v17069_v34  ;;  %v2158_v51 = vrot.slane %v2144_v49, %v17069_v34 }
 0x3b6   :  { %v2161_v58 = vadd.f32 %v2151_v50, %v1845_v52  ;;  %v2162_v59 = vadd.f32 %v2158_v51, %v1847_v53 }
 0x3b8   :  { %v13028_v60 = vmul.f32 -1.442695, %v2161_v58  ;;  %v13029_v61 = vmul.f32 -1.442695, %v2162_v59  ;;  %v2177_v62 = vrot.slane %v2161_v58, 1  ;;  %v2178_v2 = vrot.slane %v2162_v59, 1 }
 0x3b9   :  { %v2199_v5 = vrot.slane %v2161_v58, 3  ;;  %v2200_v33 = vrot.slane %v2162_v59, 3  ;;  %v2193_v8 = vrot.slane %v2161_v58, 2  ;;  %v2194_v9 = vrot.slane %v2162_v59, 2 }
 0x3ba   :  { %16116 = vpow2.f32 %v13028_v60  ;;  %v13030_v3 = vmul.f32 -1.442695, %v2177_v62  ;;  %v13031_v4 = vmul.f32 -1.442695, %v2178_v2  ;;  %v2364_v60 = vld [vmem:[%s17991_s6] sm:$0xf] }
 0x3bb   :  { %16118 = vpow2.f32 %v13029_v61  ;;  %v13032_v10 = vmul.f32 -1.442695, %v2199_v5  ;;  %v13033_v7 = vmul.f32 -1.442695, %v2200_v33  ;;  %v2369_v62 = vrot.slane %v2364_v60, %v17050_v54 }
 0x3bc   :  { %16120 = vpow2.f32 %v13030_v3  ;;  %v2373_v3 = vrot.slane %v2364_v60, %v17054_v56 }
 0x3bd   :  { %16122 = vpow2.f32 %v13031_v4 }
 0x3be   :  { %16124 = vtanh.f32 %v2193_v8 }
 0x3bf   :  { %16126 = vtanh.f32 %v2194_v9 }
 0x3c0   :  { %16128 = vpow2.f32 %v13032_v10 }
 0x3c1   :  { %16130 = vpow2.f32 %v13033_v7 }
 0x3c4   :  { %v16117_v12 = vpop.eup %16116 }
 0x3c5   :  { %v16119_v13 = vpop.eup %16118  ;;  %v2169_v63 = vadd.f32 1.0, %v16117_v12 }
 0x3c6   :  { %v16121_v14 = vpop.eup %16120  ;;  %v2170_v11 = vadd.f32 1.0, %v16119_v13 }
 0x3c7   :  { %v16123_v15 = vpop.eup %16122  ;;  %16132 = vrcp.f32 %v2169_v63  ;;  %v2187_v16 = vadd.f32 1.0, %v16121_v14 }
 0x3c8   :  { %16134 = vrcp.f32 %v2170_v11  ;;  %v2188_v17 = vadd.f32 1.0, %v16123_v15  ;;  %v16125_v20 = vpop.eup %16124 }
 0x3c9   :  { %16136 = vrcp.f32 %v2187_v16  ;;  %v16127_v21 = vpop.eup %16126  ;;  %v2381_v16 = vrot.slane %v2364_v60, %v17056_v57 }
 0x3ca   :  { %16138 = vrcp.f32 %v2188_v17  ;;  %v16129_v22 = vpop.eup %16128 }
 0x3cb   :  { %v16131_v24 = vpop.eup %16130  ;;  %v2209_v27 = vadd.f32 1.0, %v16129_v22  ;;  %v14696_v22 = vld [vmem:[#allocation16 + $0x24] ss:$16 sps:$4 sm:$0xff]  }
 0x3cc   :  { %v2210_v30 = vadd.f32 1.0, %v16131_v24 }
 0x3cd   :  { %16140 = vrcp.f32 %v2209_v27 }
 0x3ce   :  { %16142 = vrcp.f32 %v2210_v30 }
 0x3d1   :  { %v16133_v25 = vpop.eup %16132 }
 0x3d2   :  { %v16135_v26 = vpop.eup %16134  ;;  %v2242_v39 = vmul.f32 %v16133_v25, %v16125_v20  ;;  %v2377_v20 = vrot.slane %v2364_v60, %v17052_v55  ;;  %v14694_v25 = vld [vmem:[#allocation16 + $0x20] ss:$16 sps:$4 sm:$0xff]  }
 0x3d3   :  { %v16137_v29 = vpop.eup %16136  ;;  %v2243_v41 = vmul.f32 %v16135_v26, %v16127_v21  ;;  %v14697_v26 = vld [vmem:[#allocation16 + $0x28] ss:$16 sps:$4 sm:$0xff]   ;;  %v14718_v60 = vld [vmem:[#allocation16 + $0xa0] ss:$16 sps:$4 sm:$0xff]  }
 0x3d4   :  { %v16139_v36 = vpop.eup %16138  ;;  %v2240_v38 = vmul.f32 %v16137_v29, %v2230_v28  ;;  %v14702_v28 = vld [vmem:[#allocation16 + $0x44] ss:$16 sps:$4 sm:$0xff]   ;;  %v14705_v29 = vld [vmem:[#allocation16 + $0x4c] ss:$16 sps:$4 sm:$0xff]  }
 0x3d5   :  { %v2241_v40 = vmul.f32 %v16139_v36, %v2237_v32 }
 0x3d6   :  { %v2244_v42 = vadd.f32 %v2242_v39, %v2240_v38  ;;  %v14700_v38 = vld [vmem:[#allocation16 + $0x40] ss:$16 sps:$4 sm:$0xff]   ;;  %v14703_v39 = vld [vmem:[#allocation16 + $0x48] ss:$16 sps:$4 sm:$0xff]  }
 0x3d7   :  { %v2245_v43 = vadd.f32 %v2243_v41, %v2241_v40  ;;  %v16141_v49 = vpop.eup %16140  ;;  %v14708_v41 = vld [vmem:[#allocation16 + $0x64] ss:$16 sps:$4 sm:$0xff]  }
 0x3d8   :  { %16144 = vtanh.f32 %v2244_v42  ;;  %v16143_v50 = vpop.eup %16142 }
 0x3d9   :  { %16146 = vtanh.f32 %v2245_v43  ;;  %v2280_v45 = vcombine.low %v2244_v42, %v2245_v43  ;;  %v14711_v42 = vld [vmem:[#allocation16 + $0x6c] ss:$16 sps:$4 sm:$0xff]   ;;  %v14706_v43 = vld [vmem:[#allocation16 + $0x60] ss:$16 sps:$4 sm:$0xff]  }
 0x3db   :  { %v2287_v46 = vrot.slane %v2280_v45, %v17069_v34  ;;  %v14709_v45 = vld [vmem:[#allocation16 + $0x68] ss:$16 sps:$4 sm:$0xff]  }
 0x3dd   :  { %v2294_v47 = vrot.slane %v2287_v46, %v17069_v34  ;;  %v14714_v46 = vld [vmem:[#allocation16 + $0x84] ss:$16 sps:$4 sm:$0xff]  }
 0x3df   :  { %v2296_v48 = vsel %vm2257_vm11, %v2294_v47, %v1843_v18  ;;  %v14688_v18 = vld [vmem:[#allocation16] ss:$16 sps:$4 sm:$0xff]   ;;  %v14717_v47 = vld [vmem:[#allocation16 + $0x8c] ss:$16 sps:$4 sm:$0xff]  }
 0x3e0   :  { %2297 = vst [vmem:[#allocation5] sm:$0x3] %v2296_v48  ;;  %v14712_v48 = vld [vmem:[#allocation16 + $0x80] ss:$16 sps:$4 sm:$0xff]  }
 0x3e2   :  { %v16145_v51 = vpop.eup %16144 }
 0x3e3   :  { %v16147_v52 = vpop.eup %16146  ;;  %v2248_v53 = vmul.f32 %v16145_v51, %v16141_v49  ;;  %v14715_v49 = vld [vmem:[#allocation16 + $0x88] ss:$16 sps:$4 sm:$0xff]   ;;  %v14723_v51 = vld [vmem:[#allocation16 + $0xac] ss:$16 sps:$4 sm:$0xff]  }
 0x3e4   :  { %v2249_v58 = vmul.f32 %v16147_v52, %v16143_v50  ;;  %v14720_v50 = vld [vmem:[#allocation16 + $0xa4] ss:$16 sps:$4 sm:$0xff]  }
 0x3e6   :  { %v2260_v59 = vcombine.low %v2248_v53, %v2249_v58 }
 0x3e8   :  { %v2267_v61 = vrot.slane %v2260_v59, %v17069_v34  ;;  %v2298_v59 = vld [vmem:[#allocation7] sm:$0x3] }
 0x3ea   :  { %v2274_v2 = vrot.slane %v2267_v61, %v17069_v34  ;;  %v14721_v61 = vld [vmem:[#allocation16 + $0xa8] ss:$16 sps:$4 sm:$0xff]  }
 0x3ec   :  { %v2276_v4 = vsel %vm2257_vm11, %v2274_v2, %v17187_v31  ;;  %v2740_v5 = vpop.f32.mrb[24].mxu0  ;;  %v2781_v33 = vpop.f32.mrb[24].mxu1  ;;  %v14691_v31 = vld [vmem:[#allocation16 + $0x8] ss:$16 sps:$4 sm:$0xff]  }
 0x3ed   :  { %2277 = vst [vmem:[#allocation4] sm:$0x3] %v2276_v4  ;;  %v2741_v8 = vadd.f32 %v2740_v5, %v2369_v62  ;;  %v2742_v9 = vpop.f32.mrb[25].mxu0  ;;  %v2783_v10 = vpop.f32.mrb[25].mxu1  ;;  %v2782_v27 = vadd.f32 %v2781_v33, %v2377_v20  ;;  %v14726_v4 = vld [vmem:[#allocation16 + $0xc4] ss:$16 sps:$4 sm:$0xff]  }
 0x3ee   :  { %v2743_v7 = vadd.f32 %v2742_v9, %v2373_v3  ;;  %v2744_v12 = vpop.f32.mrb[26].mxu0  ;;  %v2785_v13 = vpop.f32.mrb[26].mxu1  ;;  %v2784_v17 = vadd.f32 %v2783_v10, %v2381_v16  ;;  %v14729_v5 = vld [vmem:[#allocation16 + $0xcc] ss:$16 sps:$4 sm:$0xff]   ;;  %v14724_v9 = vld [vmem:[#allocation16 + $0xc0] ss:$16 sps:$4 sm:$0xff]  }
 0x3ef   :  { %v13099_v63 = vmul.f32 -1.442695, %v2741_v8  ;;  %v2745_v14 = vpop.f32.mrb[27].mxu0  ;;  %v2786_v11 = vpop.f32.mrb[27].mxu1  ;;  %v14727_v10 = vld [vmem:[#allocation16 + $0xc8] ss:$16 sps:$4 sm:$0xff]  }
 0x3f0   :  { %v13100_v15 = vmul.f32 -1.442695, %v2743_v7  ;;  %v13101_v24 = vmul.f32 -1.442695, %v2784_v17  ;;  %v14732_v7 = vld [vmem:[#allocation16 + $0xe4] ss:$16 sps:$4 sm:$0xff]  }
 0x3f1   :  { %16148 = vpow2.f32 %v13099_v63  ;;  %v14735_v12 = vld [vmem:[#allocation16 + $0xec] ss:$16 sps:$4 sm:$0xff]   ;;  %v14730_v63 = vld [vmem:[#allocation16 + $0xe0] ss:$16 sps:$4 sm:$0xff]   ;;  %v14733_v14 = vld [vmem:[#allocation16 + $0xe8] ss:$16 sps:$4 sm:$0xff]  }
 0x3f2   :  { %16150 = vpow2.f32 %v13100_v15  ;;  %v14738_v11 = vld [vmem:[#allocation16 + $0x104] ss:$16 sps:$4 sm:$0xff]   ;;  %v14741_v15 = vld [vmem:[#allocation16 + $0x10c] ss:$16 sps:$4 sm:$0xff]   ;;  %v14736_v16 = vld [vmem:[#allocation16 + $0x100] ss:$16 sps:$4 sm:$0xff]  }
 0x3f3   :  { %16152 = vpow2.f32 %v13101_v24  ;;  %v14739_v17 = vld [vmem:[#allocation16 + $0x108] ss:$16 sps:$4 sm:$0xff]  }
 0x3f4   :  { %v3362_v19 = vld [vmem:[#allocation4] sm:$0x3]  ;;  %16154 = vtanh.f32 %v2782_v27 }
 0x3f5   :  { %v17269_v21 = vpack.c.bf16 %v3362_v19, %v3362_v19 }
 0x3f7   :  { %3596 = vmatmul.mubr.bf16.vlgmr.msra.gmra.mrb[32].mxu0 %v17269_v21  ;;  %3637 = vmatmul.mubr.bf16.vlgmr.msra.gmra.mrb[32].mxu1 %v17269_v21 }
 0x3f8   :  { %4229 = vmatpush1.bf16.msra.mxu0 %v14688_v18  ;;  %4270 = vmatpush1.bf16.msra.mxu1 %v14691_v31  ;;  %v14744_v18 = vld [vmem:[#allocation16 + $0x124] ss:$16 sps:$4 sm:$0xff]   ;;  %v14747_v31 = vld [vmem:[#allocation16 + $0x12c] ss:$16 sps:$4 sm:$0xff]  }
 0x3f9   :  { %4230 = vmatprep.subr.bf16.mxu0 %v14696_v22  ;;  %4271 = vmatprep.subr.bf16.mxu1 %v14699_v23  ;;  %v14742_v22 = vld [vmem:[#allocation16 + $0x120] ss:$16 sps:$4 sm:$0xff]   ;;  %v14745_v23 = vld [vmem:[#allocation16 + $0x128] ss:$16 sps:$4 sm:$0xff]  }
 0x3fb   :  { %v16149_v30 = vpop.eup %16148 }
 0x3fc   :  { %v16151_v32 = vpop.eup %16150  ;;  %v2791_v36 = vadd.f32 1.0, %v16149_v30  ;;  %4231 = vmatpush1.bf16.msra.mxu0 %v14694_v25  ;;  %4272 = vmatpush1.bf16.msra.mxu1 %v14697_v26  ;;  %v14750_v25 = vld [vmem:[#allocation16 + $0x144] ss:$16 sps:$4 sm:$0xff]   ;;  %v14753_v26 = vld [vmem:[#allocation16 + $0x14c] ss:$16 sps:$4 sm:$0xff]  }
 0x3fd   :  { %v2797_v40 = vadd.f32 1.0, %v16151_v32  ;;  %4232 = vmatprep.subr.bf16.mxu0 %v14702_v28  ;;  %4273 = vmatprep.subr.bf16.mxu1 %v14705_v29  ;;  %v16153_v52 = vpop.eup %16152  ;;  %v14748_v28 = vld [vmem:[#allocation16 + $0x140] ss:$16 sps:$4 sm:$0xff]   ;;  %v14751_v29 = vld [vmem:[#allocation16 + $0x148] ss:$16 sps:$4 sm:$0xff]  }
 0x3fe   :  { %16156 = vrcp.f32 %v2791_v36  ;;  %v16155_v53 = vpop.eup %16154  ;;  %v2804_v3 = vadd.f32 1.0, %v16153_v52  ;;  %v14756_v30 = vld [vmem:[#allocation16 + $0x164] ss:$16 sps:$4 sm:$0xff]   ;;  %v14759_v32 = vld [vmem:[#allocation16 + $0x16c] ss:$16 sps:$4 sm:$0xff]  }
 0x3ff   :  { %16158 = vrcp.f32 %v2797_v40  ;;  %v14754_v36 = vld [vmem:[#allocation16 + $0x160] ss:$16 sps:$4 sm:$0xff]   ;;  %v14765_v40 = vld [vmem:[#allocation16 + $0x18c] ss:$16 sps:$4 sm:$0xff]  }
 0x400   :  { %4233 = vmatpush1.bf16.msra.mxu0 %v14700_v38  ;;  %4274 = vmatpush1.bf16.msra.mxu1 %v14703_v39  ;;  %16160 = vrcp.f32 %v2804_v3  ;;  %v14757_v38 = vld [vmem:[#allocation16 + $0x168] ss:$16 sps:$4 sm:$0xff]   ;;  %v14762_v39 = vld [vmem:[#allocation16 + $0x184] ss:$16 sps:$4 sm:$0xff]   ;;  %v14777_v52 = vld [vmem:[#allocation16 + $0x1cc] ss:$16 sps:$4 sm:$0xff]  }
 0x401   :  { %4234 = vmatprep.subr.bf16.mxu0 %v14708_v41  ;;  %4275 = vmatprep.subr.bf16.mxu1 %v14711_v42 }
 0x404   :  { %4235 = vmatpush1.bf16.msra.mxu0 %v14706_v43  ;;  %4276 = vmatpush1.bf16.msra.mxu1 %v14709_v45  ;;  %v14763_v43 = vld [vmem:[#allocation16 + $0x188] ss:$16 sps:$4 sm:$0xff]   ;;  %v14768_v45 = vld [vmem:[#allocation16 + $0x1a4] ss:$16 sps:$4 sm:$0xff]  }
 0x405   :  { %4236 = vmatprep.subr.bf16.mxu0 %v14714_v46  ;;  %4277 = vmatprep.subr.bf16.mxu1 %v14717_v47  ;;  %v14771_v46 = vld [vmem:[#allocation16 + $0x1ac] ss:$16 sps:$4 sm:$0xff]  }
 0x406   :  { %v2882_v47 = vld [vmem:[%s17993_s8] sm:$0xf] }
 0x408   :  { %v16157_v58 = vpop.eup %16156  ;;  %4237 = vmatpush1.bf16.msra.mxu0 %v14712_v48  ;;  %4278 = vmatpush1.bf16.msra.mxu1 %v14715_v49  ;;  %v14766_v48 = vld [vmem:[#allocation16 + $0x1a0] ss:$16 sps:$4 sm:$0xff]   ;;  %v14769_v49 = vld [vmem:[#allocation16 + $0x1a8] ss:$16 sps:$4 sm:$0xff]  }
 0x409   :  { %v16159_v62 = vpop.eup %16158  ;;  %v2808_v2 = vmul.f32 %v16157_v58, %v16155_v53  ;;  %4238 = vmatprep.subr.bf16.mxu0 %v14720_v50  ;;  %4279 = vmatprep.subr.bf16.mxu1 %v14723_v51  ;;  %v2887_v50 = vrot.slane %v2882_v47, %v17050_v54  ;;  %v14774_v51 = vld [vmem:[#allocation16 + $0x1c4] ss:$16 sps:$4 sm:$0xff]   ;;  %v2891_v53 = vrot.slane %v2882_v47, %v17054_v56 }
 0x40a   :  { %v2807_v33 = vmul.f32 %v16159_v62, %v2298_v59  ;;  %v16161_v19 = vpop.eup %16160 }
 0x40c   :  { %v2809_v8 = vadd.f32 %v2808_v2, %v2807_v33  ;;  %4239 = vmatpush1.bf16.msra.mxu0 %v14718_v60  ;;  %4280 = vmatpush1.bf16.msra.mxu1 %v14721_v61  ;;  %v14772_v60 = vld [vmem:[#allocation16 + $0x1c0] ss:$16 sps:$4 sm:$0xff]   ;;  %v14775_v61 = vld [vmem:[#allocation16 + $0x1c8] ss:$16 sps:$4 sm:$0xff]  }
 0x40d   :  { %4240 = vmatprep.subr.bf16.mxu0 %v14726_v4  ;;  %4281 = vmatprep.subr.bf16.mxu1 %v14729_v5  ;;  %v14780_v4 = vld [vmem:[#allocation16 + $0x1e4] ss:$16 sps:$4 sm:$0xff]   ;;  %v14783_v5 = vld [vmem:[#allocation16 + $0x1ec] ss:$16 sps:$4 sm:$0xff]  }
 0x40e   :  { %16162 = vtanh.f32 %v2809_v8  ;;  %v2814_v13 = vsel %vm1281_vm6, %v2809_v8, %v2298_v59 }
 0x40f   :  { %2815 = vst [vmem:[#allocation7] sm:$0x3] %v2814_v13 }
 0x410   :  { %4241 = vmatpush1.bf16.msra.mxu0 %v14724_v9  ;;  %4282 = vmatpush1.bf16.msra.mxu1 %v14727_v10 }
 0x411   :  { %4242 = vmatprep.subr.bf16.mxu0 %v14732_v7  ;;  %4283 = vmatprep.subr.bf16.mxu1 %v14735_v12 }
 0x414   :  { %4243 = vmatpush1.bf16.msra.mxu0 %v14730_v63  ;;  %4284 = vmatpush1.bf16.msra.mxu1 %v14733_v14  ;;  %v2899_v63 = vrot.slane %v2882_v47, %v17056_v57  ;;  %v14778_v14 = vld [vmem:[#allocation16 + $0x1e0] ss:$16 sps:$4 sm:$0xff]  }
 0x415   :  { %4244 = vmatprep.subr.bf16.mxu0 %v14738_v11  ;;  %4285 = vmatprep.subr.bf16.mxu1 %v14741_v15  ;;  %v14781_v11 = vld [vmem:[#allocation16 + $0x1e8] ss:$16 sps:$4 sm:$0xff]   ;;  %v14786_v15 = vld [vmem:[#allocation18 + $0x4] ss:$16 sps:$4 sm:$0xff]  }
 0x418   :  { %v16163_v20 = vpop.eup %16162  ;;  %4245 = vmatpush1.bf16.msra.mxu0 %v14736_v16  ;;  %4286 = vmatpush1.bf16.msra.mxu1 %v14739_v17  ;;  %v14789_v16 = vld [vmem:[#allocation18 + $0xc] ss:$16 sps:$4 sm:$0xff]  }
 0x419   :  { %v2811_v24 = vmul.f32 %v16163_v20, %v16161_v19  ;;  %4246 = vmatprep.subr.bf16.mxu0 %v14744_v18  ;;  %4287 = vmatprep.subr.bf16.mxu1 %v14747_v31  ;;  %v14784_v18 = vld [vmem:[#allocation18] ss:$16 sps:$4 sm:$0xff]   ;;  %v14787_v31 = vld [vmem:[#allocation18 + $0x8] ss:$16 sps:$4 sm:$0xff]   ;;  %v2895_v19 = vrot.slane %v2882_v47, %v17052_v55  ;;  %v14792_v20 = vld [vmem:[#allocation18 + $0x24] ss:$16 sps:$4 sm:$0xff]  }
 0x41a   :  { %v14811_v47 = vld [vmem:[#allocation18 + $0x88] ss:$16 sps:$4 sm:$0xff]  }
 0x41b   :  { %v2812_v27 = vsel %vm1281_vm6, %v2811_v24, %v17211_v6  ;;  %v14760_v6 = vld [vmem:[#allocation16 + $0x180] ss:$16 sps:$4 sm:$0xff]  }
 0x41c   :  { %2813 = vst [vmem:[#allocation6] sm:$0x3] %v2812_v27  ;;  %4247 = vmatpush1.bf16.msra.mxu0 %v14742_v22  ;;  %4288 = vmatpush1.bf16.msra.mxu1 %v14745_v23  ;;  %v14795_v22 = vld [vmem:[#allocation18 + $0x2c] ss:$16 sps:$4 sm:$0xff]   ;;  %v14790_v24 = vld [vmem:[#allocation18 + $0x20] ss:$16 sps:$4 sm:$0xff]  }
 0x41d   :  { %4248 = vmatprep.subr.bf16.mxu0 %v14750_v25  ;;  %4289 = vmatprep.subr.bf16.mxu1 %v14753_v26  ;;  %v14793_v25 = vld [vmem:[#allocation18 + $0x28] ss:$16 sps:$4 sm:$0xff]   ;;  %v14798_v27 = vld [vmem:[#allocation18 + $0x44] ss:$16 sps:$4 sm:$0xff]  }
 0x420   :  { %4249 = vmatpush1.bf16.msra.mxu0 %v14748_v28  ;;  %4290 = vmatpush1.bf16.msra.mxu1 %v14751_v29  ;;  %v14801_v28 = vld [vmem:[#allocation18 + $0x4c] ss:$16 sps:$4 sm:$0xff]  }
 0x421   :  { %4250 = vmatprep.subr.bf16.mxu0 %v14756_v30  ;;  %4291 = vmatprep.subr.bf16.mxu1 %v14759_v32 }
 0x423   :  { %v3363_v41 = vld [vmem:[#allocation6] sm:$0x3] }
 0x424   :  { %4251 = vmatpush1.bf16.msra.mxu0 %v14754_v36  ;;  %4292 = vmatpush1.bf16.msra.mxu1 %v14757_v38  ;;  %v17278_v42 = vpack.c.bf16 %v3363_v41, %v3363_v41  ;;  %v14796_v36 = vld [vmem:[#allocation18 + $0x40] ss:$16 sps:$4 sm:$0xff]   ;;  %v14799_v38 = vld [vmem:[#allocation18 + $0x48] ss:$16 sps:$4 sm:$0xff]  }
 0x425   :  { %4252 = vmatprep.subr.bf16.mxu0 %v14762_v39  ;;  %4293 = vmatprep.subr.bf16.mxu1 %v14765_v40  ;;  %v14804_v39 = vld [vmem:[#allocation18 + $0x64] ss:$16 sps:$4 sm:$0xff]   ;;  %v14807_v40 = vld [vmem:[#allocation18 + $0x6c] ss:$16 sps:$4 sm:$0xff]   ;;  %v14802_v41 = vld [vmem:[#allocation18 + $0x60] ss:$16 sps:$4 sm:$0xff]  }
 0x426   :  { %4260 = vmatprep.mubr.bf16.mxu0 %v17278_v42  ;;  %4301 = vmatprep.mubr.bf16.mxu1 %v17278_v42 }
 0x428   :  { %4253 = vmatpush1.bf16.msra.mxu0 %v14760_v6  ;;  %4294 = vmatpush1.bf16.msra.mxu1 %v14763_v43  ;;  %v14805_v6 = vld [vmem:[#allocation18 + $0x68] ss:$16 sps:$4 sm:$0xff]   ;;  %v14810_v43 = vld [vmem:[#allocation18 + $0x84] ss:$16 sps:$4 sm:$0xff]  }
 0x429   :  { %4254 = vmatprep.subr.bf16.mxu0 %v14768_v45  ;;  %4295 = vmatprep.subr.bf16.mxu1 %v14771_v46  ;;  %v14813_v45 = vld [vmem:[#allocation18 + $0x8c] ss:$16 sps:$4 sm:$0xff]   ;;  %v14808_v46 = vld [vmem:[#allocation18 + $0x80] ss:$16 sps:$4 sm:$0xff]  }
 0x42c   :  { %4255 = vmatpush1.bf16.msra.mxu0 %v14766_v48  ;;  %4296 = vmatpush1.bf16.msra.mxu1 %v14769_v49  ;;  %v3258_v58 = vpop.f32.mrb[28].mxu0  ;;  %v3299_v59 = vpop.f32.mrb[28].mxu1  ;;  %v14816_v48 = vld [vmem:[#allocation18 + $0xa4] ss:$16 sps:$4 sm:$0xff]   ;;  %v14819_v49 = vld [vmem:[#allocation18 + $0xac] ss:$16 sps:$4 sm:$0xff]  }
 0x42d   :  { %v3259_v62 = vadd.f32 %v3258_v58, %v2887_v50  ;;  %v3260_v2 = vpop.f32.mrb[29].mxu0  ;;  %v3301_v3 = vpop.f32.mrb[29].mxu1  ;;  %4256 = vmatprep.subr.bf16.mxu0 %v14774_v51  ;;  %4297 = vmatprep.subr.bf16.mxu1 %v14777_v52  ;;  %v3300_v26 = vadd.f32 %v3299_v59, %v2895_v19  ;;  %v2816_v52 = vld [vmem:[#allocation9] sm:$0x3]  ;;  %v14814_v58 = vld [vmem:[#allocation18 + $0xa0] ss:$16 sps:$4 sm:$0xff]  }
 0x42e   :  { %v3261_v33 = vadd.f32 %v3260_v2, %v2891_v53  ;;  %v3262_v8 = vpop.f32.mrb[30].mxu0  ;;  %v3303_v9 = vpop.f32.mrb[30].mxu1  ;;  %v3302_v17 = vadd.f32 %v3301_v3, %v2899_v63  ;;  %v14817_v59 = vld [vmem:[#allocation18 + $0xa8] ss:$16 sps:$4 sm:$0xff]   ;;  %v14822_v2 = vld [vmem:[#allocation18 + $0xc4] ss:$16 sps:$4 sm:$0xff]  }
 0x42f   :  { %v13166_v10 = vmul.f32 -1.442695, %v3259_v62  ;;  %v3263_v7 = vpop.f32.mrb[31].mxu0  ;;  %v3304_v12 = vpop.f32.mrb[31].mxu1  ;;  %v14825_v3 = vld [vmem:[#allocation18 + $0xcc] ss:$16 sps:$4 sm:$0xff]  }
 0x430   :  { %v13167_v13 = vmul.f32 -1.442695, %v3261_v33  ;;  %4257 = vmatpush1.bf16.msra.mxu0 %v14772_v60  ;;  %4298 = vmatpush1.bf16.msra.mxu1 %v14775_v61  ;;  %v13168_v23 = vmul.f32 -1.442695, %v3302_v17  ;;  %v14820_v33 = vld [vmem:[#allocation18 + $0xc0] ss:$16 sps:$4 sm:$0xff]  }
 0x431   :  { %16164 = vpow2.f32 %v13166_v10  ;;  %4258 = vmatprep.subr.bf16.mxu0 %v14780_v4  ;;  %4299 = vmatprep.subr.bf16.mxu1 %v14783_v5  ;;  %v14823_v8 = vld [vmem:[#allocation18 + $0xc8] ss:$16 sps:$4 sm:$0xff]   ;;  %v14828_v9 = vld [vmem:[#allocation18 + $0xe4] ss:$16 sps:$4 sm:$0xff]   ;;  %v14831_v10 = vld [vmem:[#allocation18 + $0xec] ss:$16 sps:$4 sm:$0xff]  }
 0x432   :  { %16166 = vpow2.f32 %v13167_v13  ;;  %v14826_v12 = vld [vmem:[#allocation18 + $0xe0] ss:$16 sps:$4 sm:$0xff]   ;;  %v14829_v13 = vld [vmem:[#allocation18 + $0xe8] ss:$16 sps:$4 sm:$0xff]   ;;  %v14834_v63 = vld [vmem:[#allocation18 + $0x104] ss:$16 sps:$4 sm:$0xff]  }
 0x433   :  { %16168 = vpow2.f32 %v13168_v23  ;;  %v14843_v17 = vld [vmem:[#allocation18 + $0x12c] ss:$16 sps:$4 sm:$0xff]   ;;  %v14838_v19 = vld [vmem:[#allocation18 + $0x120] ss:$16 sps:$4 sm:$0xff]   ;;  %v14846_v23 = vld [vmem:[#allocation18 + $0x144] ss:$16 sps:$4 sm:$0xff]  }
 0x434   :  { %4259 = vmatpush1.bf16.msra.mxu0 %v14778_v14  ;;  %4300 = vmatpush1.bf16.msra.mxu1 %v14781_v11  ;;  %16170 = vtanh.f32 %v3300_v26  ;;  %v14837_v14 = vld [vmem:[#allocation18 + $0x10c] ss:$16 sps:$4 sm:$0xff]   ;;  %v14832_v11 = vld [vmem:[#allocation18 + $0x100] ss:$16 sps:$4 sm:$0xff]  }
 0x435   :  { %4746 = vmatprep.subr.bf16.mxu0 %v14786_v15  ;;  %4787 = vmatprep.subr.bf16.mxu1 %v14789_v16  ;;  %v14835_v15 = vld [vmem:[#allocation18 + $0x108] ss:$16 sps:$4 sm:$0xff]   ;;  %v14840_v16 = vld [vmem:[#allocation18 + $0x124] ss:$16 sps:$4 sm:$0xff]  }
 0x437   :  { %4261 = vmatmul.mubr.bf16.vlgmr.msra.gmra.mrb[36].mxu0 %v17269_v21  ;;  %4302 = vmatmul.mubr.bf16.vlgmr.msra.gmra.mrb[36].mxu1 %v17269_v21 }
 0x438   :  { %4747 = vmatpush1.bf16.msra.mxu0 %v14784_v18  ;;  %4788 = vmatpush1.bf16.msra.mxu1 %v14787_v31 }
 0x439   :  { %4748 = vmatprep.subr.bf16.mxu0 %v14792_v20  ;;  %4789 = vmatprep.subr.bf16.mxu1 %v14795_v22  ;;  %v14841_v20 = vld [vmem:[#allocation18 + $0x128] ss:$16 sps:$4 sm:$0xff]  }
 0x43b   :  { %v16165_v29 = vpop.eup %16164 }
 0x43c   :  { %v16167_v30 = vpop.eup %16166  ;;  %v3309_v32 = vadd.f32 1.0, %v16165_v29  ;;  %4749 = vmatpush1.bf16.msra.mxu0 %v14790_v24  ;;  %4790 = vmatpush1.bf16.msra.mxu1 %v14793_v25  ;;  %v14849_v24 = vld [vmem:[#allocation18 + $0x14c] ss:$16 sps:$4 sm:$0xff]   ;;  %v14844_v29 = vld [vmem:[#allocation18 + $0x140] ss:$16 sps:$4 sm:$0xff]  }
 0x43d   :  { %v3315_v21 = vadd.f32 1.0, %v16167_v30  ;;  %4750 = vmatprep.subr.bf16.mxu0 %v14798_v27  ;;  %4791 = vmatprep.subr.bf16.mxu1 %v14801_v28  ;;  %v16169_v50 = vpop.eup %16168  ;;  %v16594_v25 = vld [vmem:[#allocation8] sm:$0x3]  ;;  %v14847_v30 = vld [vmem:[#allocation18 + $0x148] ss:$16 sps:$4 sm:$0xff]  }
 0x43e   :  { %16172 = vrcp.f32 %v3309_v32  ;;  %v16171_v51 = vpop.eup %16170  ;;  %v3322_v62 = vadd.f32 1.0, %v16169_v50  ;;  %v14852_v32 = vld [vmem:[#allocation18 + $0x164] ss:$16 sps:$4 sm:$0xff]  }
 0x43f   :  { %16174 = vrcp.f32 %v3315_v21  ;;  %v14850_v21 = vld [vmem:[#allocation18 + $0x160] ss:$16 sps:$4 sm:$0xff]   ;;  %v14870_v50 = vld [vmem:[#allocation18 + $0x1c4] ss:$16 sps:$4 sm:$0xff]  }
 0x440   :  { %4751 = vmatpush1.bf16.msra.mxu0 %v14796_v36  ;;  %4792 = vmatpush1.bf16.msra.mxu1 %v14799_v38  ;;  %16176 = vrcp.f32 %v3322_v62  ;;  %v14855_v36 = vld [vmem:[#allocation18 + $0x16c] ss:$16 sps:$4 sm:$0xff]   ;;  %v14882_v62 = vld [vmem:[#allocation15 + $0x4] ss:$16 sps:$4 sm:$0xff]  }
 0x441   :  { %4752 = vmatprep.subr.bf16.mxu0 %v14804_v39  ;;  %4793 = vmatprep.subr.bf16.mxu1 %v14807_v40  ;;  %v14853_v39 = vld [vmem:[#allocation18 + $0x168] ss:$16 sps:$4 sm:$0xff]   ;;  %v14861_v40 = vld [vmem:[#allocation18 + $0x18c] ss:$16 sps:$4 sm:$0xff]  }
 0x444   :  { %4753 = vmatpush1.bf16.msra.mxu0 %v14802_v41  ;;  %4794 = vmatpush1.bf16.msra.mxu1 %v14805_v6  ;;  %v14856_v6 = vld [vmem:[#allocation18 + $0x180] ss:$16 sps:$4 sm:$0xff]  }
 0x445   :  { %4754 = vmatprep.subr.bf16.mxu0 %v14810_v43  ;;  %4795 = vmatprep.subr.bf16.mxu1 %v14813_v45  ;;  %v14859_v45 = vld [vmem:[#allocation18 + $0x188] ss:$16 sps:$4 sm:$0xff]  }
 0x448   :  { %v16173_v53 = vpop.eup %16172  ;;  %4755 = vmatpush1.bf16.msra.mxu0 %v14808_v46  ;;  %4796 = vmatpush1.bf16.msra.mxu1 %v14811_v47  ;;  %v14864_v46 = vld [vmem:[#allocation18 + $0x1a4] ss:$16 sps:$4 sm:$0xff]   ;;  %v14867_v47 = vld [vmem:[#allocation18 + $0x1ac] ss:$16 sps:$4 sm:$0xff]  }
 0x449   :  { %v16175_v60 = vpop.eup %16174  ;;  %v3326_v61 = vmul.f32 %v16173_v53, %v16171_v51  ;;  %4756 = vmatprep.subr.bf16.mxu0 %v14816_v48  ;;  %4797 = vmatprep.subr.bf16.mxu1 %v14819_v49  ;;  %v14862_v48 = vld [vmem:[#allocation18 + $0x1a0] ss:$16 sps:$4 sm:$0xff]   ;;  %v14865_v49 = vld [vmem:[#allocation18 + $0x1a8] ss:$16 sps:$4 sm:$0xff]   ;;  %v14873_v51 = vld [vmem:[#allocation18 + $0x1cc] ss:$16 sps:$4 sm:$0xff]  }
 0x44a   :  { %v3325_v4 = vmul.f32 %v16175_v60, %v2816_v52  ;;  %v16177_v18 = vpop.eup %16176  ;;  %v14871_v53 = vld [vmem:[#allocation18 + $0x1c8] ss:$16 sps:$4 sm:$0xff]   ;;  %v14874_v60 = vld [vmem:[#allocation18 + $0x1e0] ss:$16 sps:$4 sm:$0xff]  }
 0x44c   :  { %v3327_v5 = vadd.f32 %v3326_v61, %v3325_v4  ;;  %4757 = vmatpush1.bf16.msra.mxu0 %v14814_v58  ;;  %4798 = vmatpush1.bf16.msra.mxu1 %v14817_v59  ;;  %v14876_v58 = vld [vmem:[#allocation18 + $0x1e4] ss:$16 sps:$4 sm:$0xff]   ;;  %v14879_v59 = vld [vmem:[#allocation18 + $0x1ec] ss:$16 sps:$4 sm:$0xff]   ;;  %v14877_v61 = vld [vmem:[#allocation18 + $0x1e8] ss:$16 sps:$4 sm:$0xff]  }
 0x44d   :  { %4758 = vmatprep.subr.bf16.mxu0 %v14822_v2  ;;  %4799 = vmatprep.subr.bf16.mxu1 %v14825_v3  ;;  %v14885_v2 = vld [vmem:[#allocation15 + $0xc] ss:$16 sps:$4 sm:$0xff]   ;;  %v14880_v3 = vld [vmem:[#allocation15] ss:$16 sps:$4 sm:$0xff]   ;;  %v14883_v4 = vld [vmem:[#allocation15 + $0x8] ss:$16 sps:$4 sm:$0xff]  }
 0x44e   :  { %16178 = vtanh.f32 %v3327_v5  ;;  %v3332_v7 = vsel %vm824_vm5, %v3327_v5, %v2816_v52  ;;  %v14868_v52 = vld [vmem:[#allocation18 + $0x1c0] ss:$16 sps:$4 sm:$0xff]   ;;  %v14888_v5 = vld [vmem:[#allocation15 + $0x24] ss:$16 sps:$4 sm:$0xff]  }
 0x44f   :  { %3333 = vst [vmem:[#allocation9] sm:$0x3] %v3332_v7  ;;  %v14892_v7 = vld [vmem:[#allocation15 + $0x40] ss:$16 sps:$4 sm:$0xff]  }
 0x450   :  { %4759 = vmatpush1.bf16.msra.mxu0 %v14820_v33  ;;  %4800 = vmatpush1.bf16.msra.mxu1 %v14823_v8  ;;  %v14891_v33 = vld [vmem:[#allocation15 + $0x2c] ss:$16 sps:$4 sm:$0xff]   ;;  %v14886_v8 = vld [vmem:[#allocation15 + $0x20] ss:$16 sps:$4 sm:$0xff]  }
 0x451   :  { %4760 = vmatprep.subr.bf16.mxu0 %v14828_v9  ;;  %4801 = vmatprep.subr.bf16.mxu1 %v14831_v10  ;;  %v14889_v9 = vld [vmem:[#allocation15 + $0x28] ss:$16 sps:$4 sm:$0xff]   ;;  %v14894_v10 = vld [vmem:[#allocation15 + $0x44] ss:$16 sps:$4 sm:$0xff]  }
 0x454   :  { %4761 = vmatpush1.bf16.msra.mxu0 %v14826_v12  ;;  %4802 = vmatpush1.bf16.msra.mxu1 %v14829_v13  ;;  %v14895_v12 = vld [vmem:[#allocation15 + $0x48] ss:$16 sps:$4 sm:$0xff]   ;;  %v14900_v13 = vld [vmem:[#allocation15 + $0x64] ss:$16 sps:$4 sm:$0xff]  }
 0x455   :  { %4762 = vmatprep.subr.bf16.mxu0 %v14834_v63  ;;  %4803 = vmatprep.subr.bf16.mxu1 %v14837_v14  ;;  %v14903_v63 = vld [vmem:[#allocation15 + $0x6c] ss:$16 sps:$4 sm:$0xff]   ;;  %v14898_v14 = vld [vmem:[#allocation15 + $0x60] ss:$16 sps:$4 sm:$0xff]  }
 0x458   :  { %v16179_v31 = vpop.eup %16178  ;;  %4763 = vmatpush1.bf16.msra.mxu0 %v14832_v11  ;;  %4804 = vmatpush1.bf16.msra.mxu1 %v14835_v15  ;;  %v14901_v11 = vld [vmem:[#allocation15 + $0x68] ss:$16 sps:$4 sm:$0xff]   ;;  %v14906_v15 = vld [vmem:[#allocation15 + $0x84] ss:$16 sps:$4 sm:$0xff]  }
 0x459   :  { %v3329_v22 = vmul.f32 %v16179_v31, %v16177_v18  ;;  %4764 = vmatprep.subr.bf16.mxu0 %v14840_v16  ;;  %4805 = vmatprep.subr.bf16.mxu1 %v14843_v17  ;;  %v14909_v16 = vld [vmem:[#allocation15 + $0x8c] ss:$16 sps:$4 sm:$0xff]   ;;  %v14904_v17 = vld [vmem:[#allocation15 + $0x80] ss:$16 sps:$4 sm:$0xff]   ;;  %v14907_v18 = vld [vmem:[#allocation15 + $0x88] ss:$16 sps:$4 sm:$0xff]  }
 0x45a   :  { %v14912_v31 = vld [vmem:[#allocation15 + $0xa4] ss:$16 sps:$4 sm:$0xff]  }
 0x45b   :  { %v3330_v26 = vsel %vm824_vm5, %v3329_v22, %v16594_v25  ;;  %v3334_v27 = vsel %vm824_vm5, %v3329_v22, 0.0  ;;  %v14913_v22 = vld [vmem:[#allocation15 + $0xa8] ss:$16 sps:$4 sm:$0xff]   ;;  %v14916_v25 = vld [vmem:[#allocation15 + $0xc0] ss:$16 sps:$4 sm:$0xff]  }
 0x45c   :  { %3331 = vst [vmem:[#allocation8] sm:$0x3] %v3330_v26  ;;  %v3342_v28 = vrot.slane %v3334_v27, %v17069_v34  ;;  %4765 = vmatpush1.bf16.msra.mxu0 %v14838_v19  ;;  %4806 = vmatpush1.bf16.msra.mxu1 %v14841_v20  ;;  %v14915_v19 = vld [vmem:[#allocation15 + $0xac] ss:$16 sps:$4 sm:$0xff]   ;;  %v14910_v20 = vld [vmem:[#allocation15 + $0xa0] ss:$16 sps:$4 sm:$0xff]  }
 0x45d   :  { %4766 = vmatprep.subr.bf16.mxu0 %v14846_v23  ;;  %4807 = vmatprep.subr.bf16.mxu1 %v14849_v24  ;;  %v14918_v23 = vld [vmem:[#allocation15 + $0xc4] ss:$16 sps:$4 sm:$0xff]   ;;  %v14921_v24 = vld [vmem:[#allocation15 + $0xcc] ss:$16 sps:$4 sm:$0xff]   ;;  %v14919_v26 = vld [vmem:[#allocation15 + $0xc8] ss:$16 sps:$4 sm:$0xff]  }
 0x45e   :  { %v3343_v38 = vcombine.high %v3342_v28, %v3342_v28  ;;  %13169 = vst.sshfl [vmem:[#allocation3] sm:$0x1 pattern:$0x73625140] %v3342_v28  ;;  %v14924_v27 = vld [vmem:[#allocation15 + $0xe4] ss:$16 sps:$4 sm:$0xff]  }
 0x45f   :  { %v14927_v28 = vld [vmem:[#allocation15 + $0xec] ss:$16 sps:$4 sm:$0xff]  }
 0x460   :  { %13170 = vst.sshfl [vmem:[#allocation3 + $0x8] sm:$0x1 pattern:$0x73625140] %v3343_v38  ;;  %4767 = vmatpush1.bf16.msra.mxu0 %v14844_v29  ;;  %4808 = vmatpush1.bf16.msra.mxu1 %v14847_v30  ;;  %v14922_v29 = vld [vmem:[#allocation15 + $0xe0] ss:$16 sps:$4 sm:$0xff]  }
 0x461   :  { %4768 = vmatprep.subr.bf16.mxu0 %v14852_v32  ;;  %4809 = vmatprep.subr.bf16.mxu1 %v14855_v36  ;;  %v14925_v30 = vld [vmem:[#allocation15 + $0xe8] ss:$16 sps:$4 sm:$0xff]   ;;  %v14930_v32 = vld [vmem:[#allocation16 + $0x4] ss:$16 sps:$4 sm:$0xff]   ;;  %v14933_v36 = vld [vmem:[#allocation16 + $0xc] ss:$16 sps:$4 sm:$0xff]  }
 0x463   :  { %v17298_v41 = vld [vmem:[#allocation8] sm:$0x3] }
 0x464   :  { %4769 = vmatpush1.bf16.msra.mxu0 %v14850_v21  ;;  %4810 = vmatpush1.bf16.msra.mxu1 %v14853_v39  ;;  %v4339_v43 = vpack.c.bf16 %v17298_v41, %v17298_v41 }
 0x465   :  { %4770 = vmatprep.subr.bf16.mxu0 %v14858_v37  ;;  %4811 = vmatprep.subr.bf16.mxu1 %v14861_v40 }
 0x466   :  { %4778 = vmatprep.mubr.bf16.mxu0 %v4339_v43  ;;  %4819 = vmatprep.mubr.bf16.mxu1 %v4339_v43 }
 0x468   :  { %4771 = vmatpush1.bf16.msra.mxu0 %v14856_v6  ;;  %4812 = vmatpush1.bf16.msra.mxu1 %v14859_v45 }
 0x469   :  { %4772 = vmatprep.subr.bf16.mxu0 %v14864_v46  ;;  %4813 = vmatprep.subr.bf16.mxu1 %v14867_v47 }
 0x46c   :  { %4773 = vmatpush1.bf16.msra.mxu0 %v14862_v48  ;;  %4814 = vmatpush1.bf16.msra.mxu1 %v14865_v49 }
 0x46d   :  { %4774 = vmatprep.subr.bf16.mxu0 %v14870_v50  ;;  %4815 = vmatprep.subr.bf16.mxu1 %v14873_v51 }
 0x470   :  { %4775 = vmatpush1.bf16.msra.mxu0 %v14868_v52  ;;  %4816 = vmatpush1.bf16.msra.mxu1 %v14871_v53 }
 0x471   :  { %4776 = vmatprep.subr.bf16.mxu0 %v14876_v58  ;;  %4817 = vmatprep.subr.bf16.mxu1 %v14879_v59  ;;  %v3367_v58 = vld [vmem:[#allocation2 + $0x3] ss:$8 sm:$0xf] }
 0x472   :  { %v3369_v59 = vld [vmem:[#allocation2 + $0x23] ss:$8 sm:$0xf] }
 0x474   :  { %4777 = vmatpush1.bf16.msra.mxu0 %v14874_v60  ;;  %4818 = vmatpush1.bf16.msra.mxu1 %v14877_v61 }
 0x475   :  { %5085 = vmatprep.subr.bf16.mxu0 %v14882_v62  ;;  %5126 = vmatprep.subr.bf16.mxu1 %v14885_v2 }
 0x477   :  { %4779 = vmatmul.mubr.bf16.vlgmr.msra.gmra.mrb[40].mxu0 %v17278_v42  ;;  %4820 = vmatmul.mubr.bf16.vlgmr.msra.gmra.mrb[40].mxu1 %v17278_v42  ;;  %v14897_v42 = vld [vmem:[#allocation15 + $0x4c] ss:$16 sps:$4 sm:$0xff]  }
 0x478   :  { %5086 = vmatpush1.bf16.msra.mxu0 %v14880_v3  ;;  %5127 = vmatpush1.bf16.msra.mxu1 %v14883_v4 }
 0x479   :  { %5117 = vmatprep.mubr.bf16.mxu0 %v16780_v0  ;;  %5158 = vmatprep.mubr.bf16.mxu1 %v16780_v0 }
 0x47a   :  { %5087 = vmatprep.subr.bf16.mxu0 %v14888_v5  ;;  %5128 = vmatprep.subr.bf16.mxu1 %v14891_v33 }
 0x47c   :  { %5088 = vmatpush1.bf16.msra.mxu0 %v14886_v8  ;;  %5129 = vmatpush1.bf16.msra.mxu1 %v14889_v9 }
 0x47d   :  { %5089 = vmatprep.subr.bf16.mxu0 %v14894_v10  ;;  %5130 = vmatprep.subr.bf16.mxu1 %v14897_v42 }
 0x480   :  { %5090 = vmatpush1.bf16.msra.mxu0 %v14892_v7  ;;  %5131 = vmatpush1.bf16.msra.mxu1 %v14895_v12 }
 0x481   :  { %5091 = vmatprep.subr.bf16.mxu0 %v14900_v13  ;;  %5132 = vmatprep.subr.bf16.mxu1 %v14903_v63 }
 0x484   :  { %5092 = vmatpush1.bf16.msra.mxu0 %v14898_v14  ;;  %5133 = vmatpush1.bf16.msra.mxu1 %v14901_v11 }
 0x485   :  { %5093 = vmatprep.subr.bf16.mxu0 %v14906_v15  ;;  %5134 = vmatprep.subr.bf16.mxu1 %v14909_v16 }
 0x488   :  { %5094 = vmatpush1.bf16.msra.mxu0 %v14904_v17  ;;  %5135 = vmatpush1.bf16.msra.mxu1 %v14907_v18  ;;  %v3365_v18 = vld [vmem:[#allocation5] sm:$0x3] }
 0x489   :  { %5095 = vmatprep.subr.bf16.mxu0 %v14912_v31  ;;  %5136 = vmatprep.subr.bf16.mxu1 %v14915_v19  ;;  %v3744_v19 = vrot.slane %v3365_v18, %v17069_v34 }
 0x48c   :  { %5096 = vmatpush1.bf16.msra.mxu0 %v14910_v20  ;;  %5137 = vmatpush1.bf16.msra.mxu1 %v14913_v22 }
 0x48d   :  { %5097 = vmatprep.subr.bf16.mxu0 %v14918_v23  ;;  %5138 = vmatprep.subr.bf16.mxu1 %v14921_v24  ;;  %v3745_v24 = vcombine.high %v3744_v19, %v3744_v19 }
 0x490   :  { %5098 = vmatpush1.bf16.msra.mxu0 %v14916_v25  ;;  %5139 = vmatpush1.bf16.msra.mxu1 %v14919_v26 }
 0x491   :  { %5099 = vmatprep.subr.bf16.mxu0 %v14924_v27  ;;  %5140 = vmatprep.subr.bf16.mxu1 %v14927_v28 }
 0x494   :  { %5100 = vmatpush1.bf16.msra.mxu0 %v14922_v29  ;;  %5141 = vmatpush1.bf16.msra.mxu1 %v14925_v30  ;;  %v3752_v29 = vrot.slane %v3744_v19, %v17069_v34  ;;  %v14931_v19 = vld [vmem:[#allocation16 + $0x8] ss:$16 sps:$4 sm:$0xff]  }
 0x495   :  { %5750 = vmatprep.subr.bf16.mxu0 %v14930_v32  ;;  %5791 = vmatprep.subr.bf16.mxu1 %v14933_v36  ;;  %v3759_v36 = vrot.slane %v3745_v24, %v17069_v34  ;;  %v14936_v24 = vld [vmem:[#allocation16 + $0x24] ss:$16 sps:$4 sm:$0xff]  }
 0x4ca   :  { %v3597_v38 = vpop.f32.mrb[32].mxu0  ;;  %v3638_v21 = vpop.f32.mrb[32].mxu1 }
 0x4cb   :  { %v3599_v39 = vpop.f32.mrb[33].mxu0  ;;  %v3640_v37 = vpop.f32.mrb[33].mxu1 }
 0x4cc   :  { %v3649_v40 = vcombine.low %v3597_v38, %v3599_v39  ;;  %v3650_v6 = vcombine.low %v3638_v21, %v3640_v37  ;;  %v3601_v43 = vpop.f32.mrb[34].mxu0  ;;  %v3642_v45 = vpop.f32.mrb[34].mxu1 }
 0x4cd   :  { %v3602_v46 = vpop.f32.mrb[35].mxu0  ;;  %v3643_v47 = vpop.f32.mrb[35].mxu1 }
 0x4ce   :  { %v3657_v48 = vrot.slane %v3649_v40, %v17069_v34  ;;  %v3664_v49 = vrot.slane %v3650_v6, %v17069_v34  ;;  %v17314_v47 = vpop.permute.xlu1 %3777 }
 0x4cf   :  { %vm3779_vm12 = vcmp.eq.s32.totalorder %v17314_v47, 1  ;;  %v15578_v47 = vld [vmem:[#allocation18 + $0x184] ss:$16 sps:$4 sm:$0xff]  }
 0x4d0   :  { %v3665_v50 = vcombine.low %v3657_v48, %v3664_v49  ;;  %v3666_v51 = vcombine.high %v3657_v48, %v3664_v49 }
 0x4d2   :  { %v3673_v52 = vrot.slane %v3665_v50, %v17069_v34  ;;  %v3680_v53 = vrot.slane %v3666_v51, %v17069_v34 }
 0x4d4   :  { %v3683_v60 = vadd.f32 %v3673_v52, %v3367_v58  ;;  %v3684_v61 = vadd.f32 %v3680_v53, %v3369_v59 }
 0x4d6   :  { %v13203_v62 = vmul.f32 -1.442695, %v3683_v60  ;;  %v13204_v2 = vmul.f32 -1.442695, %v3684_v61  ;;  %v3699_v3 = vrot.slane %v3683_v60, 1  ;;  %v3700_v4 = vrot.slane %v3684_v61, 1 }
 0x4d7   :  { %v3721_v8 = vrot.slane %v3683_v60, 3  ;;  %v3722_v9 = vrot.slane %v3684_v61, 3  ;;  %v3715_v10 = vrot.slane %v3683_v60, 2  ;;  %v3716_v42 = vrot.slane %v3684_v61, 2  ;;  %v3886_v61 = vld [vmem:[%s17991_s6] sm:$0xf] }
 0x4d8   :  { %16180 = vpow2.f32 %v13203_v62  ;;  %v13205_v5 = vmul.f32 -1.442695, %v3699_v3  ;;  %v13206_v33 = vmul.f32 -1.442695, %v3700_v4  ;;  %v3895_v4 = vrot.slane %v3886_v61, %v17054_v56 }
 0x4d9   :  { %16182 = vpow2.f32 %v13204_v2  ;;  %v13207_v7 = vmul.f32 -1.442695, %v3721_v8  ;;  %v13208_v12 = vmul.f32 -1.442695, %v3722_v9  ;;  %v3891_v2 = vrot.slane %v3886_v61, %v17050_v54 }
 0x4da   :  { %16184 = vpow2.f32 %v13205_v5  ;;  %v16595_v5 = vld [vmem:[#allocation4] sm:$0x3] }
 0x4db   :  { %16186 = vpow2.f32 %v13206_v33 }
 0x4dc   :  { %16188 = vtanh.f32 %v3715_v10 }
 0x4dd   :  { %16190 = vtanh.f32 %v3716_v42 }
 0x4de   :  { %16192 = vpow2.f32 %v13207_v7 }
 0x4df   :  { %16194 = vpow2.f32 %v13208_v12 }
 0x4e2   :  { %v16181_v13 = vpop.eup %16180 }
 0x4e3   :  { %v16183_v63 = vpop.eup %16182  ;;  %v3691_v14 = vadd.f32 1.0, %v16181_v13 }
 0x4e4   :  { %v16185_v11 = vpop.eup %16184  ;;  %v3692_v15 = vadd.f32 1.0, %v16183_v63 }
 0x4e5   :  { %v16187_v16 = vpop.eup %16186  ;;  %16196 = vrcp.f32 %v3691_v14  ;;  %v3709_v17 = vadd.f32 1.0, %v16185_v11 }
 0x4e6   :  { %16198 = vrcp.f32 %v3692_v15  ;;  %v3710_v31 = vadd.f32 1.0, %v16187_v16  ;;  %v16189_v20 = vpop.eup %16188 }
 0x4e7   :  { %16200 = vrcp.f32 %v3709_v17  ;;  %v16191_v22 = vpop.eup %16190  ;;  %v3903_v17 = vrot.slane %v3886_v61, %v17056_v57 }
 0x4e8   :  { %16202 = vrcp.f32 %v3710_v31  ;;  %v16193_v23 = vpop.eup %16192  ;;  %v14928_v31 = vld [vmem:[#allocation16] ss:$16 sps:$4 sm:$0xff]  }
 0x4e9   :  { %v16195_v25 = vpop.eup %16194  ;;  %v3731_v28 = vadd.f32 1.0, %v16193_v23 }
 0x4ea   :  { %v3732_v32 = vadd.f32 1.0, %v16195_v25  ;;  %v14939_v25 = vld [vmem:[#allocation16 + $0x2c] ss:$16 sps:$4 sm:$0xff]  }
 0x4eb   :  { %16204 = vrcp.f32 %v3731_v28  ;;  %v14937_v28 = vld [vmem:[#allocation16 + $0x28] ss:$16 sps:$4 sm:$0xff]  }
 0x4ec   :  { %16206 = vrcp.f32 %v3732_v32  ;;  %v14945_v32 = vld [vmem:[#allocation16 + $0x4c] ss:$16 sps:$4 sm:$0xff]  }
 0x4ef   :  { %v16197_v26 = vpop.eup %16196 }
 0x4f0   :  { %v16199_v27 = vpop.eup %16198  ;;  %v3764_v39 = vmul.f32 %v16197_v26, %v16189_v20 }
 0x4f1   :  { %v16201_v30 = vpop.eup %16200  ;;  %v3765_v40 = vmul.f32 %v16199_v27, %v16191_v22  ;;  %v3899_v22 = vrot.slane %v3886_v61, %v17052_v55  ;;  %v14934_v27 = vld [vmem:[#allocation16 + $0x20] ss:$16 sps:$4 sm:$0xff]   ;;  %v3820_v61 = vld [vmem:[#allocation7] sm:$0x3] }
 0x4f2   :  { %v16203_v38 = vpop.eup %16202  ;;  %v3762_v21 = vmul.f32 %v16201_v30, %v3752_v29  ;;  %v14942_v30 = vld [vmem:[#allocation16 + $0x44] ss:$16 sps:$4 sm:$0xff]  }
 0x4f3   :  { %v3763_v37 = vmul.f32 %v16203_v38, %v3759_v36 }
 0x4f4   :  { %v3766_v6 = vadd.f32 %v3764_v39, %v3762_v21  ;;  %v14940_v39 = vld [vmem:[#allocation16 + $0x40] ss:$16 sps:$4 sm:$0xff]  }
 0x4f5   :  { %v3767_v43 = vadd.f32 %v3765_v40, %v3763_v37  ;;  %v16205_v50 = vpop.eup %16204  ;;  %v14943_v37 = vld [vmem:[#allocation16 + $0x48] ss:$16 sps:$4 sm:$0xff]  }
 0x4f6   :  { %16208 = vtanh.f32 %v3766_v6  ;;  %v16207_v51 = vpop.eup %16206 }
 0x4f7   :  { %16210 = vtanh.f32 %v3767_v43  ;;  %v3802_v45 = vcombine.low %v3766_v6, %v3767_v43  ;;  %v14948_v6 = vld [vmem:[#allocation16 + $0x64] ss:$16 sps:$4 sm:$0xff]   ;;  %v14951_v43 = vld [vmem:[#allocation16 + $0x6c] ss:$16 sps:$4 sm:$0xff]  }
 0x4f9   :  { %v3809_v46 = vrot.slane %v3802_v45, %v17069_v34  ;;  %v14946_v45 = vld [vmem:[#allocation16 + $0x60] ss:$16 sps:$4 sm:$0xff]  }
 0x4fb   :  { %v3816_v48 = vrot.slane %v3809_v46, %v17069_v34  ;;  %v14949_v46 = vld [vmem:[#allocation16 + $0x68] ss:$16 sps:$4 sm:$0xff]  }
 0x4fd   :  { %v3818_v49 = vsel %vm3779_vm12, %v3816_v48, %v3365_v18  ;;  %v14954_v48 = vld [vmem:[#allocation16 + $0x84] ss:$16 sps:$4 sm:$0xff]  }
 0x4fe   :  { %3819 = vst [vmem:[#allocation5] sm:$0x3] %v3818_v49  ;;  %v14957_v49 = vld [vmem:[#allocation16 + $0x8c] ss:$16 sps:$4 sm:$0xff]  }
 0x500   :  { %v16209_v52 = vpop.eup %16208 }
 0x501   :  { %v16211_v53 = vpop.eup %16210  ;;  %v3770_v58 = vmul.f32 %v16209_v52, %v16205_v50  ;;  %v14952_v50 = vld [vmem:[#allocation16 + $0x80] ss:$16 sps:$4 sm:$0xff]   ;;  %v14960_v52 = vld [vmem:[#allocation16 + $0xa4] ss:$16 sps:$4 sm:$0xff]  }
 0x502   :  { %v3771_v59 = vmul.f32 %v16211_v53, %v16207_v51  ;;  %v14955_v51 = vld [vmem:[#allocation16 + $0x88] ss:$16 sps:$4 sm:$0xff]   ;;  %v14963_v53 = vld [vmem:[#allocation16 + $0xac] ss:$16 sps:$4 sm:$0xff]  }
 0x504   :  { %v3782_v60 = vcombine.low %v3770_v58, %v3771_v59 }
 0x506   :  { %v3789_v62 = vrot.slane %v3782_v60, %v17069_v34 }
 0x508   :  { %v3796_v3 = vrot.slane %v3789_v62, %v17069_v34  ;;  %v14958_v62 = vld [vmem:[#allocation16 + $0xa0] ss:$16 sps:$4 sm:$0xff]  }
 0x50a   :  { %v3798_v33 = vsel %vm3779_vm12, %v3796_v3, %v16595_v5  ;;  %v4262_v8 = vpop.f32.mrb[36].mxu0  ;;  %v4303_v9 = vpop.f32.mrb[36].mxu1 }
 0x50b   :  { %3799 = vst [vmem:[#allocation4] sm:$0x3] %v3798_v33  ;;  %v4263_v10 = vadd.f32 %v4262_v8, %v3891_v2  ;;  %v4264_v42 = vpop.f32.mrb[37].mxu0  ;;  %v4305_v7 = vpop.f32.mrb[37].mxu1  ;;  %v4304_v29 = vadd.f32 %v4303_v9, %v3899_v22  ;;  %v14961_v2 = vld [vmem:[#allocation16 + $0xa8] ss:$16 sps:$4 sm:$0xff]  }
 0x50c   :  { %v4265_v12 = vadd.f32 %v4264_v42, %v3895_v4  ;;  %v4266_v13 = vpop.f32.mrb[38].mxu0  ;;  %v4307_v63 = vpop.f32.mrb[38].mxu1  ;;  %v4306_v18 = vadd.f32 %v4305_v7, %v3903_v17  ;;  %v14966_v33 = vld [vmem:[#allocation16 + $0xc4] ss:$16 sps:$4 sm:$0xff]   ;;  %v14969_v8 = vld [vmem:[#allocation16 + $0xcc] ss:$16 sps:$4 sm:$0xff]  }
 0x50d   :  { %v13274_v14 = vmul.f32 -1.442695, %v4263_v10  ;;  %v4267_v11 = vpop.f32.mrb[39].mxu0  ;;  %v4308_v15 = vpop.f32.mrb[39].mxu1  ;;  %v14964_v42 = vld [vmem:[#allocation16 + $0xc0] ss:$16 sps:$4 sm:$0xff]  }
 0x50e   :  { %v13275_v16 = vmul.f32 -1.442695, %v4265_v12  ;;  %v13276_v26 = vmul.f32 -1.442695, %v4306_v18  ;;  %v14967_v7 = vld [vmem:[#allocation16 + $0xc8] ss:$16 sps:$4 sm:$0xff]  }
 0x50f   :  { %16212 = vpow2.f32 %v13274_v14  ;;  %v14972_v12 = vld [vmem:[#allocation16 + $0xe4] ss:$16 sps:$4 sm:$0xff]   ;;  %v14975_v13 = vld [vmem:[#allocation16 + $0xec] ss:$16 sps:$4 sm:$0xff]   ;;  %v14970_v14 = vld [vmem:[#allocation16 + $0xe0] ss:$16 sps:$4 sm:$0xff]  }
 0x510   :  { %16214 = vpow2.f32 %v13275_v16  ;;  %v14973_v11 = vld [vmem:[#allocation16 + $0xe8] ss:$16 sps:$4 sm:$0xff]   ;;  %v14978_v15 = vld [vmem:[#allocation16 + $0x104] ss:$16 sps:$4 sm:$0xff]   ;;  %v14981_v16 = vld [vmem:[#allocation16 + $0x10c] ss:$16 sps:$4 sm:$0xff]  }
 0x511   :  { %16216 = vpow2.f32 %v13276_v26  ;;  %v14976_v17 = vld [vmem:[#allocation16 + $0x100] ss:$16 sps:$4 sm:$0xff]   ;;  %v14979_v18 = vld [vmem:[#allocation16 + $0x108] ss:$16 sps:$4 sm:$0xff]  }
 0x512   :  { %v4884_v20 = vld [vmem:[#allocation4] sm:$0x3]  ;;  %16218 = vtanh.f32 %v4304_v29  ;;  %v16596_v29 = vld [vmem:[#allocation6] sm:$0x3] }
 0x513   :  { %v17331_v23 = vpack.c.bf16 %v4884_v20, %v4884_v20 }
 0x515   :  { %5118 = vmatmul.mubr.bf16.vlgmr.msra.gmra.mrb[44].mxu0 %v17331_v23  ;;  %5159 = vmatmul.mubr.bf16.vlgmr.msra.gmra.mrb[44].mxu1 %v17331_v23 }
 0x516   :  { %5751 = vmatpush1.bf16.msra.mxu0 %v14928_v31  ;;  %5792 = vmatpush1.bf16.msra.mxu1 %v14931_v19  ;;  %v14984_v31 = vld [vmem:[#allocation16 + $0x124] ss:$16 sps:$4 sm:$0xff]   ;;  %v14987_v19 = vld [vmem:[#allocation16 + $0x12c] ss:$16 sps:$4 sm:$0xff]  }
 0x517   :  { %5752 = vmatprep.subr.bf16.mxu0 %v14936_v24  ;;  %5793 = vmatprep.subr.bf16.mxu1 %v14939_v25  ;;  %v14982_v24 = vld [vmem:[#allocation16 + $0x120] ss:$16 sps:$4 sm:$0xff]   ;;  %v14985_v25 = vld [vmem:[#allocation16 + $0x128] ss:$16 sps:$4 sm:$0xff]  }
 0x519   :  { %v16213_v36 = vpop.eup %16212 }
 0x51a   :  { %v16215_v38 = vpop.eup %16214  ;;  %v4313_v21 = vadd.f32 1.0, %v16213_v36  ;;  %5753 = vmatpush1.bf16.msra.mxu0 %v14934_v27  ;;  %5794 = vmatpush1.bf16.msra.mxu1 %v14937_v28  ;;  %v14990_v27 = vld [vmem:[#allocation16 + $0x144] ss:$16 sps:$4 sm:$0xff]   ;;  %v14993_v28 = vld [vmem:[#allocation16 + $0x14c] ss:$16 sps:$4 sm:$0xff]  }
 0x51b   :  { %v4319_v40 = vadd.f32 1.0, %v16215_v38  ;;  %5754 = vmatprep.subr.bf16.mxu0 %v14942_v30  ;;  %5795 = vmatprep.subr.bf16.mxu1 %v14945_v32  ;;  %v16217_v58 = vpop.eup %16216  ;;  %v14988_v32 = vld [vmem:[#allocation16 + $0x140] ss:$16 sps:$4 sm:$0xff]   ;;  %v14991_v36 = vld [vmem:[#allocation16 + $0x148] ss:$16 sps:$4 sm:$0xff]  }
 0x51c   :  { %16220 = vrcp.f32 %v4313_v21  ;;  %v16219_v59 = vpop.eup %16218  ;;  %v4326_v5 = vadd.f32 1.0, %v16217_v58  ;;  %v14996_v38 = vld [vmem:[#allocation16 + $0x164] ss:$16 sps:$4 sm:$0xff]   ;;  %v14999_v21 = vld [vmem:[#allocation16 + $0x16c] ss:$16 sps:$4 sm:$0xff]  }
 0x51d   :  { %16222 = vrcp.f32 %v4319_v40  ;;  %v15002_v40 = vld [vmem:[#allocation16 + $0x184] ss:$16 sps:$4 sm:$0xff]  }
 0x51e   :  { %5755 = vmatpush1.bf16.msra.mxu0 %v14940_v39  ;;  %5796 = vmatpush1.bf16.msra.mxu1 %v14943_v37  ;;  %16224 = vrcp.f32 %v4326_v5  ;;  %v14994_v39 = vld [vmem:[#allocation16 + $0x160] ss:$16 sps:$4 sm:$0xff]   ;;  %v14997_v37 = vld [vmem:[#allocation16 + $0x168] ss:$16 sps:$4 sm:$0xff]  }
 0x51f   :  { %5756 = vmatprep.subr.bf16.mxu0 %v14948_v6  ;;  %5797 = vmatprep.subr.bf16.mxu1 %v14951_v43  ;;  %v15005_v6 = vld [vmem:[#allocation16 + $0x18c] ss:$16 sps:$4 sm:$0xff]  }
 0x522   :  { %5757 = vmatpush1.bf16.msra.mxu0 %v14946_v45  ;;  %5798 = vmatpush1.bf16.msra.mxu1 %v14949_v46  ;;  %v15000_v45 = vld [vmem:[#allocation16 + $0x180] ss:$16 sps:$4 sm:$0xff]  }
 0x523   :  { %5758 = vmatprep.subr.bf16.mxu0 %v14954_v48  ;;  %5799 = vmatprep.subr.bf16.mxu1 %v14957_v49  ;;  %v15003_v48 = vld [vmem:[#allocation16 + $0x188] ss:$16 sps:$4 sm:$0xff]   ;;  %v15008_v49 = vld [vmem:[#allocation16 + $0x1a4] ss:$16 sps:$4 sm:$0xff]  }
 0x526   :  { %v16221_v60 = vpop.eup %16220  ;;  %5759 = vmatpush1.bf16.msra.mxu0 %v14952_v50  ;;  %5800 = vmatpush1.bf16.msra.mxu1 %v14955_v51  ;;  %v15011_v50 = vld [vmem:[#allocation16 + $0x1ac] ss:$16 sps:$4 sm:$0xff]  }
 0x527   :  { %v16223_v3 = vpop.eup %16222  ;;  %v4330_v4 = vmul.f32 %v16221_v60, %v16219_v59  ;;  %5760 = vmatprep.subr.bf16.mxu0 %v14960_v52  ;;  %5801 = vmatprep.subr.bf16.mxu1 %v14963_v53  ;;  %v4404_v51 = vld [vmem:[%s17993_s8] sm:$0xf]  ;;  %v15006_v52 = vld [vmem:[#allocation16 + $0x1a0] ss:$16 sps:$4 sm:$0xff]   ;;  %v15009_v53 = vld [vmem:[#allocation16 + $0x1a8] ss:$16 sps:$4 sm:$0xff]  }
 0x528   :  { %v4329_v9 = vmul.f32 %v16223_v3, %v3820_v61  ;;  %v16225_v20 = vpop.eup %16224  ;;  %v4409_v58 = vrot.slane %v4404_v51, %v17050_v54  ;;  %v15014_v59 = vld [vmem:[#allocation16 + $0x1c4] ss:$16 sps:$4 sm:$0xff]   ;;  %v15017_v60 = vld [vmem:[#allocation16 + $0x1cc] ss:$16 sps:$4 sm:$0xff]   ;;  %v15012_v3 = vld [vmem:[#allocation16 + $0x1c0] ss:$16 sps:$4 sm:$0xff]  }
 0x52a   :  { %v4331_v10 = vadd.f32 %v4330_v4, %v4329_v9  ;;  %5761 = vmatpush1.bf16.msra.mxu0 %v14958_v62  ;;  %5802 = vmatpush1.bf16.msra.mxu1 %v14961_v2  ;;  %v15015_v4 = vld [vmem:[#allocation16 + $0x1c8] ss:$16 sps:$4 sm:$0xff]   ;;  %v15020_v9 = vld [vmem:[#allocation16 + $0x1e4] ss:$16 sps:$4 sm:$0xff]  }
 0x52b   :  { %5762 = vmatprep.subr.bf16.mxu0 %v14966_v33  ;;  %5803 = vmatprep.subr.bf16.mxu1 %v14969_v8 }
 0x52c   :  { %16226 = vtanh.f32 %v4331_v10  ;;  %v4336_v63 = vsel %vm2257_vm11, %v4331_v10, %v3820_v61  ;;  %v4413_v61 = vrot.slane %v4404_v51, %v17054_v56  ;;  %v15023_v10 = vld [vmem:[#allocation16 + $0x1ec] ss:$16 sps:$4 sm:$0xff]  }
 0x52d   :  { %4337 = vst [vmem:[#allocation7] sm:$0x3] %v4336_v63 }
 0x52e   :  { %5763 = vmatpush1.bf16.msra.mxu0 %v14964_v42  ;;  %5804 = vmatpush1.bf16.msra.mxu1 %v14967_v7 }
 0x52f   :  { %5764 = vmatprep.subr.bf16.mxu0 %v14972_v12  ;;  %5805 = vmatprep.subr.bf16.mxu1 %v14975_v13 }
 0x532   :  { %5765 = vmatpush1.bf16.msra.mxu0 %v14970_v14  ;;  %5806 = vmatpush1.bf16.msra.mxu1 %v14973_v11 }
 0x533   :  { %5766 = vmatprep.subr.bf16.mxu0 %v14978_v15  ;;  %5807 = vmatprep.subr.bf16.mxu1 %v14981_v16  ;;  %v4421_v15 = vrot.slane %v4404_v51, %v17056_v57  ;;  %v15018_v16 = vld [vmem:[#allocation16 + $0x1e0] ss:$16 sps:$4 sm:$0xff]  }
 0x536   :  { %v16227_v22 = vpop.eup %16226  ;;  %5767 = vmatpush1.bf16.msra.mxu0 %v14976_v17  ;;  %5808 = vmatpush1.bf16.msra.mxu1 %v14979_v18  ;;  %v15021_v17 = vld [vmem:[#allocation16 + $0x1e8] ss:$16 sps:$4 sm:$0xff]   ;;  %v15026_v18 = vld [vmem:[#allocation18 + $0x4] ss:$16 sps:$4 sm:$0xff]  }
 0x537   :  { %v4333_v26 = vmul.f32 %v16227_v22, %v16225_v20  ;;  %5768 = vmatprep.subr.bf16.mxu0 %v14984_v31  ;;  %5809 = vmatprep.subr.bf16.mxu1 %v14987_v19  ;;  %v15029_v31 = vld [vmem:[#allocation18 + $0xc] ss:$16 sps:$4 sm:$0xff]   ;;  %v15024_v20 = vld [vmem:[#allocation18] ss:$16 sps:$4 sm:$0xff]   ;;  %v15027_v22 = vld [vmem:[#allocation18 + $0x8] ss:$16 sps:$4 sm:$0xff]  }
 0x539   :  { %v4334_v30 = vsel %vm2257_vm11, %v4333_v26, %v16596_v29  ;;  %v15035_v26 = vld [vmem:[#allocation18 + $0x2c] ss:$16 sps:$4 sm:$0xff]   ;;  %v15033_v29 = vld [vmem:[#allocation18 + $0x28] ss:$16 sps:$4 sm:$0xff]  }
 0x53a   :  { %4335 = vst [vmem:[#allocation6] sm:$0x3] %v4334_v30  ;;  %5769 = vmatpush1.bf16.msra.mxu0 %v14982_v24  ;;  %5810 = vmatpush1.bf16.msra.mxu1 %v14985_v25  ;;  %v4417_v24 = vrot.slane %v4404_v51, %v17052_v55  ;;  %v15032_v25 = vld [vmem:[#allocation18 + $0x24] ss:$16 sps:$4 sm:$0xff]   ;;  %v15048_v51 = vld [vmem:[#allocation18 + $0x80] ss:$16 sps:$4 sm:$0xff]  }
 0x53b   :  { %5770 = vmatprep.subr.bf16.mxu0 %v14990_v27  ;;  %5811 = vmatprep.subr.bf16.mxu1 %v14993_v28  ;;  %v15030_v28 = vld [vmem:[#allocation18 + $0x20] ss:$16 sps:$4 sm:$0xff]  }
 0x53e   :  { %5771 = vmatpush1.bf16.msra.mxu0 %v14988_v32  ;;  %5812 = vmatpush1.bf16.msra.mxu1 %v14991_v36  ;;  %v15038_v32 = vld [vmem:[#allocation18 + $0x44] ss:$16 sps:$4 sm:$0xff]   ;;  %v15041_v36 = vld [vmem:[#allocation18 + $0x4c] ss:$16 sps:$4 sm:$0xff]  }
 0x53f   :  { %5772 = vmatprep.subr.bf16.mxu0 %v14996_v38  ;;  %5813 = vmatprep.subr.bf16.mxu1 %v14999_v21 }
 0x541   :  { %v4885_v43 = vld [vmem:[#allocation6] sm:$0x3] }
 0x542   :  { %5773 = vmatpush1.bf16.msra.mxu0 %v14994_v39  ;;  %5814 = vmatpush1.bf16.msra.mxu1 %v14997_v37  ;;  %v17339_v46 = vpack.c.bf16 %v4885_v43, %v4885_v43  ;;  %v15036_v37 = vld [vmem:[#allocation18 + $0x40] ss:$16 sps:$4 sm:$0xff]   ;;  %v15047_v43 = vld [vmem:[#allocation18 + $0x6c] ss:$16 sps:$4 sm:$0xff]  }
 0x543   :  { %5774 = vmatprep.subr.bf16.mxu0 %v15002_v40  ;;  %5815 = vmatprep.subr.bf16.mxu1 %v15005_v6  ;;  %v15039_v40 = vld [vmem:[#allocation18 + $0x48] ss:$16 sps:$4 sm:$0xff]   ;;  %v15044_v6 = vld [vmem:[#allocation18 + $0x64] ss:$16 sps:$4 sm:$0xff]  }
 0x544   :  { %5782 = vmatprep.mubr.bf16.mxu0 %v17339_v46  ;;  %5823 = vmatprep.mubr.bf16.mxu1 %v17339_v46 }
 0x546   :  { %5775 = vmatpush1.bf16.msra.mxu0 %v15000_v45  ;;  %5816 = vmatpush1.bf16.msra.mxu1 %v15003_v48  ;;  %v15042_v45 = vld [vmem:[#allocation18 + $0x60] ss:$16 sps:$4 sm:$0xff]   ;;  %v15045_v48 = vld [vmem:[#allocation18 + $0x68] ss:$16 sps:$4 sm:$0xff]  }
 0x547   :  { %5776 = vmatprep.subr.bf16.mxu0 %v15008_v49  ;;  %5817 = vmatprep.subr.bf16.mxu1 %v15011_v50  ;;  %v15050_v49 = vld [vmem:[#allocation18 + $0x84] ss:$16 sps:$4 sm:$0xff]   ;;  %v15053_v50 = vld [vmem:[#allocation18 + $0x8c] ss:$16 sps:$4 sm:$0xff]  }
 0x54a   :  { %5777 = vmatpush1.bf16.msra.mxu0 %v15006_v52  ;;  %5818 = vmatpush1.bf16.msra.mxu1 %v15009_v53  ;;  %v4780_v62 = vpop.f32.mrb[40].mxu0  ;;  %v4821_v2 = vpop.f32.mrb[40].mxu1  ;;  %v15051_v52 = vld [vmem:[#allocation18 + $0x88] ss:$16 sps:$4 sm:$0xff]   ;;  %v15056_v53 = vld [vmem:[#allocation18 + $0xa4] ss:$16 sps:$4 sm:$0xff]  }
 0x54b   :  { %v4781_v5 = vadd.f32 %v4780_v62, %v4409_v58  ;;  %v4782_v33 = vpop.f32.mrb[41].mxu0  ;;  %v4823_v8 = vpop.f32.mrb[41].mxu1  ;;  %5778 = vmatprep.subr.bf16.mxu0 %v15014_v59  ;;  %5819 = vmatprep.subr.bf16.mxu1 %v15017_v60  ;;  %v4822_v30 = vadd.f32 %v4821_v2, %v4417_v24  ;;  %v15059_v58 = vld [vmem:[#allocation18 + $0xac] ss:$16 sps:$4 sm:$0xff]   ;;  %v15054_v2 = vld [vmem:[#allocation18 + $0xa0] ss:$16 sps:$4 sm:$0xff]  }
 0x54c   :  { %v4783_v42 = vadd.f32 %v4782_v33, %v4413_v61  ;;  %v4784_v7 = vpop.f32.mrb[42].mxu0  ;;  %v4825_v12 = vpop.f32.mrb[42].mxu1  ;;  %v4824_v19 = vadd.f32 %v4823_v8, %v4421_v15  ;;  %v4338_v62 = vld [vmem:[#allocation9] sm:$0x3]  ;;  %v15062_v8 = vld [vmem:[#allocation18 + $0xc4] ss:$16 sps:$4 sm:$0xff]  }
 0x54d   :  { %v13341_v13 = vmul.f32 -1.442695, %v4781_v5  ;;  %v4785_v63 = vpop.f32.mrb[43].mxu0  ;;  %v4826_v14 = vpop.f32.mrb[43].mxu1  ;;  %v15060_v7 = vld [vmem:[#allocation18 + $0xc0] ss:$16 sps:$4 sm:$0xff]  }
 0x54e   :  { %v13342_v11 = vmul.f32 -1.442695, %v4783_v42  ;;  %5779 = vmatpush1.bf16.msra.mxu0 %v15012_v3  ;;  %5820 = vmatpush1.bf16.msra.mxu1 %v15015_v4  ;;  %v13343_v27 = vmul.f32 -1.442695, %v4824_v19  ;;  %v15057_v3 = vld [vmem:[#allocation18 + $0xa8] ss:$16 sps:$4 sm:$0xff]  }
 0x54f   :  { %16228 = vpow2.f32 %v13341_v13  ;;  %5780 = vmatprep.subr.bf16.mxu0 %v15020_v9  ;;  %5821 = vmatprep.subr.bf16.mxu1 %v15023_v10  ;;  %v15065_v9 = vld [vmem:[#allocation18 + $0xcc] ss:$16 sps:$4 sm:$0xff]   ;;  %v15063_v12 = vld [vmem:[#allocation18 + $0xc8] ss:$16 sps:$4 sm:$0xff]   ;;  %v15068_v13 = vld [vmem:[#allocation18 + $0xe4] ss:$16 sps:$4 sm:$0xff]  }
 0x550   :  { %16230 = vpow2.f32 %v13342_v11  ;;  %v15071_v63 = vld [vmem:[#allocation18 + $0xec] ss:$16 sps:$4 sm:$0xff]   ;;  %v15066_v11 = vld [vmem:[#allocation18 + $0xe0] ss:$16 sps:$4 sm:$0xff]   ;;  %v15069_v15 = vld [vmem:[#allocation18 + $0xe8] ss:$16 sps:$4 sm:$0xff]  }
 0x551   :  { %16232 = vpow2.f32 %v13343_v27  ;;  %v15080_v19 = vld [vmem:[#allocation18 + $0x124] ss:$16 sps:$4 sm:$0xff]  }
 0x552   :  { %5781 = vmatpush1.bf16.msra.mxu0 %v15018_v16  ;;  %5822 = vmatpush1.bf16.msra.mxu1 %v15021_v17  ;;  %16234 = vtanh.f32 %v4822_v30  ;;  %v15074_v16 = vld [vmem:[#allocation18 + $0x104] ss:$16 sps:$4 sm:$0xff]   ;;  %v15077_v17 = vld [vmem:[#allocation18 + $0x10c] ss:$16 sps:$4 sm:$0xff]  }
 0x553   :  { %6268 = vmatprep.subr.bf16.mxu0 %v15026_v18  ;;  %6309 = vmatprep.subr.bf16.mxu1 %v15029_v31  ;;  %v15072_v18 = vld [vmem:[#allocation18 + $0x100] ss:$16 sps:$4 sm:$0xff]   ;;  %v15075_v31 = vld [vmem:[#allocation18 + $0x108] ss:$16 sps:$4 sm:$0xff]  }
 0x555   :  { %5783 = vmatmul.mubr.bf16.vlgmr.msra.gmra.mrb[48].mxu0 %v17331_v23  ;;  %5824 = vmatmul.mubr.bf16.vlgmr.msra.gmra.mrb[48].mxu1 %v17331_v23 }
 0x556   :  { %6269 = vmatpush1.bf16.msra.mxu0 %v15024_v20  ;;  %6310 = vmatpush1.bf16.msra.mxu1 %v15027_v22  ;;  %v15083_v20 = vld [vmem:[#allocation18 + $0x12c] ss:$16 sps:$4 sm:$0xff]  }
 0x557   :  { %6270 = vmatprep.subr.bf16.mxu0 %v15032_v25  ;;  %6311 = vmatprep.subr.bf16.mxu1 %v15035_v26  ;;  %v15078_v25 = vld [vmem:[#allocation18 + $0x120] ss:$16 sps:$4 sm:$0xff]   ;;  %v15081_v26 = vld [vmem:[#allocation18 + $0x128] ss:$16 sps:$4 sm:$0xff]  }
 0x559   :  { %v16229_v38 = vpop.eup %16228 }
 0x55a   :  { %v16231_v21 = vpop.eup %16230  ;;  %v4831_v39 = vadd.f32 1.0, %v16229_v38  ;;  %6271 = vmatpush1.bf16.msra.mxu0 %v15030_v28  ;;  %6312 = vmatpush1.bf16.msra.mxu1 %v15033_v29  ;;  %v15086_v28 = vld [vmem:[#allocation18 + $0x144] ss:$16 sps:$4 sm:$0xff]   ;;  %v15089_v29 = vld [vmem:[#allocation18 + $0x14c] ss:$16 sps:$4 sm:$0xff]  }
 0x55b   :  { %v4837_v23 = vadd.f32 1.0, %v16231_v21  ;;  %6272 = vmatprep.subr.bf16.mxu0 %v15038_v32  ;;  %6313 = vmatprep.subr.bf16.mxu1 %v15041_v36  ;;  %v16233_v59 = vpop.eup %16232  ;;  %v15084_v38 = vld [vmem:[#allocation18 + $0x140] ss:$16 sps:$4 sm:$0xff]   ;;  %v15087_v21 = vld [vmem:[#allocation18 + $0x148] ss:$16 sps:$4 sm:$0xff]  }
 0x55c   :  { %16236 = vrcp.f32 %v4831_v39  ;;  %v16235_v60 = vpop.eup %16234  ;;  %v4844_v33 = vadd.f32 1.0, %v16233_v59  ;;  %v15092_v39 = vld [vmem:[#allocation18 + $0x164] ss:$16 sps:$4 sm:$0xff]   ;;  %v15113_v59 = vld [vmem:[#allocation18 + $0x1cc] ss:$16 sps:$4 sm:$0xff]  }
 0x55d   :  { %16238 = vrcp.f32 %v4837_v23  ;;  %v15093_v23 = vld [vmem:[#allocation18 + $0x168] ss:$16 sps:$4 sm:$0xff]  }
 0x55e   :  { %6273 = vmatpush1.bf16.msra.mxu0 %v15036_v37  ;;  %6314 = vmatpush1.bf16.msra.mxu1 %v15039_v40  ;;  %16240 = vrcp.f32 %v4844_v33  ;;  %v15095_v37 = vld [vmem:[#allocation18 + $0x16c] ss:$16 sps:$4 sm:$0xff]  }
 0x55f   :  { %6274 = vmatprep.subr.bf16.mxu0 %v15044_v6  ;;  %6315 = vmatprep.subr.bf16.mxu1 %v15047_v43  ;;  %v15101_v6 = vld [vmem:[#allocation18 + $0x18c] ss:$16 sps:$4 sm:$0xff]  }
 0x560   :  { %v15125_v33 = vld [vmem:[#allocation15 + $0xc] ss:$16 sps:$4 sm:$0xff]  }
 0x562   :  { %6275 = vmatpush1.bf16.msra.mxu0 %v15042_v45  ;;  %6316 = vmatpush1.bf16.msra.mxu1 %v15045_v48  ;;  %v15096_v45 = vld [vmem:[#allocation18 + $0x180] ss:$16 sps:$4 sm:$0xff]  }
 0x563   :  { %6276 = vmatprep.subr.bf16.mxu0 %v15050_v49  ;;  %6317 = vmatprep.subr.bf16.mxu1 %v15053_v50  ;;  %v15099_v49 = vld [vmem:[#allocation18 + $0x188] ss:$16 sps:$4 sm:$0xff]   ;;  %v15104_v50 = vld [vmem:[#allocation18 + $0x1a4] ss:$16 sps:$4 sm:$0xff]  }
 0x566   :  { %v16237_v61 = vpop.eup %16236  ;;  %6277 = vmatpush1.bf16.msra.mxu0 %v15048_v51  ;;  %6318 = vmatpush1.bf16.msra.mxu1 %v15051_v52  ;;  %v15107_v51 = vld [vmem:[#allocation18 + $0x1ac] ss:$16 sps:$4 sm:$0xff]   ;;  %v15102_v52 = vld [vmem:[#allocation18 + $0x1a0] ss:$16 sps:$4 sm:$0xff]  }
 0x567   :  { %v16239_v4 = vpop.eup %16238  ;;  %v4848_v5 = vmul.f32 %v16237_v61, %v16235_v60  ;;  %6278 = vmatprep.subr.bf16.mxu0 %v15056_v53  ;;  %6319 = vmatprep.subr.bf16.mxu1 %v15059_v58  ;;  %v15105_v53 = vld [vmem:[#allocation18 + $0x1a8] ss:$16 sps:$4 sm:$0xff]   ;;  %v15110_v58 = vld [vmem:[#allocation18 + $0x1c4] ss:$16 sps:$4 sm:$0xff]   ;;  %v15108_v60 = vld [vmem:[#allocation18 + $0x1c0] ss:$16 sps:$4 sm:$0xff]  }
 0x568   :  { %v4847_v10 = vmul.f32 %v16239_v4, %v4338_v62  ;;  %v16241_v22 = vpop.eup %16240  ;;  %v15111_v61 = vld [vmem:[#allocation18 + $0x1c8] ss:$16 sps:$4 sm:$0xff]  }
 0x569   :  { %v15117_v4 = vld [vmem:[#allocation18 + $0x1e8] ss:$16 sps:$4 sm:$0xff]  }
 0x56a   :  { %v4849_v42 = vadd.f32 %v4848_v5, %v4847_v10  ;;  %6279 = vmatpush1.bf16.msra.mxu0 %v15054_v2  ;;  %6320 = vmatpush1.bf16.msra.mxu1 %v15057_v3  ;;  %v15119_v2 = vld [vmem:[#allocation18 + $0x1ec] ss:$16 sps:$4 sm:$0xff]   ;;  %v15114_v3 = vld [vmem:[#allocation18 + $0x1e0] ss:$16 sps:$4 sm:$0xff]   ;;  %v15122_v5 = vld [vmem:[#allocation15 + $0x4] ss:$16 sps:$4 sm:$0xff]  }
 0x56b   :  { %6280 = vmatprep.subr.bf16.mxu0 %v15062_v8  ;;  %6321 = vmatprep.subr.bf16.mxu1 %v15065_v9  ;;  %v15120_v8 = vld [vmem:[#allocation15] ss:$16 sps:$4 sm:$0xff]   ;;  %v15123_v9 = vld [vmem:[#allocation15 + $0x8] ss:$16 sps:$4 sm:$0xff]   ;;  %v15128_v10 = vld [vmem:[#allocation15 + $0x24] ss:$16 sps:$4 sm:$0xff]  }
 0x56c   :  { %16242 = vtanh.f32 %v4849_v42  ;;  %v4854_v14 = vsel %vm1281_vm6, %v4849_v42, %v4338_v62  ;;  %v15116_v62 = vld [vmem:[#allocation18 + $0x1e4] ss:$16 sps:$4 sm:$0xff]   ;;  %v15131_v42 = vld [vmem:[#allocation15 + $0x2c] ss:$16 sps:$4 sm:$0xff]  }
 0x56d   :  { %4855 = vst [vmem:[#allocation9] sm:$0x3] %v4854_v14  ;;  %v15135_v14 = vld [vmem:[#allocation15 + $0x48] ss:$16 sps:$4 sm:$0xff]  }
 0x56e   :  { %6281 = vmatpush1.bf16.msra.mxu0 %v15060_v7  ;;  %6322 = vmatpush1.bf16.msra.mxu1 %v15063_v12  ;;  %v15126_v7 = vld [vmem:[#allocation15 + $0x20] ss:$16 sps:$4 sm:$0xff]   ;;  %v15129_v12 = vld [vmem:[#allocation15 + $0x28] ss:$16 sps:$4 sm:$0xff]  }
 0x56f   :  { %6282 = vmatprep.subr.bf16.mxu0 %v15068_v13  ;;  %6323 = vmatprep.subr.bf16.mxu1 %v15071_v63  ;;  %v15134_v13 = vld [vmem:[#allocation15 + $0x44] ss:$16 sps:$4 sm:$0xff]   ;;  %v15132_v63 = vld [vmem:[#allocation15 + $0x40] ss:$16 sps:$4 sm:$0xff]  }
 0x572   :  { %6283 = vmatpush1.bf16.msra.mxu0 %v15066_v11  ;;  %6324 = vmatpush1.bf16.msra.mxu1 %v15069_v15  ;;  %v15140_v11 = vld [vmem:[#allocation15 + $0x64] ss:$16 sps:$4 sm:$0xff]   ;;  %v15143_v15 = vld [vmem:[#allocation15 + $0x6c] ss:$16 sps:$4 sm:$0xff]  }
 0x573   :  { %6284 = vmatprep.subr.bf16.mxu0 %v15074_v16  ;;  %6325 = vmatprep.subr.bf16.mxu1 %v15077_v17  ;;  %v15138_v16 = vld [vmem:[#allocation15 + $0x60] ss:$16 sps:$4 sm:$0xff]   ;;  %v15141_v17 = vld [vmem:[#allocation15 + $0x68] ss:$16 sps:$4 sm:$0xff]  }
 0x576   :  { %v16243_v24 = vpop.eup %16242  ;;  %6285 = vmatpush1.bf16.msra.mxu0 %v15072_v18  ;;  %6326 = vmatpush1.bf16.msra.mxu1 %v15075_v31  ;;  %v15146_v18 = vld [vmem:[#allocation15 + $0x84] ss:$16 sps:$4 sm:$0xff]   ;;  %v15149_v31 = vld [vmem:[#allocation15 + $0x8c] ss:$16 sps:$4 sm:$0xff]  }
 0x577   :  { %v4851_v27 = vmul.f32 %v16243_v24, %v16241_v22  ;;  %6286 = vmatprep.subr.bf16.mxu0 %v15080_v19  ;;  %6327 = vmatprep.subr.bf16.mxu1 %v15083_v20  ;;  %v15144_v19 = vld [vmem:[#allocation15 + $0x80] ss:$16 sps:$4 sm:$0xff]   ;;  %v15147_v20 = vld [vmem:[#allocation15 + $0x88] ss:$16 sps:$4 sm:$0xff]   ;;  %v15152_v22 = vld [vmem:[#allocation15 + $0xa4] ss:$16 sps:$4 sm:$0xff]  }
 0x578   :  { %v15155_v24 = vld [vmem:[#allocation15 + $0xac] ss:$16 sps:$4 sm:$0xff]  }
 0x579   :  { %v4852_v30 = vsel %vm1281_vm6, %v4851_v27, %v17298_v41  ;;  %v4856_v32 = vsel %vm1281_vm6, %v4851_v27, 0.0  ;;  %v15090_v41 = vld [vmem:[#allocation18 + $0x160] ss:$16 sps:$4 sm:$0xff]   ;;  %v15158_v27 = vld [vmem:[#allocation15 + $0xc4] ss:$16 sps:$4 sm:$0xff]  }
 0x57a   :  { %4853 = vst [vmem:[#allocation8] sm:$0x3] %v4852_v30  ;;  %v4864_v36 = vrot.slane %v4856_v32, %v17069_v34  ;;  %6287 = vmatpush1.bf16.msra.mxu0 %v15078_v25  ;;  %6328 = vmatpush1.bf16.msra.mxu1 %v15081_v26  ;;  %v15150_v25 = vld [vmem:[#allocation15 + $0xa0] ss:$16 sps:$4 sm:$0xff]   ;;  %v15153_v26 = vld [vmem:[#allocation15 + $0xa8] ss:$16 sps:$4 sm:$0xff]  }
 0x57b   :  { %6288 = vmatprep.subr.bf16.mxu0 %v15086_v28  ;;  %6329 = vmatprep.subr.bf16.mxu1 %v15089_v29  ;;  %v15161_v28 = vld [vmem:[#allocation15 + $0xcc] ss:$16 sps:$4 sm:$0xff]   ;;  %v15156_v29 = vld [vmem:[#allocation15 + $0xc0] ss:$16 sps:$4 sm:$0xff]   ;;  %v15159_v30 = vld [vmem:[#allocation15 + $0xc8] ss:$16 sps:$4 sm:$0xff]  }
 0x57c   :  { %v4865_v40 = vcombine.high %v4864_v36, %v4864_v36  ;;  %13344 = vst.sshfl [vmem:[#allocation3 + $0x1] sm:$0x1 pattern:$0x73625140] %v4864_v36  ;;  %v15164_v32 = vld [vmem:[#allocation15 + $0xe4] ss:$16 sps:$4 sm:$0xff]  }
 0x57d   :  { %v15167_v36 = vld [vmem:[#allocation15 + $0xec] ss:$16 sps:$4 sm:$0xff]  }
 0x57e   :  { %13345 = vst.sshfl [vmem:[#allocation3 + $0x9] sm:$0x1 pattern:$0x73625140] %v4865_v40  ;;  %6289 = vmatpush1.bf16.msra.mxu0 %v15084_v38  ;;  %6330 = vmatpush1.bf16.msra.mxu1 %v15087_v21  ;;  %v15162_v38 = vld [vmem:[#allocation15 + $0xe0] ss:$16 sps:$4 sm:$0xff]  }
 0x57f   :  { %6290 = vmatprep.subr.bf16.mxu0 %v15092_v39  ;;  %6331 = vmatprep.subr.bf16.mxu1 %v15095_v37  ;;  %v15165_v21 = vld [vmem:[#allocation15 + $0xe8] ss:$16 sps:$4 sm:$0xff]   ;;  %v15170_v39 = vld [vmem:[#allocation16 + $0x4] ss:$16 sps:$4 sm:$0xff]   ;;  %v15173_v37 = vld [vmem:[#allocation16 + $0xc] ss:$16 sps:$4 sm:$0xff]  }
 0x581   :  { %v17360_v43 = vld [vmem:[#allocation8] sm:$0x3] }
 0x582   :  { %6291 = vmatpush1.bf16.msra.mxu0 %v15090_v41  ;;  %6332 = vmatpush1.bf16.msra.mxu1 %v15093_v23  ;;  %v5861_v48 = vpack.c.bf16 %v17360_v43, %v17360_v43 }
 0x583   :  { %6292 = vmatprep.subr.bf16.mxu0 %v15098_v35  ;;  %6333 = vmatprep.subr.bf16.mxu1 %v15101_v6 }
 0x584   :  { %6300 = vmatprep.mubr.bf16.mxu0 %v5861_v48  ;;  %6341 = vmatprep.mubr.bf16.mxu1 %v5861_v48 }
 0x586   :  { %6293 = vmatpush1.bf16.msra.mxu0 %v15096_v45  ;;  %6334 = vmatpush1.bf16.msra.mxu1 %v15099_v49 }
 0x587   :  { %6294 = vmatprep.subr.bf16.mxu0 %v15104_v50  ;;  %6335 = vmatprep.subr.bf16.mxu1 %v15107_v51 }
 0x58a   :  { %6295 = vmatpush1.bf16.msra.mxu0 %v15102_v52  ;;  %6336 = vmatpush1.bf16.msra.mxu1 %v15105_v53 }
 0x58b   :  { %6296 = vmatprep.subr.bf16.mxu0 %v15110_v58  ;;  %6337 = vmatprep.subr.bf16.mxu1 %v15113_v59 }
 0x58e   :  { %6297 = vmatpush1.bf16.msra.mxu0 %v15108_v60  ;;  %6338 = vmatpush1.bf16.msra.mxu1 %v15111_v61 }
 0x58f   :  { %6298 = vmatprep.subr.bf16.mxu0 %v15116_v62  ;;  %6339 = vmatprep.subr.bf16.mxu1 %v15119_v2  ;;  %v4889_v62 = vld [vmem:[#allocation2 + $0x4] ss:$8 sm:$0xf] }
 0x590   :  { %v4891_v2 = vld [vmem:[#allocation2 + $0x24] ss:$8 sm:$0xf] }
 0x592   :  { %6299 = vmatpush1.bf16.msra.mxu0 %v15114_v3  ;;  %6340 = vmatpush1.bf16.msra.mxu1 %v15117_v4 }
 0x593   :  { %6607 = vmatprep.subr.bf16.mxu0 %v15122_v5  ;;  %6648 = vmatprep.subr.bf16.mxu1 %v15125_v33 }
 0x595   :  { %6301 = vmatmul.mubr.bf16.vlgmr.msra.gmra.mrb[52].mxu0 %v17339_v46  ;;  %6342 = vmatmul.mubr.bf16.vlgmr.msra.gmra.mrb[52].mxu1 %v17339_v46  ;;  %v15137_v46 = vld [vmem:[#allocation15 + $0x4c] ss:$16 sps:$4 sm:$0xff]  }
 0x596   :  { %6608 = vmatpush1.bf16.msra.mxu0 %v15120_v8  ;;  %6649 = vmatpush1.bf16.msra.mxu1 %v15123_v9 }
 0x597   :  { %6639 = vmatprep.mubr.bf16.mxu0 %v16780_v0  ;;  %6680 = vmatprep.mubr.bf16.mxu1 %v16780_v0 }
 0x598   :  { %6609 = vmatprep.subr.bf16.mxu0 %v15128_v10  ;;  %6650 = vmatprep.subr.bf16.mxu1 %v15131_v42 }
 0x59a   :  { %6610 = vmatpush1.bf16.msra.mxu0 %v15126_v7  ;;  %6651 = vmatpush1.bf16.msra.mxu1 %v15129_v12 }
 0x59b   :  { %6611 = vmatprep.subr.bf16.mxu0 %v15134_v13  ;;  %6652 = vmatprep.subr.bf16.mxu1 %v15137_v46 }
 0x59e   :  { %6612 = vmatpush1.bf16.msra.mxu0 %v15132_v63  ;;  %6653 = vmatpush1.bf16.msra.mxu1 %v15135_v14 }
 0x59f   :  { %6613 = vmatprep.subr.bf16.mxu0 %v15140_v11  ;;  %6654 = vmatprep.subr.bf16.mxu1 %v15143_v15 }
 0x5a2   :  { %6614 = vmatpush1.bf16.msra.mxu0 %v15138_v16  ;;  %6655 = vmatpush1.bf16.msra.mxu1 %v15141_v17 }
 0x5a3   :  { %6615 = vmatprep.subr.bf16.mxu0 %v15146_v18  ;;  %6656 = vmatprep.subr.bf16.mxu1 %v15149_v31 }
 0x5a6   :  { %6616 = vmatpush1.bf16.msra.mxu0 %v15144_v19  ;;  %6657 = vmatpush1.bf16.msra.mxu1 %v15147_v20  ;;  %v4887_v20 = vld [vmem:[#allocation5] sm:$0x3] }
 0x5a7   :  { %6617 = vmatprep.subr.bf16.mxu0 %v15152_v22  ;;  %6658 = vmatprep.subr.bf16.mxu1 %v15155_v24  ;;  %v5266_v24 = vrot.slane %v4887_v20, %v17069_v34 }
 0x5aa   :  { %6618 = vmatpush1.bf16.msra.mxu0 %v15150_v25  ;;  %6659 = vmatpush1.bf16.msra.mxu1 %v15153_v26 }
 0x5ab   :  { %6619 = vmatprep.subr.bf16.mxu0 %v15158_v27  ;;  %6660 = vmatprep.subr.bf16.mxu1 %v15161_v28  ;;  %v5267_v28 = vcombine.high %v5266_v24, %v5266_v24 }
 0x5ae   :  { %6620 = vmatpush1.bf16.msra.mxu0 %v15156_v29  ;;  %6661 = vmatpush1.bf16.msra.mxu1 %v15159_v30 }
 0x5af   :  { %6621 = vmatprep.subr.bf16.mxu0 %v15164_v32  ;;  %6662 = vmatprep.subr.bf16.mxu1 %v15167_v36 }
 0x5b2   :  { %6622 = vmatpush1.bf16.msra.mxu0 %v15162_v38  ;;  %6663 = vmatpush1.bf16.msra.mxu1 %v15165_v21  ;;  %v5274_v38 = vrot.slane %v5266_v24, %v17069_v34  ;;  %v15171_v24 = vld [vmem:[#allocation16 + $0x8] ss:$16 sps:$4 sm:$0xff]  }
 0x5b3   :  { %7272 = vmatprep.subr.bf16.mxu0 %v15170_v39  ;;  %7313 = vmatprep.subr.bf16.mxu1 %v15173_v37  ;;  %v5281_v37 = vrot.slane %v5267_v28, %v17069_v34  ;;  %v15176_v28 = vld [vmem:[#allocation16 + $0x24] ss:$16 sps:$4 sm:$0xff]  }
 0x5e8   :  { %v5119_v40 = vpop.f32.mrb[44].mxu0  ;;  %v5160_v41 = vpop.f32.mrb[44].mxu1 }
 0x5e9   :  { %v5121_v23 = vpop.f32.mrb[45].mxu0  ;;  %v5162_v35 = vpop.f32.mrb[45].mxu1 }
 0x5ea   :  { %v5171_v6 = vcombine.low %v5119_v40, %v5121_v23  ;;  %v5172_v45 = vcombine.low %v5160_v41, %v5162_v35  ;;  %v5123_v48 = vpop.f32.mrb[46].mxu0  ;;  %v5164_v49 = vpop.f32.mrb[46].mxu1 }
 0x5eb   :  { %v5124_v50 = vpop.f32.mrb[47].mxu0  ;;  %v5165_v51 = vpop.f32.mrb[47].mxu1 }
 0x5ec   :  { %v5179_v52 = vrot.slane %v5171_v6, %v17069_v34  ;;  %v5186_v53 = vrot.slane %v5172_v45, %v17069_v34  ;;  %v17376_v51 = vpop.permute.xlu0 %5299 }
 0x5ed   :  { %vm5301_vm13 = vcmp.eq.s32.totalorder %v17376_v51, 1  ;;  %v15818_v51 = vld [vmem:[#allocation18 + $0x184] ss:$16 sps:$4 sm:$0xff]  }
 0x5ee   :  { %v5187_v58 = vcombine.low %v5179_v52, %v5186_v53  ;;  %v5188_v59 = vcombine.high %v5179_v52, %v5186_v53 }
 0x5f0   :  { %v5195_v60 = vrot.slane %v5187_v58, %v17069_v34  ;;  %v5202_v61 = vrot.slane %v5188_v59, %v17069_v34 }
 0x5f2   :  { %v5205_v3 = vadd.f32 %v5195_v60, %v4889_v62  ;;  %v5206_v4 = vadd.f32 %v5202_v61, %v4891_v2 }
 0x5f4   :  { %v13378_v5 = vmul.f32 -1.442695, %v5205_v3  ;;  %v13379_v33 = vmul.f32 -1.442695, %v5206_v4  ;;  %v5221_v8 = vrot.slane %v5205_v3, 1  ;;  %v5222_v9 = vrot.slane %v5206_v4, 1 }
 0x5f5   :  { %v5243_v7 = vrot.slane %v5205_v3, 3  ;;  %v5244_v12 = vrot.slane %v5206_v4, 3  ;;  %v5237_v13 = vrot.slane %v5205_v3, 2  ;;  %v5238_v46 = vrot.slane %v5206_v4, 2  ;;  %v5408_v4 = vld [vmem:[%s17991_s6] sm:$0xf] }
 0x5f6   :  { %16244 = vpow2.f32 %v13378_v5  ;;  %v13380_v10 = vmul.f32 -1.442695, %v5221_v8  ;;  %v13381_v42 = vmul.f32 -1.442695, %v5222_v9  ;;  %v5417_v9 = vrot.slane %v5408_v4, %v17054_v56 }
 0x5f7   :  { %16246 = vpow2.f32 %v13379_v33  ;;  %v13382_v63 = vmul.f32 -1.442695, %v5243_v7  ;;  %v13383_v14 = vmul.f32 -1.442695, %v5244_v12  ;;  %v5413_v33 = vrot.slane %v5408_v4, %v17050_v54 }
 0x5f8   :  { %16248 = vpow2.f32 %v13380_v10  ;;  %v16597_v10 = vld [vmem:[#allocation4] sm:$0x3] }
 0x5f9   :  { %16250 = vpow2.f32 %v13381_v42 }
 0x5fa   :  { %16252 = vtanh.f32 %v5237_v13 }
 0x5fb   :  { %16254 = vtanh.f32 %v5238_v46 }
 0x5fc   :  { %16256 = vpow2.f32 %v13382_v63 }
 0x5fd   :  { %16258 = vpow2.f32 %v13383_v14 }
 0x600   :  { %v16245_v11 = vpop.eup %16244 }
 0x601   :  { %v16247_v15 = vpop.eup %16246  ;;  %v5213_v16 = vadd.f32 1.0, %v16245_v11 }
 0x602   :  { %v16249_v17 = vpop.eup %16248  ;;  %v5214_v18 = vadd.f32 1.0, %v16247_v15 }
 0x603   :  { %v16251_v31 = vpop.eup %16250  ;;  %16260 = vrcp.f32 %v5213_v16  ;;  %v5231_v19 = vadd.f32 1.0, %v16249_v17 }
 0x604   :  { %16262 = vrcp.f32 %v5214_v18  ;;  %v5232_v22 = vadd.f32 1.0, %v16251_v31  ;;  %v16253_v25 = vpop.eup %16252 }
 0x605   :  { %16264 = vrcp.f32 %v5231_v19  ;;  %v16255_v26 = vpop.eup %16254  ;;  %v5425_v19 = vrot.slane %v5408_v4, %v17056_v57 }
 0x606   :  { %16266 = vrcp.f32 %v5232_v22  ;;  %v16257_v27 = vpop.eup %16256  ;;  %v15168_v22 = vld [vmem:[#allocation16] ss:$16 sps:$4 sm:$0xff]  }
 0x607   :  { %v16259_v29 = vpop.eup %16258  ;;  %v5253_v36 = vadd.f32 1.0, %v16257_v27 }
 0x608   :  { %v5254_v39 = vadd.f32 1.0, %v16259_v29  ;;  %v15179_v29 = vld [vmem:[#allocation16 + $0x2c] ss:$16 sps:$4 sm:$0xff]  }
 0x609   :  { %16268 = vrcp.f32 %v5253_v36  ;;  %v15177_v36 = vld [vmem:[#allocation16 + $0x28] ss:$16 sps:$4 sm:$0xff]  }
 0x60a   :  { %16270 = vrcp.f32 %v5254_v39  ;;  %v15185_v39 = vld [vmem:[#allocation16 + $0x4c] ss:$16 sps:$4 sm:$0xff]  }
 0x60d   :  { %v16261_v30 = vpop.eup %16260 }
 0x60e   :  { %v16263_v32 = vpop.eup %16262  ;;  %v5286_v23 = vmul.f32 %v16261_v30, %v16253_v25 }
 0x60f   :  { %v16265_v21 = vpop.eup %16264  ;;  %v5287_v6 = vmul.f32 %v16263_v32, %v16255_v26  ;;  %v5421_v26 = vrot.slane %v5408_v4, %v17052_v55  ;;  %v15174_v32 = vld [vmem:[#allocation16 + $0x20] ss:$16 sps:$4 sm:$0xff]   ;;  %v5342_v4 = vld [vmem:[#allocation7] sm:$0x3] }
 0x610   :  { %v16267_v40 = vpop.eup %16266  ;;  %v5284_v41 = vmul.f32 %v16265_v21, %v5274_v38  ;;  %v15182_v21 = vld [vmem:[#allocation16 + $0x44] ss:$16 sps:$4 sm:$0xff]  }
 0x611   :  { %v5285_v35 = vmul.f32 %v16267_v40, %v5281_v37 }
 0x612   :  { %v5288_v45 = vadd.f32 %v5286_v23, %v5284_v41  ;;  %v15180_v23 = vld [vmem:[#allocation16 + $0x40] ss:$16 sps:$4 sm:$0xff]  }
 0x613   :  { %v5289_v48 = vadd.f32 %v5287_v6, %v5285_v35  ;;  %v16269_v58 = vpop.eup %16268  ;;  %v15183_v35 = vld [vmem:[#allocation16 + $0x48] ss:$16 sps:$4 sm:$0xff]  }
 0x614   :  { %16272 = vtanh.f32 %v5288_v45  ;;  %v16271_v59 = vpop.eup %16270 }
 0x615   :  { %16274 = vtanh.f32 %v5289_v48  ;;  %v5324_v49 = vcombine.low %v5288_v45, %v5289_v48  ;;  %v15188_v45 = vld [vmem:[#allocation16 + $0x64] ss:$16 sps:$4 sm:$0xff]   ;;  %v15191_v48 = vld [vmem:[#allocation16 + $0x6c] ss:$16 sps:$4 sm:$0xff]  }
 0x617   :  { %v5331_v50 = vrot.slane %v5324_v49, %v17069_v34  ;;  %v15186_v49 = vld [vmem:[#allocation16 + $0x60] ss:$16 sps:$4 sm:$0xff]  }
 0x619   :  { %v5338_v52 = vrot.slane %v5331_v50, %v17069_v34  ;;  %v15189_v50 = vld [vmem:[#allocation16 + $0x68] ss:$16 sps:$4 sm:$0xff]  }
 0x61b   :  { %v5340_v53 = vsel %vm5301_vm13, %v5338_v52, %v4887_v20  ;;  %v15194_v52 = vld [vmem:[#allocation16 + $0x84] ss:$16 sps:$4 sm:$0xff]  }
 0x61c   :  { %5341 = vst [vmem:[#allocation5] sm:$0x3] %v5340_v53  ;;  %v15197_v53 = vld [vmem:[#allocation16 + $0x8c] ss:$16 sps:$4 sm:$0xff]  }
 0x61e   :  { %v16273_v60 = vpop.eup %16272 }
 0x61f   :  { %v16275_v61 = vpop.eup %16274  ;;  %v5292_v62 = vmul.f32 %v16273_v60, %v16269_v58  ;;  %v15192_v58 = vld [vmem:[#allocation16 + $0x80] ss:$16 sps:$4 sm:$0xff]   ;;  %v15200_v60 = vld [vmem:[#allocation16 + $0xa4] ss:$16 sps:$4 sm:$0xff]  }
 0x620   :  { %v5293_v2 = vmul.f32 %v16275_v61, %v16271_v59  ;;  %v15195_v59 = vld [vmem:[#allocation16 + $0x88] ss:$16 sps:$4 sm:$0xff]   ;;  %v15203_v61 = vld [vmem:[#allocation16 + $0xac] ss:$16 sps:$4 sm:$0xff]  }
 0x622   :  { %v5304_v3 = vcombine.low %v5292_v62, %v5293_v2 }
 0x624   :  { %v5311_v5 = vrot.slane %v5304_v3, %v17069_v34 }
 0x626   :  { %v5318_v8 = vrot.slane %v5311_v5, %v17069_v34  ;;  %v15198_v5 = vld [vmem:[#allocation16 + $0xa0] ss:$16 sps:$4 sm:$0xff]  }
 0x628   :  { %v5320_v42 = vsel %vm5301_vm13, %v5318_v8, %v16597_v10  ;;  %v5784_v7 = vpop.f32.mrb[48].mxu0  ;;  %v5825_v12 = vpop.f32.mrb[48].mxu1 }
 0x629   :  { %5321 = vst [vmem:[#allocation4] sm:$0x3] %v5320_v42  ;;  %v5785_v13 = vadd.f32 %v5784_v7, %v5413_v33  ;;  %v5786_v46 = vpop.f32.mrb[49].mxu0  ;;  %v5827_v63 = vpop.f32.mrb[49].mxu1  ;;  %v5826_v38 = vadd.f32 %v5825_v12, %v5421_v26  ;;  %v15201_v33 = vld [vmem:[#allocation16 + $0xa8] ss:$16 sps:$4 sm:$0xff]  }
 0x62a   :  { %v5787_v14 = vadd.f32 %v5786_v46, %v5417_v9  ;;  %v5788_v11 = vpop.f32.mrb[50].mxu0  ;;  %v5829_v15 = vpop.f32.mrb[50].mxu1  ;;  %v5828_v20 = vadd.f32 %v5827_v63, %v5425_v19  ;;  %v15206_v42 = vld [vmem:[#allocation16 + $0xc4] ss:$16 sps:$4 sm:$0xff]   ;;  %v15209_v7 = vld [vmem:[#allocation16 + $0xcc] ss:$16 sps:$4 sm:$0xff]  }
 0x62b   :  { %v13449_v16 = vmul.f32 -1.442695, %v5785_v13  ;;  %v5789_v17 = vpop.f32.mrb[51].mxu0  ;;  %v5830_v18 = vpop.f32.mrb[51].mxu1  ;;  %v15204_v46 = vld [vmem:[#allocation16 + $0xc0] ss:$16 sps:$4 sm:$0xff]  }
 0x62c   :  { %v13450_v31 = vmul.f32 -1.442695, %v5787_v14  ;;  %v13451_v30 = vmul.f32 -1.442695, %v5828_v20  ;;  %v15207_v63 = vld [vmem:[#allocation16 + $0xc8] ss:$16 sps:$4 sm:$0xff]  }
 0x62d   :  { %16276 = vpow2.f32 %v13449_v16  ;;  %v15212_v14 = vld [vmem:[#allocation16 + $0xe4] ss:$16 sps:$4 sm:$0xff]   ;;  %v15215_v11 = vld [vmem:[#allocation16 + $0xec] ss:$16 sps:$4 sm:$0xff]   ;;  %v15210_v16 = vld [vmem:[#allocation16 + $0xe0] ss:$16 sps:$4 sm:$0xff]  }
 0x62e   :  { %16278 = vpow2.f32 %v13450_v31  ;;  %v15213_v17 = vld [vmem:[#allocation16 + $0xe8] ss:$16 sps:$4 sm:$0xff]   ;;  %v15218_v18 = vld [vmem:[#allocation16 + $0x104] ss:$16 sps:$4 sm:$0xff]   ;;  %v15221_v31 = vld [vmem:[#allocation16 + $0x10c] ss:$16 sps:$4 sm:$0xff]  }
 0x62f   :  { %16280 = vpow2.f32 %v13451_v30  ;;  %v15216_v19 = vld [vmem:[#allocation16 + $0x100] ss:$16 sps:$4 sm:$0xff]   ;;  %v15219_v20 = vld [vmem:[#allocation16 + $0x108] ss:$16 sps:$4 sm:$0xff]  }
 0x630   :  { %v6406_v25 = vld [vmem:[#allocation4] sm:$0x3]  ;;  %16282 = vtanh.f32 %v5826_v38  ;;  %v16598_v38 = vld [vmem:[#allocation6] sm:$0x3] }
 0x631   :  { %v17393_v27 = vpack.c.bf16 %v6406_v25, %v6406_v25 }
 0x633   :  { %6640 = vmatmul.mubr.bf16.vlgmr.msra.gmra.mrb[56].mxu0 %v17393_v27  ;;  %6681 = vmatmul.mubr.bf16.vlgmr.msra.gmra.mrb[56].mxu1 %v17393_v27 }
 0x634   :  { %7273 = vmatpush1.bf16.msra.mxu0 %v15168_v22  ;;  %7314 = vmatpush1.bf16.msra.mxu1 %v15171_v24  ;;  %v15224_v22 = vld [vmem:[#allocation16 + $0x124] ss:$16 sps:$4 sm:$0xff]   ;;  %v15227_v24 = vld [vmem:[#allocation16 + $0x12c] ss:$16 sps:$4 sm:$0xff]  }
 0x635   :  { %7274 = vmatprep.subr.bf16.mxu0 %v15176_v28  ;;  %7315 = vmatprep.subr.bf16.mxu1 %v15179_v29  ;;  %v15222_v28 = vld [vmem:[#allocation16 + $0x120] ss:$16 sps:$4 sm:$0xff]   ;;  %v15225_v29 = vld [vmem:[#allocation16 + $0x128] ss:$16 sps:$4 sm:$0xff]  }
 0x637   :  { %v16277_v37 = vpop.eup %16276 }
 0x638   :  { %v16279_v40 = vpop.eup %16278  ;;  %v5835_v41 = vadd.f32 1.0, %v16277_v37  ;;  %7275 = vmatpush1.bf16.msra.mxu0 %v15174_v32  ;;  %7316 = vmatpush1.bf16.msra.mxu1 %v15177_v36  ;;  %v15230_v32 = vld [vmem:[#allocation16 + $0x144] ss:$16 sps:$4 sm:$0xff]   ;;  %v15233_v36 = vld [vmem:[#allocation16 + $0x14c] ss:$16 sps:$4 sm:$0xff]  }
 0x639   :  { %v5841_v6 = vadd.f32 1.0, %v16279_v40  ;;  %7276 = vmatprep.subr.bf16.mxu0 %v15182_v21  ;;  %7317 = vmatprep.subr.bf16.mxu1 %v15185_v39  ;;  %v16281_v62 = vpop.eup %16280  ;;  %v15228_v39 = vld [vmem:[#allocation16 + $0x140] ss:$16 sps:$4 sm:$0xff]   ;;  %v15231_v37 = vld [vmem:[#allocation16 + $0x148] ss:$16 sps:$4 sm:$0xff]  }
 0x63a   :  { %16284 = vrcp.f32 %v5835_v41  ;;  %v16283_v2 = vpop.eup %16282  ;;  %v5848_v10 = vadd.f32 1.0, %v16281_v62  ;;  %v15236_v40 = vld [vmem:[#allocation16 + $0x164] ss:$16 sps:$4 sm:$0xff]   ;;  %v15239_v41 = vld [vmem:[#allocation16 + $0x16c] ss:$16 sps:$4 sm:$0xff]  }
 0x63b   :  { %16286 = vrcp.f32 %v5841_v6  ;;  %v15242_v6 = vld [vmem:[#allocation16 + $0x184] ss:$16 sps:$4 sm:$0xff]  }
 0x63c   :  { %7277 = vmatpush1.bf16.msra.mxu0 %v15180_v23  ;;  %7318 = vmatpush1.bf16.msra.mxu1 %v15183_v35  ;;  %16288 = vrcp.f32 %v5848_v10  ;;  %v15234_v23 = vld [vmem:[#allocation16 + $0x160] ss:$16 sps:$4 sm:$0xff]   ;;  %v15237_v35 = vld [vmem:[#allocation16 + $0x168] ss:$16 sps:$4 sm:$0xff]  }
 0x63d   :  { %7278 = vmatprep.subr.bf16.mxu0 %v15188_v45  ;;  %7319 = vmatprep.subr.bf16.mxu1 %v15191_v48  ;;  %v15245_v45 = vld [vmem:[#allocation16 + $0x18c] ss:$16 sps:$4 sm:$0xff]  }
 0x640   :  { %7279 = vmatpush1.bf16.msra.mxu0 %v15186_v49  ;;  %7320 = vmatpush1.bf16.msra.mxu1 %v15189_v50  ;;  %v15240_v49 = vld [vmem:[#allocation16 + $0x180] ss:$16 sps:$4 sm:$0xff]  }
 0x641   :  { %7280 = vmatprep.subr.bf16.mxu0 %v15194_v52  ;;  %7321 = vmatprep.subr.bf16.mxu1 %v15197_v53  ;;  %v15243_v52 = vld [vmem:[#allocation16 + $0x188] ss:$16 sps:$4 sm:$0xff]   ;;  %v15248_v53 = vld [vmem:[#allocation16 + $0x1a4] ss:$16 sps:$4 sm:$0xff]  }
 0x644   :  { %v16285_v3 = vpop.eup %16284  ;;  %7281 = vmatpush1.bf16.msra.mxu0 %v15192_v58  ;;  %7322 = vmatpush1.bf16.msra.mxu1 %v15195_v59  ;;  %v15251_v58 = vld [vmem:[#allocation16 + $0x1ac] ss:$16 sps:$4 sm:$0xff]  }
 0x645   :  { %v16287_v8 = vpop.eup %16286  ;;  %v5852_v9 = vmul.f32 %v16285_v3, %v16283_v2  ;;  %7282 = vmatprep.subr.bf16.mxu0 %v15200_v60  ;;  %7323 = vmatprep.subr.bf16.mxu1 %v15203_v61  ;;  %v5926_v59 = vld [vmem:[%s17993_s8] sm:$0xf]  ;;  %v15246_v60 = vld [vmem:[#allocation16 + $0x1a0] ss:$16 sps:$4 sm:$0xff]   ;;  %v15249_v61 = vld [vmem:[#allocation16 + $0x1a8] ss:$16 sps:$4 sm:$0xff]  }
 0x646   :  { %v5851_v12 = vmul.f32 %v16287_v8, %v5342_v4  ;;  %v16289_v25 = vpop.eup %16288  ;;  %v5931_v62 = vrot.slane %v5926_v59, %v17050_v54  ;;  %v15254_v2 = vld [vmem:[#allocation16 + $0x1c4] ss:$16 sps:$4 sm:$0xff]   ;;  %v15257_v3 = vld [vmem:[#allocation16 + $0x1cc] ss:$16 sps:$4 sm:$0xff]   ;;  %v15252_v8 = vld [vmem:[#allocation16 + $0x1c0] ss:$16 sps:$4 sm:$0xff]  }
 0x648   :  { %v5853_v13 = vadd.f32 %v5852_v9, %v5851_v12  ;;  %7283 = vmatpush1.bf16.msra.mxu0 %v15198_v5  ;;  %7324 = vmatpush1.bf16.msra.mxu1 %v15201_v33  ;;  %v15255_v9 = vld [vmem:[#allocation16 + $0x1c8] ss:$16 sps:$4 sm:$0xff]   ;;  %v15260_v12 = vld [vmem:[#allocation16 + $0x1e4] ss:$16 sps:$4 sm:$0xff]  }
 0x649   :  { %7284 = vmatprep.subr.bf16.mxu0 %v15206_v42  ;;  %7325 = vmatprep.subr.bf16.mxu1 %v15209_v7 }
 0x64a   :  { %16290 = vtanh.f32 %v5853_v13  ;;  %v5858_v15 = vsel %vm3779_vm12, %v5853_v13, %v5342_v4  ;;  %v5935_v4 = vrot.slane %v5926_v59, %v17054_v56  ;;  %v15263_v13 = vld [vmem:[#allocation16 + $0x1ec] ss:$16 sps:$4 sm:$0xff]  }
 0x64b   :  { %5859 = vst [vmem:[#allocation7] sm:$0x3] %v5858_v15 }
 0x64c   :  { %7285 = vmatpush1.bf16.msra.mxu0 %v15204_v46  ;;  %7326 = vmatpush1.bf16.msra.mxu1 %v15207_v63 }
 0x64d   :  { %7286 = vmatprep.subr.bf16.mxu0 %v15212_v14  ;;  %7327 = vmatprep.subr.bf16.mxu1 %v15215_v11 }
 0x650   :  { %7287 = vmatpush1.bf16.msra.mxu0 %v15210_v16  ;;  %7328 = vmatpush1.bf16.msra.mxu1 %v15213_v17 }
 0x651   :  { %7288 = vmatprep.subr.bf16.mxu0 %v15218_v18  ;;  %7329 = vmatprep.subr.bf16.mxu1 %v15221_v31  ;;  %v5943_v18 = vrot.slane %v5926_v59, %v17056_v57  ;;  %v15258_v31 = vld [vmem:[#allocation16 + $0x1e0] ss:$16 sps:$4 sm:$0xff]  }
 0x654   :  { %v16291_v26 = vpop.eup %16290  ;;  %7289 = vmatpush1.bf16.msra.mxu0 %v15216_v19  ;;  %7330 = vmatpush1.bf16.msra.mxu1 %v15219_v20  ;;  %v15261_v19 = vld [vmem:[#allocation16 + $0x1e8] ss:$16 sps:$4 sm:$0xff]   ;;  %v15266_v20 = vld [vmem:[#allocation18 + $0x4] ss:$16 sps:$4 sm:$0xff]  }
 0x655   :  { %v5855_v30 = vmul.f32 %v16291_v26, %v16289_v25  ;;  %7290 = vmatprep.subr.bf16.mxu0 %v15224_v22  ;;  %7331 = vmatprep.subr.bf16.mxu1 %v15227_v24  ;;  %v15269_v22 = vld [vmem:[#allocation18 + $0xc] ss:$16 sps:$4 sm:$0xff]   ;;  %v15264_v25 = vld [vmem:[#allocation18] ss:$16 sps:$4 sm:$0xff]   ;;  %v15267_v26 = vld [vmem:[#allocation18 + $0x8] ss:$16 sps:$4 sm:$0xff]  }
 0x657   :  { %v5856_v21 = vsel %vm3779_vm12, %v5855_v30, %v16598_v38  ;;  %v15275_v30 = vld [vmem:[#allocation18 + $0x2c] ss:$16 sps:$4 sm:$0xff]   ;;  %v15273_v38 = vld [vmem:[#allocation18 + $0x28] ss:$16 sps:$4 sm:$0xff]  }
 0x658   :  { %5857 = vst [vmem:[#allocation6] sm:$0x3] %v5856_v21  ;;  %7291 = vmatpush1.bf16.msra.mxu0 %v15222_v28  ;;  %7332 = vmatpush1.bf16.msra.mxu1 %v15225_v29  ;;  %v5939_v28 = vrot.slane %v5926_v59, %v17052_v55  ;;  %v15272_v29 = vld [vmem:[#allocation18 + $0x24] ss:$16 sps:$4 sm:$0xff]   ;;  %v15288_v59 = vld [vmem:[#allocation18 + $0x80] ss:$16 sps:$4 sm:$0xff]  }
 0x659   :  { %7292 = vmatprep.subr.bf16.mxu0 %v15230_v32  ;;  %7333 = vmatprep.subr.bf16.mxu1 %v15233_v36  ;;  %v15270_v36 = vld [vmem:[#allocation18 + $0x20] ss:$16 sps:$4 sm:$0xff]  }
 0x65c   :  { %7293 = vmatpush1.bf16.msra.mxu0 %v15228_v39  ;;  %7334 = vmatpush1.bf16.msra.mxu1 %v15231_v37  ;;  %v15278_v39 = vld [vmem:[#allocation18 + $0x44] ss:$16 sps:$4 sm:$0xff]   ;;  %v15281_v37 = vld [vmem:[#allocation18 + $0x4c] ss:$16 sps:$4 sm:$0xff]  }
 0x65d   :  { %7294 = vmatprep.subr.bf16.mxu0 %v15236_v40  ;;  %7335 = vmatprep.subr.bf16.mxu1 %v15239_v41 }
 0x65f   :  { %v6407_v48 = vld [vmem:[#allocation6] sm:$0x3] }
 0x660   :  { %7295 = vmatpush1.bf16.msra.mxu0 %v15234_v23  ;;  %7336 = vmatpush1.bf16.msra.mxu1 %v15237_v35  ;;  %v17401_v50 = vpack.c.bf16 %v6407_v48, %v6407_v48  ;;  %v15276_v35 = vld [vmem:[#allocation18 + $0x40] ss:$16 sps:$4 sm:$0xff]   ;;  %v15287_v48 = vld [vmem:[#allocation18 + $0x6c] ss:$16 sps:$4 sm:$0xff]  }
 0x661   :  { %7296 = vmatprep.subr.bf16.mxu0 %v15242_v6  ;;  %7337 = vmatprep.subr.bf16.mxu1 %v15245_v45  ;;  %v15279_v6 = vld [vmem:[#allocation18 + $0x48] ss:$16 sps:$4 sm:$0xff]   ;;  %v15284_v45 = vld [vmem:[#allocation18 + $0x64] ss:$16 sps:$4 sm:$0xff]  }
 0x662   :  { %7304 = vmatprep.mubr.bf16.mxu0 %v17401_v50  ;;  %7345 = vmatprep.mubr.bf16.mxu1 %v17401_v50 }
 0x664   :  { %7297 = vmatpush1.bf16.msra.mxu0 %v15240_v49  ;;  %7338 = vmatpush1.bf16.msra.mxu1 %v15243_v52  ;;  %v15282_v49 = vld [vmem:[#allocation18 + $0x60] ss:$16 sps:$4 sm:$0xff]   ;;  %v15285_v52 = vld [vmem:[#allocation18 + $0x68] ss:$16 sps:$4 sm:$0xff]  }
 0x665   :  { %7298 = vmatprep.subr.bf16.mxu0 %v15248_v53  ;;  %7339 = vmatprep.subr.bf16.mxu1 %v15251_v58  ;;  %v15290_v53 = vld [vmem:[#allocation18 + $0x84] ss:$16 sps:$4 sm:$0xff]   ;;  %v15293_v58 = vld [vmem:[#allocation18 + $0x8c] ss:$16 sps:$4 sm:$0xff]  }
 0x668   :  { %7299 = vmatpush1.bf16.msra.mxu0 %v15246_v60  ;;  %7340 = vmatpush1.bf16.msra.mxu1 %v15249_v61  ;;  %v6302_v5 = vpop.f32.mrb[52].mxu0  ;;  %v6343_v33 = vpop.f32.mrb[52].mxu1  ;;  %v15291_v60 = vld [vmem:[#allocation18 + $0x88] ss:$16 sps:$4 sm:$0xff]   ;;  %v15296_v61 = vld [vmem:[#allocation18 + $0xa4] ss:$16 sps:$4 sm:$0xff]  }
 0x669   :  { %v6303_v10 = vadd.f32 %v6302_v5, %v5931_v62  ;;  %v6304_v42 = vpop.f32.mrb[53].mxu0  ;;  %v6345_v7 = vpop.f32.mrb[53].mxu1  ;;  %7300 = vmatprep.subr.bf16.mxu0 %v15254_v2  ;;  %7341 = vmatprep.subr.bf16.mxu1 %v15257_v3  ;;  %v6344_v21 = vadd.f32 %v6343_v33, %v5939_v28  ;;  %v15299_v62 = vld [vmem:[#allocation18 + $0xac] ss:$16 sps:$4 sm:$0xff]   ;;  %v15294_v33 = vld [vmem:[#allocation18 + $0xa0] ss:$16 sps:$4 sm:$0xff]  }
 0x66a   :  { %v6305_v46 = vadd.f32 %v6304_v42, %v5935_v4  ;;  %v6306_v63 = vpop.f32.mrb[54].mxu0  ;;  %v6347_v14 = vpop.f32.mrb[54].mxu1  ;;  %v6346_v24 = vadd.f32 %v6345_v7, %v5943_v18  ;;  %v5860_v5 = vld [vmem:[#allocation9] sm:$0x3]  ;;  %v15302_v7 = vld [vmem:[#allocation18 + $0xc4] ss:$16 sps:$4 sm:$0xff]  }
 0x66b   :  { %v13516_v11 = vmul.f32 -1.442695, %v6303_v10  ;;  %v6307_v15 = vpop.f32.mrb[55].mxu0  ;;  %v6348_v16 = vpop.f32.mrb[55].mxu1  ;;  %v15300_v63 = vld [vmem:[#allocation18 + $0xc0] ss:$16 sps:$4 sm:$0xff]  }
 0x66c   :  { %v13517_v17 = vmul.f32 -1.442695, %v6305_v46  ;;  %7301 = vmatpush1.bf16.msra.mxu0 %v15252_v8  ;;  %7342 = vmatpush1.bf16.msra.mxu1 %v15255_v9  ;;  %v13518_v32 = vmul.f32 -1.442695, %v6346_v24  ;;  %v15297_v8 = vld [vmem:[#allocation18 + $0xa8] ss:$16 sps:$4 sm:$0xff]  }
 0x66d   :  { %16292 = vpow2.f32 %v13516_v11  ;;  %7302 = vmatprep.subr.bf16.mxu0 %v15260_v12  ;;  %7343 = vmatprep.subr.bf16.mxu1 %v15263_v13  ;;  %v15305_v12 = vld [vmem:[#allocation18 + $0xcc] ss:$16 sps:$4 sm:$0xff]   ;;  %v15303_v14 = vld [vmem:[#allocation18 + $0xc8] ss:$16 sps:$4 sm:$0xff]   ;;  %v15308_v11 = vld [vmem:[#allocation18 + $0xe4] ss:$16 sps:$4 sm:$0xff]  }
 0x66e   :  { %16294 = vpow2.f32 %v13517_v17  ;;  %v15311_v15 = vld [vmem:[#allocation18 + $0xec] ss:$16 sps:$4 sm:$0xff]   ;;  %v15306_v17 = vld [vmem:[#allocation18 + $0xe0] ss:$16 sps:$4 sm:$0xff]   ;;  %v15309_v18 = vld [vmem:[#allocation18 + $0xe8] ss:$16 sps:$4 sm:$0xff]  }
 0x66f   :  { %16296 = vpow2.f32 %v13518_v32  ;;  %v15320_v24 = vld [vmem:[#allocation18 + $0x124] ss:$16 sps:$4 sm:$0xff]  }
 0x670   :  { %7303 = vmatpush1.bf16.msra.mxu0 %v15258_v31  ;;  %7344 = vmatpush1.bf16.msra.mxu1 %v15261_v19  ;;  %16298 = vtanh.f32 %v6344_v21  ;;  %v15314_v31 = vld [vmem:[#allocation18 + $0x104] ss:$16 sps:$4 sm:$0xff]   ;;  %v15317_v19 = vld [vmem:[#allocation18 + $0x10c] ss:$16 sps:$4 sm:$0xff]  }
 0x671   :  { %7790 = vmatprep.subr.bf16.mxu0 %v15266_v20  ;;  %7831 = vmatprep.subr.bf16.mxu1 %v15269_v22  ;;  %v15312_v20 = vld [vmem:[#allocation18 + $0x100] ss:$16 sps:$4 sm:$0xff]   ;;  %v15315_v22 = vld [vmem:[#allocation18 + $0x108] ss:$16 sps:$4 sm:$0xff]  }
 0x673   :  { %7305 = vmatmul.mubr.bf16.vlgmr.msra.gmra.mrb[60].mxu0 %v17393_v27  ;;  %7346 = vmatmul.mubr.bf16.vlgmr.msra.gmra.mrb[60].mxu1 %v17393_v27 }
 0x674   :  { %7791 = vmatpush1.bf16.msra.mxu0 %v15264_v25  ;;  %7832 = vmatpush1.bf16.msra.mxu1 %v15267_v26  ;;  %v15323_v25 = vld [vmem:[#allocation18 + $0x12c] ss:$16 sps:$4 sm:$0xff]  }
 0x675   :  { %7792 = vmatprep.subr.bf16.mxu0 %v15272_v29  ;;  %7833 = vmatprep.subr.bf16.mxu1 %v15275_v30  ;;  %v15318_v29 = vld [vmem:[#allocation18 + $0x120] ss:$16 sps:$4 sm:$0xff]   ;;  %v15321_v30 = vld [vmem:[#allocation18 + $0x128] ss:$16 sps:$4 sm:$0xff]  }
 0x677   :  { %v16293_v40 = vpop.eup %16292 }
 0x678   :  { %v16295_v41 = vpop.eup %16294  ;;  %v6353_v23 = vadd.f32 1.0, %v16293_v40  ;;  %7793 = vmatpush1.bf16.msra.mxu0 %v15270_v36  ;;  %7834 = vmatpush1.bf16.msra.mxu1 %v15273_v38  ;;  %v15326_v36 = vld [vmem:[#allocation18 + $0x144] ss:$16 sps:$4 sm:$0xff]   ;;  %v15329_v38 = vld [vmem:[#allocation18 + $0x14c] ss:$16 sps:$4 sm:$0xff]  }
 0x679   :  { %v6359_v27 = vadd.f32 1.0, %v16295_v41  ;;  %7794 = vmatprep.subr.bf16.mxu0 %v15278_v39  ;;  %7835 = vmatprep.subr.bf16.mxu1 %v15281_v37  ;;  %v16297_v2 = vpop.eup %16296  ;;  %v15324_v40 = vld [vmem:[#allocation18 + $0x140] ss:$16 sps:$4 sm:$0xff]   ;;  %v15327_v41 = vld [vmem:[#allocation18 + $0x148] ss:$16 sps:$4 sm:$0xff]  }
 0x67a   :  { %16300 = vrcp.f32 %v6353_v23  ;;  %v16299_v3 = vpop.eup %16298  ;;  %v6366_v42 = vadd.f32 1.0, %v16297_v2  ;;  %v15332_v23 = vld [vmem:[#allocation18 + $0x164] ss:$16 sps:$4 sm:$0xff]   ;;  %v15353_v2 = vld [vmem:[#allocation18 + $0x1cc] ss:$16 sps:$4 sm:$0xff]  }
 0x67b   :  { %16302 = vrcp.f32 %v6359_v27  ;;  %v15333_v27 = vld [vmem:[#allocation18 + $0x168] ss:$16 sps:$4 sm:$0xff]  }
 0x67c   :  { %7795 = vmatpush1.bf16.msra.mxu0 %v15276_v35  ;;  %7836 = vmatpush1.bf16.msra.mxu1 %v15279_v6  ;;  %16304 = vrcp.f32 %v6366_v42  ;;  %v15335_v35 = vld [vmem:[#allocation18 + $0x16c] ss:$16 sps:$4 sm:$0xff]   ;;  %v15362_v42 = vld [vmem:[#allocation15 + $0x4] ss:$16 sps:$4 sm:$0xff]  }
 0x67d   :  { %7796 = vmatprep.subr.bf16.mxu0 %v15284_v45  ;;  %7837 = vmatprep.subr.bf16.mxu1 %v15287_v48  ;;  %v15341_v45 = vld [vmem:[#allocation18 + $0x18c] ss:$16 sps:$4 sm:$0xff]  }
 0x680   :  { %7797 = vmatpush1.bf16.msra.mxu0 %v15282_v49  ;;  %7838 = vmatpush1.bf16.msra.mxu1 %v15285_v52  ;;  %v15336_v49 = vld [vmem:[#allocation18 + $0x180] ss:$16 sps:$4 sm:$0xff]  }
 0x681   :  { %7798 = vmatprep.subr.bf16.mxu0 %v15290_v53  ;;  %7839 = vmatprep.subr.bf16.mxu1 %v15293_v58  ;;  %v15339_v53 = vld [vmem:[#allocation18 + $0x188] ss:$16 sps:$4 sm:$0xff]   ;;  %v15344_v58 = vld [vmem:[#allocation18 + $0x1a4] ss:$16 sps:$4 sm:$0xff]  }
 0x684   :  { %v16301_v4 = vpop.eup %16300  ;;  %7799 = vmatpush1.bf16.msra.mxu0 %v15288_v59  ;;  %7840 = vmatpush1.bf16.msra.mxu1 %v15291_v60  ;;  %v15347_v59 = vld [vmem:[#allocation18 + $0x1ac] ss:$16 sps:$4 sm:$0xff]   ;;  %v15342_v60 = vld [vmem:[#allocation18 + $0x1a0] ss:$16 sps:$4 sm:$0xff]  }
 0x685   :  { %v16303_v9 = vpop.eup %16302  ;;  %v6370_v10 = vmul.f32 %v16301_v4, %v16299_v3  ;;  %7800 = vmatprep.subr.bf16.mxu0 %v15296_v61  ;;  %7841 = vmatprep.subr.bf16.mxu1 %v15299_v62  ;;  %v15345_v61 = vld [vmem:[#allocation18 + $0x1a8] ss:$16 sps:$4 sm:$0xff]   ;;  %v15350_v62 = vld [vmem:[#allocation18 + $0x1c4] ss:$16 sps:$4 sm:$0xff]   ;;  %v15348_v3 = vld [vmem:[#allocation18 + $0x1c0] ss:$16 sps:$4 sm:$0xff]  }
 0x686   :  { %v6369_v13 = vmul.f32 %v16303_v9, %v5860_v5  ;;  %v16305_v26 = vpop.eup %16304  ;;  %v15351_v4 = vld [vmem:[#allocation18 + $0x1c8] ss:$16 sps:$4 sm:$0xff]  }
 0x687   :  { %v15357_v9 = vld [vmem:[#allocation18 + $0x1e8] ss:$16 sps:$4 sm:$0xff]  }
 0x688   :  { %v6371_v46 = vadd.f32 %v6370_v10, %v6369_v13  ;;  %7801 = vmatpush1.bf16.msra.mxu0 %v15294_v33  ;;  %7842 = vmatpush1.bf16.msra.mxu1 %v15297_v8  ;;  %v15359_v33 = vld [vmem:[#allocation18 + $0x1ec] ss:$16 sps:$4 sm:$0xff]   ;;  %v15354_v8 = vld [vmem:[#allocation18 + $0x1e0] ss:$16 sps:$4 sm:$0xff]   ;;  %v15368_v13 = vld [vmem:[#allocation15 + $0x24] ss:$16 sps:$4 sm:$0xff]  }
 0x689   :  { %7802 = vmatprep.subr.bf16.mxu0 %v15302_v7  ;;  %7843 = vmatprep.subr.bf16.mxu1 %v15305_v12  ;;  %v15360_v10 = vld [vmem:[#allocation15] ss:$16 sps:$4 sm:$0xff]   ;;  %v15363_v7 = vld [vmem:[#allocation15 + $0x8] ss:$16 sps:$4 sm:$0xff]   ;;  %v15365_v12 = vld [vmem:[#allocation15 + $0xc] ss:$16 sps:$4 sm:$0xff]  }
 0x68a   :  { %16306 = vtanh.f32 %v6371_v46  ;;  %v6376_v16 = vsel %vm2257_vm11, %v6371_v46, %v5860_v5  ;;  %v15356_v5 = vld [vmem:[#allocation18 + $0x1e4] ss:$16 sps:$4 sm:$0xff]   ;;  %v15371_v46 = vld [vmem:[#allocation15 + $0x2c] ss:$16 sps:$4 sm:$0xff]  }
 0x68b   :  { %6377 = vst [vmem:[#allocation9] sm:$0x3] %v6376_v16  ;;  %v15375_v16 = vld [vmem:[#allocation15 + $0x48] ss:$16 sps:$4 sm:$0xff]  }
 0x68c   :  { %7803 = vmatpush1.bf16.msra.mxu0 %v15300_v63  ;;  %7844 = vmatpush1.bf16.msra.mxu1 %v15303_v14  ;;  %v15366_v63 = vld [vmem:[#allocation15 + $0x20] ss:$16 sps:$4 sm:$0xff]   ;;  %v15369_v14 = vld [vmem:[#allocation15 + $0x28] ss:$16 sps:$4 sm:$0xff]  }
 0x68d   :  { %7804 = vmatprep.subr.bf16.mxu0 %v15308_v11  ;;  %7845 = vmatprep.subr.bf16.mxu1 %v15311_v15  ;;  %v15374_v11 = vld [vmem:[#allocation15 + $0x44] ss:$16 sps:$4 sm:$0xff]   ;;  %v15372_v15 = vld [vmem:[#allocation15 + $0x40] ss:$16 sps:$4 sm:$0xff]  }
 0x690   :  { %7805 = vmatpush1.bf16.msra.mxu0 %v15306_v17  ;;  %7846 = vmatpush1.bf16.msra.mxu1 %v15309_v18  ;;  %v15380_v17 = vld [vmem:[#allocation15 + $0x64] ss:$16 sps:$4 sm:$0xff]   ;;  %v15383_v18 = vld [vmem:[#allocation15 + $0x6c] ss:$16 sps:$4 sm:$0xff]  }
 0x691   :  { %7806 = vmatprep.subr.bf16.mxu0 %v15314_v31  ;;  %7847 = vmatprep.subr.bf16.mxu1 %v15317_v19  ;;  %v15378_v31 = vld [vmem:[#allocation15 + $0x60] ss:$16 sps:$4 sm:$0xff]   ;;  %v15381_v19 = vld [vmem:[#allocation15 + $0x68] ss:$16 sps:$4 sm:$0xff]  }
 0x694   :  { %v16307_v28 = vpop.eup %16306  ;;  %7807 = vmatpush1.bf16.msra.mxu0 %v15312_v20  ;;  %7848 = vmatpush1.bf16.msra.mxu1 %v15315_v22  ;;  %v15386_v20 = vld [vmem:[#allocation15 + $0x84] ss:$16 sps:$4 sm:$0xff]   ;;  %v15389_v22 = vld [vmem:[#allocation15 + $0x8c] ss:$16 sps:$4 sm:$0xff]  }
 0x695   :  { %v6373_v32 = vmul.f32 %v16307_v28, %v16305_v26  ;;  %7808 = vmatprep.subr.bf16.mxu0 %v15320_v24  ;;  %7849 = vmatprep.subr.bf16.mxu1 %v15323_v25  ;;  %v15384_v24 = vld [vmem:[#allocation15 + $0x80] ss:$16 sps:$4 sm:$0xff]   ;;  %v15387_v25 = vld [vmem:[#allocation15 + $0x88] ss:$16 sps:$4 sm:$0xff]   ;;  %v15392_v26 = vld [vmem:[#allocation15 + $0xa4] ss:$16 sps:$4 sm:$0xff]  }
 0x696   :  { %v15395_v28 = vld [vmem:[#allocation15 + $0xac] ss:$16 sps:$4 sm:$0xff]  }
 0x697   :  { %v6374_v21 = vsel %vm2257_vm11, %v6373_v32, %v17360_v43  ;;  %v6378_v39 = vsel %vm2257_vm11, %v6373_v32, 0.0  ;;  %v15330_v43 = vld [vmem:[#allocation18 + $0x160] ss:$16 sps:$4 sm:$0xff]   ;;  %v15398_v32 = vld [vmem:[#allocation15 + $0xc4] ss:$16 sps:$4 sm:$0xff]  }
 0x698   :  { %6375 = vst [vmem:[#allocation8] sm:$0x3] %v6374_v21  ;;  %v6386_v37 = vrot.slane %v6378_v39, %v17069_v34  ;;  %7809 = vmatpush1.bf16.msra.mxu0 %v15318_v29  ;;  %7850 = vmatpush1.bf16.msra.mxu1 %v15321_v30  ;;  %v15390_v29 = vld [vmem:[#allocation15 + $0xa0] ss:$16 sps:$4 sm:$0xff]   ;;  %v15393_v30 = vld [vmem:[#allocation15 + $0xa8] ss:$16 sps:$4 sm:$0xff]  }
 0x699   :  { %7810 = vmatprep.subr.bf16.mxu0 %v15326_v36  ;;  %7851 = vmatprep.subr.bf16.mxu1 %v15329_v38  ;;  %v15401_v36 = vld [vmem:[#allocation15 + $0xcc] ss:$16 sps:$4 sm:$0xff]   ;;  %v15396_v38 = vld [vmem:[#allocation15 + $0xc0] ss:$16 sps:$4 sm:$0xff]   ;;  %v15399_v21 = vld [vmem:[#allocation15 + $0xc8] ss:$16 sps:$4 sm:$0xff]  }
 0x69a   :  { %v6387_v6 = vcombine.high %v6386_v37, %v6386_v37  ;;  %13519 = vst.sshfl [vmem:[#allocation3 + $0x2] sm:$0x1 pattern:$0x73625140] %v6386_v37  ;;  %v15404_v39 = vld [vmem:[#allocation15 + $0xe4] ss:$16 sps:$4 sm:$0xff]  }
 0x69b   :  { %v15407_v37 = vld [vmem:[#allocation15 + $0xec] ss:$16 sps:$4 sm:$0xff]  }
 0x69c   :  { %13520 = vst.sshfl [vmem:[#allocation3 + $0xa] sm:$0x1 pattern:$0x73625140] %v6387_v6  ;;  %7811 = vmatpush1.bf16.msra.mxu0 %v15324_v40  ;;  %7852 = vmatpush1.bf16.msra.mxu1 %v15327_v41  ;;  %v15402_v40 = vld [vmem:[#allocation15 + $0xe0] ss:$16 sps:$4 sm:$0xff]  }
 0x69d   :  { %7812 = vmatprep.subr.bf16.mxu0 %v15332_v23  ;;  %7853 = vmatprep.subr.bf16.mxu1 %v15335_v35  ;;  %v15405_v41 = vld [vmem:[#allocation15 + $0xe8] ss:$16 sps:$4 sm:$0xff]   ;;  %v15410_v23 = vld [vmem:[#allocation16 + $0x4] ss:$16 sps:$4 sm:$0xff]   ;;  %v15413_v35 = vld [vmem:[#allocation16 + $0xc] ss:$16 sps:$4 sm:$0xff]  }
 0x69f   :  { %v17422_v48 = vld [vmem:[#allocation8] sm:$0x3] }
 0x6a0   :  { %7813 = vmatpush1.bf16.msra.mxu0 %v15330_v43  ;;  %7854 = vmatpush1.bf16.msra.mxu1 %v15333_v27  ;;  %v7383_v52 = vpack.c.bf16 %v17422_v48, %v17422_v48 }
 0x6a1   :  { %7814 = vmatprep.subr.bf16.mxu0 %v15338_v44  ;;  %7855 = vmatprep.subr.bf16.mxu1 %v15341_v45 }
 0x6a2   :  { %7822 = vmatprep.mubr.bf16.mxu0 %v7383_v52  ;;  %7863 = vmatprep.mubr.bf16.mxu1 %v7383_v52 }
 0x6a4   :  { %7815 = vmatpush1.bf16.msra.mxu0 %v15336_v49  ;;  %7856 = vmatpush1.bf16.msra.mxu1 %v15339_v53 }
 0x6a5   :  { %7816 = vmatprep.subr.bf16.mxu0 %v15344_v58  ;;  %7857 = vmatprep.subr.bf16.mxu1 %v15347_v59 }
 0x6a8   :  { %7817 = vmatpush1.bf16.msra.mxu0 %v15342_v60  ;;  %7858 = vmatpush1.bf16.msra.mxu1 %v15345_v61 }
 0x6a9   :  { %7818 = vmatprep.subr.bf16.mxu0 %v15350_v62  ;;  %7859 = vmatprep.subr.bf16.mxu1 %v15353_v2 }
 0x6ac   :  { %7819 = vmatpush1.bf16.msra.mxu0 %v15348_v3  ;;  %7860 = vmatpush1.bf16.msra.mxu1 %v15351_v4 }
 0x6ad   :  { %7820 = vmatprep.subr.bf16.mxu0 %v15356_v5  ;;  %7861 = vmatprep.subr.bf16.mxu1 %v15359_v33  ;;  %v6411_v5 = vld [vmem:[#allocation2 + $0x5] ss:$8 sm:$0xf] }
 0x6ae   :  { %v6413_v33 = vld [vmem:[#allocation2 + $0x25] ss:$8 sm:$0xf] }
 0x6b0   :  { %7821 = vmatpush1.bf16.msra.mxu0 %v15354_v8  ;;  %7862 = vmatpush1.bf16.msra.mxu1 %v15357_v9 }
 0x6b1   :  { %8129 = vmatprep.subr.bf16.mxu0 %v15362_v42  ;;  %8170 = vmatprep.subr.bf16.mxu1 %v15365_v12 }
 0x6b3   :  { %7823 = vmatmul.mubr.bf16.vlgmr.msra.gmra.mrb[64].mxu0 %v17401_v50  ;;  %7864 = vmatmul.mubr.bf16.vlgmr.msra.gmra.mrb[64].mxu1 %v17401_v50  ;;  %v15377_v50 = vld [vmem:[#allocation15 + $0x4c] ss:$16 sps:$4 sm:$0xff]  }
 0x6b4   :  { %8161 = vmatprep.mubr.bf16.mxu0 %v16780_v0  ;;  %8202 = vmatprep.mubr.bf16.mxu1 %v16780_v0 }
 0x6b5   :  { %8130 = vmatpush1.bf16.msra.mxu0 %v15360_v10  ;;  %8171 = vmatpush1.bf16.msra.mxu1 %v15363_v7 }
 0x6b6   :  { %8131 = vmatprep.subr.bf16.mxu0 %v15368_v13  ;;  %8172 = vmatprep.subr.bf16.mxu1 %v15371_v46 }
 0x6b9   :  { %8132 = vmatpush1.bf16.msra.mxu0 %v15366_v63  ;;  %8173 = vmatpush1.bf16.msra.mxu1 %v15369_v14 }
 0x6ba   :  { %8133 = vmatprep.subr.bf16.mxu0 %v15374_v11  ;;  %8174 = vmatprep.subr.bf16.mxu1 %v15377_v50 }
 0x6bd   :  { %8134 = vmatpush1.bf16.msra.mxu0 %v15372_v15  ;;  %8175 = vmatpush1.bf16.msra.mxu1 %v15375_v16 }
 0x6be   :  { %8135 = vmatprep.subr.bf16.mxu0 %v15380_v17  ;;  %8176 = vmatprep.subr.bf16.mxu1 %v15383_v18 }
 0x6c1   :  { %8136 = vmatpush1.bf16.msra.mxu0 %v15378_v31  ;;  %8177 = vmatpush1.bf16.msra.mxu1 %v15381_v19 }
 0x6c2   :  { %8137 = vmatprep.subr.bf16.mxu0 %v15386_v20  ;;  %8178 = vmatprep.subr.bf16.mxu1 %v15389_v22 }
 0x6c5   :  { %8138 = vmatpush1.bf16.msra.mxu0 %v15384_v24  ;;  %8179 = vmatpush1.bf16.msra.mxu1 %v15387_v25  ;;  %v6409_v25 = vld [vmem:[#allocation5] sm:$0x3] }
 0x6c6   :  { %8139 = vmatprep.subr.bf16.mxu0 %v15392_v26  ;;  %8180 = vmatprep.subr.bf16.mxu1 %v15395_v28  ;;  %v6788_v28 = vrot.slane %v6409_v25, %v17069_v34 }
 0x6c9   :  { %8140 = vmatpush1.bf16.msra.mxu0 %v15390_v29  ;;  %8181 = vmatpush1.bf16.msra.mxu1 %v15393_v30 }
 0x6ca   :  { %8141 = vmatprep.subr.bf16.mxu0 %v15398_v32  ;;  %8182 = vmatprep.subr.bf16.mxu1 %v15401_v36  ;;  %v6789_v36 = vcombine.high %v6788_v28, %v6788_v28 }
 0x6cd   :  { %8142 = vmatpush1.bf16.msra.mxu0 %v15396_v38  ;;  %8183 = vmatpush1.bf16.msra.mxu1 %v15399_v21 }
 0x6ce   :  { %8143 = vmatprep.subr.bf16.mxu0 %v15404_v39  ;;  %8184 = vmatprep.subr.bf16.mxu1 %v15407_v37 }
 0x6d1   :  { %8144 = vmatpush1.bf16.msra.mxu0 %v15402_v40  ;;  %8185 = vmatpush1.bf16.msra.mxu1 %v15405_v41  ;;  %v6796_v40 = vrot.slane %v6788_v28, %v17069_v34  ;;  %v15411_v28 = vld [vmem:[#allocation16 + $0x8] ss:$16 sps:$4 sm:$0xff]  }
 0x6d2   :  { %8794 = vmatprep.subr.bf16.mxu0 %v15410_v23  ;;  %8835 = vmatprep.subr.bf16.mxu1 %v15413_v35  ;;  %v6803_v35 = vrot.slane %v6789_v36, %v17069_v34  ;;  %v15416_v36 = vld [vmem:[#allocation16 + $0x24] ss:$16 sps:$4 sm:$0xff]  }
 0x706   :  { %v6641_v6 = vpop.f32.mrb[56].mxu0  ;;  %v6682_v43 = vpop.f32.mrb[56].mxu1 }
 0x707   :  { %v6643_v27 = vpop.f32.mrb[57].mxu0  ;;  %v6684_v44 = vpop.f32.mrb[57].mxu1 }
 0x708   :  { %v6693_v45 = vcombine.low %v6641_v6, %v6643_v27  ;;  %v6694_v49 = vcombine.low %v6682_v43, %v6684_v44  ;;  %v6645_v52 = vpop.f32.mrb[58].mxu0  ;;  %v6686_v53 = vpop.f32.mrb[58].mxu1 }
 0x709   :  { %v6646_v58 = vpop.f32.mrb[59].mxu0  ;;  %v6687_v59 = vpop.f32.mrb[59].mxu1 }
 0x70a   :  { %v6701_v60 = vrot.slane %v6693_v45, %v17069_v34  ;;  %v6708_v61 = vrot.slane %v6694_v49, %v17069_v34  ;;  %v17438_v59 = vpop.permute.xlu1 %6821 }
 0x70b   :  { %vm6823_vm14 = vcmp.eq.s32.totalorder %v17438_v59, 1  ;;  %v17825_v59 = vld [vmem:[#allocation18 + $0x1e0] ss:$16 sps:$4 sm:$0xff]  }
 0x70c   :  { %v6709_v62 = vcombine.low %v6701_v60, %v6708_v61  ;;  %v6710_v2 = vcombine.high %v6701_v60, %v6708_v61 }
 0x70e   :  { %v6717_v3 = vrot.slane %v6709_v62, %v17069_v34  ;;  %v6724_v4 = vrot.slane %v6710_v2, %v17069_v34 }
 0x710   :  { %v6727_v8 = vadd.f32 %v6717_v3, %v6411_v5  ;;  %v6728_v9 = vadd.f32 %v6724_v4, %v6413_v33 }
 0x712   :  { %v13553_v10 = vmul.f32 -1.442695, %v6727_v8  ;;  %v13554_v42 = vmul.f32 -1.442695, %v6728_v9  ;;  %v6743_v7 = vrot.slane %v6727_v8, 1  ;;  %v6744_v12 = vrot.slane %v6728_v9, 1 }
 0x713   :  { %v6765_v63 = vrot.slane %v6727_v8, 3  ;;  %v6766_v14 = vrot.slane %v6728_v9, 3  ;;  %v6759_v11 = vrot.slane %v6727_v8, 2  ;;  %v6760_v50 = vrot.slane %v6728_v9, 2  ;;  %v6930_v9 = vld [vmem:[%s17991_s6] sm:$0xf] }
 0x714   :  { %16308 = vpow2.f32 %v13553_v10  ;;  %v13555_v13 = vmul.f32 -1.442695, %v6743_v7  ;;  %v13556_v46 = vmul.f32 -1.442695, %v6744_v12  ;;  %v6939_v12 = vrot.slane %v6930_v9, %v17054_v56 }
 0x715   :  { %16310 = vpow2.f32 %v13554_v42  ;;  %v13557_v15 = vmul.f32 -1.442695, %v6765_v63  ;;  %v13558_v16 = vmul.f32 -1.442695, %v6766_v14  ;;  %v6935_v42 = vrot.slane %v6930_v9, %v17050_v54 }
 0x716   :  { %16312 = vpow2.f32 %v13555_v13  ;;  %v16599_v13 = vld [vmem:[#allocation4] sm:$0x3] }
 0x717   :  { %16314 = vpow2.f32 %v13556_v46 }
 0x718   :  { %16316 = vtanh.f32 %v6759_v11 }
 0x719   :  { %16318 = vtanh.f32 %v6760_v50 }
 0x71a   :  { %16320 = vpow2.f32 %v13557_v15 }
 0x71b   :  { %16322 = vpow2.f32 %v13558_v16 }
 0x71e   :  { %v16309_v17 = vpop.eup %16308 }
 0x71f   :  { %v16311_v18 = vpop.eup %16310  ;;  %v6735_v31 = vadd.f32 1.0, %v16309_v17 }
 0x720   :  { %v16313_v19 = vpop.eup %16312  ;;  %v6736_v20 = vadd.f32 1.0, %v16311_v18 }
 0x721   :  { %v16315_v22 = vpop.eup %16314  ;;  %16324 = vrcp.f32 %v6735_v31  ;;  %v6753_v24 = vadd.f32 1.0, %v16313_v19 }
 0x722   :  { %16326 = vrcp.f32 %v6736_v20  ;;  %v6754_v26 = vadd.f32 1.0, %v16315_v22  ;;  %v16317_v29 = vpop.eup %16316 }
 0x723   :  { %16328 = vrcp.f32 %v6753_v24  ;;  %v16319_v30 = vpop.eup %16318  ;;  %v6947_v24 = vrot.slane %v6930_v9, %v17056_v57 }
 0x724   :  { %16330 = vrcp.f32 %v6754_v26  ;;  %v16321_v32 = vpop.eup %16320  ;;  %v15408_v26 = vld [vmem:[#allocation16] ss:$16 sps:$4 sm:$0xff]  }
 0x725   :  { %v16323_v38 = vpop.eup %16322  ;;  %v6775_v37 = vadd.f32 1.0, %v16321_v32 }
 0x726   :  { %v6776_v23 = vadd.f32 1.0, %v16323_v38  ;;  %v15419_v38 = vld [vmem:[#allocation16 + $0x2c] ss:$16 sps:$4 sm:$0xff]  }
 0x727   :  { %16332 = vrcp.f32 %v6775_v37  ;;  %v15417_v37 = vld [vmem:[#allocation16 + $0x28] ss:$16 sps:$4 sm:$0xff]  }
 0x728   :  { %16334 = vrcp.f32 %v6776_v23  ;;  %v15425_v23 = vld [vmem:[#allocation16 + $0x4c] ss:$16 sps:$4 sm:$0xff]  }
 0x72b   :  { %v16325_v21 = vpop.eup %16324 }
 0x72c   :  { %v16327_v39 = vpop.eup %16326  ;;  %v6808_v27 = vmul.f32 %v16325_v21, %v16317_v29 }
 0x72d   :  { %v16329_v41 = vpop.eup %16328  ;;  %v6809_v45 = vmul.f32 %v16327_v39, %v16319_v30  ;;  %v6943_v30 = vrot.slane %v6930_v9, %v17052_v55  ;;  %v15414_v39 = vld [vmem:[#allocation16 + $0x20] ss:$16 sps:$4 sm:$0xff]   ;;  %v6864_v9 = vld [vmem:[#allocation7] sm:$0x3] }
 0x72e   :  { %v16331_v6 = vpop.eup %16330  ;;  %v6806_v43 = vmul.f32 %v16329_v41, %v6796_v40  ;;  %v15422_v41 = vld [vmem:[#allocation16 + $0x44] ss:$16 sps:$4 sm:$0xff]  }
 0x72f   :  { %v6807_v44 = vmul.f32 %v16331_v6, %v6803_v35 }
 0x730   :  { %v6810_v49 = vadd.f32 %v6808_v27, %v6806_v43  ;;  %v15420_v27 = vld [vmem:[#allocation16 + $0x40] ss:$16 sps:$4 sm:$0xff]  }
 0x731   :  { %v6811_v52 = vadd.f32 %v6809_v45, %v6807_v44  ;;  %v16333_v62 = vpop.eup %16332  ;;  %v15423_v44 = vld [vmem:[#allocation16 + $0x48] ss:$16 sps:$4 sm:$0xff]  }
 0x732   :  { %16336 = vtanh.f32 %v6810_v49  ;;  %v16335_v2 = vpop.eup %16334 }
 0x733   :  { %16338 = vtanh.f32 %v6811_v52  ;;  %v6846_v53 = vcombine.low %v6810_v49, %v6811_v52  ;;  %v15428_v49 = vld [vmem:[#allocation16 + $0x64] ss:$16 sps:$4 sm:$0xff]   ;;  %v15431_v52 = vld [vmem:[#allocation16 + $0x6c] ss:$16 sps:$4 sm:$0xff]  }
 0x735   :  { %v6853_v58 = vrot.slane %v6846_v53, %v17069_v34  ;;  %v15426_v53 = vld [vmem:[#allocation16 + $0x60] ss:$16 sps:$4 sm:$0xff]  }
 0x737   :  { %v6860_v60 = vrot.slane %v6853_v58, %v17069_v34  ;;  %v15429_v58 = vld [vmem:[#allocation16 + $0x68] ss:$16 sps:$4 sm:$0xff]  }
 0x739   :  { %v6862_v61 = vsel %vm6823_vm14, %v6860_v60, %v6409_v25  ;;  %v15434_v60 = vld [vmem:[#allocation16 + $0x84] ss:$16 sps:$4 sm:$0xff]  }
 0x73a   :  { %6863 = vst [vmem:[#allocation5] sm:$0x3] %v6862_v61  ;;  %v15437_v61 = vld [vmem:[#allocation16 + $0x8c] ss:$16 sps:$4 sm:$0xff]  }
 0x73c   :  { %v16337_v3 = vpop.eup %16336 }
 0x73d   :  { %v16339_v4 = vpop.eup %16338  ;;  %v6814_v5 = vmul.f32 %v16337_v3, %v16333_v62  ;;  %v15432_v62 = vld [vmem:[#allocation16 + $0x80] ss:$16 sps:$4 sm:$0xff]   ;;  %v15440_v3 = vld [vmem:[#allocation16 + $0xa4] ss:$16 sps:$4 sm:$0xff]  }
 0x73e   :  { %v6815_v33 = vmul.f32 %v16339_v4, %v16335_v2  ;;  %v15435_v2 = vld [vmem:[#allocation16 + $0x88] ss:$16 sps:$4 sm:$0xff]   ;;  %v15443_v4 = vld [vmem:[#allocation16 + $0xac] ss:$16 sps:$4 sm:$0xff]  }
 0x740   :  { %v6826_v8 = vcombine.low %v6814_v5, %v6815_v33 }
 0x742   :  { %v6833_v10 = vrot.slane %v6826_v8, %v17069_v34 }
 0x744   :  { %v6840_v7 = vrot.slane %v6833_v10, %v17069_v34  ;;  %v15438_v10 = vld [vmem:[#allocation16 + $0xa0] ss:$16 sps:$4 sm:$0xff]  }
 0x746   :  { %v6842_v46 = vsel %vm6823_vm14, %v6840_v7, %v16599_v13  ;;  %v7306_v63 = vpop.f32.mrb[60].mxu0  ;;  %v7347_v14 = vpop.f32.mrb[60].mxu1 }
 0x747   :  { %6843 = vst [vmem:[#allocation4] sm:$0x3] %v6842_v46  ;;  %v7307_v11 = vadd.f32 %v7306_v63, %v6935_v42  ;;  %v7308_v50 = vpop.f32.mrb[61].mxu0  ;;  %v7349_v15 = vpop.f32.mrb[61].mxu1  ;;  %v7348_v40 = vadd.f32 %v7347_v14, %v6943_v30  ;;  %v15441_v42 = vld [vmem:[#allocation16 + $0xa8] ss:$16 sps:$4 sm:$0xff]  }
 0x748   :  { %v7309_v16 = vadd.f32 %v7308_v50, %v6939_v12  ;;  %v7310_v17 = vpop.f32.mrb[62].mxu0  ;;  %v7351_v18 = vpop.f32.mrb[62].mxu1  ;;  %v7350_v25 = vadd.f32 %v7349_v15, %v6947_v24  ;;  %v15446_v46 = vld [vmem:[#allocation16 + $0xc4] ss:$16 sps:$4 sm:$0xff]   ;;  %v15449_v63 = vld [vmem:[#allocation16 + $0xcc] ss:$16 sps:$4 sm:$0xff]  }
 0x749   :  { %v13624_v31 = vmul.f32 -1.442695, %v7307_v11  ;;  %v7311_v19 = vpop.f32.mrb[63].mxu0  ;;  %v7352_v20 = vpop.f32.mrb[63].mxu1  ;;  %v15444_v50 = vld [vmem:[#allocation16 + $0xc0] ss:$16 sps:$4 sm:$0xff]  }
 0x74a   :  { %v13625_v22 = vmul.f32 -1.442695, %v7309_v16  ;;  %v13626_v21 = vmul.f32 -1.442695, %v7350_v25  ;;  %v15447_v15 = vld [vmem:[#allocation16 + $0xc8] ss:$16 sps:$4 sm:$0xff]  }
 0x74b   :  { %16340 = vpow2.f32 %v13624_v31  ;;  %v15452_v16 = vld [vmem:[#allocation16 + $0xe4] ss:$16 sps:$4 sm:$0xff]   ;;  %v15455_v17 = vld [vmem:[#allocation16 + $0xec] ss:$16 sps:$4 sm:$0xff]   ;;  %v15450_v31 = vld [vmem:[#allocation16 + $0xe0] ss:$16 sps:$4 sm:$0xff]  }
 0x74c   :  { %16342 = vpow2.f32 %v13625_v22  ;;  %v15453_v19 = vld [vmem:[#allocation16 + $0xe8] ss:$16 sps:$4 sm:$0xff]   ;;  %v15458_v20 = vld [vmem:[#allocation16 + $0x104] ss:$16 sps:$4 sm:$0xff]   ;;  %v15461_v22 = vld [vmem:[#allocation16 + $0x10c] ss:$16 sps:$4 sm:$0xff]  }
 0x74d   :  { %16344 = vpow2.f32 %v13626_v21  ;;  %v15456_v24 = vld [vmem:[#allocation16 + $0x100] ss:$16 sps:$4 sm:$0xff]   ;;  %v15459_v25 = vld [vmem:[#allocation16 + $0x108] ss:$16 sps:$4 sm:$0xff]  }
 0x74e   :  { %v7928_v29 = vld [vmem:[#allocation4] sm:$0x3]  ;;  %16346 = vtanh.f32 %v7348_v40  ;;  %v16600_v40 = vld [vmem:[#allocation6] sm:$0x3] }
 0x74f   :  { %v17455_v32 = vpack.c.bf16 %v7928_v29, %v7928_v29 }
 0x751   :  { %8162 = vmatmul.mubr.bf16.vlgmr.msra.gmra.mrb[68].mxu0 %v17455_v32  ;;  %8203 = vmatmul.mubr.bf16.vlgmr.msra.gmra.mrb[68].mxu1 %v17455_v32 }
 0x752   :  { %8795 = vmatpush1.bf16.msra.mxu0 %v15408_v26  ;;  %8836 = vmatpush1.bf16.msra.mxu1 %v15411_v28  ;;  %v15464_v26 = vld [vmem:[#allocation16 + $0x124] ss:$16 sps:$4 sm:$0xff]   ;;  %v15467_v28 = vld [vmem:[#allocation16 + $0x12c] ss:$16 sps:$4 sm:$0xff]  }
 0x753   :  { %8796 = vmatprep.subr.bf16.mxu0 %v15416_v36  ;;  %8837 = vmatprep.subr.bf16.mxu1 %v15419_v38  ;;  %v15462_v36 = vld [vmem:[#allocation16 + $0x120] ss:$16 sps:$4 sm:$0xff]   ;;  %v15465_v38 = vld [vmem:[#allocation16 + $0x128] ss:$16 sps:$4 sm:$0xff]  }
 0x755   :  { %v16341_v35 = vpop.eup %16340 }
 0x756   :  { %v16343_v6 = vpop.eup %16342  ;;  %v7357_v43 = vadd.f32 1.0, %v16341_v35  ;;  %8797 = vmatpush1.bf16.msra.mxu0 %v15414_v39  ;;  %8838 = vmatpush1.bf16.msra.mxu1 %v15417_v37  ;;  %v15470_v39 = vld [vmem:[#allocation16 + $0x144] ss:$16 sps:$4 sm:$0xff]   ;;  %v15473_v37 = vld [vmem:[#allocation16 + $0x14c] ss:$16 sps:$4 sm:$0xff]  }
 0x757   :  { %v7363_v45 = vadd.f32 1.0, %v16343_v6  ;;  %8798 = vmatprep.subr.bf16.mxu0 %v15422_v41  ;;  %8839 = vmatprep.subr.bf16.mxu1 %v15425_v23  ;;  %v16345_v5 = vpop.eup %16344  ;;  %v15468_v23 = vld [vmem:[#allocation16 + $0x140] ss:$16 sps:$4 sm:$0xff]   ;;  %v15471_v35 = vld [vmem:[#allocation16 + $0x148] ss:$16 sps:$4 sm:$0xff]  }
 0x758   :  { %16348 = vrcp.f32 %v7357_v43  ;;  %v16347_v33 = vpop.eup %16346  ;;  %v7370_v13 = vadd.f32 1.0, %v16345_v5  ;;  %v15476_v6 = vld [vmem:[#allocation16 + $0x164] ss:$16 sps:$4 sm:$0xff]   ;;  %v15479_v43 = vld [vmem:[#allocation16 + $0x16c] ss:$16 sps:$4 sm:$0xff]  }
 0x759   :  { %16350 = vrcp.f32 %v7363_v45  ;;  %v15482_v45 = vld [vmem:[#allocation16 + $0x184] ss:$16 sps:$4 sm:$0xff]  }
 0x75a   :  { %8799 = vmatpush1.bf16.msra.mxu0 %v15420_v27  ;;  %8840 = vmatpush1.bf16.msra.mxu1 %v15423_v44  ;;  %16352 = vrcp.f32 %v7370_v13  ;;  %v15474_v27 = vld [vmem:[#allocation16 + $0x160] ss:$16 sps:$4 sm:$0xff]   ;;  %v15477_v44 = vld [vmem:[#allocation16 + $0x168] ss:$16 sps:$4 sm:$0xff]  }
 0x75b   :  { %8800 = vmatprep.subr.bf16.mxu0 %v15428_v49  ;;  %8841 = vmatprep.subr.bf16.mxu1 %v15431_v52  ;;  %v15485_v49 = vld [vmem:[#allocation16 + $0x18c] ss:$16 sps:$4 sm:$0xff]  }
 0x75e   :  { %8801 = vmatpush1.bf16.msra.mxu0 %v15426_v53  ;;  %8842 = vmatpush1.bf16.msra.mxu1 %v15429_v58  ;;  %v15480_v53 = vld [vmem:[#allocation16 + $0x180] ss:$16 sps:$4 sm:$0xff]  }
 0x75f   :  { %8802 = vmatprep.subr.bf16.mxu0 %v15434_v60  ;;  %8843 = vmatprep.subr.bf16.mxu1 %v15437_v61  ;;  %v15483_v60 = vld [vmem:[#allocation16 + $0x188] ss:$16 sps:$4 sm:$0xff]   ;;  %v15488_v61 = vld [vmem:[#allocation16 + $0x1a4] ss:$16 sps:$4 sm:$0xff]  }
 0x762   :  { %v16349_v8 = vpop.eup %16348  ;;  %8803 = vmatpush1.bf16.msra.mxu0 %v15432_v62  ;;  %8844 = vmatpush1.bf16.msra.mxu1 %v15435_v2  ;;  %v15491_v62 = vld [vmem:[#allocation16 + $0x1ac] ss:$16 sps:$4 sm:$0xff]  }
 0x763   :  { %v16351_v7 = vpop.eup %16350  ;;  %v7374_v12 = vmul.f32 %v16349_v8, %v16347_v33  ;;  %8804 = vmatprep.subr.bf16.mxu0 %v15440_v3  ;;  %8845 = vmatprep.subr.bf16.mxu1 %v15443_v4  ;;  %v7448_v2 = vld [vmem:[%s17993_s8] sm:$0xf]  ;;  %v15486_v3 = vld [vmem:[#allocation16 + $0x1a0] ss:$16 sps:$4 sm:$0xff]   ;;  %v15489_v4 = vld [vmem:[#allocation16 + $0x1a8] ss:$16 sps:$4 sm:$0xff]  }
 0x764   :  { %v7373_v14 = vmul.f32 %v16351_v7, %v6864_v9  ;;  %v16353_v29 = vpop.eup %16352  ;;  %v7453_v5 = vrot.slane %v7448_v2, %v17050_v54  ;;  %v15494_v33 = vld [vmem:[#allocation16 + $0x1c4] ss:$16 sps:$4 sm:$0xff]   ;;  %v15497_v8 = vld [vmem:[#allocation16 + $0x1cc] ss:$16 sps:$4 sm:$0xff]   ;;  %v15492_v7 = vld [vmem:[#allocation16 + $0x1c0] ss:$16 sps:$4 sm:$0xff]  }
 0x766   :  { %v7375_v11 = vadd.f32 %v7374_v12, %v7373_v14  ;;  %8805 = vmatpush1.bf16.msra.mxu0 %v15438_v10  ;;  %8846 = vmatpush1.bf16.msra.mxu1 %v15441_v42  ;;  %v15495_v12 = vld [vmem:[#allocation16 + $0x1c8] ss:$16 sps:$4 sm:$0xff]   ;;  %v15500_v14 = vld [vmem:[#allocation16 + $0x1e4] ss:$16 sps:$4 sm:$0xff]  }
 0x767   :  { %8806 = vmatprep.subr.bf16.mxu0 %v15446_v46  ;;  %8847 = vmatprep.subr.bf16.mxu1 %v15449_v63 }
 0x768   :  { %16354 = vtanh.f32 %v7375_v11  ;;  %v7380_v18 = vsel %vm5301_vm13, %v7375_v11, %v6864_v9  ;;  %v7457_v9 = vrot.slane %v7448_v2, %v17054_v56  ;;  %v15503_v11 = vld [vmem:[#allocation16 + $0x1ec] ss:$16 sps:$4 sm:$0xff]  }
 0x769   :  { %7381 = vst [vmem:[#allocation7] sm:$0x3] %v7380_v18 }
 0x76a   :  { %8807 = vmatpush1.bf16.msra.mxu0 %v15444_v50  ;;  %8848 = vmatpush1.bf16.msra.mxu1 %v15447_v15 }
 0x76b   :  { %8808 = vmatprep.subr.bf16.mxu0 %v15452_v16  ;;  %8849 = vmatprep.subr.bf16.mxu1 %v15455_v17 }
 0x76e   :  { %8809 = vmatpush1.bf16.msra.mxu0 %v15450_v31  ;;  %8850 = vmatpush1.bf16.msra.mxu1 %v15453_v19 }
 0x76f   :  { %8810 = vmatprep.subr.bf16.mxu0 %v15458_v20  ;;  %8851 = vmatprep.subr.bf16.mxu1 %v15461_v22  ;;  %v7465_v20 = vrot.slane %v7448_v2, %v17056_v57  ;;  %v15498_v22 = vld [vmem:[#allocation16 + $0x1e0] ss:$16 sps:$4 sm:$0xff]  }
 0x772   :  { %v16355_v30 = vpop.eup %16354  ;;  %8811 = vmatpush1.bf16.msra.mxu0 %v15456_v24  ;;  %8852 = vmatpush1.bf16.msra.mxu1 %v15459_v25  ;;  %v15501_v24 = vld [vmem:[#allocation16 + $0x1e8] ss:$16 sps:$4 sm:$0xff]   ;;  %v15506_v25 = vld [vmem:[#allocation18 + $0x4] ss:$16 sps:$4 sm:$0xff]  }
 0x773   :  { %v7377_v21 = vmul.f32 %v16355_v30, %v16353_v29  ;;  %8812 = vmatprep.subr.bf16.mxu0 %v15464_v26  ;;  %8853 = vmatprep.subr.bf16.mxu1 %v15467_v28  ;;  %v15509_v26 = vld [vmem:[#allocation18 + $0xc] ss:$16 sps:$4 sm:$0xff]   ;;  %v15504_v29 = vld [vmem:[#allocation18] ss:$16 sps:$4 sm:$0xff]   ;;  %v15507_v30 = vld [vmem:[#allocation18 + $0x8] ss:$16 sps:$4 sm:$0xff]  }
 0x775   :  { %v7378_v41 = vsel %vm5301_vm13, %v7377_v21, %v16600_v40  ;;  %v15515_v21 = vld [vmem:[#allocation18 + $0x2c] ss:$16 sps:$4 sm:$0xff]   ;;  %v15513_v40 = vld [vmem:[#allocation18 + $0x28] ss:$16 sps:$4 sm:$0xff]  }
 0x776   :  { %7379 = vst [vmem:[#allocation6] sm:$0x3] %v7378_v41  ;;  %8813 = vmatpush1.bf16.msra.mxu0 %v15462_v36  ;;  %8854 = vmatpush1.bf16.msra.mxu1 %v15465_v38  ;;  %v7461_v36 = vrot.slane %v7448_v2, %v17052_v55  ;;  %v15512_v38 = vld [vmem:[#allocation18 + $0x24] ss:$16 sps:$4 sm:$0xff]   ;;  %v15528_v2 = vld [vmem:[#allocation18 + $0x80] ss:$16 sps:$4 sm:$0xff]  }
 0x777   :  { %8814 = vmatprep.subr.bf16.mxu0 %v15470_v39  ;;  %8855 = vmatprep.subr.bf16.mxu1 %v15473_v37  ;;  %v15510_v37 = vld [vmem:[#allocation18 + $0x20] ss:$16 sps:$4 sm:$0xff]  }
 0x77a   :  { %8815 = vmatpush1.bf16.msra.mxu0 %v15468_v23  ;;  %8856 = vmatpush1.bf16.msra.mxu1 %v15471_v35  ;;  %v15518_v23 = vld [vmem:[#allocation18 + $0x44] ss:$16 sps:$4 sm:$0xff]   ;;  %v15521_v35 = vld [vmem:[#allocation18 + $0x4c] ss:$16 sps:$4 sm:$0xff]  }
 0x77b   :  { %8816 = vmatprep.subr.bf16.mxu0 %v15476_v6  ;;  %8857 = vmatprep.subr.bf16.mxu1 %v15479_v43 }
 0x77d   :  { %v7929_v52 = vld [vmem:[#allocation6] sm:$0x3] }
 0x77e   :  { %8817 = vmatpush1.bf16.msra.mxu0 %v15474_v27  ;;  %8858 = vmatpush1.bf16.msra.mxu1 %v15477_v44  ;;  %v17463_v58 = vpack.c.bf16 %v7929_v52, %v7929_v52  ;;  %v15516_v44 = vld [vmem:[#allocation18 + $0x40] ss:$16 sps:$4 sm:$0xff]   ;;  %v15527_v52 = vld [vmem:[#allocation18 + $0x6c] ss:$16 sps:$4 sm:$0xff]  }
 0x77f   :  { %8818 = vmatprep.subr.bf16.mxu0 %v15482_v45  ;;  %8859 = vmatprep.subr.bf16.mxu1 %v15485_v49  ;;  %v15519_v45 = vld [vmem:[#allocation18 + $0x48] ss:$16 sps:$4 sm:$0xff]   ;;  %v15524_v49 = vld [vmem:[#allocation18 + $0x64] ss:$16 sps:$4 sm:$0xff]  }
 0x780   :  { %8826 = vmatprep.mubr.bf16.mxu0 %v17463_v58  ;;  %8867 = vmatprep.mubr.bf16.mxu1 %v17463_v58 }
 0x782   :  { %8819 = vmatpush1.bf16.msra.mxu0 %v15480_v53  ;;  %8860 = vmatpush1.bf16.msra.mxu1 %v15483_v60  ;;  %v15522_v53 = vld [vmem:[#allocation18 + $0x60] ss:$16 sps:$4 sm:$0xff]   ;;  %v15525_v60 = vld [vmem:[#allocation18 + $0x68] ss:$16 sps:$4 sm:$0xff]  }
 0x783   :  { %8820 = vmatprep.subr.bf16.mxu0 %v15488_v61  ;;  %8861 = vmatprep.subr.bf16.mxu1 %v15491_v62  ;;  %v15530_v61 = vld [vmem:[#allocation18 + $0x84] ss:$16 sps:$4 sm:$0xff]   ;;  %v15533_v62 = vld [vmem:[#allocation18 + $0x8c] ss:$16 sps:$4 sm:$0xff]  }
 0x786   :  { %8821 = vmatpush1.bf16.msra.mxu0 %v15486_v3  ;;  %8862 = vmatpush1.bf16.msra.mxu1 %v15489_v4  ;;  %v7824_v10 = vpop.f32.mrb[64].mxu0  ;;  %v7865_v42 = vpop.f32.mrb[64].mxu1  ;;  %v15531_v3 = vld [vmem:[#allocation18 + $0x88] ss:$16 sps:$4 sm:$0xff]   ;;  %v15536_v4 = vld [vmem:[#allocation18 + $0xa4] ss:$16 sps:$4 sm:$0xff]  }
 0x787   :  { %v7825_v13 = vadd.f32 %v7824_v10, %v7453_v5  ;;  %v7826_v46 = vpop.f32.mrb[65].mxu0  ;;  %v7867_v63 = vpop.f32.mrb[65].mxu1  ;;  %8822 = vmatprep.subr.bf16.mxu0 %v15494_v33  ;;  %8863 = vmatprep.subr.bf16.mxu1 %v15497_v8  ;;  %v7866_v41 = vadd.f32 %v7865_v42, %v7461_v36  ;;  %v15539_v5 = vld [vmem:[#allocation18 + $0xac] ss:$16 sps:$4 sm:$0xff]   ;;  %v15534_v42 = vld [vmem:[#allocation18 + $0xa0] ss:$16 sps:$4 sm:$0xff]  }
 0x788   :  { %v7827_v50 = vadd.f32 %v7826_v46, %v7457_v9  ;;  %v7828_v15 = vpop.f32.mrb[66].mxu0  ;;  %v7869_v16 = vpop.f32.mrb[66].mxu1  ;;  %v7868_v28 = vadd.f32 %v7867_v63, %v7465_v20  ;;  %v7382_v10 = vld [vmem:[#allocation9] sm:$0x3]  ;;  %v15542_v63 = vld [vmem:[#allocation18 + $0xc4] ss:$16 sps:$4 sm:$0xff]  }
 0x789   :  { %v13691_v17 = vmul.f32 -1.442695, %v7825_v13  ;;  %v7829_v18 = vpop.f32.mrb[67].mxu0  ;;  %v7870_v31 = vpop.f32.mrb[67].mxu1  ;;  %v15540_v15 = vld [vmem:[#allocation18 + $0xc0] ss:$16 sps:$4 sm:$0xff]  }
 0x78a   :  { %v13692_v19 = vmul.f32 -1.442695, %v7827_v50  ;;  %8823 = vmatpush1.bf16.msra.mxu0 %v15492_v7  ;;  %8864 = vmatpush1.bf16.msra.mxu1 %v15495_v12  ;;  %v13693_v39 = vmul.f32 -1.442695, %v7868_v28  ;;  %v15537_v7 = vld [vmem:[#allocation18 + $0xa8] ss:$16 sps:$4 sm:$0xff]  }
 0x78b   :  { %16356 = vpow2.f32 %v13691_v17  ;;  %8824 = vmatprep.subr.bf16.mxu0 %v15500_v14  ;;  %8865 = vmatprep.subr.bf16.mxu1 %v15503_v11  ;;  %v15545_v14 = vld [vmem:[#allocation18 + $0xcc] ss:$16 sps:$4 sm:$0xff]   ;;  %v15543_v16 = vld [vmem:[#allocation18 + $0xc8] ss:$16 sps:$4 sm:$0xff]   ;;  %v15548_v17 = vld [vmem:[#allocation18 + $0xe4] ss:$16 sps:$4 sm:$0xff]  }
 0x78c   :  { %16358 = vpow2.f32 %v13692_v19  ;;  %v15551_v18 = vld [vmem:[#allocation18 + $0xec] ss:$16 sps:$4 sm:$0xff]   ;;  %v15546_v19 = vld [vmem:[#allocation18 + $0xe0] ss:$16 sps:$4 sm:$0xff]   ;;  %v15549_v20 = vld [vmem:[#allocation18 + $0xe8] ss:$16 sps:$4 sm:$0xff]  }
 0x78d   :  { %16360 = vpow2.f32 %v13693_v39  ;;  %v15560_v28 = vld [vmem:[#allocation18 + $0x124] ss:$16 sps:$4 sm:$0xff]  }
 0x78e   :  { %8825 = vmatpush1.bf16.msra.mxu0 %v15498_v22  ;;  %8866 = vmatpush1.bf16.msra.mxu1 %v15501_v24  ;;  %16362 = vtanh.f32 %v7866_v41  ;;  %v15554_v22 = vld [vmem:[#allocation18 + $0x104] ss:$16 sps:$4 sm:$0xff]   ;;  %v15557_v24 = vld [vmem:[#allocation18 + $0x10c] ss:$16 sps:$4 sm:$0xff]  }
 0x78f   :  { %9312 = vmatprep.subr.bf16.mxu0 %v15506_v25  ;;  %9353 = vmatprep.subr.bf16.mxu1 %v15509_v26  ;;  %v15552_v25 = vld [vmem:[#allocation18 + $0x100] ss:$16 sps:$4 sm:$0xff]   ;;  %v15555_v26 = vld [vmem:[#allocation18 + $0x108] ss:$16 sps:$4 sm:$0xff]  }
 0x791   :  { %8827 = vmatmul.mubr.bf16.vlgmr.msra.gmra.mrb[72].mxu0 %v17455_v32  ;;  %8868 = vmatmul.mubr.bf16.vlgmr.msra.gmra.mrb[72].mxu1 %v17455_v32 }
 0x792   :  { %9313 = vmatpush1.bf16.msra.mxu0 %v15504_v29  ;;  %9354 = vmatpush1.bf16.msra.mxu1 %v15507_v30  ;;  %v15563_v29 = vld [vmem:[#allocation18 + $0x12c] ss:$16 sps:$4 sm:$0xff]  }
 0x793   :  { %9314 = vmatprep.subr.bf16.mxu0 %v15512_v38  ;;  %9355 = vmatprep.subr.bf16.mxu1 %v15515_v21  ;;  %v15558_v38 = vld [vmem:[#allocation18 + $0x120] ss:$16 sps:$4 sm:$0xff]   ;;  %v15561_v21 = vld [vmem:[#allocation18 + $0x128] ss:$16 sps:$4 sm:$0xff]  }
 0x795   :  { %v16357_v6 = vpop.eup %16356 }
 0x796   :  { %v16359_v43 = vpop.eup %16358  ;;  %v7875_v27 = vadd.f32 1.0, %v16357_v6  ;;  %9315 = vmatpush1.bf16.msra.mxu0 %v15510_v37  ;;  %9356 = vmatpush1.bf16.msra.mxu1 %v15513_v40  ;;  %v15566_v37 = vld [vmem:[#allocation18 + $0x144] ss:$16 sps:$4 sm:$0xff]   ;;  %v15569_v40 = vld [vmem:[#allocation18 + $0x14c] ss:$16 sps:$4 sm:$0xff]  }
 0x797   :  { %v7881_v32 = vadd.f32 1.0, %v16359_v43  ;;  %9316 = vmatprep.subr.bf16.mxu0 %v15518_v23  ;;  %9357 = vmatprep.subr.bf16.mxu1 %v15521_v35  ;;  %v16361_v33 = vpop.eup %16360  ;;  %v15564_v6 = vld [vmem:[#allocation18 + $0x140] ss:$16 sps:$4 sm:$0xff]   ;;  %v15567_v43 = vld [vmem:[#allocation18 + $0x148] ss:$16 sps:$4 sm:$0xff]  }
 0x798   :  { %16364 = vrcp.f32 %v7875_v27  ;;  %v16363_v8 = vpop.eup %16362  ;;  %v7888_v46 = vadd.f32 1.0, %v16361_v33  ;;  %v15572_v27 = vld [vmem:[#allocation18 + $0x164] ss:$16 sps:$4 sm:$0xff]   ;;  %v15593_v33 = vld [vmem:[#allocation18 + $0x1cc] ss:$16 sps:$4 sm:$0xff]  }
 0x799   :  { %16366 = vrcp.f32 %v7881_v32  ;;  %v15573_v32 = vld [vmem:[#allocation18 + $0x168] ss:$16 sps:$4 sm:$0xff]  }
 0x79a   :  { %9317 = vmatpush1.bf16.msra.mxu0 %v15516_v44  ;;  %9358 = vmatpush1.bf16.msra.mxu1 %v15519_v45  ;;  %16368 = vrcp.f32 %v7888_v46  ;;  %v15575_v44 = vld [vmem:[#allocation18 + $0x16c] ss:$16 sps:$4 sm:$0xff]   ;;  %v15602_v46 = vld [vmem:[#allocation15 + $0x4] ss:$16 sps:$4 sm:$0xff]  }
 0x79b   :  { %9318 = vmatprep.subr.bf16.mxu0 %v15524_v49  ;;  %9359 = vmatprep.subr.bf16.mxu1 %v15527_v52  ;;  %v15581_v49 = vld [vmem:[#allocation18 + $0x18c] ss:$16 sps:$4 sm:$0xff]  }
 0x79e   :  { %9319 = vmatpush1.bf16.msra.mxu0 %v15522_v53  ;;  %9360 = vmatpush1.bf16.msra.mxu1 %v15525_v60  ;;  %v15576_v53 = vld [vmem:[#allocation18 + $0x180] ss:$16 sps:$4 sm:$0xff]  }
 0x79f   :  { %9320 = vmatprep.subr.bf16.mxu0 %v15530_v61  ;;  %9361 = vmatprep.subr.bf16.mxu1 %v15533_v62  ;;  %v15579_v61 = vld [vmem:[#allocation18 + $0x188] ss:$16 sps:$4 sm:$0xff]   ;;  %v15584_v62 = vld [vmem:[#allocation18 + $0x1a4] ss:$16 sps:$4 sm:$0xff]  }
 0x7a2   :  { %v16365_v9 = vpop.eup %16364  ;;  %9321 = vmatpush1.bf16.msra.mxu0 %v15528_v2  ;;  %9362 = vmatpush1.bf16.msra.mxu1 %v15531_v3  ;;  %v15587_v2 = vld [vmem:[#allocation18 + $0x1ac] ss:$16 sps:$4 sm:$0xff]   ;;  %v15582_v3 = vld [vmem:[#allocation18 + $0x1a0] ss:$16 sps:$4 sm:$0xff]  }
 0x7a3   :  { %v16367_v12 = vpop.eup %16366  ;;  %v7892_v13 = vmul.f32 %v16365_v9, %v16363_v8  ;;  %9322 = vmatprep.subr.bf16.mxu0 %v15536_v4  ;;  %9363 = vmatprep.subr.bf16.mxu1 %v15539_v5  ;;  %v15585_v4 = vld [vmem:[#allocation18 + $0x1a8] ss:$16 sps:$4 sm:$0xff]   ;;  %v15590_v5 = vld [vmem:[#allocation18 + $0x1c4] ss:$16 sps:$4 sm:$0xff]   ;;  %v15588_v8 = vld [vmem:[#allocation18 + $0x1c0] ss:$16 sps:$4 sm:$0xff]  }
 0x7a4   :  { %v7891_v11 = vmul.f32 %v16367_v12, %v7382_v10  ;;  %v16369_v30 = vpop.eup %16368  ;;  %v15591_v9 = vld [vmem:[#allocation18 + $0x1c8] ss:$16 sps:$4 sm:$0xff]  }
 0x7a5   :  { %v15597_v12 = vld [vmem:[#allocation18 + $0x1e8] ss:$16 sps:$4 sm:$0xff]  }
 0x7a6   :  { %v7893_v50 = vadd.f32 %v7892_v13, %v7891_v11  ;;  %9323 = vmatpush1.bf16.msra.mxu0 %v15534_v42  ;;  %9364 = vmatpush1.bf16.msra.mxu1 %v15537_v7  ;;  %v15599_v42 = vld [vmem:[#allocation18 + $0x1ec] ss:$16 sps:$4 sm:$0xff]   ;;  %v15594_v7 = vld [vmem:[#allocation18 + $0x1e0] ss:$16 sps:$4 sm:$0xff]   ;;  %v15608_v11 = vld [vmem:[#allocation15 + $0x24] ss:$16 sps:$4 sm:$0xff]  }
 0x7a7   :  { %9324 = vmatprep.subr.bf16.mxu0 %v15542_v63  ;;  %9365 = vmatprep.subr.bf16.mxu1 %v15545_v14  ;;  %v15600_v13 = vld [vmem:[#allocation15] ss:$16 sps:$4 sm:$0xff]   ;;  %v15603_v63 = vld [vmem:[#allocation15 + $0x8] ss:$16 sps:$4 sm:$0xff]   ;;  %v15605_v14 = vld [vmem:[#allocation15 + $0xc] ss:$16 sps:$4 sm:$0xff]  }
 0x7a8   :  { %16370 = vtanh.f32 %v7893_v50  ;;  %v7898_v31 = vsel %vm3779_vm12, %v7893_v50, %v7382_v10  ;;  %v15596_v10 = vld [vmem:[#allocation18 + $0x1e4] ss:$16 sps:$4 sm:$0xff]   ;;  %v15611_v50 = vld [vmem:[#allocation15 + $0x2c] ss:$16 sps:$4 sm:$0xff]  }
 0x7a9   :  { %7899 = vst [vmem:[#allocation9] sm:$0x3] %v7898_v31  ;;  %v15620_v31 = vld [vmem:[#allocation15 + $0x64] ss:$16 sps:$4 sm:$0xff]  }
 0x7aa   :  { %9325 = vmatpush1.bf16.msra.mxu0 %v15540_v15  ;;  %9366 = vmatpush1.bf16.msra.mxu1 %v15543_v16  ;;  %v15606_v15 = vld [vmem:[#allocation15 + $0x20] ss:$16 sps:$4 sm:$0xff]   ;;  %v15609_v16 = vld [vmem:[#allocation15 + $0x28] ss:$16 sps:$4 sm:$0xff]  }
 0x7ab   :  { %9326 = vmatprep.subr.bf16.mxu0 %v15548_v17  ;;  %9367 = vmatprep.subr.bf16.mxu1 %v15551_v18  ;;  %v15614_v17 = vld [vmem:[#allocation15 + $0x44] ss:$16 sps:$4 sm:$0xff]   ;;  %v15612_v18 = vld [vmem:[#allocation15 + $0x40] ss:$16 sps:$4 sm:$0xff]  }
 0x7ae   :  { %9327 = vmatpush1.bf16.msra.mxu0 %v15546_v19  ;;  %9368 = vmatpush1.bf16.msra.mxu1 %v15549_v20  ;;  %v15623_v19 = vld [vmem:[#allocation15 + $0x6c] ss:$16 sps:$4 sm:$0xff]   ;;  %v15618_v20 = vld [vmem:[#allocation15 + $0x60] ss:$16 sps:$4 sm:$0xff]  }
 0x7af   :  { %9328 = vmatprep.subr.bf16.mxu0 %v15554_v22  ;;  %9369 = vmatprep.subr.bf16.mxu1 %v15557_v24  ;;  %v15621_v22 = vld [vmem:[#allocation15 + $0x68] ss:$16 sps:$4 sm:$0xff]   ;;  %v15626_v24 = vld [vmem:[#allocation15 + $0x84] ss:$16 sps:$4 sm:$0xff]  }
 0x7b2   :  { %v16371_v36 = vpop.eup %16370  ;;  %9329 = vmatpush1.bf16.msra.mxu0 %v15552_v25  ;;  %9370 = vmatpush1.bf16.msra.mxu1 %v15555_v26  ;;  %v15629_v25 = vld [vmem:[#allocation15 + $0x8c] ss:$16 sps:$4 sm:$0xff]   ;;  %v15624_v26 = vld [vmem:[#allocation15 + $0x80] ss:$16 sps:$4 sm:$0xff]  }
 0x7b3   :  { %v7895_v39 = vmul.f32 %v16371_v36, %v16369_v30  ;;  %9330 = vmatprep.subr.bf16.mxu0 %v15560_v28  ;;  %9371 = vmatprep.subr.bf16.mxu1 %v15563_v29  ;;  %v15627_v28 = vld [vmem:[#allocation15 + $0x88] ss:$16 sps:$4 sm:$0xff]   ;;  %v15632_v29 = vld [vmem:[#allocation15 + $0xa4] ss:$16 sps:$4 sm:$0xff]   ;;  %v15635_v30 = vld [vmem:[#allocation15 + $0xac] ss:$16 sps:$4 sm:$0xff]  }
 0x7b4   :  { %v15630_v36 = vld [vmem:[#allocation15 + $0xa0] ss:$16 sps:$4 sm:$0xff]  }
 0x7b5   :  { %v7896_v41 = vsel %vm3779_vm12, %v7895_v39, %v17422_v48  ;;  %v7900_v23 = vsel %vm3779_vm12, %v7895_v39, 0.0  ;;  %v15570_v48 = vld [vmem:[#allocation18 + $0x160] ss:$16 sps:$4 sm:$0xff]   ;;  %v15638_v39 = vld [vmem:[#allocation15 + $0xc4] ss:$16 sps:$4 sm:$0xff]  }
 0x7b6   :  { %7897 = vst [vmem:[#allocation8] sm:$0x3] %v7896_v41  ;;  %v7908_v35 = vrot.slane %v7900_v23, %v17069_v34  ;;  %9331 = vmatpush1.bf16.msra.mxu0 %v15558_v38  ;;  %9372 = vmatpush1.bf16.msra.mxu1 %v15561_v21  ;;  %v15633_v38 = vld [vmem:[#allocation15 + $0xa8] ss:$16 sps:$4 sm:$0xff]   ;;  %v15636_v21 = vld [vmem:[#allocation15 + $0xc0] ss:$16 sps:$4 sm:$0xff]  }
 0x7b7   :  { %9332 = vmatprep.subr.bf16.mxu0 %v15566_v37  ;;  %9373 = vmatprep.subr.bf16.mxu1 %v15569_v40  ;;  %v15639_v37 = vld [vmem:[#allocation15 + $0xc8] ss:$16 sps:$4 sm:$0xff]   ;;  %v15641_v40 = vld [vmem:[#allocation15 + $0xcc] ss:$16 sps:$4 sm:$0xff]   ;;  %v15644_v41 = vld [vmem:[#allocation15 + $0xe4] ss:$16 sps:$4 sm:$0xff]  }
 0x7b8   :  { %v7909_v45 = vcombine.high %v7908_v35, %v7908_v35  ;;  %13694 = vst.sshfl [vmem:[#allocation3 + $0x3] sm:$0x1 pattern:$0x73625140] %v7908_v35  ;;  %v15647_v23 = vld [vmem:[#allocation15 + $0xec] ss:$16 sps:$4 sm:$0xff]  }
 0x7b9   :  { %v15642_v35 = vld [vmem:[#allocation15 + $0xe0] ss:$16 sps:$4 sm:$0xff]  }
 0x7ba   :  { %13695 = vst.sshfl [vmem:[#allocation3 + $0xb] sm:$0x1 pattern:$0x73625140] %v7909_v45  ;;  %9333 = vmatpush1.bf16.msra.mxu0 %v15564_v6  ;;  %9374 = vmatpush1.bf16.msra.mxu1 %v15567_v43  ;;  %v15645_v6 = vld [vmem:[#allocation15 + $0xe8] ss:$16 sps:$4 sm:$0xff]  }
 0x7bb   :  { %9334 = vmatprep.subr.bf16.mxu0 %v15572_v27  ;;  %9375 = vmatprep.subr.bf16.mxu1 %v15575_v44  ;;  %v15650_v43 = vld [vmem:[#allocation16 + $0x4] ss:$16 sps:$4 sm:$0xff]   ;;  %v15653_v27 = vld [vmem:[#allocation16 + $0xc] ss:$16 sps:$4 sm:$0xff]  }
 0x7bd   :  { %v17484_v52 = vld [vmem:[#allocation8] sm:$0x3] }
 0x7be   :  { %9335 = vmatpush1.bf16.msra.mxu0 %v15570_v48  ;;  %9376 = vmatpush1.bf16.msra.mxu1 %v15573_v32  ;;  %v8905_v60 = vpack.c.bf16 %v17484_v52, %v17484_v52 }
 0x7bf   :  { %9336 = vmatprep.subr.bf16.mxu0 %v15578_v47  ;;  %9377 = vmatprep.subr.bf16.mxu1 %v15581_v49 }
 0x7c0   :  { %9344 = vmatprep.mubr.bf16.mxu0 %v8905_v60  ;;  %9385 = vmatprep.mubr.bf16.mxu1 %v8905_v60 }
 0x7c2   :  { %9337 = vmatpush1.bf16.msra.mxu0 %v15576_v53  ;;  %9378 = vmatpush1.bf16.msra.mxu1 %v15579_v61 }
 0x7c3   :  { %9338 = vmatprep.subr.bf16.mxu0 %v15584_v62  ;;  %9379 = vmatprep.subr.bf16.mxu1 %v15587_v2 }
 0x7c6   :  { %9339 = vmatpush1.bf16.msra.mxu0 %v15582_v3  ;;  %9380 = vmatpush1.bf16.msra.mxu1 %v15585_v4 }
 0x7c7   :  { %9340 = vmatprep.subr.bf16.mxu0 %v15590_v5  ;;  %9381 = vmatprep.subr.bf16.mxu1 %v15593_v33 }
 0x7ca   :  { %9341 = vmatpush1.bf16.msra.mxu0 %v15588_v8  ;;  %9382 = vmatpush1.bf16.msra.mxu1 %v15591_v9  ;;  %v7933_v9 = vld [vmem:[#allocation2 + $0x6] ss:$8 sm:$0xf] }
 0x7cb   :  { %9342 = vmatprep.subr.bf16.mxu0 %v15596_v10  ;;  %9383 = vmatprep.subr.bf16.mxu1 %v15599_v42  ;;  %v7935_v10 = vld [vmem:[#allocation2 + $0x26] ss:$8 sm:$0xf] }
 0x7ce   :  { %9343 = vmatpush1.bf16.msra.mxu0 %v15594_v7  ;;  %9384 = vmatpush1.bf16.msra.mxu1 %v15597_v12 }
 0x7cf   :  { %9651 = vmatprep.subr.bf16.mxu0 %v15602_v46  ;;  %9692 = vmatprep.subr.bf16.mxu1 %v15605_v14 }
 0x7d1   :  { %9345 = vmatmul.mubr.bf16.vlgmr.msra.gmra.mrb[76].mxu0 %v17463_v58  ;;  %9386 = vmatmul.mubr.bf16.vlgmr.msra.gmra.mrb[76].mxu1 %v17463_v58  ;;  %v15617_v58 = vld [vmem:[#allocation15 + $0x4c] ss:$16 sps:$4 sm:$0xff]  }
 0x7d2   :  { %9683 = vmatprep.mubr.bf16.mxu0 %v16780_v0  ;;  %9724 = vmatprep.mubr.bf16.mxu1 %v16780_v0  ;;  %v15615_v0 = vld [vmem:[#allocation15 + $0x48] ss:$16 sps:$4 sm:$0xff]  }
 0x7d3   :  { %9652 = vmatpush1.bf16.msra.mxu0 %v15600_v13  ;;  %9693 = vmatpush1.bf16.msra.mxu1 %v15603_v63 }
 0x7d4   :  { %9653 = vmatprep.subr.bf16.mxu0 %v15608_v11  ;;  %9694 = vmatprep.subr.bf16.mxu1 %v15611_v50 }
 0x7d7   :  { %9654 = vmatpush1.bf16.msra.mxu0 %v15606_v15  ;;  %9695 = vmatpush1.bf16.msra.mxu1 %v15609_v16 }
 0x7d8   :  { %9655 = vmatprep.subr.bf16.mxu0 %v15614_v17  ;;  %9696 = vmatprep.subr.bf16.mxu1 %v15617_v58 }
 0x7db   :  { %9656 = vmatpush1.bf16.msra.mxu0 %v15612_v18  ;;  %9697 = vmatpush1.bf16.msra.mxu1 %v15615_v0 }
 0x7dc   :  { %9657 = vmatprep.subr.bf16.mxu0 %v15620_v31  ;;  %9698 = vmatprep.subr.bf16.mxu1 %v15623_v19 }
 0x7df   :  { %9658 = vmatpush1.bf16.msra.mxu0 %v15618_v20  ;;  %9699 = vmatpush1.bf16.msra.mxu1 %v15621_v22 }
 0x7e0   :  { %9659 = vmatprep.subr.bf16.mxu0 %v15626_v24  ;;  %9700 = vmatprep.subr.bf16.mxu1 %v15629_v25 }
 0x7e3   :  { %9660 = vmatpush1.bf16.msra.mxu0 %v15624_v26  ;;  %9701 = vmatpush1.bf16.msra.mxu1 %v15627_v28  ;;  %v7931_v26 = vld [vmem:[#allocation5] sm:$0x3] }
 0x7e4   :  { %9661 = vmatprep.subr.bf16.mxu0 %v15632_v29  ;;  %9702 = vmatprep.subr.bf16.mxu1 %v15635_v30  ;;  %v8310_v29 = vrot.slane %v7931_v26, %v17069_v34 }
 0x7e7   :  { %9662 = vmatpush1.bf16.msra.mxu0 %v15630_v36  ;;  %9703 = vmatpush1.bf16.msra.mxu1 %v15633_v38 }
 0x7e8   :  { %9663 = vmatprep.subr.bf16.mxu0 %v15638_v39  ;;  %9704 = vmatprep.subr.bf16.mxu1 %v15641_v40 }
 0x7eb   :  { %9664 = vmatpush1.bf16.msra.mxu0 %v15636_v21  ;;  %9705 = vmatpush1.bf16.msra.mxu1 %v15639_v37  ;;  %v8311_v21 = vcombine.high %v8310_v29, %v8310_v29 }
 0x7ec   :  { %9665 = vmatprep.subr.bf16.mxu0 %v15644_v41  ;;  %9706 = vmatprep.subr.bf16.mxu1 %v15647_v23  ;;  %v8318_v23 = vrot.slane %v8310_v29, %v17069_v34 }
 0x7ef   :  { %9666 = vmatpush1.bf16.msra.mxu0 %v15642_v35  ;;  %9707 = vmatpush1.bf16.msra.mxu1 %v15645_v6 }
 0x7f0   :  { %10316 = vmatprep.subr.bf16.mxu0 %v15650_v43  ;;  %10357 = vmatprep.subr.bf16.mxu1 %v15653_v27  ;;  %v8325_v43 = vrot.slane %v8311_v21, %v17069_v34  ;;  %v15659_v21 = vld [vmem:[#allocation16 + $0x2c] ss:$16 sps:$4 sm:$0xff]  }
 0x824   :  { %v8163_v44 = vpop.f32.mrb[68].mxu0  ;;  %v8204_v45 = vpop.f32.mrb[68].mxu1 }
 0x825   :  { %v8165_v48 = vpop.f32.mrb[69].mxu0  ;;  %v8206_v32 = vpop.f32.mrb[69].mxu1 }
 0x826   :  { %v8215_v47 = vcombine.low %v8163_v44, %v8165_v48  ;;  %v8216_v49 = vcombine.low %v8204_v45, %v8206_v32  ;;  %v8167_v53 = vpop.f32.mrb[70].mxu0  ;;  %v8208_v60 = vpop.f32.mrb[70].mxu1 }
 0x827   :  { %v8168_v61 = vpop.f32.mrb[71].mxu0  ;;  %v8209_v62 = vpop.f32.mrb[71].mxu1 }
 0x828   :  { %v8223_v2 = vrot.slane %v8215_v47, %v17069_v34  ;;  %v8230_v3 = vrot.slane %v8216_v49, %v17069_v34  ;;  %v17499_v60 = vpop.permute.xlu0 %8343 }
 0x829   :  { %18021 = vst [vmem:[#allocation31_spill] sm:$0xff] %v17499_v60  ;;  %vm8345_vm15 = vcmp.eq.s32.totalorder %v17499_v60, 1  ;;  %v17791_v60 = vld [vmem:[#allocation18 + $0x1ac] ss:$16 sps:$4 sm:$0xff]  }
 0x82a   :  { %v8231_v4 = vcombine.low %v8223_v2, %v8230_v3  ;;  %v8232_v5 = vcombine.high %v8223_v2, %v8230_v3  ;;  %18028 = vst [vmem:[#allocation38_spill] sm:$0xff] %v17791_v60 }
 0x82c   :  { %v8239_v33 = vrot.slane %v8231_v4, %v17069_v34  ;;  %v8246_v8 = vrot.slane %v8232_v5, %v17069_v34 }
 0x82e   :  { %v8249_v42 = vadd.f32 %v8239_v33, %v7933_v9  ;;  %v8250_v7 = vadd.f32 %v8246_v8, %v7935_v10 }
 0x830   :  { %v13728_v12 = vmul.f32 -1.442695, %v8249_v42  ;;  %v13729_v13 = vmul.f32 -1.442695, %v8250_v7  ;;  %v8265_v46 = vrot.slane %v8249_v42, 1  ;;  %v8266_v63 = vrot.slane %v8250_v7, 1 }
 0x831   :  { %v8287_v50 = vrot.slane %v8249_v42, 3  ;;  %v8288_v15 = vrot.slane %v8250_v7, 3  ;;  %v8281_v16 = vrot.slane %v8249_v42, 2  ;;  %v8282_v17 = vrot.slane %v8250_v7, 2  ;;  %v8452_v42 = vld [vmem:[%s17991_s6] sm:$0xf] }
 0x832   :  { %16372 = vpow2.f32 %v13728_v12  ;;  %v13730_v14 = vmul.f32 -1.442695, %v8265_v46  ;;  %v13731_v11 = vmul.f32 -1.442695, %v8266_v63  ;;  %v8457_v12 = vrot.slane %v8452_v42, %v17050_v54  ;;  %v16601_v63 = vld [vmem:[#allocation4] sm:$0x3] }
 0x833   :  { %16374 = vpow2.f32 %v13729_v13  ;;  %v13732_v58 = vmul.f32 -1.442695, %v8287_v50  ;;  %v13733_v18 = vmul.f32 -1.442695, %v8288_v15  ;;  %v8461_v46 = vrot.slane %v8452_v42, %v17054_v56 }
 0x834   :  { %16376 = vpow2.f32 %v13730_v14 }
 0x835   :  { %16378 = vpow2.f32 %v13731_v11 }
 0x836   :  { %16380 = vtanh.f32 %v8281_v16 }
 0x837   :  { %16382 = vtanh.f32 %v8282_v17 }
 0x838   :  { %16384 = vpow2.f32 %v13732_v58 }
 0x839   :  { %16386 = vpow2.f32 %v13733_v18 }
 0x83c   :  { %v16373_v0 = vpop.eup %16372 }
 0x83d   :  { %v16375_v31 = vpop.eup %16374  ;;  %v8257_v19 = vadd.f32 1.0, %v16373_v0 }
 0x83e   :  { %v16377_v20 = vpop.eup %16376  ;;  %v8258_v22 = vadd.f32 1.0, %v16375_v31 }
 0x83f   :  { %v16379_v24 = vpop.eup %16378  ;;  %16388 = vrcp.f32 %v8257_v19  ;;  %v8275_v25 = vadd.f32 1.0, %v16377_v20 }
 0x840   :  { %16390 = vrcp.f32 %v8258_v22  ;;  %v8276_v28 = vadd.f32 1.0, %v16379_v24  ;;  %v16381_v30 = vpop.eup %16380  ;;  %v8469_v24 = vrot.slane %v8452_v42, %v17056_v57 }
 0x841   :  { %16392 = vrcp.f32 %v8275_v25  ;;  %v16383_v36 = vpop.eup %16382 }
 0x842   :  { %16394 = vrcp.f32 %v8276_v28  ;;  %v16385_v38 = vpop.eup %16384  ;;  %v15651_v28 = vld [vmem:[#allocation16 + $0x8] ss:$16 sps:$4 sm:$0xff]  }
 0x843   :  { %v16387_v39 = vpop.eup %16386  ;;  %v8297_v41 = vadd.f32 1.0, %v16385_v38  ;;  %v15656_v38 = vld [vmem:[#allocation16 + $0x24] ss:$16 sps:$4 sm:$0xff]  }
 0x844   :  { %v8298_v6 = vadd.f32 1.0, %v16387_v39 }
 0x845   :  { %16396 = vrcp.f32 %v8297_v41 }
 0x846   :  { %16398 = vrcp.f32 %v8298_v6 }
 0x849   :  { %v16389_v37 = vpop.eup %16388 }
 0x84a   :  { %v16391_v40 = vpop.eup %16390  ;;  %v8330_v45 = vmul.f32 %v16389_v37, %v16381_v30  ;;  %v8465_v30 = vrot.slane %v8452_v42, %v17052_v55  ;;  %v15654_v37 = vld [vmem:[#allocation16 + $0x20] ss:$16 sps:$4 sm:$0xff]  }
 0x84b   :  { %v16393_v35 = vpop.eup %16392  ;;  %v8331_v32 = vmul.f32 %v16391_v40, %v16383_v36  ;;  %v15657_v40 = vld [vmem:[#allocation16 + $0x28] ss:$16 sps:$4 sm:$0xff]   ;;  %v15678_v42 = vld [vmem:[#allocation16 + $0xa0] ss:$16 sps:$4 sm:$0xff]  }
 0x84c   :  { %v16395_v27 = vpop.eup %16394  ;;  %v8328_v44 = vmul.f32 %v16393_v35, %v8318_v23  ;;  %v15662_v23 = vld [vmem:[#allocation16 + $0x44] ss:$16 sps:$4 sm:$0xff]   ;;  %v15665_v35 = vld [vmem:[#allocation16 + $0x4c] ss:$16 sps:$4 sm:$0xff]  }
 0x84d   :  { %v8329_v48 = vmul.f32 %v16395_v27, %v8325_v43 }
 0x84e   :  { %v8332_v47 = vadd.f32 %v8330_v45, %v8328_v44  ;;  %v15660_v44 = vld [vmem:[#allocation16 + $0x40] ss:$16 sps:$4 sm:$0xff]   ;;  %v15663_v45 = vld [vmem:[#allocation16 + $0x48] ss:$16 sps:$4 sm:$0xff]  }
 0x84f   :  { %v8333_v49 = vadd.f32 %v8331_v32, %v8329_v48  ;;  %v16397_v3 = vpop.eup %16396  ;;  %v15668_v32 = vld [vmem:[#allocation16 + $0x64] ss:$16 sps:$4 sm:$0xff]  }
 0x850   :  { %16400 = vtanh.f32 %v8332_v47  ;;  %v16399_v4 = vpop.eup %16398 }
 0x851   :  { %16402 = vtanh.f32 %v8333_v49  ;;  %v8368_v53 = vcombine.low %v8332_v47, %v8333_v49  ;;  %v15671_v47 = vld [vmem:[#allocation16 + $0x6c] ss:$16 sps:$4 sm:$0xff]   ;;  %v15666_v49 = vld [vmem:[#allocation16 + $0x60] ss:$16 sps:$4 sm:$0xff]  }
 0x853   :  { %v8375_v61 = vrot.slane %v8368_v53, %v17069_v34  ;;  %v15669_v53 = vld [vmem:[#allocation16 + $0x68] ss:$16 sps:$4 sm:$0xff]  }
 0x855   :  { %v8382_v62 = vrot.slane %v8375_v61, %v17069_v34  ;;  %v15674_v61 = vld [vmem:[#allocation16 + $0x84] ss:$16 sps:$4 sm:$0xff]  }
 0x857   :  { %v8384_v2 = vsel %vm8345_vm15, %v8382_v62, %v7931_v26  ;;  %v15648_v26 = vld [vmem:[#allocation16] ss:$16 sps:$4 sm:$0xff]   ;;  %v15677_v62 = vld [vmem:[#allocation16 + $0x8c] ss:$16 sps:$4 sm:$0xff]  }
 0x858   :  { %8385 = vst [vmem:[#allocation5] sm:$0x3] %v8384_v2  ;;  %v15672_v2 = vld [vmem:[#allocation16 + $0x80] ss:$16 sps:$4 sm:$0xff]  }
 0x85a   :  { %v16401_v5 = vpop.eup %16400 }
 0x85b   :  { %v16403_v33 = vpop.eup %16402  ;;  %v8336_v8 = vmul.f32 %v16401_v5, %v16397_v3  ;;  %v15675_v3 = vld [vmem:[#allocation16 + $0x88] ss:$16 sps:$4 sm:$0xff]   ;;  %v15683_v5 = vld [vmem:[#allocation16 + $0xac] ss:$16 sps:$4 sm:$0xff]  }
 0x85c   :  { %v8337_v9 = vmul.f32 %v16403_v33, %v16399_v4  ;;  %v15680_v4 = vld [vmem:[#allocation16 + $0xa4] ss:$16 sps:$4 sm:$0xff]  }
 0x85e   :  { %v8348_v10 = vcombine.low %v8336_v8, %v8337_v9 }
 0x860   :  { %v8355_v7 = vrot.slane %v8348_v10, %v17069_v34  ;;  %v8386_v10 = vld [vmem:[#allocation7] sm:$0x3] }
 0x862   :  { %v8362_v13 = vrot.slane %v8355_v7, %v17069_v34  ;;  %v15681_v7 = vld [vmem:[#allocation16 + $0xa8] ss:$16 sps:$4 sm:$0xff]  }
 0x864   :  { %v8364_v14 = vsel %vm8345_vm15, %v8362_v13, %v16601_v63  ;;  %v8828_v11 = vpop.f32.mrb[72].mxu0  ;;  %v8869_v50 = vpop.f32.mrb[72].mxu1  ;;  %v15686_v63 = vld [vmem:[#allocation16 + $0xc4] ss:$16 sps:$4 sm:$0xff]  }
 0x865   :  { %8365 = vst [vmem:[#allocation4] sm:$0x3] %v8364_v14  ;;  %v8829_v15 = vadd.f32 %v8828_v11, %v8457_v12  ;;  %v8830_v16 = vpop.f32.mrb[73].mxu0  ;;  %v8871_v17 = vpop.f32.mrb[73].mxu1  ;;  %v8870_v41 = vadd.f32 %v8869_v50, %v8465_v30  ;;  %v15689_v14 = vld [vmem:[#allocation16 + $0xcc] ss:$16 sps:$4 sm:$0xff]  }
 0x866   :  { %v8831_v58 = vadd.f32 %v8830_v16, %v8461_v46  ;;  %v8832_v18 = vpop.f32.mrb[74].mxu0  ;;  %v8873_v0 = vpop.f32.mrb[74].mxu1  ;;  %v8872_v25 = vadd.f32 %v8871_v17, %v8469_v24  ;;  %v15687_v16 = vld [vmem:[#allocation16 + $0xc8] ss:$16 sps:$4 sm:$0xff]   ;;  %v15692_v17 = vld [vmem:[#allocation16 + $0xe4] ss:$16 sps:$4 sm:$0xff]  }
 0x867   :  { %v13799_v31 = vmul.f32 -1.442695, %v8829_v15  ;;  %v8833_v19 = vpop.f32.mrb[75].mxu0  ;;  %v8874_v20 = vpop.f32.mrb[75].mxu1  ;;  %v15684_v15 = vld [vmem:[#allocation16 + $0xc0] ss:$16 sps:$4 sm:$0xff]  }
 0x868   :  { %v13800_v22 = vmul.f32 -1.442695, %v8831_v58  ;;  %v13801_v39 = vmul.f32 -1.442695, %v8872_v25  ;;  %v15695_v58 = vld [vmem:[#allocation16 + $0xec] ss:$16 sps:$4 sm:$0xff]  }
 0x869   :  { %16404 = vpow2.f32 %v13799_v31  ;;  %v15690_v0 = vld [vmem:[#allocation16 + $0xe0] ss:$16 sps:$4 sm:$0xff]   ;;  %v15693_v31 = vld [vmem:[#allocation16 + $0xe8] ss:$16 sps:$4 sm:$0xff]   ;;  %v15698_v19 = vld [vmem:[#allocation16 + $0x104] ss:$16 sps:$4 sm:$0xff]  }
 0x86a   :  { %16406 = vpow2.f32 %v13800_v22  ;;  %v15701_v20 = vld [vmem:[#allocation16 + $0x10c] ss:$16 sps:$4 sm:$0xff]   ;;  %v15696_v22 = vld [vmem:[#allocation16 + $0x100] ss:$16 sps:$4 sm:$0xff]   ;;  %v15699_v24 = vld [vmem:[#allocation16 + $0x108] ss:$16 sps:$4 sm:$0xff]  }
 0x86b   :  { %16408 = vpow2.f32 %v13801_v39  ;;  %v15704_v25 = vld [vmem:[#allocation16 + $0x124] ss:$16 sps:$4 sm:$0xff]   ;;  %v15702_v30 = vld [vmem:[#allocation16 + $0x120] ss:$16 sps:$4 sm:$0xff]  }
 0x86c   :  { %v9450_v29 = vld [vmem:[#allocation4] sm:$0x3]  ;;  %16410 = vtanh.f32 %v8870_v41 }
 0x86d   :  { %v17517_v36 = vpack.c.bf16 %v9450_v29, %v9450_v29  ;;  %v15710_v39 = vld [vmem:[#allocation16 + $0x144] ss:$16 sps:$4 sm:$0xff]  }
 0x86f   :  { %9684 = vmatmul.mubr.bf16.vlgmr.msra.gmra.mrb[80].mxu0 %v17517_v36  ;;  %9725 = vmatmul.mubr.bf16.vlgmr.msra.gmra.mrb[80].mxu1 %v17517_v36 }
 0x870   :  { %10317 = vmatpush1.bf16.msra.mxu0 %v15648_v26  ;;  %10358 = vmatpush1.bf16.msra.mxu1 %v15651_v28  ;;  %v15707_v26 = vld [vmem:[#allocation16 + $0x12c] ss:$16 sps:$4 sm:$0xff]  }
 0x871   :  { %10318 = vmatprep.subr.bf16.mxu0 %v15656_v38  ;;  %10359 = vmatprep.subr.bf16.mxu1 %v15659_v21  ;;  %v15705_v38 = vld [vmem:[#allocation16 + $0x128] ss:$16 sps:$4 sm:$0xff]  }
 0x873   :  { %v16405_v6 = vpop.eup %16404 }
 0x874   :  { %v16407_v43 = vpop.eup %16406  ;;  %v8879_v27 = vadd.f32 1.0, %v16405_v6  ;;  %10319 = vmatpush1.bf16.msra.mxu0 %v15654_v37  ;;  %10360 = vmatpush1.bf16.msra.mxu1 %v15657_v40  ;;  %v15713_v37 = vld [vmem:[#allocation16 + $0x14c] ss:$16 sps:$4 sm:$0xff]   ;;  %v16602_v40 = vld [vmem:[#allocation6] sm:$0x3] }
 0x875   :  { %v8885_v48 = vadd.f32 1.0, %v16407_v43  ;;  %10320 = vmatprep.subr.bf16.mxu0 %v15662_v23  ;;  %10361 = vmatprep.subr.bf16.mxu1 %v15665_v35  ;;  %v16409_v33 = vpop.eup %16408  ;;  %v15708_v23 = vld [vmem:[#allocation16 + $0x140] ss:$16 sps:$4 sm:$0xff]   ;;  %v15711_v35 = vld [vmem:[#allocation16 + $0x148] ss:$16 sps:$4 sm:$0xff]  }
 0x876   :  { %16412 = vrcp.f32 %v8879_v27  ;;  %v16411_v8 = vpop.eup %16410  ;;  %v8892_v46 = vadd.f32 1.0, %v16409_v33  ;;  %v15716_v6 = vld [vmem:[#allocation16 + $0x164] ss:$16 sps:$4 sm:$0xff]   ;;  %v15719_v43 = vld [vmem:[#allocation16 + $0x16c] ss:$16 sps:$4 sm:$0xff]  }
 0x877   :  { %16414 = vrcp.f32 %v8885_v48  ;;  %v15714_v27 = vld [vmem:[#allocation16 + $0x160] ss:$16 sps:$4 sm:$0xff]   ;;  %v15725_v48 = vld [vmem:[#allocation16 + $0x18c] ss:$16 sps:$4 sm:$0xff]   ;;  %v17537_v33 = vld [vmem:[#allocation16 + $0x1c4] ss:$16 sps:$4 sm:$0xff]  }
 0x878   :  { %10321 = vmatpush1.bf16.msra.mxu0 %v15660_v44  ;;  %10362 = vmatpush1.bf16.msra.mxu1 %v15663_v45  ;;  %16416 = vrcp.f32 %v8892_v46  ;;  %v15717_v44 = vld [vmem:[#allocation16 + $0x168] ss:$16 sps:$4 sm:$0xff]   ;;  %v15722_v45 = vld [vmem:[#allocation16 + $0x184] ss:$16 sps:$4 sm:$0xff]  }
 0x879   :  { %10322 = vmatprep.subr.bf16.mxu0 %v15668_v32  ;;  %10363 = vmatprep.subr.bf16.mxu1 %v15671_v47  ;;  %v15720_v47 = vld [vmem:[#allocation16 + $0x180] ss:$16 sps:$4 sm:$0xff]  }
 0x87c   :  { %10323 = vmatpush1.bf16.msra.mxu0 %v15666_v49  ;;  %10364 = vmatpush1.bf16.msra.mxu1 %v15669_v53  ;;  %v15723_v53 = vld [vmem:[#allocation16 + $0x188] ss:$16 sps:$4 sm:$0xff]  }
 0x87d   :  { %10324 = vmatprep.subr.bf16.mxu0 %v15674_v61  ;;  %10365 = vmatprep.subr.bf16.mxu1 %v15677_v62  ;;  %v15728_v61 = vld [vmem:[#allocation16 + $0x1a4] ss:$16 sps:$4 sm:$0xff]   ;;  %v15731_v62 = vld [vmem:[#allocation16 + $0x1ac] ss:$16 sps:$4 sm:$0xff]  }
 0x880   :  { %v16413_v9 = vpop.eup %16412  ;;  %10325 = vmatpush1.bf16.msra.mxu0 %v15672_v2  ;;  %10366 = vmatpush1.bf16.msra.mxu1 %v15675_v3  ;;  %v8970_v2 = vld [vmem:[%s17993_s8] sm:$0xf]  ;;  %v15726_v3 = vld [vmem:[#allocation16 + $0x1a0] ss:$16 sps:$4 sm:$0xff]  }
 0x881   :  { %v16415_v12 = vpop.eup %16414  ;;  %v8896_v13 = vmul.f32 %v16413_v9, %v16411_v8  ;;  %10326 = vmatprep.subr.bf16.mxu0 %v15680_v4  ;;  %10367 = vmatprep.subr.bf16.mxu1 %v15683_v5  ;;  %v15729_v4 = vld [vmem:[#allocation16 + $0x1a8] ss:$16 sps:$4 sm:$0xff]   ;;  %v8975_v5 = vrot.slane %v8970_v2, %v17050_v54  ;;  %v17539_v8 = vld [vmem:[#allocation16 + $0x1cc] ss:$16 sps:$4 sm:$0xff]   ;;  %v8979_v9 = vrot.slane %v8970_v2, %v17054_v56 }
 0x882   :  { %v8895_v11 = vmul.f32 %v16415_v12, %v8386_v10  ;;  %v16417_v28 = vpop.eup %16416  ;;  %v17544_v12 = vld [vmem:[#allocation16 + $0x1c8] ss:$16 sps:$4 sm:$0xff]  }
 0x884   :  { %v8897_v50 = vadd.f32 %v8896_v13, %v8895_v11  ;;  %10327 = vmatpush1.bf16.msra.mxu0 %v15678_v42  ;;  %10368 = vmatpush1.bf16.msra.mxu1 %v15681_v7  ;;  %v17542_v7 = vld [vmem:[#allocation16 + $0x1c0] ss:$16 sps:$4 sm:$0xff]   ;;  %v17550_v11 = vld [vmem:[#allocation16 + $0x1ec] ss:$16 sps:$4 sm:$0xff]  }
 0x885   :  { %10328 = vmatprep.subr.bf16.mxu0 %v15686_v63  ;;  %10369 = vmatprep.subr.bf16.mxu1 %v15689_v14  ;;  %v17548_v14 = vld [vmem:[#allocation16 + $0x1e4] ss:$16 sps:$4 sm:$0xff]  }
 0x886   :  { %16418 = vtanh.f32 %v8897_v50  ;;  %v8902_v18 = vsel %vm6823_vm14, %v8897_v50, %v8386_v10 }
 0x887   :  { %8903 = vst [vmem:[#allocation7] sm:$0x3] %v8902_v18 }
 0x888   :  { %10329 = vmatpush1.bf16.msra.mxu0 %v15684_v15  ;;  %10370 = vmatpush1.bf16.msra.mxu1 %v15687_v16 }
 0x889   :  { %10330 = vmatprep.subr.bf16.mxu0 %v15692_v17  ;;  %10371 = vmatprep.subr.bf16.mxu1 %v15695_v58 }
 0x88c   :  { %10331 = vmatpush1.bf16.msra.mxu0 %v15690_v0  ;;  %10372 = vmatpush1.bf16.msra.mxu1 %v15693_v31  ;;  %v8987_v31 = vrot.slane %v8970_v2, %v17056_v57 }
 0x88d   :  { %10332 = vmatprep.subr.bf16.mxu0 %v15698_v19  ;;  %10373 = vmatprep.subr.bf16.mxu1 %v15701_v20  ;;  %v17555_v19 = vld [vmem:[#allocation16 + $0x1e0] ss:$16 sps:$4 sm:$0xff]   ;;  %v17557_v20 = vld [vmem:[#allocation16 + $0x1e8] ss:$16 sps:$4 sm:$0xff]  }
 0x890   :  { %v16419_v29 = vpop.eup %16418  ;;  %10333 = vmatpush1.bf16.msra.mxu0 %v15696_v22  ;;  %10374 = vmatpush1.bf16.msra.mxu1 %v15699_v24  ;;  %v15746_v22 = vld [vmem:[#allocation18 + $0x4] ss:$16 sps:$4 sm:$0xff]   ;;  %v15749_v24 = vld [vmem:[#allocation18 + $0xc] ss:$16 sps:$4 sm:$0xff]  }
 0x891   :  { %v8899_v21 = vmul.f32 %v16419_v29, %v16417_v28  ;;  %10334 = vmatprep.subr.bf16.mxu0 %v15704_v25  ;;  %10375 = vmatprep.subr.bf16.mxu1 %v15707_v26  ;;  %v15744_v26 = vld [vmem:[#allocation18] ss:$16 sps:$4 sm:$0xff]   ;;  %v15747_v28 = vld [vmem:[#allocation18 + $0x8] ss:$16 sps:$4 sm:$0xff]   ;;  %v8983_v29 = vrot.slane %v8970_v2, %v17052_v55 }
 0x892   :  { %v15768_v2 = vld [vmem:[#allocation18 + $0x80] ss:$16 sps:$4 sm:$0xff]  }
 0x893   :  { %v8900_v41 = vsel %vm6823_vm14, %v8899_v21, %v16602_v40 }
 0x894   :  { %8901 = vst [vmem:[#allocation6] sm:$0x3] %v8900_v41  ;;  %10335 = vmatpush1.bf16.msra.mxu0 %v15702_v30  ;;  %10376 = vmatpush1.bf16.msra.mxu1 %v15705_v38  ;;  %v15752_v30 = vld [vmem:[#allocation18 + $0x24] ss:$16 sps:$4 sm:$0xff]   ;;  %v15755_v38 = vld [vmem:[#allocation18 + $0x2c] ss:$16 sps:$4 sm:$0xff]  }
 0x895   :  { %10336 = vmatprep.subr.bf16.mxu0 %v15710_v39  ;;  %10377 = vmatprep.subr.bf16.mxu1 %v15713_v37  ;;  %v15750_v39 = vld [vmem:[#allocation18 + $0x20] ss:$16 sps:$4 sm:$0xff]   ;;  %v15753_v37 = vld [vmem:[#allocation18 + $0x28] ss:$16 sps:$4 sm:$0xff]   ;;  %v15758_v41 = vld [vmem:[#allocation18 + $0x44] ss:$16 sps:$4 sm:$0xff]  }
 0x898   :  { %10337 = vmatpush1.bf16.msra.mxu0 %v15708_v23  ;;  %10378 = vmatpush1.bf16.msra.mxu1 %v15711_v35  ;;  %v15761_v23 = vld [vmem:[#allocation18 + $0x4c] ss:$16 sps:$4 sm:$0xff]  }
 0x899   :  { %10338 = vmatprep.subr.bf16.mxu0 %v15716_v6  ;;  %10379 = vmatprep.subr.bf16.mxu1 %v15719_v43 }
 0x89b   :  { %v17525_v32 = vld [vmem:[#allocation6] sm:$0x3] }
 0x89c   :  { %10339 = vmatpush1.bf16.msra.mxu0 %v15714_v27  ;;  %10380 = vmatpush1.bf16.msra.mxu1 %v15717_v44  ;;  %v17529_v49 = vpack.c.bf16 %v17525_v32, %v17525_v32  ;;  %v15756_v27 = vld [vmem:[#allocation18 + $0x40] ss:$16 sps:$4 sm:$0xff]   ;;  %v15759_v44 = vld [vmem:[#allocation18 + $0x48] ss:$16 sps:$4 sm:$0xff]  }
 0x89d   :  { %10340 = vmatprep.subr.bf16.mxu0 %v15722_v45  ;;  %10381 = vmatprep.subr.bf16.mxu1 %v15725_v48  ;;  %v15764_v45 = vld [vmem:[#allocation18 + $0x64] ss:$16 sps:$4 sm:$0xff]   ;;  %v15767_v48 = vld [vmem:[#allocation18 + $0x6c] ss:$16 sps:$4 sm:$0xff]  }
 0x89e   :  { %10348 = vmatprep.mubr.bf16.mxu0 %v17529_v49  ;;  %10389 = vmatprep.mubr.bf16.mxu1 %v17529_v49 }
 0x8a0   :  { %10341 = vmatpush1.bf16.msra.mxu0 %v15720_v47  ;;  %10382 = vmatpush1.bf16.msra.mxu1 %v15723_v53  ;;  %v15762_v47 = vld [vmem:[#allocation18 + $0x60] ss:$16 sps:$4 sm:$0xff]   ;;  %v15765_v53 = vld [vmem:[#allocation18 + $0x68] ss:$16 sps:$4 sm:$0xff]  }
 0x8a1   :  { %10342 = vmatprep.subr.bf16.mxu0 %v15728_v61  ;;  %10383 = vmatprep.subr.bf16.mxu1 %v15731_v62  ;;  %v15770_v61 = vld [vmem:[#allocation18 + $0x84] ss:$16 sps:$4 sm:$0xff]   ;;  %v15773_v62 = vld [vmem:[#allocation18 + $0x8c] ss:$16 sps:$4 sm:$0xff]  }
 0x8a4   :  { %10343 = vmatpush1.bf16.msra.mxu0 %v15726_v3  ;;  %10384 = vmatpush1.bf16.msra.mxu1 %v15729_v4  ;;  %v9346_v10 = vpop.f32.mrb[76].mxu0  ;;  %v9387_v42 = vpop.f32.mrb[76].mxu1  ;;  %v15771_v3 = vld [vmem:[#allocation18 + $0x88] ss:$16 sps:$4 sm:$0xff]   ;;  %v15776_v4 = vld [vmem:[#allocation18 + $0xa4] ss:$16 sps:$4 sm:$0xff]  }
 0x8a5   :  { %v9347_v13 = vadd.f32 %v9346_v10, %v8975_v5  ;;  %v9348_v46 = vpop.f32.mrb[77].mxu0  ;;  %v9389_v63 = vpop.f32.mrb[77].mxu1  ;;  %10344 = vmatprep.subr.bf16.mxu0 %v17537_v33  ;;  %10385 = vmatprep.subr.bf16.mxu1 %v17539_v8  ;;  %v9388_v40 = vadd.f32 %v9387_v42, %v8983_v29  ;;  %v15779_v5 = vld [vmem:[#allocation18 + $0xac] ss:$16 sps:$4 sm:$0xff]   ;;  %v15789_v29 = vld [vmem:[#allocation18 + $0xe8] ss:$16 sps:$4 sm:$0xff]  }
 0x8a6   :  { %v9349_v50 = vadd.f32 %v9348_v46, %v8979_v9  ;;  %v9350_v15 = vpop.f32.mrb[78].mxu0  ;;  %v9391_v16 = vpop.f32.mrb[78].mxu1  ;;  %v9390_v25 = vadd.f32 %v9389_v63, %v8987_v31  ;;  %v15774_v46 = vld [vmem:[#allocation18 + $0xa0] ss:$16 sps:$4 sm:$0xff]   ;;  %v15777_v63 = vld [vmem:[#allocation18 + $0xa8] ss:$16 sps:$4 sm:$0xff]  }
 0x8a7   :  { %v13866_v17 = vmul.f32 -1.442695, %v9347_v13  ;;  %v9351_v58 = vpop.f32.mrb[79].mxu0  ;;  %v9392_v18 = vpop.f32.mrb[79].mxu1  ;;  %v8904_v13 = vld [vmem:[#allocation9] sm:$0x3] }
 0x8a8   :  { %v13867_v0 = vmul.f32 -1.442695, %v9349_v50  ;;  %10345 = vmatpush1.bf16.msra.mxu0 %v17542_v7  ;;  %10386 = vmatpush1.bf16.msra.mxu1 %v17544_v12  ;;  %v13868_v21 = vmul.f32 -1.442695, %v9390_v25  ;;  %v15785_v58 = vld [vmem:[#allocation18 + $0xcc] ss:$16 sps:$4 sm:$0xff]  }
 0x8a9   :  { %16420 = vpow2.f32 %v13866_v17  ;;  %10346 = vmatprep.subr.bf16.mxu0 %v17548_v14  ;;  %10387 = vmatprep.subr.bf16.mxu1 %v17550_v11  ;;  %v15782_v17 = vld [vmem:[#allocation18 + $0xc4] ss:$16 sps:$4 sm:$0xff]   ;;  %v15780_v31 = vld [vmem:[#allocation18 + $0xc0] ss:$16 sps:$4 sm:$0xff]   ;;  %v15791_v25 = vld [vmem:[#allocation18 + $0xec] ss:$16 sps:$4 sm:$0xff]  }
 0x8aa   :  { %16422 = vpow2.f32 %v13867_v0 }
 0x8ab   :  { %16424 = vpow2.f32 %v13868_v21  ;;  %v15792_v21 = vld [vmem:[#allocation18 + $0x100] ss:$16 sps:$4 sm:$0xff]  }
 0x8ac   :  { %10347 = vmatpush1.bf16.msra.mxu0 %v17555_v19  ;;  %10388 = vmatpush1.bf16.msra.mxu1 %v17557_v20  ;;  %16426 = vtanh.f32 %v9388_v40  ;;  %v15803_v40 = vld [vmem:[#allocation18 + $0x12c] ss:$16 sps:$4 sm:$0xff]  }
 0x8ad   :  { %10834 = vmatprep.subr.bf16.mxu0 %v15746_v22  ;;  %10875 = vmatprep.subr.bf16.mxu1 %v15749_v24  ;;  %v15783_v22 = vld [vmem:[#allocation18 + $0xc8] ss:$16 sps:$4 sm:$0xff]   ;;  %v15788_v24 = vld [vmem:[#allocation18 + $0xe4] ss:$16 sps:$4 sm:$0xff]  }
 0x8af   :  { %10349 = vmatmul.mubr.bf16.vlgmr.msra.gmra.mrb[84].mxu0 %v17517_v36  ;;  %10390 = vmatmul.mubr.bf16.vlgmr.msra.gmra.mrb[84].mxu1 %v17517_v36 }
 0x8b0   :  { %10835 = vmatpush1.bf16.msra.mxu0 %v15744_v26  ;;  %10876 = vmatpush1.bf16.msra.mxu1 %v15747_v28  ;;  %v15786_v28 = vld [vmem:[#allocation18 + $0xe0] ss:$16 sps:$4 sm:$0xff]  }
 0x8b1   :  { %10836 = vmatprep.subr.bf16.mxu0 %v15752_v30  ;;  %10877 = vmatprep.subr.bf16.mxu1 %v15755_v38  ;;  %v15794_v30 = vld [vmem:[#allocation18 + $0x104] ss:$16 sps:$4 sm:$0xff]   ;;  %v15797_v38 = vld [vmem:[#allocation18 + $0x10c] ss:$16 sps:$4 sm:$0xff]  }
 0x8b3   :  { %v16421_v35 = vpop.eup %16420 }
 0x8b4   :  { %v16423_v6 = vpop.eup %16422  ;;  %v9397_v43 = vadd.f32 1.0, %v16421_v35  ;;  %10837 = vmatpush1.bf16.msra.mxu0 %v15750_v39  ;;  %10878 = vmatpush1.bf16.msra.mxu1 %v15753_v37  ;;  %v15795_v39 = vld [vmem:[#allocation18 + $0x108] ss:$16 sps:$4 sm:$0xff]   ;;  %v15800_v37 = vld [vmem:[#allocation18 + $0x124] ss:$16 sps:$4 sm:$0xff]  }
 0x8b5   :  { %v9403_v36 = vadd.f32 1.0, %v16423_v6  ;;  %10838 = vmatprep.subr.bf16.mxu0 %v15758_v41  ;;  %10879 = vmatprep.subr.bf16.mxu1 %v15761_v23  ;;  %v16425_v9 = vpop.eup %16424  ;;  %v15798_v35 = vld [vmem:[#allocation18 + $0x120] ss:$16 sps:$4 sm:$0xff]   ;;  %v15801_v6 = vld [vmem:[#allocation18 + $0x128] ss:$16 sps:$4 sm:$0xff]  }
 0x8b6   :  { %16428 = vrcp.f32 %v9397_v43  ;;  %v16427_v10 = vpop.eup %16426  ;;  %v9410_v16 = vadd.f32 1.0, %v16425_v9  ;;  %v15816_v9 = vld [vmem:[#allocation18 + $0x180] ss:$16 sps:$4 sm:$0xff]  }
 0x8b7   :  { %16430 = vrcp.f32 %v9403_v36 }
 0x8b8   :  { %10839 = vmatpush1.bf16.msra.mxu0 %v15756_v27  ;;  %10880 = vmatpush1.bf16.msra.mxu1 %v15759_v44  ;;  %16432 = vrcp.f32 %v9410_v16  ;;  %v15806_v27 = vld [vmem:[#allocation18 + $0x144] ss:$16 sps:$4 sm:$0xff]   ;;  %v15809_v44 = vld [vmem:[#allocation18 + $0x14c] ss:$16 sps:$4 sm:$0xff]  }
 0x8b9   :  { %10840 = vmatprep.subr.bf16.mxu0 %v15764_v45  ;;  %10881 = vmatprep.subr.bf16.mxu1 %v15767_v48  ;;  %v15833_v16 = vld [vmem:[#allocation18 + $0x1cc] ss:$16 sps:$4 sm:$0xff]  }
 0x8bc   :  { %10841 = vmatpush1.bf16.msra.mxu0 %v15762_v47  ;;  %10882 = vmatpush1.bf16.msra.mxu1 %v15765_v53  ;;  %v15804_v47 = vld [vmem:[#allocation18 + $0x140] ss:$16 sps:$4 sm:$0xff]   ;;  %v15807_v53 = vld [vmem:[#allocation18 + $0x148] ss:$16 sps:$4 sm:$0xff]  }
 0x8bd   :  { %10842 = vmatprep.subr.bf16.mxu0 %v15770_v61  ;;  %10883 = vmatprep.subr.bf16.mxu1 %v15773_v62  ;;  %v15812_v61 = vld [vmem:[#allocation18 + $0x164] ss:$16 sps:$4 sm:$0xff]   ;;  %v15815_v62 = vld [vmem:[#allocation18 + $0x16c] ss:$16 sps:$4 sm:$0xff]  }
 0x8c0   :  { %v16429_v42 = vpop.eup %16428  ;;  %10843 = vmatpush1.bf16.msra.mxu0 %v15768_v2  ;;  %10884 = vmatpush1.bf16.msra.mxu1 %v15771_v3  ;;  %v15813_v3 = vld [vmem:[#allocation18 + $0x168] ss:$16 sps:$4 sm:$0xff]  }
 0x8c1   :  { %v16431_v50 = vpop.eup %16430  ;;  %v9414_v15 = vmul.f32 %v16429_v42, %v16427_v10  ;;  %10844 = vmatprep.subr.bf16.mxu0 %v15776_v4  ;;  %10885 = vmatprep.subr.bf16.mxu1 %v15779_v5  ;;  %v15821_v4 = vld [vmem:[#allocation18 + $0x18c] ss:$16 sps:$4 sm:$0xff]   ;;  %v15819_v42 = vld [vmem:[#allocation18 + $0x188] ss:$16 sps:$4 sm:$0xff]  }
 0x8c2   :  { %v9413_v18 = vmul.f32 %v16431_v50, %v8904_v13  ;;  %v16433_v41 = vpop.eup %16432  ;;  %v15825_v50 = vld [vmem:[#allocation18 + $0x1a8] ss:$16 sps:$4 sm:$0xff]  }
 0x8c4   :  { %v9415_v0 = vadd.f32 %v9414_v15, %v9413_v18  ;;  %10845 = vmatpush1.bf16.msra.mxu0 %v15774_v46  ;;  %10886 = vmatpush1.bf16.msra.mxu1 %v15777_v63  ;;  %v15827_v46 = vld [vmem:[#allocation18 + $0x1ac] ss:$16 sps:$4 sm:$0xff]   ;;  %v15822_v63 = vld [vmem:[#allocation18 + $0x1a0] ss:$16 sps:$4 sm:$0xff]   ;;  %v15830_v15 = vld [vmem:[#allocation18 + $0x1c4] ss:$16 sps:$4 sm:$0xff]  }
 0x8c5   :  { %10846 = vmatprep.subr.bf16.mxu0 %v15782_v17  ;;  %10887 = vmatprep.subr.bf16.mxu1 %v15785_v58  ;;  %v15828_v17 = vld [vmem:[#allocation18 + $0x1c0] ss:$16 sps:$4 sm:$0xff]   ;;  %v15831_v58 = vld [vmem:[#allocation18 + $0x1c8] ss:$16 sps:$4 sm:$0xff]   ;;  %v15836_v18 = vld [vmem:[#allocation18 + $0x1e4] ss:$16 sps:$4 sm:$0xff]  }
 0x8c6   :  { %16434 = vtanh.f32 %v9415_v0  ;;  %v9420_v26 = vsel %vm5301_vm13, %v9415_v0, %v8904_v13  ;;  %v15824_v13 = vld [vmem:[#allocation18 + $0x1a4] ss:$16 sps:$4 sm:$0xff]   ;;  %v15839_v0 = vld [vmem:[#allocation18 + $0x1ec] ss:$16 sps:$4 sm:$0xff]  }
 0x8c7   :  { %9421 = vst [vmem:[#allocation9] sm:$0x3] %v9420_v26  ;;  %v15843_v26 = vld [vmem:[#allocation16 + $0x8] ss:$16 sps:$4 sm:$0xff]  }
 0x8c8   :  { %10847 = vmatpush1.bf16.msra.mxu0 %v15780_v31  ;;  %10888 = vmatpush1.bf16.msra.mxu1 %v15783_v22  ;;  %v15834_v31 = vld [vmem:[#allocation18 + $0x1e0] ss:$16 sps:$4 sm:$0xff]   ;;  %v15837_v22 = vld [vmem:[#allocation18 + $0x1e8] ss:$16 sps:$4 sm:$0xff]  }
 0x8c9   :  { %10848 = vmatprep.subr.bf16.mxu0 %v15788_v24  ;;  %10889 = vmatprep.subr.bf16.mxu1 %v15791_v25  ;;  %v15840_v24 = vld [vmem:[#allocation16] ss:$16 sps:$4 sm:$0xff]   ;;  %v15842_v25 = vld [vmem:[#allocation16 + $0x4] ss:$16 sps:$4 sm:$0xff]  }
 0x8cc   :  { %10849 = vmatpush1.bf16.msra.mxu0 %v15786_v28  ;;  %10890 = vmatpush1.bf16.msra.mxu1 %v15789_v29  ;;  %v15845_v28 = vld [vmem:[#allocation16 + $0xc] ss:$16 sps:$4 sm:$0xff]   ;;  %v15848_v29 = vld [vmem:[#allocation16 + $0x24] ss:$16 sps:$4 sm:$0xff]  }
 0x8cd   :  { %10850 = vmatprep.subr.bf16.mxu0 %v15794_v30  ;;  %10891 = vmatprep.subr.bf16.mxu1 %v15797_v38  ;;  %v15851_v30 = vld [vmem:[#allocation16 + $0x2c] ss:$16 sps:$4 sm:$0xff]   ;;  %v15846_v38 = vld [vmem:[#allocation16 + $0x20] ss:$16 sps:$4 sm:$0xff]  }
 0x8d0   :  { %v16435_v23 = vpop.eup %16434  ;;  %10851 = vmatpush1.bf16.msra.mxu0 %v15792_v21  ;;  %10892 = vmatpush1.bf16.msra.mxu1 %v15795_v39  ;;  %v15849_v21 = vld [vmem:[#allocation16 + $0x28] ss:$16 sps:$4 sm:$0xff]   ;;  %v15852_v39 = vld [vmem:[#allocation16 + $0x40] ss:$16 sps:$4 sm:$0xff]  }
 0x8d1   :  { %v9417_v43 = vmul.f32 %v16435_v23, %v16433_v41  ;;  %10852 = vmatprep.subr.bf16.mxu0 %v15800_v37  ;;  %10893 = vmatprep.subr.bf16.mxu1 %v15803_v40  ;;  %v15854_v37 = vld [vmem:[#allocation16 + $0x44] ss:$16 sps:$4 sm:$0xff]   ;;  %v15855_v40 = vld [vmem:[#allocation16 + $0x48] ss:$16 sps:$4 sm:$0xff]   ;;  %v15863_v23 = vld [vmem:[#allocation16 + $0x6c] ss:$16 sps:$4 sm:$0xff]  }
 0x8d2   :  { %v15860_v41 = vld [vmem:[#allocation16 + $0x64] ss:$16 sps:$4 sm:$0xff]  }
 0x8d3   :  { %v9418_v36 = vsel %vm5301_vm13, %v9417_v43, %v17484_v52  ;;  %v9422_v45 = vsel %vm5301_vm13, %v9417_v43, 0.0  ;;  %v15810_v52 = vld [vmem:[#allocation18 + $0x160] ss:$16 sps:$4 sm:$0xff]   ;;  %v15866_v43 = vld [vmem:[#allocation16 + $0x84] ss:$16 sps:$4 sm:$0xff]  }
 0x8d4   :  { %9419 = vst [vmem:[#allocation8] sm:$0x3] %v9418_v36  ;;  %v9430_v48 = vrot.slane %v9422_v45, %v17069_v34  ;;  %10853 = vmatpush1.bf16.msra.mxu0 %v15798_v35  ;;  %10894 = vmatpush1.bf16.msra.mxu1 %v15801_v6  ;;  %v15858_v35 = vld [vmem:[#allocation16 + $0x60] ss:$16 sps:$4 sm:$0xff]   ;;  %v15861_v6 = vld [vmem:[#allocation16 + $0x68] ss:$16 sps:$4 sm:$0xff]  }
 0x8d5   :  { %10854 = vmatprep.subr.bf16.mxu0 %v15806_v27  ;;  %10895 = vmatprep.subr.bf16.mxu1 %v15809_v44  ;;  %v15869_v27 = vld [vmem:[#allocation16 + $0x8c] ss:$16 sps:$4 sm:$0xff]   ;;  %v15864_v44 = vld [vmem:[#allocation16 + $0x80] ss:$16 sps:$4 sm:$0xff]   ;;  %v15867_v36 = vld [vmem:[#allocation16 + $0x88] ss:$16 sps:$4 sm:$0xff]  }
 0x8d6   :  { %v9431_v2 = vcombine.high %v9430_v48, %v9430_v48  ;;  %13869 = vst.sshfl [vmem:[#allocation3 + $0x4] sm:$0x1 pattern:$0x73625140] %v9430_v48  ;;  %v15872_v45 = vld [vmem:[#allocation16 + $0xa4] ss:$16 sps:$4 sm:$0xff]  }
 0x8d7   :  { %v15875_v48 = vld [vmem:[#allocation16 + $0xac] ss:$16 sps:$4 sm:$0xff]  }
 0x8d8   :  { %13870 = vst.sshfl [vmem:[#allocation3 + $0xc] sm:$0x1 pattern:$0x73625140] %v9431_v2  ;;  %10855 = vmatpush1.bf16.msra.mxu0 %v15804_v47  ;;  %10896 = vmatpush1.bf16.msra.mxu1 %v15807_v53  ;;  %v15870_v47 = vld [vmem:[#allocation16 + $0xa0] ss:$16 sps:$4 sm:$0xff]  }
 0x8d9   :  { %10856 = vmatprep.subr.bf16.mxu0 %v15812_v61  ;;  %10897 = vmatprep.subr.bf16.mxu1 %v15815_v62  ;;  %v15873_v53 = vld [vmem:[#allocation16 + $0xa8] ss:$16 sps:$4 sm:$0xff]   ;;  %v15878_v61 = vld [vmem:[#allocation16 + $0xc4] ss:$16 sps:$4 sm:$0xff]   ;;  %v15881_v62 = vld [vmem:[#allocation16 + $0xcc] ss:$16 sps:$4 sm:$0xff]  }
 0x8da   :  { %v15876_v2 = vld [vmem:[#allocation16 + $0xc0] ss:$16 sps:$4 sm:$0xff]  }
 0x8db   :  { %v17574_v5 = vld [vmem:[#allocation8] sm:$0x3] }
 0x8dc   :  { %10857 = vmatpush1.bf16.msra.mxu0 %v15810_v52  ;;  %10898 = vmatpush1.bf16.msra.mxu1 %v15813_v3  ;;  %v10427_v10 = vpack.c.bf16 %v17574_v5, %v17574_v5 }
 0x8dd   :  { %10858 = vmatprep.subr.bf16.mxu0 %v15818_v51  ;;  %10899 = vmatprep.subr.bf16.mxu1 %v15821_v4  ;;  %v15879_v51 = vld [vmem:[#allocation16 + $0xc8] ss:$16 sps:$4 sm:$0xff]   ;;  %v15884_v4 = vld [vmem:[#allocation16 + $0xe4] ss:$16 sps:$4 sm:$0xff]  }
 0x8de   :  { %10866 = vmatprep.mubr.bf16.mxu0 %v10427_v10  ;;  %10907 = vmatprep.mubr.bf16.mxu1 %v10427_v10 }
 0x8e0   :  { %10859 = vmatpush1.bf16.msra.mxu0 %v15816_v9  ;;  %10900 = vmatpush1.bf16.msra.mxu1 %v15819_v42  ;;  %v15887_v42 = vld [vmem:[#allocation16 + $0xec] ss:$16 sps:$4 sm:$0xff]  }
 0x8e1   :  { %10860 = vmatprep.subr.bf16.mxu0 %v15824_v13  ;;  %10901 = vmatprep.subr.bf16.mxu1 %v15827_v46 }
 0x8e4   :  { %10861 = vmatpush1.bf16.msra.mxu0 %v15822_v63  ;;  %10902 = vmatpush1.bf16.msra.mxu1 %v15825_v50 }
 0x8e5   :  { %10862 = vmatprep.subr.bf16.mxu0 %v15830_v15  ;;  %10903 = vmatprep.subr.bf16.mxu1 %v15833_v16 }
 0x8e8   :  { %10863 = vmatpush1.bf16.msra.mxu0 %v15828_v17  ;;  %10904 = vmatpush1.bf16.msra.mxu1 %v15831_v58  ;;  %v15882_v17 = vld [vmem:[#allocation16 + $0xe0] ss:$16 sps:$4 sm:$0xff]  }
 0x8e9   :  { %10864 = vmatprep.subr.bf16.mxu0 %v15836_v18  ;;  %10905 = vmatprep.subr.bf16.mxu1 %v15839_v0  ;;  %v15885_v0 = vld [vmem:[#allocation16 + $0xe8] ss:$16 sps:$4 sm:$0xff]  }
 0x8ec   :  { %10865 = vmatpush1.bf16.msra.mxu0 %v15834_v31  ;;  %10906 = vmatpush1.bf16.msra.mxu1 %v15837_v22  ;;  %v15890_v31 = vld [vmem:[#allocation16 + $0x104] ss:$16 sps:$4 sm:$0xff]   ;;  %v15893_v22 = vld [vmem:[#allocation16 + $0x10c] ss:$16 sps:$4 sm:$0xff]  }
 0x8ed   :  { %11384 = vmatprep.subr.bf16.mxu0 %v15842_v25  ;;  %11425 = vmatprep.subr.bf16.mxu1 %v15845_v28  ;;  %v15888_v28 = vld [vmem:[#allocation16 + $0x100] ss:$16 sps:$4 sm:$0xff]  }
 0x8ef   :  { %10867 = vmatmul.mubr.bf16.vlgmr.msra.gmra.mrb[88].mxu0 %v17529_v49  ;;  %10908 = vmatmul.mubr.bf16.vlgmr.msra.gmra.mrb[88].mxu1 %v17529_v49  ;;  %v15857_v49 = vld [vmem:[#allocation16 + $0x4c] ss:$16 sps:$4 sm:$0xff]  }
 0x8f0   :  { %11385 = vmatpush1.bf16.msra.mxu0 %v15840_v24  ;;  %11426 = vmatpush1.bf16.msra.mxu1 %v15843_v26  ;;  %v9455_v26 = vld [vmem:[#allocation2 + $0x7] ss:$8 sm:$0xf] }
 0x8f1   :  { %11386 = vmatprep.subr.bf16.mxu0 %v15848_v29  ;;  %11427 = vmatprep.subr.bf16.mxu1 %v15851_v30 }
 0x8f4   :  { %11387 = vmatpush1.bf16.msra.mxu0 %v15846_v38  ;;  %11428 = vmatpush1.bf16.msra.mxu1 %v15849_v21  ;;  %v15891_v38 = vld [vmem:[#allocation16 + $0x108] ss:$16 sps:$4 sm:$0xff]   ;;  %v15896_v21 = vld [vmem:[#allocation16 + $0x124] ss:$16 sps:$4 sm:$0xff]  }
 0x8f5   :  { %11388 = vmatprep.subr.bf16.mxu0 %v15854_v37  ;;  %11429 = vmatprep.subr.bf16.mxu1 %v15857_v49  ;;  %v15899_v37 = vld [vmem:[#allocation16 + $0x12c] ss:$16 sps:$4 sm:$0xff]  }
 0x8f8   :  { %11389 = vmatpush1.bf16.msra.mxu0 %v15852_v39  ;;  %11430 = vmatpush1.bf16.msra.mxu1 %v15855_v40  ;;  %v9457_v39 = vld [vmem:[#allocation2 + $0x27] ss:$8 sm:$0xf] }
 0x8f9   :  { %11390 = vmatprep.subr.bf16.mxu0 %v15860_v41  ;;  %11431 = vmatprep.subr.bf16.mxu1 %v15863_v23  ;;  %v15894_v41 = vld [vmem:[#allocation16 + $0x120] ss:$16 sps:$4 sm:$0xff]   ;;  %v15897_v23 = vld [vmem:[#allocation16 + $0x128] ss:$16 sps:$4 sm:$0xff]  }
 0x8fc   :  { %11391 = vmatpush1.bf16.msra.mxu0 %v15858_v35  ;;  %11432 = vmatpush1.bf16.msra.mxu1 %v15861_v6  ;;  %v15902_v35 = vld [vmem:[#allocation16 + $0x144] ss:$16 sps:$4 sm:$0xff]  }
 0x8fd   :  { %11392 = vmatprep.subr.bf16.mxu0 %v15866_v43  ;;  %11433 = vmatprep.subr.bf16.mxu1 %v15869_v27 }
 0x900   :  { %11393 = vmatpush1.bf16.msra.mxu0 %v15864_v44  ;;  %11434 = vmatpush1.bf16.msra.mxu1 %v15867_v36  ;;  %v15905_v36 = vld [vmem:[#allocation16 + $0x14c] ss:$16 sps:$4 sm:$0xff]  }
 0x901   :  { %11394 = vmatprep.subr.bf16.mxu0 %v15872_v45  ;;  %11435 = vmatprep.subr.bf16.mxu1 %v15875_v48 }
 0x904   :  { %11395 = vmatpush1.bf16.msra.mxu0 %v15870_v47  ;;  %11436 = vmatpush1.bf16.msra.mxu1 %v15873_v53  ;;  %v15900_v47 = vld [vmem:[#allocation16 + $0x140] ss:$16 sps:$4 sm:$0xff]   ;;  %v15903_v53 = vld [vmem:[#allocation16 + $0x148] ss:$16 sps:$4 sm:$0xff]  }
 0x905   :  { %11396 = vmatprep.subr.bf16.mxu0 %v15878_v61  ;;  %11437 = vmatprep.subr.bf16.mxu1 %v15881_v62  ;;  %v15908_v61 = vld [vmem:[#allocation16 + $0x164] ss:$16 sps:$4 sm:$0xff]  }
 0x908   :  { %11397 = vmatpush1.bf16.msra.mxu0 %v15876_v2  ;;  %11438 = vmatpush1.bf16.msra.mxu1 %v15879_v51  ;;  %v15911_v2 = vld [vmem:[#allocation16 + $0x16c] ss:$16 sps:$4 sm:$0xff]   ;;  %v15906_v51 = vld [vmem:[#allocation16 + $0x160] ss:$16 sps:$4 sm:$0xff]  }
 0x909   :  { %11398 = vmatprep.subr.bf16.mxu0 %v15884_v4  ;;  %11439 = vmatprep.subr.bf16.mxu1 %v15887_v42 }
 0x90c   :  { %11399 = vmatpush1.bf16.msra.mxu0 %v15882_v17  ;;  %11440 = vmatpush1.bf16.msra.mxu1 %v15885_v0 }
 0x90d   :  { %11400 = vmatprep.subr.bf16.mxu0 %v15890_v31  ;;  %11441 = vmatprep.subr.bf16.mxu1 %v15893_v22 }
 0x910   :  { %11401 = vmatpush1.bf16.msra.mxu0 %v15888_v28  ;;  %11442 = vmatpush1.bf16.msra.mxu1 %v15891_v38 }
 0x911   :  { %11402 = vmatprep.subr.bf16.mxu0 %v15896_v21  ;;  %11443 = vmatprep.subr.bf16.mxu1 %v15899_v37 }
 0x914   :  { %11403 = vmatpush1.bf16.msra.mxu0 %v15894_v41  ;;  %11444 = vmatpush1.bf16.msra.mxu1 %v15897_v23  ;;  %v17593_v23 = vld [vmem:[#allocation18 + $0xc] ss:$16 sps:$4 sm:$0xff]  }
 0x915   :  { %11404 = vmatprep.subr.bf16.mxu0 %v15902_v35  ;;  %11445 = vmatprep.subr.bf16.mxu1 %v15905_v36 }
 0x918   :  { %11405 = vmatpush1.bf16.msra.mxu0 %v15900_v47  ;;  %11446 = vmatpush1.bf16.msra.mxu1 %v15903_v53  ;;  %v17601_v47 = vpop.permute.xlu1 %9865 }
 0x919   :  { %11406 = vmatprep.subr.bf16.mxu0 %v15908_v61  ;;  %11447 = vmatprep.subr.bf16.mxu1 %v15911_v2  ;;  %18022 = vst [vmem:[#allocation32_spill] sm:$0xff] %v17601_v47  ;;  %vm9867_vm0 = vcmp.eq.s32.totalorder %v17601_v47, 1 }
 0x91c   :  { %11407 = vmatpush1.bf16.msra.mxu0 %v15906_v51 }
 0x942   :  { %v9685_v52 = vpop.f32.mrb[80].mxu0  ;;  %v9726_v3 = vpop.f32.mrb[80].mxu1 }
 0x943   :  { %v9687_v9 = vpop.f32.mrb[81].mxu0  ;;  %v9728_v10 = vpop.f32.mrb[81].mxu1 }
 0x944   :  { %v9737_v13 = vcombine.low %v9685_v52, %v9687_v9  ;;  %v9738_v46 = vcombine.low %v9726_v3, %v9728_v10  ;;  %v9689_v63 = vpop.f32.mrb[82].mxu0  ;;  %v9730_v50 = vpop.f32.mrb[82].mxu1  ;;  %v15909_v9 = vld [vmem:[#allocation16 + $0x168] ss:$16 sps:$4 sm:$0xff]   ;;  %v15914_v10 = vld [vmem:[#allocation16 + $0x184] ss:$16 sps:$4 sm:$0xff]  }
 0x945   :  { %v9690_v15 = vpop.f32.mrb[83].mxu0  ;;  %v9731_v16 = vpop.f32.mrb[83].mxu1  ;;  %v15912_v63 = vld [vmem:[#allocation16 + $0x180] ss:$16 sps:$4 sm:$0xff]   ;;  %11448 = vmatpush1.bf16.msra.mxu1 %v15909_v9  ;;  %11408 = vmatprep.subr.bf16.mxu0 %v15914_v10  ;;  %v9974_v9 = vld [vmem:[%s17991_s6] sm:$0xf] }
 0x946   :  { %v9745_v58 = vrot.slane %v9737_v13, %v17069_v34  ;;  %v9752_v18 = vrot.slane %v9738_v46, %v17069_v34  ;;  %v15917_v13 = vld [vmem:[#allocation16 + $0x18c] ss:$16 sps:$4 sm:$0xff]   ;;  %v15915_v15 = vld [vmem:[#allocation16 + $0x188] ss:$16 sps:$4 sm:$0xff]   ;;  %v15920_v16 = vld [vmem:[#allocation16 + $0x1a4] ss:$16 sps:$4 sm:$0xff]   ;;  %11409 = vmatpush1.bf16.msra.mxu0 %v15912_v63 }
 0x947   :  { %11449 = vmatprep.subr.bf16.mxu1 %v15917_v13  ;;  %11410 = vmatprep.subr.bf16.mxu0 %v15920_v16  ;;  %v16603_v63 = vld [vmem:[#allocation4] sm:$0x3] }
 0x948   :  { %v9753_v24 = vcombine.low %v9745_v58, %v9752_v18  ;;  %v9754_v25 = vcombine.high %v9745_v58, %v9752_v18  ;;  %v15923_v18 = vld [vmem:[#allocation16 + $0x1ac] ss:$16 sps:$4 sm:$0xff]  }
 0x949   :  { %11450 = vmatpush1.bf16.msra.mxu1 %v15915_v15 }
 0x94a   :  { %v9761_v29 = vrot.slane %v9753_v24, %v17069_v34  ;;  %v9768_v30 = vrot.slane %v9754_v25, %v17069_v34  ;;  %v15918_v25 = vld [vmem:[#allocation16 + $0x1a0] ss:$16 sps:$4 sm:$0xff]   ;;  %11451 = vmatprep.subr.bf16.mxu1 %v15923_v18 }
 0x94b   :  { %11411 = vmatpush1.bf16.msra.mxu0 %v15918_v25 }
 0x94c   :  { %v9771_v40 = vadd.f32 %v9761_v29, %v9455_v26  ;;  %v9772_v49 = vadd.f32 %v9768_v30, %v9457_v39  ;;  %v9453_v26 = vld [vmem:[#allocation5] sm:$0x3]  ;;  %v15921_v29 = vld [vmem:[#allocation16 + $0x1a8] ss:$16 sps:$4 sm:$0xff]   ;;  %11412 = vmatprep.subr.bf16.mxu0 %v17537_v33 }
 0x94d   :  { %v9832_v30 = vrot.slane %v9453_v26, %v17069_v34  ;;  %11452 = vmatpush1.bf16.msra.mxu1 %v15921_v29  ;;  %v9991_v29 = vrot.slane %v9974_v9, %v17056_v57 }
 0x94e   :  { %v13903_v6 = vmul.f32 -1.442695, %v9771_v40  ;;  %v13904_v43 = vmul.f32 -1.442695, %v9772_v49  ;;  %v9787_v27 = vrot.slane %v9771_v40, 1  ;;  %v9788_v44 = vrot.slane %v9772_v49, 1  ;;  %11453 = vmatprep.subr.bf16.mxu1 %v17539_v8 }
 0x94f   :  { %v9809_v62 = vrot.slane %v9771_v40, 3  ;;  %v9810_v52 = vrot.slane %v9772_v49, 3  ;;  %v9803_v3 = vrot.slane %v9771_v40, 2  ;;  %v9804_v4 = vrot.slane %v9772_v49, 2  ;;  %11413 = vmatpush1.bf16.msra.mxu0 %v17542_v7  ;;  %v17590_v49 = vld [vmem:[#allocation18 + $0x4] ss:$16 sps:$4 sm:$0xff]  }
 0x950   :  { %16436 = vpow2.f32 %v13903_v6  ;;  %v13905_v45 = vmul.f32 -1.442695, %v9787_v27  ;;  %v13906_v48 = vmul.f32 -1.442695, %v9788_v44  ;;  %v9833_v37 = vcombine.high %v9832_v30, %v9832_v30  ;;  %11414 = vmatprep.subr.bf16.mxu0 %v17548_v14 }
 0x951   :  { %16438 = vpow2.f32 %v13904_v43  ;;  %v13907_v42 = vmul.f32 -1.442695, %v9809_v62  ;;  %v13908_v46 = vmul.f32 -1.442695, %v9810_v52  ;;  %11454 = vmatpush1.bf16.msra.mxu1 %v17544_v12  ;;  %v9840_v8 = vrot.slane %v9832_v30, %v17069_v34 }
 0x952   :  { %16440 = vpow2.f32 %v13905_v45  ;;  %11455 = vmatprep.subr.bf16.mxu1 %v17550_v11  ;;  %v9847_v7 = vrot.slane %v9833_v37, %v17069_v34 }
 0x953   :  { %16442 = vpow2.f32 %v13906_v48  ;;  %11415 = vmatpush1.bf16.msra.mxu0 %v17555_v19 }
 0x954   :  { %16444 = vtanh.f32 %v9803_v3  ;;  %11902 = vmatprep.subr.bf16.mxu0 %v17590_v49 }
 0x955   :  { %16446 = vtanh.f32 %v9804_v4  ;;  %11456 = vmatpush1.bf16.msra.mxu1 %v17557_v20 }
 0x956   :  { %16448 = vpow2.f32 %v13907_v42  ;;  %11943 = vmatprep.subr.bf16.mxu1 %v17593_v23  ;;  %v9979_v42 = vrot.slane %v9974_v9, %v17050_v54 }
 0x957   :  { %16450 = vpow2.f32 %v13908_v46  ;;  %v9983_v46 = vrot.slane %v9974_v9, %v17054_v56 }
 0x95a   :  { %v16437_v50 = vpop.eup %16436 }
 0x95b   :  { %v16439_v17 = vpop.eup %16438  ;;  %v9779_v58 = vadd.f32 1.0, %v16437_v50 }
 0x95c   :  { %v16441_v0 = vpop.eup %16440  ;;  %v9780_v31 = vadd.f32 1.0, %v16439_v17 }
 0x95d   :  { %v16443_v22 = vpop.eup %16442  ;;  %16452 = vrcp.f32 %v9779_v58  ;;  %v9797_v24 = vadd.f32 1.0, %v16441_v0 }
 0x95e   :  { %16454 = vrcp.f32 %v9780_v31  ;;  %v9798_v28 = vadd.f32 1.0, %v16443_v22  ;;  %v16445_v38 = vpop.eup %16444 }
 0x95f   :  { %16456 = vrcp.f32 %v9797_v24  ;;  %v16447_v21 = vpop.eup %16446 }
 0x960   :  { %16458 = vrcp.f32 %v9798_v28  ;;  %v16449_v39 = vpop.eup %16448 }
 0x961   :  { %v16451_v40 = vpop.eup %16450  ;;  %v9819_v35 = vadd.f32 1.0, %v16449_v39 }
 0x962   :  { %v9820_v43 = vadd.f32 1.0, %v16451_v40 }
 0x963   :  { %16460 = vrcp.f32 %v9819_v35 }
 0x964   :  { %16462 = vrcp.f32 %v9820_v43 }
 0x967   :  { %v16453_v41 = vpop.eup %16452 }
 0x968   :  { %v16455_v33 = vpop.eup %16454  ;;  %v9852_v14 = vmul.f32 %v16453_v41, %v16445_v38  ;;  %v9987_v38 = vrot.slane %v9974_v9, %v17052_v55  ;;  %v17647_v9 = vld [vmem:[#allocation18 + $0x28] ss:$16 sps:$4 sm:$0xff]  }
 0x969   :  { %v16457_v6 = vpop.eup %16456  ;;  %v9853_v44 = vmul.f32 %v16455_v33, %v16447_v21 }
 0x96a   :  { %v16459_v12 = vpop.eup %16458  ;;  %v9850_v27 = vmul.f32 %v16457_v6, %v9840_v8 }
 0x96b   :  { %v9851_v11 = vmul.f32 %v16459_v12, %v9847_v7  ;;  %v9908_v12 = vld [vmem:[#allocation7] sm:$0x3] }
 0x96c   :  { %v9854_v36 = vadd.f32 %v9852_v14, %v9850_v27 }
 0x96d   :  { %v9855_v45 = vadd.f32 %v9853_v44, %v9851_v11  ;;  %v16461_v61 = vpop.eup %16460 }
 0x96e   :  { %16464 = vtanh.f32 %v9854_v36  ;;  %v16463_v62 = vpop.eup %16462 }
 0x96f   :  { %16466 = vtanh.f32 %v9855_v45  ;;  %v9890_v48 = vcombine.low %v9854_v36, %v9855_v45 }
 0x971   :  { %v9897_v19 = vrot.slane %v9890_v48, %v17069_v34 }
 0x973   :  { %v9904_v53 = vrot.slane %v9897_v19, %v17069_v34 }
 0x975   :  { %v9906_v20 = vsel %vm9867_vm0, %v9904_v53, %v9453_v26 }
 0x976   :  { %9907 = vst [vmem:[#allocation5] sm:$0x3] %v9906_v20 }
 0x978   :  { %v16465_v2 = vpop.eup %16464 }
 0x979   :  { %v16467_v52 = vpop.eup %16466  ;;  %v9858_v3 = vmul.f32 %v16465_v2, %v16461_v61  ;;  %v17632_v2 = vld [vmem:[#allocation18 + $0x8] ss:$16 sps:$4 sm:$0xff]  }
 0x97a   :  { %v9859_v51 = vmul.f32 %v16467_v52, %v16463_v62  ;;  %v17630_v62 = vld [vmem:[#allocation18] ss:$16 sps:$4 sm:$0xff]  }
 0x97c   :  { %v9870_v4 = vcombine.low %v9858_v3, %v9859_v51  ;;  %v17634_v3 = vld [vmem:[#allocation18 + $0x24] ss:$16 sps:$4 sm:$0xff]   ;;  %v17636_v51 = vld [vmem:[#allocation18 + $0x2c] ss:$16 sps:$4 sm:$0xff]  }
 0x97e   :  { %v9877_v10 = vrot.slane %v9870_v4, %v17069_v34  ;;  %v17645_v4 = vld [vmem:[#allocation18 + $0x20] ss:$16 sps:$4 sm:$0xff]  }
 0x980   :  { %v9884_v13 = vrot.slane %v9877_v10, %v17069_v34 }
 0x982   :  { %v9886_v50 = vsel %vm9867_vm0, %v9884_v13, %v16603_v63  ;;  %v10350_v15 = vpop.f32.mrb[84].mxu0  ;;  %v10391_v16 = vpop.f32.mrb[84].mxu1  ;;  %v17654_v13 = vld [vmem:[#allocation18 + $0x4c] ss:$16 sps:$4 sm:$0xff]  }
 0x983   :  { %9887 = vst [vmem:[#allocation4] sm:$0x3] %v9886_v50  ;;  %v10351_v17 = vadd.f32 %v10350_v15, %v9979_v42  ;;  %v10352_v58 = vpop.f32.mrb[85].mxu0  ;;  %v10393_v18 = vpop.f32.mrb[85].mxu1  ;;  %v10392_v39 = vadd.f32 %v10391_v16, %v9987_v38  ;;  %v17652_v42 = vld [vmem:[#allocation18 + $0x44] ss:$16 sps:$4 sm:$0xff]  }
 0x984   :  { %v10353_v0 = vadd.f32 %v10352_v58, %v9983_v46  ;;  %v10354_v31 = vpop.f32.mrb[86].mxu0  ;;  %v10395_v22 = vpop.f32.mrb[86].mxu1  ;;  %v10394_v30 = vadd.f32 %v10393_v18, %v9991_v29  ;;  %v17659_v15 = vld [vmem:[#allocation18 + $0x40] ss:$16 sps:$4 sm:$0xff]   ;;  %v17661_v16 = vld [vmem:[#allocation18 + $0x48] ss:$16 sps:$4 sm:$0xff]  }
 0x985   :  { %v13974_v24 = vmul.f32 -1.442695, %v10351_v17  ;;  %v10355_v25 = vpop.f32.mrb[87].mxu0  ;;  %v10396_v26 = vpop.f32.mrb[87].mxu1  ;;  %v17667_v31 = vld [vmem:[#allocation18 + $0x6c] ss:$16 sps:$4 sm:$0xff]  }
 0x986   :  { %v13975_v28 = vmul.f32 -1.442695, %v10353_v0  ;;  %v13976_v21 = vmul.f32 -1.442695, %v10394_v30  ;;  %v17665_v0 = vld [vmem:[#allocation18 + $0x64] ss:$16 sps:$4 sm:$0xff]  }
 0x987   :  { %16468 = vpow2.f32 %v13974_v24 }
 0x988   :  { %16470 = vpow2.f32 %v13975_v28 }
 0x989   :  { %16472 = vpow2.f32 %v13976_v21  ;;  %v17672_v21 = vld [vmem:[#allocation18 + $0x60] ss:$16 sps:$4 sm:$0xff]  }
 0x98a   :  { %16474 = vtanh.f32 %v10392_v39  ;;  %v10972_v53 = vld [vmem:[#allocation4] sm:$0x3]  ;;  %v17674_v39 = vld [vmem:[#allocation18 + $0x68] ss:$16 sps:$4 sm:$0xff]  }
 0x98b   :  { %v10976_v52 = vpack.c.bf16 %v10972_v53, %v10972_v53  ;;  %v17711_v53 = vld [vmem:[#allocation18 + $0xc8] ss:$16 sps:$4 sm:$0xff]  }
 0x991   :  { %v16469_v37 = vpop.eup %16468 }
 0x992   :  { %v16471_v40 = vpop.eup %16470  ;;  %v10401_v41 = vadd.f32 1.0, %v16469_v37  ;;  %v17678_v37 = vld [vmem:[#allocation18 + $0x84] ss:$16 sps:$4 sm:$0xff]  }
 0x993   :  { %v10407_v33 = vadd.f32 1.0, %v16471_v40  ;;  %v16473_v35 = vpop.eup %16472  ;;  %v17680_v40 = vld [vmem:[#allocation18 + $0x8c] ss:$16 sps:$4 sm:$0xff]  }
 0x994   :  { %16476 = vrcp.f32 %v10401_v41  ;;  %v16475_v8 = vpop.eup %16474  ;;  %v10414_v27 = vadd.f32 1.0, %v16473_v35  ;;  %v17686_v35 = vld [vmem:[#allocation18 + $0x88] ss:$16 sps:$4 sm:$0xff]  }
 0x995   :  { %16478 = vrcp.f32 %v10407_v33  ;;  %v17684_v33 = vld [vmem:[#allocation18 + $0x80] ss:$16 sps:$4 sm:$0xff]  }
 0x996   :  { %16480 = vrcp.f32 %v10414_v27  ;;  %v17699_v27 = vld [vmem:[#allocation18 + $0xa8] ss:$16 sps:$4 sm:$0xff]  }
 0x99e   :  { %v16477_v6 = vpop.eup %16476 }
 0x99f   :  { %v16479_v43 = vpop.eup %16478  ;;  %v10418_v7 = vmul.f32 %v16477_v6, %v16475_v8  ;;  %v17691_v6 = vld [vmem:[#allocation18 + $0xa4] ss:$16 sps:$4 sm:$0xff]  }
 0x9a0   :  { %v10417_v14 = vmul.f32 %v16479_v43, %v9908_v12  ;;  %v16481_v36 = vpop.eup %16480  ;;  %v17693_v43 = vld [vmem:[#allocation18 + $0xac] ss:$16 sps:$4 sm:$0xff]  }
 0x9a2   :  { %v10419_v11 = vadd.f32 %v10418_v7, %v10417_v14 }
 0x9a4   :  { %16482 = vtanh.f32 %v10419_v11  ;;  %v10424_v44 = vsel %vm8345_vm15, %v10419_v11, %v9908_v12  ;;  %v17697_v12 = vld [vmem:[#allocation18 + $0xa0] ss:$16 sps:$4 sm:$0xff]   ;;  %v17703_v11 = vld [vmem:[#allocation18 + $0xc4] ss:$16 sps:$4 sm:$0xff]  }
 0x9a5   :  { %10425 = vst [vmem:[#allocation7] sm:$0x3] %v10424_v44  ;;  %v17705_v44 = vld [vmem:[#allocation18 + $0xcc] ss:$16 sps:$4 sm:$0xff]  }
 0x9ae   :  { %v16483_v45 = vpop.eup %16482 }
 0x9af   :  { %v10421_v48 = vmul.f32 %v16483_v45, %v16481_v36 }
 0x9b1   :  { %v10422_v19 = vsel %vm8345_vm15, %v10421_v48, %v17525_v32  ;;  %v10492_v32 = vld [vmem:[%s17993_s8] sm:$0xf] }
 0x9b2   :  { %10423 = vst [vmem:[#allocation6] sm:$0x3] %v10422_v19  ;;  %v10497_v10 = vrot.slane %v10492_v32, %v17050_v54  ;;  %v10501_v46 = vrot.slane %v10492_v32, %v17054_v56  ;;  %v10509_v38 = vrot.slane %v10492_v32, %v17056_v57  ;;  %v10505_v8 = vrot.slane %v10492_v32, %v17052_v55  ;;  %v17709_v19 = vld [vmem:[#allocation18 + $0xc0] ss:$16 sps:$4 sm:$0xff]   ;;  %v17715_v32 = vld [vmem:[#allocation18 + $0xe4] ss:$16 sps:$4 sm:$0xff]  }
 0x9b3   :  { %v17795_v55 = vld [vmem:[#allocation18 + $0x1a0] ss:$16 sps:$4 sm:$0xff]   ;;  %v17797_v57 = vld [vmem:[#allocation18 + $0x1a8] ss:$16 sps:$4 sm:$0xff]   ;;  %v17801_v54 = vld [vmem:[#allocation18 + $0x1c4] ss:$16 sps:$4 sm:$0xff]  }
 0x9b9   :  { %v17624_v20 = vld [vmem:[#allocation6] sm:$0x3] }
 0x9ba   :  { %18023 = vst [vmem:[#allocation33_spill] sm:$0xff] %v17624_v20  ;;  %v17628_v61 = vpack.c.bf16 %v17624_v20, %v17624_v20 }
 0x9bc   :  { %11416 = vmatprep.mubr.bf16.mxu0 %v17628_v61  ;;  %11457 = vmatprep.mubr.bf16.mxu1 %v17628_v61 }
 0x9bd   :  { %11417 = vmatmul.mubr.bf16.vlgmr.msra.gmra.mrb[92].mxu0 %v10976_v52  ;;  %11458 = vmatmul.mubr.bf16.vlgmr.msra.gmra.mrb[92].mxu1 %v10976_v52 }
 0x9be   :  { %11903 = vmatpush1.bf16.msra.mxu0 %v17630_v62  ;;  %11944 = vmatpush1.bf16.msra.mxu1 %v17632_v2 }
 0x9bf   :  { %11904 = vmatprep.subr.bf16.mxu0 %v17634_v3  ;;  %11945 = vmatprep.subr.bf16.mxu1 %v17636_v51 }
 0x9c2   :  { %v10868_v63 = vpop.f32.mrb[88].mxu0  ;;  %v10909_v50 = vpop.f32.mrb[88].mxu1  ;;  %11905 = vmatpush1.bf16.msra.mxu0 %v17645_v4  ;;  %11946 = vmatpush1.bf16.msra.mxu1 %v17647_v9 }
 0x9c3   :  { %v10869_v17 = vadd.f32 %v10868_v63, %v10497_v10  ;;  %v10870_v58 = vpop.f32.mrb[89].mxu0  ;;  %v10911_v18 = vpop.f32.mrb[89].mxu1  ;;  %11906 = vmatprep.subr.bf16.mxu0 %v17652_v42  ;;  %11947 = vmatprep.subr.bf16.mxu1 %v17654_v13  ;;  %v10910_v14 = vadd.f32 %v10909_v50, %v10505_v8  ;;  %v17717_v10 = vld [vmem:[#allocation18 + $0xec] ss:$16 sps:$4 sm:$0xff]   ;;  %v17723_v63 = vld [vmem:[#allocation18 + $0xe8] ss:$16 sps:$4 sm:$0xff]  }
 0x9c4   :  { %v10871_v22 = vadd.f32 %v10870_v58, %v10501_v46  ;;  %v10872_v24 = vpop.f32.mrb[90].mxu0  ;;  %v10913_v25 = vpop.f32.mrb[90].mxu1  ;;  %v10912_v41 = vadd.f32 %v10911_v18, %v10509_v38  ;;  %v17721_v46 = vld [vmem:[#allocation18 + $0xe0] ss:$16 sps:$4 sm:$0xff]   ;;  %v17727_v50 = vld [vmem:[#allocation18 + $0x104] ss:$16 sps:$4 sm:$0xff]  }
 0x9c5   :  { %v14041_v26 = vmul.f32 -1.442695, %v10869_v17  ;;  %v10873_v28 = vpop.f32.mrb[91].mxu0  ;;  %v10914_v29 = vpop.f32.mrb[91].mxu1  ;;  %v17729_v17 = vld [vmem:[#allocation18 + $0x10c] ss:$16 sps:$4 sm:$0xff]  }
 0x9c6   :  { %v14042_v30 = vmul.f32 -1.442695, %v10871_v22  ;;  %11907 = vmatpush1.bf16.msra.mxu0 %v17659_v15  ;;  %11948 = vmatpush1.bf16.msra.mxu1 %v17661_v16  ;;  %v14043_v7 = vmul.f32 -1.442695, %v10912_v41  ;;  %v17733_v58 = vld [vmem:[#allocation18 + $0x100] ss:$16 sps:$4 sm:$0xff]  }
 0x9c7   :  { %16484 = vpow2.f32 %v14041_v26  ;;  %11908 = vmatprep.subr.bf16.mxu0 %v17665_v0  ;;  %11949 = vmatprep.subr.bf16.mxu1 %v17667_v31  ;;  %v17735_v18 = vld [vmem:[#allocation18 + $0x108] ss:$16 sps:$4 sm:$0xff]   ;;  %v17739_v22 = vld [vmem:[#allocation18 + $0x124] ss:$16 sps:$4 sm:$0xff]   ;;  %v17741_v24 = vld [vmem:[#allocation18 + $0x12c] ss:$16 sps:$4 sm:$0xff]  }
 0x9c8   :  { %16486 = vpow2.f32 %v14042_v30  ;;  %v10426_v29 = vld [vmem:[#allocation9] sm:$0x3]  ;;  %v17745_v30 = vld [vmem:[#allocation18 + $0x120] ss:$16 sps:$4 sm:$0xff]   ;;  %v17747_v38 = vld [vmem:[#allocation18 + $0x128] ss:$16 sps:$4 sm:$0xff]  }
 0x9c9   :  { %16488 = vpow2.f32 %v14043_v7 }
 0x9ca   :  { %11909 = vmatpush1.bf16.msra.mxu0 %v17672_v21  ;;  %11950 = vmatpush1.bf16.msra.mxu1 %v17674_v39  ;;  %16490 = vtanh.f32 %v10910_v14  ;;  %v17751_v14 = vld [vmem:[#allocation18 + $0x144] ss:$16 sps:$4 sm:$0xff]  }
 0x9cb   :  { %11910 = vmatprep.subr.bf16.mxu0 %v17678_v37  ;;  %11951 = vmatprep.subr.bf16.mxu1 %v17680_v40 }
 0x9ce   :  { %11911 = vmatpush1.bf16.msra.mxu0 %v17684_v33  ;;  %11952 = vmatpush1.bf16.msra.mxu1 %v17686_v35 }
 0x9cf   :  { %11912 = vmatprep.subr.bf16.mxu0 %v17691_v6  ;;  %11953 = vmatprep.subr.bf16.mxu1 %v17693_v43 }
 0x9d1   :  { %v16485_v36 = vpop.eup %16484 }
 0x9d2   :  { %v16487_v45 = vpop.eup %16486  ;;  %v10919_v48 = vadd.f32 1.0, %v16485_v36  ;;  %11913 = vmatpush1.bf16.msra.mxu0 %v17697_v12  ;;  %11954 = vmatpush1.bf16.msra.mxu1 %v17699_v27  ;;  %v17753_v36 = vld [vmem:[#allocation18 + $0x14c] ss:$16 sps:$4 sm:$0xff]  }
 0x9d3   :  { %v10925_v52 = vadd.f32 1.0, %v16487_v45  ;;  %11914 = vmatprep.subr.bf16.mxu0 %v17703_v11  ;;  %11955 = vmatprep.subr.bf16.mxu1 %v17705_v44  ;;  %v16489_v25 = vpop.eup %16488 }
 0x9d4   :  { %16492 = vrcp.f32 %v10919_v48  ;;  %v16491_v26 = vpop.eup %16490  ;;  %v10932_v7 = vadd.f32 1.0, %v16489_v25  ;;  %v17763_v25 = vld [vmem:[#allocation18 + $0x164] ss:$16 sps:$4 sm:$0xff]  }
 0x9d5   :  { %16494 = vrcp.f32 %v10925_v52  ;;  %v17757_v52 = vld [vmem:[#allocation18 + $0x140] ss:$16 sps:$4 sm:$0xff]  }
 0x9d6   :  { %11915 = vmatpush1.bf16.msra.mxu0 %v17709_v19  ;;  %11956 = vmatpush1.bf16.msra.mxu1 %v17711_v53  ;;  %16496 = vrcp.f32 %v10932_v7  ;;  %v17777_v7 = vld [vmem:[#allocation18 + $0x184] ss:$16 sps:$4 sm:$0xff]  }
 0x9d7   :  { %11916 = vmatprep.subr.bf16.mxu0 %v17715_v32  ;;  %11957 = vmatprep.subr.bf16.mxu1 %v17717_v10  ;;  %18024 = vst [vmem:[#allocation34_spill] sm:$0xff] %v17777_v7 }
 0x9da   :  { %11917 = vmatpush1.bf16.msra.mxu0 %v17721_v46  ;;  %11958 = vmatpush1.bf16.msra.mxu1 %v17723_v63 }
 0x9db   :  { %11918 = vmatprep.subr.bf16.mxu0 %v17727_v50  ;;  %11959 = vmatprep.subr.bf16.mxu1 %v17729_v17 }
 0x9de   :  { %v16493_v28 = vpop.eup %16492  ;;  %11919 = vmatpush1.bf16.msra.mxu0 %v17733_v58  ;;  %11960 = vmatpush1.bf16.msra.mxu1 %v17735_v18 }
 0x9df   :  { %v16495_v41 = vpop.eup %16494  ;;  %v10936_v8 = vmul.f32 %v16493_v28, %v16491_v26  ;;  %11920 = vmatprep.subr.bf16.mxu0 %v17739_v22  ;;  %11961 = vmatprep.subr.bf16.mxu1 %v17741_v24  ;;  %v17765_v26 = vld [vmem:[#allocation18 + $0x16c] ss:$16 sps:$4 sm:$0xff]  }
 0x9e0   :  { %v10935_v45 = vmul.f32 %v16495_v41, %v10426_v29  ;;  %v17771_v41 = vld [vmem:[#allocation18 + $0x160] ss:$16 sps:$4 sm:$0xff]   ;;  %v16497_v20 = vpop.eup %16496 }
 0x9e2   :  { %v10937_v48 = vadd.f32 %v10936_v8, %v10935_v45  ;;  %11921 = vmatpush1.bf16.msra.mxu0 %v17745_v30  ;;  %11962 = vmatpush1.bf16.msra.mxu1 %v17747_v38  ;;  %v17773_v8 = vld [vmem:[#allocation18 + $0x168] ss:$16 sps:$4 sm:$0xff]   ;;  %v17779_v45 = vld [vmem:[#allocation18 + $0x18c] ss:$16 sps:$4 sm:$0xff]  }
 0x9e3   :  { %11922 = vmatprep.subr.bf16.mxu0 %v17751_v14  ;;  %11963 = vmatprep.subr.bf16.mxu1 %v17753_v36  ;;  %18025 = vst [vmem:[#allocation35_spill] sm:$0xff] %v17779_v45 }
 0x9e4   :  { %16498 = vtanh.f32 %v10937_v48  ;;  %v10942_v28 = vsel %vm6823_vm14, %v10937_v48, %v10426_v29  ;;  %v17783_v29 = vld [vmem:[#allocation18 + $0x180] ss:$16 sps:$4 sm:$0xff]   ;;  %v17785_v48 = vld [vmem:[#allocation18 + $0x188] ss:$16 sps:$4 sm:$0xff]  }
 0x9e5   :  { %10943 = vst [vmem:[#allocation9] sm:$0x3] %v10942_v28  ;;  %18026 = vst [vmem:[#allocation36_spill] sm:$0xff] %v17783_v29  ;;  %v17789_v28 = vld [vmem:[#allocation18 + $0x1a4] ss:$16 sps:$4 sm:$0xff]  }
 0x9e6   :  { %11923 = vmatpush1.bf16.msra.mxu0 %v17757_v52  ;;  %11964 = vmatpush1.bf16.msra.mxu1 %v17759_v1  ;;  %18027 = vst [vmem:[#allocation37_spill] sm:$0xff] %v17785_v48 }
 0x9e7   :  { %11924 = vmatprep.subr.bf16.mxu0 %v17763_v25  ;;  %11965 = vmatprep.subr.bf16.mxu1 %v17765_v26 }
 0x9ea   :  { %11925 = vmatpush1.bf16.msra.mxu0 %v17771_v41  ;;  %11966 = vmatpush1.bf16.msra.mxu1 %v17773_v8 }
 0x9eb   :  { %11926 = vmatprep.subr.bf16.mxu0 %v17777_v7  ;;  %11967 = vmatprep.subr.bf16.mxu1 %v17779_v45  ;;  %v17803_v45 = vld [vmem:[#allocation18 + $0x1cc] ss:$16 sps:$4 sm:$0xff]  }
 0x9ee   :  { %v16499_v47 = vpop.eup %16498  ;;  %11927 = vmatpush1.bf16.msra.mxu0 %v17783_v29  ;;  %11968 = vmatpush1.bf16.msra.mxu1 %v17785_v48 }
 0x9ef   :  { %v10939_v56 = vmul.f32 %v16499_v47, %v16497_v20  ;;  %11928 = vmatprep.subr.bf16.mxu0 %v17789_v28  ;;  %11969 = vmatprep.subr.bf16.mxu1 %v17791_v60  ;;  %v17813_v47 = vld [vmem:[#allocation18 + $0x1c0] ss:$16 sps:$4 sm:$0xff]   ;;  %v17815_v20 = vld [vmem:[#allocation18 + $0x1c8] ss:$16 sps:$4 sm:$0xff]   ;;  %v17819_v60 = vld [vmem:[#allocation18 + $0x1e4] ss:$16 sps:$4 sm:$0xff]  }
 0x9f1   :  { %v10940_v7 = vsel %vm6823_vm14, %v10939_v56, %v17574_v5  ;;  %v10944_v48 = vsel %vm6823_vm14, %v10939_v56, 0.0  ;;  %v17821_v5 = vld [vmem:[#allocation18 + $0x1ec] ss:$16 sps:$4 sm:$0xff]  }
 0x9f2   :  { %v10952_v29 = vrot.slane %v10944_v48, %v17069_v34  ;;  %10941 = vst [vmem:[#allocation8] sm:$0x3] %v10940_v7  ;;  %11929 = vmatpush1.bf16.msra.mxu0 %v17795_v55  ;;  %11970 = vmatpush1.bf16.msra.mxu1 %v17797_v57  ;;  %v17827_v7 = vld [vmem:[#allocation18 + $0x1e8] ss:$16 sps:$4 sm:$0xff]  }
 0x9f3   :  { %11930 = vmatprep.subr.bf16.mxu0 %v17801_v54  ;;  %11971 = vmatprep.subr.bf16.mxu1 %v17803_v45 }
 0x9f4   :  { %v10953_v56 = vcombine.high %v10952_v29, %v10952_v29  ;;  %14044 = vst.sshfl [vmem:[#allocation3 + $0x5] sm:$0x1 pattern:$0x73625140] %v10952_v29 }
 0x9f6   :  { %14045 = vst.sshfl [vmem:[#allocation3 + $0xd] sm:$0x1 pattern:$0x73625140] %v10953_v56  ;;  %11931 = vmatpush1.bf16.msra.mxu0 %v17813_v47  ;;  %11972 = vmatpush1.bf16.msra.mxu1 %v17815_v20 }
 0x9f7   :  { %11932 = vmatprep.subr.bf16.mxu0 %v17819_v60  ;;  %11973 = vmatprep.subr.bf16.mxu1 %v17821_v5 }
 0x9f9   :  { %v17831_v48 = vld [vmem:[#allocation8] sm:$0x3] }
 0x9fa   :  { %11933 = vmatpush1.bf16.msra.mxu0 %v17825_v59  ;;  %11974 = vmatpush1.bf16.msra.mxu1 %v17827_v7  ;;  %v11495_v29 = vpack.c.bf16 %v17831_v48, %v17831_v48 }
 0x9fb   :  { %12451 = vmatprep.subr.bf16.mxu0 %v17590_v49  ;;  %12492 = vmatprep.subr.bf16.mxu1 %v17593_v23  ;;  %v18029_v49 = vld [vmem:[#allocation34_spill] sm:$0xff]  ;;  %v18030_v23 = vld [vmem:[#allocation35_spill] sm:$0xff] }
 0x9fc   :  { %11934 = vmatprep.mubr.bf16.mxu0 %v11495_v29  ;;  %11975 = vmatprep.mubr.bf16.mxu1 %v11495_v29 }
 0x9fd   :  { %11935 = vmatmul.mubr.bf16.vlgmr.msra.gmra.mrb[96].mxu0 %v17628_v61  ;;  %11976 = vmatmul.mubr.bf16.vlgmr.msra.gmra.mrb[96].mxu1 %v17628_v61  ;;  %v18031_v61 = vld [vmem:[#allocation36_spill] sm:$0xff] }
 0x9fe   :  { %12452 = vmatpush1.bf16.msra.mxu0 %v17630_v62  ;;  %12493 = vmatpush1.bf16.msra.mxu1 %v17632_v2  ;;  %v18032_v62 = vld [vmem:[#allocation37_spill] sm:$0xff]  ;;  %v18033_v2 = vld [vmem:[#allocation38_spill] sm:$0xff] }
 0x9ff   :  { %12453 = vmatprep.subr.bf16.mxu0 %v17634_v3  ;;  %12494 = vmatprep.subr.bf16.mxu1 %v17636_v51  ;;  %v18036_v3 = vld [vmem:[#allocation29_spill] sm:$0xff] }
 0xa02   :  { %12454 = vmatpush1.bf16.msra.mxu0 %v17645_v4  ;;  %12495 = vmatpush1.bf16.msra.mxu1 %v17647_v9 }
 0xa03   :  { %12455 = vmatprep.subr.bf16.mxu0 %v17652_v42  ;;  %12496 = vmatprep.subr.bf16.mxu1 %v17654_v13 }
 0xa06   :  { %12456 = vmatpush1.bf16.msra.mxu0 %v17659_v15  ;;  %12497 = vmatpush1.bf16.msra.mxu1 %v17661_v16 }
 0xa07   :  { %12457 = vmatprep.subr.bf16.mxu0 %v17665_v0  ;;  %12498 = vmatprep.subr.bf16.mxu1 %v17667_v31 }
 0xa0a   :  { %12458 = vmatpush1.bf16.msra.mxu0 %v17672_v21  ;;  %12499 = vmatpush1.bf16.msra.mxu1 %v17674_v39 }
 0xa0b   :  { %12459 = vmatprep.subr.bf16.mxu0 %v17678_v37  ;;  %12500 = vmatprep.subr.bf16.mxu1 %v17680_v40  ;;  %v18037_v40 = vld [vmem:[#allocation30_spill] sm:$0xff] }
 0xa0e   :  { %12460 = vmatpush1.bf16.msra.mxu0 %v17684_v33  ;;  %12501 = vmatpush1.bf16.msra.mxu1 %v17686_v35 }
 0xa0f   :  { %12461 = vmatprep.subr.bf16.mxu0 %v17691_v6  ;;  %12502 = vmatprep.subr.bf16.mxu1 %v17693_v43  ;;  %v18038_v6 = vld [vmem:[#allocation28_spill] sm:$0xff] }
 0xa12   :  { %12462 = vmatpush1.bf16.msra.mxu0 %v17697_v12  ;;  %12503 = vmatpush1.bf16.msra.mxu1 %v17699_v27 }
 0xa13   :  { %12463 = vmatprep.subr.bf16.mxu0 %v17703_v11  ;;  %12504 = vmatprep.subr.bf16.mxu1 %v17705_v44 }
 0xa16   :  { %12464 = vmatpush1.bf16.msra.mxu0 %v17709_v19  ;;  %12505 = vmatpush1.bf16.msra.mxu1 %v17711_v53 }
 0xa17   :  { %12465 = vmatprep.subr.bf16.mxu0 %v17715_v32  ;;  %12506 = vmatprep.subr.bf16.mxu1 %v17717_v10 }
 0xa1a   :  { %12466 = vmatpush1.bf16.msra.mxu0 %v17721_v46  ;;  %12507 = vmatpush1.bf16.msra.mxu1 %v17723_v63 }
 0xa1b   :  { %12467 = vmatprep.subr.bf16.mxu0 %v17727_v50  ;;  %12508 = vmatprep.subr.bf16.mxu1 %v17729_v17  ;;  %v10975_v17 = vld [vmem:[#allocation7] sm:$0x3] }
 0xa1e   :  { %12468 = vmatpush1.bf16.msra.mxu0 %v17733_v58  ;;  %12509 = vmatpush1.bf16.msra.mxu1 %v17735_v18 }
 0xa1f   :  { %12469 = vmatprep.subr.bf16.mxu0 %v17739_v22  ;;  %12510 = vmatprep.subr.bf16.mxu1 %v17741_v24 }
 0xa22   :  { %12470 = vmatpush1.bf16.msra.mxu0 %v17745_v30  ;;  %12511 = vmatpush1.bf16.msra.mxu1 %v17747_v38 }
 0xa23   :  { %12471 = vmatprep.subr.bf16.mxu0 %v17751_v14  ;;  %12512 = vmatprep.subr.bf16.mxu1 %v17753_v36 }
 0xa26   :  { %12472 = vmatpush1.bf16.msra.mxu0 %v17757_v52  ;;  %12513 = vmatpush1.bf16.msra.mxu1 %v17759_v1  ;;  %v18034_v1 = vmov 0.0   ;;  %v18040_v52 = vld [vmem:[#allocation33_spill] sm:$0xff] }
 0xa27   :  { %12473 = vmatprep.subr.bf16.mxu0 %v17763_v25  ;;  %12514 = vmatprep.subr.bf16.mxu1 %v17765_v26  ;;  %v11560_v26 = vld [vmem:[%s17993_s8] sm:$0xf] }
 0xa2a   :  { %12474 = vmatpush1.bf16.msra.mxu0 %v17771_v41  ;;  %12515 = vmatpush1.bf16.msra.mxu1 %v17773_v8  ;;  %v11569_v8 = vrot.slane %v11560_v26, %v18036_v3 }
 0xa2b   :  { %12475 = vmatprep.subr.bf16.mxu0 %v18029_v49  ;;  %12516 = vmatprep.subr.bf16.mxu1 %v18030_v23 }
 0xa2e   :  { %12476 = vmatpush1.bf16.msra.mxu0 %v18031_v61  ;;  %12517 = vmatpush1.bf16.msra.mxu1 %v18032_v62  ;;  %v11577_v62 = vrot.slane %v11560_v26, %v18037_v40 }
 0xa2f   :  { %12477 = vmatprep.subr.bf16.mxu0 %v17789_v28  ;;  %12518 = vmatprep.subr.bf16.mxu1 %v18033_v2 }
 0xa32   :  { %12478 = vmatpush1.bf16.msra.mxu0 %v17795_v55  ;;  %12519 = vmatpush1.bf16.msra.mxu1 %v17797_v57  ;;  %v18035_v55 = vld [vmem:[#allocation27_spill] sm:$0xff] }
 0xa33   :  { %12479 = vmatprep.subr.bf16.mxu0 %v17801_v54  ;;  %12520 = vmatprep.subr.bf16.mxu1 %v17803_v45  ;;  %v11042_v54 = vld [vmem:[%s17991_s6] sm:$0xf]  ;;  %v11565_v41 = vrot.slane %v11560_v26, %v18035_v55 }
 0xa34   :  { %v11047_v57 = vrot.slane %v11042_v54, %v18035_v55  ;;  %v11051_v51 = vrot.slane %v11042_v54, %v18036_v3  ;;  %v11059_v33 = vrot.slane %v11042_v54, %v18037_v40  ;;  %v11055_v43 = vrot.slane %v11042_v54, %v18038_v6 }
 0xa35   :  { %v11573_v54 = vrot.slane %v11560_v26, %v18038_v6  ;;  %v16031_v26 = vld [vmem:[#allocation19 + $0x28] sm:$0xff]  }
 0xa36   :  { %12480 = vmatpush1.bf16.msra.mxu0 %v17813_v47  ;;  %12521 = vmatpush1.bf16.msra.mxu1 %v17815_v20 }
 0xa37   :  { %12481 = vmatprep.subr.bf16.mxu0 %v17819_v60  ;;  %12522 = vmatprep.subr.bf16.mxu1 %v17821_v5 }
 0xa3a   :  { %12482 = vmatpush1.bf16.msra.mxu0 %v17825_v59  ;;  %12523 = vmatpush1.bf16.msra.mxu1 %v17827_v7 }
 0xa3b   :  { %14287 = vmatprep.subr.bf16.mxu0 %v18034_v1  ;;  %14307 = vmatprep.subr.bf16.mxu1 %v18034_v1 }
 0xa90   :  { %v11418_v4 = vpop.f32.mrb[92].mxu0  ;;  %v11459_v60 = vpop.f32.mrb[92].mxu1 }
 0xa91   :  { %v11419_v9 = vadd.f32 %v11418_v4, %v11047_v57  ;;  %v11420_v42 = vpop.f32.mrb[93].mxu0  ;;  %v11461_v13 = vpop.f32.mrb[93].mxu1  ;;  %v11460_v27 = vadd.f32 %v11459_v60, %v11055_v43 }
 0xa92   :  { %v11421_v15 = vadd.f32 %v11420_v42, %v11051_v51  ;;  %v11422_v16 = vpop.f32.mrb[94].mxu0  ;;  %v11463_v0 = vpop.f32.mrb[94].mxu1  ;;  %v11462_v35 = vadd.f32 %v11461_v13, %v11059_v33 }
 0xa93   :  { %v14110_v31 = vmul.f32 -1.442695, %v11419_v9  ;;  %v11423_v21 = vpop.f32.mrb[95].mxu0  ;;  %v11464_v39 = vpop.f32.mrb[95].mxu1 }
 0xa94   :  { %v14111_v37 = vmul.f32 -1.442695, %v11421_v15  ;;  %v14112_v12 = vmul.f32 -1.442695, %v11462_v35  ;;  %v11494_v21 = vld [vmem:[#allocation9] sm:$0x3] }
 0xa95   :  { %16500 = vpow2.f32 %v14110_v31 }
 0xa96   :  { %16502 = vpow2.f32 %v14111_v37 }
 0xa97   :  { %16504 = vpow2.f32 %v14112_v12 }
 0xa98   :  { %16506 = vtanh.f32 %v11460_v27 }
 0xa9f   :  { %v16501_v11 = vpop.eup %16500 }
 0xaa0   :  { %v16503_v44 = vpop.eup %16502  ;;  %v11469_v19 = vadd.f32 1.0, %v16501_v11 }
 0xaa1   :  { %v11475_v53 = vadd.f32 1.0, %v16503_v44  ;;  %v16505_v32 = vpop.eup %16504 }
 0xaa2   :  { %16508 = vrcp.f32 %v11469_v19  ;;  %v16507_v10 = vpop.eup %16506  ;;  %v11482_v58 = vadd.f32 1.0, %v16505_v32 }
 0xaa3   :  { %16510 = vrcp.f32 %v11475_v53 }
 0xaa4   :  { %16512 = vrcp.f32 %v11482_v58  ;;  %v16022_v58 = vld [vmem:[#allocation19 + $0x8] sm:$0xff]  }
 0xaac   :  { %v16509_v46 = vpop.eup %16508 }
 0xaad   :  { %v16511_v63 = vpop.eup %16510  ;;  %v11486_v50 = vmul.f32 %v16509_v46, %v16507_v10 }
 0xaae   :  { %v11485_v18 = vmul.f32 %v16511_v63, %v10975_v17  ;;  %v16513_v38 = vpop.eup %16512 }
 0xab0   :  { %v11487_v22 = vadd.f32 %v11486_v50, %v11485_v18  ;;  %v16023_v18 = vld [vmem:[#allocation19 + $0x8] sm:$0xff]  }
 0xab2   :  { %16514 = vtanh.f32 %v11487_v22  ;;  %v11492_v30 = vsel %vm9867_vm0, %v11487_v22, %v10975_v17  ;;  %v16021_v17 = vld [vmem:[#allocation19] sm:$0xff]   ;;  %v16024_v22 = vld [vmem:[#allocation19 + $0x10] sm:$0xff]  }
 0xab3   :  { %11493 = vst [vmem:[#allocation7] sm:$0x3] %v11492_v30  ;;  %v16025_v30 = vld [vmem:[#allocation19 + $0x10] sm:$0xff]  }
 0xabc   :  { %v16515_v14 = vpop.eup %16514 }
 0xabd   :  { %v11489_v36 = vmul.f32 %v16515_v14, %v16513_v38  ;;  %v16026_v38 = vld [vmem:[#allocation19 + $0x18] sm:$0xff]  }
 0xabe   :  { %v16027_v14 = vld [vmem:[#allocation19 + $0x18] sm:$0xff]  }
 0xabf   :  { %v11490_v25 = vsel %vm9867_vm0, %v11489_v36, %v18040_v52  ;;  %v16028_v36 = vld [vmem:[#allocation19 + $0x20] sm:$0xff]  }
 0xac0   :  { %11491 = vst [vmem:[#allocation6] sm:$0x3] %v11490_v25  ;;  %v16029_v52 = vld [vmem:[#allocation19 + $0x20] sm:$0xff]   ;;  %v16030_v25 = vld [vmem:[#allocation19 + $0x28] sm:$0xff]  }
 0xac7   :  { %v12040_v10 = vld [vmem:[#allocation6] sm:$0x3] }
 0xac8   :  { %v12043_v50 = vpack.c.bf16 %v12040_v10, %v12040_v10 }
 0xad0   :  { %v11936_v45 = vpop.f32.mrb[96].mxu0  ;;  %v11977_v28 = vpop.f32.mrb[96].mxu1 }
 0xad1   :  { %v11937_v47 = vadd.f32 %v11936_v45, %v11565_v41  ;;  %v11938_v20 = vpop.f32.mrb[97].mxu0  ;;  %v11979_v5 = vpop.f32.mrb[97].mxu1  ;;  %v11978_v51 = vadd.f32 %v11977_v28, %v11573_v54  ;;  %v16032_v41 = vld [vmem:[#allocation19 + $0x30] sm:$0xff]   ;;  %v16034_v45 = vld [vmem:[#allocation19 + $0x38] sm:$0xff]  }
 0xad2   :  { %v11939_v56 = vadd.f32 %v11938_v20, %v11569_v8  ;;  %v11940_v59 = vpop.f32.mrb[98].mxu0  ;;  %v11981_v7 = vpop.f32.mrb[98].mxu1  ;;  %v11980_v2 = vadd.f32 %v11979_v5, %v11577_v62  ;;  %v16033_v8 = vld [vmem:[#allocation19 + $0x30] sm:$0xff]   ;;  %v16035_v28 = vld [vmem:[#allocation19 + $0x38] sm:$0xff]  }
 0xad3   :  { %v14177_v29 = vmul.f32 -1.442695, %v11937_v47  ;;  %v11941_v49 = vpop.f32.mrb[99].mxu0  ;;  %v11982_v23 = vpop.f32.mrb[99].mxu1  ;;  %v12109_v47 = vld [vmem:[%s17993_s8] sm:$0xf] }
 0xad4   :  { %v14178_v61 = vmul.f32 -1.442695, %v11939_v56  ;;  %v14179_v57 = vmul.f32 -1.442695, %v11980_v2  ;;  %v12114_v20 = vrot.slane %v12109_v47, %v18035_v55  ;;  %v12118_v5 = vrot.slane %v12109_v47, %v18036_v3 }
 0xad5   :  { %16516 = vpow2.f32 %v14177_v29  ;;  %v12122_v55 = vrot.slane %v12109_v47, %v18038_v6 }
 0xad6   :  { %16518 = vpow2.f32 %v14178_v61 }
 0xad7   :  { %16520 = vpow2.f32 %v14179_v57 }
 0xad8   :  { %16522 = vtanh.f32 %v11978_v51  ;;  %v12126_v51 = vrot.slane %v12109_v47, %v18037_v40 }
 0xadf   :  { %v16517_v4 = vpop.eup %16516 }
 0xae0   :  { %v16519_v60 = vpop.eup %16518  ;;  %v11987_v9 = vadd.f32 1.0, %v16517_v4 }
 0xae1   :  { %v11993_v42 = vadd.f32 1.0, %v16519_v60  ;;  %v16521_v13 = vpop.eup %16520 }
 0xae2   :  { %16524 = vrcp.f32 %v11987_v9  ;;  %v16523_v15 = vpop.eup %16522  ;;  %v12000_v39 = vadd.f32 1.0, %v16521_v13 }
 0xae3   :  { %16526 = vrcp.f32 %v11993_v42 }
 0xae4   :  { %16528 = vrcp.f32 %v12000_v39 }
 0xaec   :  { %v16525_v16 = vpop.eup %16524 }
 0xaed   :  { %v16527_v0 = vpop.eup %16526  ;;  %v12004_v31 = vmul.f32 %v16525_v16, %v16523_v15 }
 0xaee   :  { %v12003_v37 = vmul.f32 %v16527_v0, %v11494_v21  ;;  %v16529_v12 = vpop.eup %16528 }
 0xaf0   :  { %v12005_v33 = vadd.f32 %v12004_v31, %v12003_v37 }
 0xaf2   :  { %16530 = vtanh.f32 %v12005_v33  ;;  %v12010_v43 = vsel %vm8345_vm15, %v12005_v33, %v11494_v21 }
 0xaf3   :  { %12011 = vst [vmem:[#allocation9] sm:$0x3] %v12010_v43 }
 0xafa   :  { %v12042_v39 = vld [vmem:[#allocation9] sm:$0x3] }
 0xafc   :  { %v16531_v27 = vpop.eup %16530 }
 0xafd   :  { %v12007_v11 = vmul.f32 %v16531_v27, %v16529_v12 }
 0xaff   :  { %v12008_v44 = vsel %vm8345_vm15, %v12007_v11, %v17831_v48  ;;  %v12012_v19 = vsel %vm8345_vm15, %v12007_v11, 0.0  ;;  %v16020_v48 = vld [vmem:[#allocation19] sm:$0xff]  }
 0xb00   :  { %v12020_v53 = vrot.slane %v12012_v19, %v17069_v34  ;;  %12009 = vst [vmem:[#allocation8] sm:$0x3] %v12008_v44 }
 0xb02   :  { %v12021_v32 = vcombine.high %v12020_v53, %v12020_v53  ;;  %14180 = vst.sshfl [vmem:[#allocation3 + $0x6] sm:$0x1 pattern:$0x73625140] %v12020_v53 }
 0xb04   :  { %14181 = vst.sshfl [vmem:[#allocation3 + $0xe] sm:$0x1 pattern:$0x73625140] %v12021_v32 }
 0xb07   :  { %v17932_v46 = vld [vmem:[#allocation8] sm:$0x3] }
 0xb08   :  { %v12044_v63 = vpack.c.bf16 %v17932_v46, %v17932_v46 }
 0xb0a   :  { %12483 = vmatprep.mubr.bf16.mxu0 %v12044_v63  ;;  %12524 = vmatprep.mubr.bf16.mxu1 %v12044_v63 }
 0xb0b   :  { %12484 = vmatmul.mubr.bf16.vlgmr.msra.gmra.mrb[100].mxu0 %v12043_v50  ;;  %12525 = vmatmul.mubr.bf16.vlgmr.msra.gmra.mrb[100].mxu1 %v12043_v50 }
 0xb0c   :  { %14303 = vmatprep.mubr.msk.bf16.mxu0 %vm16783_vm1, %v18034_v1  ;;  %14323 = vmatprep.mubr.msk.bf16.mxu1 %vm16783_vm1, %v18034_v1 }
 0xb0d   :  { %14288 = vmatpush3.bf16.msra.mxu0 %v16020_v48  ;;  %14308 = vmatpush3.bf16.msra.mxu1 %v16021_v17  ;;  %v14251_v48 = vld [vmem:[%s17995_s10] ss:$0 sm:$0xff] }
 0xb0e   :  { %14289 = vmatprep.subr.bf16.mxu0 %v18034_v1  ;;  %14309 = vmatprep.subr.bf16.mxu1 %v18034_v1 }
 0xb11   :  { %14290 = vmatpush3.bf16.msra.mxu0 %v16022_v58  ;;  %14310 = vmatpush3.bf16.msra.mxu1 %v16023_v18 }
 0xb12   :  { %14291 = vmatprep.subr.bf16.mxu0 %v18034_v1  ;;  %14311 = vmatprep.subr.bf16.mxu1 %v18034_v1 }
 0xb15   :  { %14292 = vmatpush3.bf16.msra.mxu0 %v16024_v22  ;;  %14312 = vmatpush3.bf16.msra.mxu1 %v16025_v30 }
 0xb16   :  { %14293 = vmatprep.subr.bf16.mxu0 %v18034_v1  ;;  %14313 = vmatprep.subr.bf16.mxu1 %v18034_v1 }
 0xb19   :  { %14294 = vmatpush3.bf16.msra.mxu0 %v16026_v38  ;;  %14314 = vmatpush3.bf16.msra.mxu1 %v16027_v14 }
 0xb1a   :  { %14295 = vmatprep.subr.bf16.mxu0 %v18034_v1  ;;  %14315 = vmatprep.subr.bf16.mxu1 %v18034_v1 }
 0xb1d   :  { %14296 = vmatpush3.bf16.msra.mxu0 %v16028_v36  ;;  %14316 = vmatpush3.bf16.msra.mxu1 %v16029_v52 }
 0xb1e   :  { %14297 = vmatprep.subr.bf16.mxu0 %v18034_v1  ;;  %14317 = vmatprep.subr.bf16.mxu1 %v18034_v1 }
 0xb21   :  { %14298 = vmatpush3.bf16.msra.mxu0 %v16030_v25  ;;  %14318 = vmatpush3.bf16.msra.mxu1 %v16031_v26 }
 0xb22   :  { %14299 = vmatprep.subr.bf16.mxu0 %v18034_v1  ;;  %14319 = vmatprep.subr.bf16.mxu1 %v18034_v1 }
 0xb25   :  { %14300 = vmatpush3.bf16.msra.mxu0 %v16032_v41  ;;  %14320 = vmatpush3.bf16.msra.mxu1 %v16033_v8 }
 0xb26   :  { %14301 = vmatprep.subr.bf16.mxu0 %v18034_v1  ;;  %14321 = vmatprep.subr.bf16.mxu1 %v18034_v1 }
 0xb29   :  { %14302 = vmatpush3.bf16.msra.mxu0 %v16034_v45  ;;  %14322 = vmatpush3.bf16.msra.mxu1 %v16035_v28 }
 0xbde   :  { %v12485_v56 = vpop.f32.mrb[100].mxu0  ;;  %v12526_v59 = vpop.f32.mrb[100].mxu1 }
 0xbdf   :  { %v12486_v7 = vadd.f32 %v12485_v56, %v12114_v20  ;;  %v12487_v29 = vpop.f32.mrb[101].mxu0  ;;  %v12528_v49 = vpop.f32.mrb[101].mxu1  ;;  %v12527_v60 = vadd.f32 %v12526_v59, %v12122_v55 }
 0xbe0   :  { %v12488_v23 = vadd.f32 %v12487_v29, %v12118_v5  ;;  %v12489_v61 = vpop.f32.mrb[102].mxu0  ;;  %v12530_v62 = vpop.f32.mrb[102].mxu1  ;;  %v12529_v4 = vadd.f32 %v12528_v49, %v12126_v51 }
 0xbe1   :  { %v14246_v2 = vmul.f32 -1.442695, %v12486_v7  ;;  %v12490_v1 = vpop.f32.mrb[103].mxu0  ;;  %v12531_v54 = vpop.f32.mrb[103].mxu1 }
 0xbe2   :  { %v14247_v57 = vmul.f32 -1.442695, %v12488_v23  ;;  %v14248_v3 = vmul.f32 -1.442695, %v12529_v4 }
 0xbe3   :  { %16532 = vpow2.f32 %v14246_v2 }
 0xbe4   :  { %16534 = vpow2.f32 %v14247_v57 }
 0xbe5   :  { %16536 = vpow2.f32 %v14248_v3 }
 0xbe6   :  { %16538 = vtanh.f32 %v12527_v60 }
 0xbed   :  { %v16533_v9 = vpop.eup %16532 }
 0xbee   :  { %v16535_v42 = vpop.eup %16534  ;;  %v12536_v13 = vadd.f32 1.0, %v16533_v9 }
 0xbef   :  { %v12542_v15 = vadd.f32 1.0, %v16535_v42  ;;  %v16537_v16 = vpop.eup %16536 }
 0xbf0   :  { %16540 = vrcp.f32 %v12536_v13  ;;  %v16539_v0 = vpop.eup %16538  ;;  %v12549_v37 = vadd.f32 1.0, %v16537_v16 }
 0xbf1   :  { %16542 = vrcp.f32 %v12542_v15 }
 0xbf2   :  { %16544 = vrcp.f32 %v12549_v37 }
 0xbfa   :  { %v16541_v31 = vpop.eup %16540 }
 0xbfb   :  { %v16543_v21 = vpop.eup %16542  ;;  %v12553_v40 = vmul.f32 %v16541_v31, %v16539_v0 }
 0xbfc   :  { %v12552_v33 = vmul.f32 %v16543_v21, %v12042_v39  ;;  %v16545_v43 = vpop.eup %16544 }
 0xbfe   :  { %v12554_v35 = vadd.f32 %v12553_v40, %v12552_v33 }
 0xc00   :  { %16546 = vtanh.f32 %v12554_v35  ;;  %v12559_v6 = vsel %vm9867_vm0, %v12554_v35, %v12042_v39 }
 0xc01   :  { %12560 = vst [vmem:[#allocation9] sm:$0x3] %v12559_v6 }
 0xc0a   :  { %v16547_v12 = vpop.eup %16546 }
 0xc0b   :  { %v12556_v27 = vmul.f32 %v16547_v12, %v16545_v43 }
 0xc0d   :  { %v12557_v11 = vsel %vm9867_vm0, %v12556_v27, %v17932_v46  ;;  %v12561_v44 = vsel %vm9867_vm0, %v12556_v27, 0.0 }
 0xc0e   :  { %12558 = vst [vmem:[#allocation8] sm:$0x3] %v12557_v11  ;;  %v12569_v19 = vrot.slane %v12561_v44, %v17069_v34 }
 0xc10   :  { %v12570_v53 = vcombine.high %v12569_v19, %v12569_v19  ;;  %14249 = vst.sshfl [vmem:[#allocation3 + $0x7] sm:$0x1 pattern:$0x73625140] %v12569_v19 }
 0xc12   :  { %14250 = vst.sshfl [vmem:[#allocation3 + $0xf] sm:$0x1 pattern:$0x73625140] %v12570_v53 }
 0xc17   :  { %v12589_v32 = vld [vmem:[#allocation3] sm:$0xff] }
 0xc18   :  { %v12590_v10 = vpack.c.bf16 %v12589_v32, %v12589_v32 }
 0xc19   :  { %v12704_v63 = vld [vmem:[#allocation3 + $0x8] sm:$0xff] }
 0xc1a   :  { %14304 = vmatmul.mubr.bf16.vlgmr.msra.gmra.mrb[104].mxu0 %v12590_v10  ;;  %v12705_v50 = vpack.c.bf16 %v12704_v63, %v12704_v63 }
 0xc1c   :  { %14324 = vmatmul.mubr.bf16.vlgmr.msra.gmra.mrb[104].mxu1 %v12705_v50 }
 0xced   :  { %v12696_v46 = vpop.f32.mrb[104].mxu0 }
 0xcee   :  { %v12697_v24 = vadd.f32 %v14251_v48, %v12696_v46  ;;  %v14305_v17 = vpop.f32.mrb[105].mxu0 }
 0xcef   :  { %v12699_v58 = vpop.f32.mrb[106].mxu0  ;;  %v12811_v34 = vpop.f32.mrb[104].mxu1 }
 0xcf0   :  { %12702 = vst [vmem:[#allocation21] sm:$0xff] %v12697_v24  ;;  %v12812_v18 = vadd.f32 %v14251_v48, %v12811_v34  ;;  %v14306_v22 = vpop.f32.mrb[107].mxu0  ;;  %v14325_v30 = vpop.f32.mrb[105].mxu1 }
 0xcf1   :  { %v12814_v38 = vpop.f32.mrb[106].mxu1 }
 0xcf2   :  { %12818 = vst [vmem:[#allocation21 + $0x8] sm:$0xff] %v12812_v18  ;;  %v14326_v14 = vpop.f32.mrb[107].mxu1 }
 0xcf3   :  { %16747 = shalt.err (!%p16744_p10)
}
 0xcf4   :  { %s16748_s16 = scalar_lea.hbm %s17996_s11, 256 }
 0xcf5   :  { %p16749_p11 = scmp.ne.s32.totalorder %s17996_s11, %s16748_s16  ;;  %p16752_p12 = scmp.lt.u32.totalorder %s16748_s16, %s17996_s11 }
 0xcf7   :  { %p16754_p13 = pnand %p16752_p12, %p16749_p11 }
 0xcf9   :  { %16757 = shalt.err (!%p16754_p13)
}
 0xcfa   :  { %12830 = dma.vmem_to_hbm [thread:$0]  %s12825_s1, 256, %s17996_s11, [#allocation12], %s16773_s5, %s16773_s5, %s16774_s13  }
 0xcfb   :  { %16766 = dma.done.wait [#allocation12], 256  }
 0xcfc   :  { %16767 = vsyncadd [#allocation12], 4294967040 }
 0xcfd   :  { %12834 = vsyncpa [#allocation11], 1 }
 0xcfe   :  { %12835 = vsyncpa [#allocation14], 1 }
 0xcff   :  { %12836 = vsyncpa [#allocation17], 1 }
 0xd00   :  { %12837 = vsyncpa [#allocation20], 1 }
 0xd01   :  { %12838 = vsyncpa [#allocation12], 1 }

</bundles_post_ra>
